<compile_context>
chip_gen: v6e
topology: v6e:2x2x1
jax: 0.10.0
libtpu: 0.0.40
codegen_flags: <defaults>
</compile_context>

<pallas_src>
import functools

import jax
import jax.numpy as jnp
from jax.experimental import pallas as pl
from jax.experimental.pallas import tpu as pltpu


def _lstm_classifier_kernel(x_ref,      # (T, BT, E)   time-major embeddings
                            w0_ref,     # (E+H, 4H)    stacked [W_ih0 ; W_hh0]
                            b0_ref,     # (1, 4H)      b_ih0 + b_hh0
                            w1_ref,     # (2H, 4H)     stacked [W_ih1 ; W_hh1]
                            b1_ref,     # (1, 4H)      b_ih1 + b_hh1
                            wout_ref,   # (H, Cp)      zero-padded to Cp lanes
                            bout_ref,   # (1, Cp)
                            out_ref,    # (BT, Cp)     softmax probs (padded)
                            *, num_classes):
    T, BT, E = x_ref.shape
    H = w1_ref.shape[0] // 2
    Cp = out_ref.shape[-1]

    # Weights / biases loaded once; bias broadcast hoisted out of the time loop.
    w0 = w0_ref[...]
    w1 = w1_ref[...]
    b0 = jnp.broadcast_to(b0_ref[...], (BT, 4 * H))
    b1 = jnp.broadcast_to(b1_ref[...], (BT, 4 * H))

    def cell(xh, c, w, b):
        # One fused MXU matmul per cell; PyTorch gate order [i, f, g, o].
        gates = jnp.dot(xh, w, preferred_element_type=jnp.float32) + b
        i = jax.nn.sigmoid(gates[:, 0 * H:1 * H])
        f = jax.nn.sigmoid(gates[:, 1 * H:2 * H])
        g = jnp.tanh(gates[:, 2 * H:3 * H])
        o = jax.nn.sigmoid(gates[:, 3 * H:4 * H])
        c_new = f * c + i * g
        h_new = o * jnp.tanh(c_new)
        return h_new, c_new

    def step(t, carry):
        h0, c0, h1, c1 = carry
        x_t = x_ref[t]                                        # (BT, E)
        h0, c0 = cell(jnp.concatenate([x_t, h0], axis=-1), c0, w0, b0)
        h1, c1 = cell(jnp.concatenate([h0, h1], axis=-1), c1, w1, b1)
        return (h0, c0, h1, c1)

    z = jnp.zeros((BT, H), jnp.float32)
    _, _, h1, _ = jax.lax.fori_loop(0, T, step, (z, z, z, z), unroll=True)

    # Dropout with p=0 is the identity (matches F.dropout(..., p=0)).
    logits = (jnp.dot(h1, wout_ref[...], preferred_element_type=jnp.float32)
              + bout_ref[...])
    lane = jax.lax.broadcasted_iota(jnp.int32, (BT, Cp), 1)
    logits = jnp.where(lane < num_classes, logits, -1e30)    # mask padded classes
    out_ref[...] = jax.nn.softmax(logits, axis=-1)


def rnn_classifier_forward(X, kparams, *, num_classes=2):
    """X: (B, T) int32 token ids. Returns (B, num_classes) softmax probabilities."""
    emb_table = kparams["emb"]                                 # (V+1, E)
    B, T = X.shape
    E = emb_table.shape[1]
    H = kparams["b0"].shape[1] // 4
    Cp = kparams["wout"].shape[1]

    # Embedding gather (glue), then time-major (T, B, E).
    emb = jnp.take(emb_table, X, axis=0).astype(jnp.float32)   # (B, T, E)
    x_tbe = jnp.transpose(emb, (1, 0, 2))                      # (T, B, E)

    # Pad batch to a sublane multiple; tile batch so large batches shard across
    # TensorCores (v7x) via the "parallel" grid axis.
    Bp = max(8, ((B + 7) // 8) * 8)
    BT = min(128, Bp)
    num_tiles = pl.cdiv(Bp, BT)
    Bp = num_tiles * BT
    if Bp != B:
        x_tbe = jnp.pad(x_tbe, ((0, 0), (0, Bp - B), (0, 0)))

    full = lambda shape: pl.BlockSpec(shape, lambda b: tuple(0 for _ in shape))

    out = pl.pallas_call(
        functools.partial(_lstm_classifier_kernel, num_classes=num_classes),
        out_shape=jax.ShapeDtypeStruct((Bp, Cp), jnp.float32),
        grid_spec=pltpu.PrefetchScalarGridSpec(
            num_scalar_prefetch=0,
            grid=(num_tiles,),
            in_specs=[
                pl.BlockSpec((T, BT, E), lambda b: (0, b, 0)),  # full sequence in VMEM
                full((E + H, 4 * H)),   # w0 (stacked)
                full((1, 4 * H)),       # b0
                full((2 * H, 4 * H)),   # w1 (stacked)
                full((1, 4 * H)),       # b1
                full((H, Cp)),          # wout (lane padded)
                full((1, Cp)),          # bout (lane padded)
            ],
            out_specs=pl.BlockSpec((BT, Cp), lambda b: (b, 0)),
        ),
        compiler_params=pltpu.CompilerParams(
            dimension_semantics=("parallel",)),   # batch tiles are independent
    )(
        x_tbe,
        kparams["w0"], kparams["b0"],
        kparams["w1"], kparams["b1"],
        kparams["wout"], kparams["bout"],
    )
    return out[:B, :num_classes]


def make_params(key, vocab_size, embedding_dim, num_units,
                num_classes=2, padded_classes=128):
    """PyTorch-shaped weights (for reference) + pre-stacked kernel layout."""
    E, H, C, Cp = embedding_dim, num_units, num_classes, padded_classes
    ks = jax.random.split(key, 12)
    s = 1.0 / (H ** 0.5)
    u = lambda k, shape: jax.random.uniform(k, shape, jnp.float32, -s, s)

    # nn.Embedding(vocab_size + 1, E)
    emb = jax.random.normal(ks[0], (vocab_size + 1, E), jnp.float32)

    # nn.LSTM: W_ih_l0 (4H,E), W_hh_l0 (4H,H), biases (4H,); layer 1 same with E->H
    wih0, whh0 = u(ks[1], (4 * H, E)), u(ks[2], (4 * H, H))
    bih0, bhh0 = u(ks[3], (4 * H,)), u(ks[4], (4 * H,))
    wih1, whh1 = u(ks[5], (4 * H, H)), u(ks[6], (4 * H, H))
    bih1, bhh1 = u(ks[7], (4 * H,)), u(ks[8], (4 * H,))

    # nn.Linear(H, 2)
    wout, bout = u(ks[9], (C, H)), u(ks[10], (C,))

    raw = dict(emb=emb, wih0=wih0, whh0=whh0, bih0=bih0, bhh0=bhh0,
               wih1=wih1, whh1=whh1, bih1=bih1, bhh1=bhh1, wout=wout, bout=bout)

    kernel = dict(
        emb=emb,
        w0=jnp.concatenate([wih0.T, whh0.T], axis=0),               # (E+H, 4H)
        b0=(bih0 + bhh0).reshape(1, 4 * H),
        w1=jnp.concatenate([wih1.T, whh1.T], axis=0),               # (2H, 4H)
        b1=(bih1 + bhh1).reshape(1, 4 * H),
        wout=jnp.pad(wout.T, ((0, 0), (0, Cp - C))),                # (H, Cp)
        bout=jnp.pad(bout.reshape(1, C), ((0, 0), (0, Cp - C))),    # (1, Cp)
    )
    return raw, kernel


def _reference_forward(X, raw):
    """Pure-JAX reference mirroring the PyTorch module semantics."""
    emb = jnp.take(raw["emb"], X, axis=0).astype(jnp.float32)   # (B, T, E)
    B, T, _ = emb.shape
    H = raw["whh0"].shape[1]

    def cell(x, h, c, wih, whh, bih, bhh):
        gates = x @ wih.T + h @ whh.T + bih + bhh
        i = jax.nn.sigmoid(gates[:, 0 * H:1 * H])
        f = jax.nn.sigmoid(gates[:, 1 * H:2 * H])
        g = jnp.tanh(gates[:, 2 * H:3 * H])
        o = jax.nn.sigmoid(gates[:, 3 * H:4 * H])
        c = f * c + i * g
        h = o * jnp.tanh(c)
        return h, c

    h0 = c0 = h1 = c1 = jnp.zeros((B, H), jnp.float32)
    for t in range(T):
        h0, c0 = cell(emb[:, t, :], h0, c0,
                      raw["wih0"], raw["whh0"], raw["bih0"], raw["bhh0"])
        h1, c1 = cell(h0, h1, c1,
                      raw["wih1"], raw["whh1"], raw["bih1"], raw["bhh1"])
    logits = h1 @ raw["wout"].T + raw["bout"]
    return jax.nn.softmax(logits, axis=-1)


if __name__ == "__main__":
    # Module defaults: embedding_dim = num_units = 128 (lane-aligned), 2 layers.
    B, T = 2, 8
    vocab_size, embedding_dim, num_units = 50, 128, 128

    key = jax.random.PRNGKey(0)
    k_params, k_x = jax.random.split(key)
    raw, kparams = make_params(k_params, vocab_size, embedding_dim, num_units)
    X = jax.random.randint(k_x, (B, T), 0, vocab_size + 1, dtype=jnp.int32)

    out = jax.block_until_ready(rnn_classifier_forward(X, kparams))
    ref = _reference_forward(X, raw)

    assert out.shape == (B, 2)
    assert jnp.allclose(out, ref, atol=1e-4, rtol=1e-4), (out, ref)
    assert jnp.allclose(out.sum(axis=-1), 1.0, atol=1e-5)

    print("KERNEL_OK")
</pallas_src>

<mosaic_0001>
module attributes {stable_mosaic.version = 11 : i64} {
  func.func @_lstm_classifier_kernel(%arg0: i32, %arg1: memref<8x8x128xf32, #tpu.memory_space<vmem>>, %arg2: memref<256x512xf32, #tpu.memory_space<vmem>>, %arg3: memref<1x512xf32, #tpu.memory_space<vmem>>, %arg4: memref<256x512xf32, #tpu.memory_space<vmem>>, %arg5: memref<1x512xf32, #tpu.memory_space<vmem>>, %arg6: memref<128x128xf32, #tpu.memory_space<vmem>>, %arg7: memref<1x128xf32, #tpu.memory_space<vmem>>, %arg8: memref<8x128xf32, #tpu.memory_space<vmem>>) attributes {dimension_semantics = [#tpu.dimension_semantics<parallel>], iteration_bounds = array<i64: 1>, scalar_prefetch = 0 : i64, scratch_operands = 0 : i64, tpu.core_type = #tpu.core_type<tc>, window_params = [{transform_indices = @transform_0, window_bounds = array<i64: 8, 8, 128>}, {pipeline_mode = #tpu.pipeline_mode<synchronous>, transform_indices = @transform_1, window_bounds = array<i64: 256, 512>}, {pipeline_mode = #tpu.pipeline_mode<synchronous>, transform_indices = @transform_2, window_bounds = array<i64: 1, 512>}, {pipeline_mode = #tpu.pipeline_mode<synchronous>, transform_indices = @transform_3, window_bounds = array<i64: 256, 512>}, {pipeline_mode = #tpu.pipeline_mode<synchronous>, transform_indices = @transform_4, window_bounds = array<i64: 1, 512>}, {pipeline_mode = #tpu.pipeline_mode<synchronous>, transform_indices = @transform_5, window_bounds = array<i64: 128, 128>}, {pipeline_mode = #tpu.pipeline_mode<synchronous>, transform_indices = @transform_6, window_bounds = array<i64: 1, 128>}, {transform_indices = @transform_7, window_bounds = array<i64: 8, 128>}]} {
    %c0 = arith.constant 0 : index
    %c0_0 = arith.constant 0 : index
    %0 = vector.load %arg2[%c0, %c0_0] : memref<256x512xf32, #tpu.memory_space<vmem>>, vector<256x512xf32>
    %c0_1 = arith.constant 0 : index
    %c0_2 = arith.constant 0 : index
    %1 = vector.load %arg4[%c0_1, %c0_2] : memref<256x512xf32, #tpu.memory_space<vmem>>, vector<256x512xf32>
    %c0_3 = arith.constant 0 : index
    %c0_4 = arith.constant 0 : index
    %2 = vector.load %arg3[%c0_3, %c0_4] : memref<1x512xf32, #tpu.memory_space<vmem>>, vector<1x512xf32>
    %3 = vector.shape_cast %2 : vector<1x512xf32> to vector<1x512xf32>
    %4 = vector.broadcast %3 : vector<1x512xf32> to vector<8x512xf32>
    %c0_5 = arith.constant 0 : index
    %c0_6 = arith.constant 0 : index
    %5 = vector.load %arg5[%c0_5, %c0_6] : memref<1x512xf32, #tpu.memory_space<vmem>>, vector<1x512xf32>
    %6 = vector.shape_cast %5 : vector<1x512xf32> to vector<1x512xf32>
    %7 = vector.broadcast %6 : vector<1x512xf32> to vector<8x512xf32>
    %cst = arith.constant 0.000000e+00 : f32
    %8 = vector.broadcast %cst : f32 to vector<8x128xf32>
    %c0_i32 = arith.constant 0 : i32
    %9 = arith.index_cast %c0_i32 : i32 to index
    %c0_7 = arith.constant 0 : index
    %c0_8 = arith.constant 0 : index
    %10 = vector.load %arg1[%9, %c0_7, %c0_8] : memref<8x8x128xf32, #tpu.memory_space<vmem>>, vector<1x8x128xf32>
    %11 = vector.shape_cast %10 : vector<1x8x128xf32> to vector<8x128xf32>
    %12 = tpu.concatenate %11, %8 in 1 : vector<8x128xf32>, vector<8x128xf32> -> vector<8x256xf32>
    %cst_9 = arith.constant dense<0.000000e+00> : vector<8x512xf32>
    %13 = tpu.matmul %12, %0, %cst_9 {dimension_numbers = #tpu.dot_dimension_numbers<[1], [0], [0], [1], [0, 0, 1, 1], [], []>} : vector<8x256xf32>, vector<256x512xf32>, vector<8x512xf32> -> vector<8x512xf32>
    %14 = arith.addf %13, %4 : vector<8x512xf32>
    %15 = vector.extract_strided_slice %14 {offsets = [0, 0], sizes = [8, 128], strides = [1, 1]} : vector<8x512xf32> to vector<8x128xf32>
    %16 = arith.negf %15 : vector<8x128xf32>
    %17 = math.exp %16 : vector<8x128xf32>
    %cst_10 = arith.constant 1.000000e+00 : f32
    %18 = vector.broadcast %cst_10 : f32 to vector<8x128xf32>
    %19 = arith.addf %18, %17 : vector<8x128xf32>
    %20 = arith.divf %18, %19 : vector<8x128xf32>
    %21 = vector.extract_strided_slice %14 {offsets = [0, 128], sizes = [8, 128], strides = [1, 1]} : vector<8x512xf32> to vector<8x128xf32>
    %22 = arith.negf %21 : vector<8x128xf32>
    %23 = math.exp %22 : vector<8x128xf32>
    %cst_11 = arith.constant 1.000000e+00 : f32
    %24 = vector.broadcast %cst_11 : f32 to vector<8x128xf32>
    %25 = arith.addf %24, %23 : vector<8x128xf32>
    %26 = arith.divf %24, %25 : vector<8x128xf32>
    %27 = vector.extract_strided_slice %14 {offsets = [0, 256], sizes = [8, 128], strides = [1, 1]} : vector<8x512xf32> to vector<8x128xf32>
    %28 = math.tanh %27 : vector<8x128xf32>
    %29 = vector.extract_strided_slice %14 {offsets = [0, 384], sizes = [8, 128], strides = [1, 1]} : vector<8x512xf32> to vector<8x128xf32>
    %30 = arith.negf %29 : vector<8x128xf32>
    %31 = math.exp %30 : vector<8x128xf32>
    %cst_12 = arith.constant 1.000000e+00 : f32
    %32 = vector.broadcast %cst_12 : f32 to vector<8x128xf32>
    %33 = arith.addf %32, %31 : vector<8x128xf32>
    %34 = arith.divf %32, %33 : vector<8x128xf32>
    %35 = arith.mulf %26, %8 : vector<8x128xf32>
    %36 = arith.mulf %20, %28 : vector<8x128xf32>
    %37 = arith.addf %35, %36 : vector<8x128xf32>
    %38 = math.tanh %37 : vector<8x128xf32>
    %39 = arith.mulf %34, %38 : vector<8x128xf32>
    %40 = tpu.concatenate %39, %8 in 1 : vector<8x128xf32>, vector<8x128xf32> -> vector<8x256xf32>
    %cst_13 = arith.constant dense<0.000000e+00> : vector<8x512xf32>
    %41 = tpu.matmul %40, %1, %cst_13 {dimension_numbers = #tpu.dot_dimension_numbers<[1], [0], [0], [1], [0, 0, 1, 1], [], []>} : vector<8x256xf32>, vector<256x512xf32>, vector<8x512xf32> -> vector<8x512xf32>
    %42 = arith.addf %41, %7 : vector<8x512xf32>
    %43 = vector.extract_strided_slice %42 {offsets = [0, 0], sizes = [8, 128], strides = [1, 1]} : vector<8x512xf32> to vector<8x128xf32>
    %44 = arith.negf %43 : vector<8x128xf32>
    %45 = math.exp %44 : vector<8x128xf32>
    %cst_14 = arith.constant 1.000000e+00 : f32
    %46 = vector.broadcast %cst_14 : f32 to vector<8x128xf32>
    %47 = arith.addf %46, %45 : vector<8x128xf32>
    %48 = arith.divf %46, %47 : vector<8x128xf32>
    %49 = vector.extract_strided_slice %42 {offsets = [0, 128], sizes = [8, 128], strides = [1, 1]} : vector<8x512xf32> to vector<8x128xf32>
    %50 = arith.negf %49 : vector<8x128xf32>
    %51 = math.exp %50 : vector<8x128xf32>
    %cst_15 = arith.constant 1.000000e+00 : f32
    %52 = vector.broadcast %cst_15 : f32 to vector<8x128xf32>
    %53 = arith.addf %52, %51 : vector<8x128xf32>
    %54 = arith.divf %52, %53 : vector<8x128xf32>
    %55 = vector.extract_strided_slice %42 {offsets = [0, 256], sizes = [8, 128], strides = [1, 1]} : vector<8x512xf32> to vector<8x128xf32>
    %56 = math.tanh %55 : vector<8x128xf32>
    %57 = vector.extract_strided_slice %42 {offsets = [0, 384], sizes = [8, 128], strides = [1, 1]} : vector<8x512xf32> to vector<8x128xf32>
    %58 = arith.negf %57 : vector<8x128xf32>
    %59 = math.exp %58 : vector<8x128xf32>
    %cst_16 = arith.constant 1.000000e+00 : f32
    %60 = vector.broadcast %cst_16 : f32 to vector<8x128xf32>
    %61 = arith.addf %60, %59 : vector<8x128xf32>
    %62 = arith.divf %60, %61 : vector<8x128xf32>
    %63 = arith.mulf %54, %8 : vector<8x128xf32>
    %64 = arith.mulf %48, %56 : vector<8x128xf32>
    %65 = arith.addf %63, %64 : vector<8x128xf32>
    %66 = math.tanh %65 : vector<8x128xf32>
    %67 = arith.mulf %62, %66 : vector<8x128xf32>
    %c1_i32 = arith.constant 1 : i32
    %68 = arith.index_cast %c1_i32 : i32 to index
    %c0_17 = arith.constant 0 : index
    %c0_18 = arith.constant 0 : index
    %69 = vector.load %arg1[%68, %c0_17, %c0_18] : memref<8x8x128xf32, #tpu.memory_space<vmem>>, vector<1x8x128xf32>
    %70 = vector.shape_cast %69 : vector<1x8x128xf32> to vector<8x128xf32>
    %71 = tpu.concatenate %70, %39 in 1 : vector<8x128xf32>, vector<8x128xf32> -> vector<8x256xf32>
    %cst_19 = arith.constant dense<0.000000e+00> : vector<8x512xf32>
    %72 = tpu.matmul %71, %0, %cst_19 {dimension_numbers = #tpu.dot_dimension_numbers<[1], [0], [0], [1], [0, 0, 1, 1], [], []>} : vector<8x256xf32>, vector<256x512xf32>, vector<8x512xf32> -> vector<8x512xf32>
    %73 = arith.addf %72, %4 : vector<8x512xf32>
    %74 = vector.extract_strided_slice %73 {offsets = [0, 0], sizes = [8, 128], strides = [1, 1]} : vector<8x512xf32> to vector<8x128xf32>
    %75 = arith.negf %74 : vector<8x128xf32>
    %76 = math.exp %75 : vector<8x128xf32>
    %cst_20 = arith.constant 1.000000e+00 : f32
    %77 = vector.broadcast %cst_20 : f32 to vector<8x128xf32>
    %78 = arith.addf %77, %76 : vector<8x128xf32>
    %79 = arith.divf %77, %78 : vector<8x128xf32>
    %80 = vector.extract_strided_slice %73 {offsets = [0, 128], sizes = [8, 128], strides = [1, 1]} : vector<8x512xf32> to vector<8x128xf32>
    %81 = arith.negf %80 : vector<8x128xf32>
    %82 = math.exp %81 : vector<8x128xf32>
    %cst_21 = arith.constant 1.000000e+00 : f32
    %83 = vector.broadcast %cst_21 : f32 to vector<8x128xf32>
    %84 = arith.addf %83, %82 : vector<8x128xf32>
    %85 = arith.divf %83, %84 : vector<8x128xf32>
    %86 = vector.extract_strided_slice %73 {offsets = [0, 256], sizes = [8, 128], strides = [1, 1]} : vector<8x512xf32> to vector<8x128xf32>
    %87 = math.tanh %86 : vector<8x128xf32>
    %88 = vector.extract_strided_slice %73 {offsets = [0, 384], sizes = [8, 128], strides = [1, 1]} : vector<8x512xf32> to vector<8x128xf32>
    %89 = arith.negf %88 : vector<8x128xf32>
    %90 = math.exp %89 : vector<8x128xf32>
    %cst_22 = arith.constant 1.000000e+00 : f32
    %91 = vector.broadcast %cst_22 : f32 to vector<8x128xf32>
    %92 = arith.addf %91, %90 : vector<8x128xf32>
    %93 = arith.divf %91, %92 : vector<8x128xf32>
    %94 = arith.mulf %85, %37 : vector<8x128xf32>
    %95 = arith.mulf %79, %87 : vector<8x128xf32>
    %96 = arith.addf %94, %95 : vector<8x128xf32>
    %97 = math.tanh %96 : vector<8x128xf32>
    %98 = arith.mulf %93, %97 : vector<8x128xf32>
    %99 = tpu.concatenate %98, %67 in 1 : vector<8x128xf32>, vector<8x128xf32> -> vector<8x256xf32>
    %cst_23 = arith.constant dense<0.000000e+00> : vector<8x512xf32>
    %100 = tpu.matmul %99, %1, %cst_23 {dimension_numbers = #tpu.dot_dimension_numbers<[1], [0], [0], [1], [0, 0, 1, 1], [], []>} : vector<8x256xf32>, vector<256x512xf32>, vector<8x512xf32> -> vector<8x512xf32>
    %101 = arith.addf %100, %7 : vector<8x512xf32>
    %102 = vector.extract_strided_slice %101 {offsets = [0, 0], sizes = [8, 128], strides = [1, 1]} : vector<8x512xf32> to vector<8x128xf32>
    %103 = arith.negf %102 : vector<8x128xf32>
    %104 = math.exp %103 : vector<8x128xf32>
    %cst_24 = arith.constant 1.000000e+00 : f32
    %105 = vector.broadcast %cst_24 : f32 to vector<8x128xf32>
    %106 = arith.addf %105, %104 : vector<8x128xf32>
    %107 = arith.divf %105, %106 : vector<8x128xf32>
    %108 = vector.extract_strided_slice %101 {offsets = [0, 128], sizes = [8, 128], strides = [1, 1]} : vector<8x512xf32> to vector<8x128xf32>
    %109 = arith.negf %108 : vector<8x128xf32>
    %110 = math.exp %109 : vector<8x128xf32>
    %cst_25 = arith.constant 1.000000e+00 : f32
    %111 = vector.broadcast %cst_25 : f32 to vector<8x128xf32>
    %112 = arith.addf %111, %110 : vector<8x128xf32>
    %113 = arith.divf %111, %112 : vector<8x128xf32>
    %114 = vector.extract_strided_slice %101 {offsets = [0, 256], sizes = [8, 128], strides = [1, 1]} : vector<8x512xf32> to vector<8x128xf32>
    %115 = math.tanh %114 : vector<8x128xf32>
    %116 = vector.extract_strided_slice %101 {offsets = [0, 384], sizes = [8, 128], strides = [1, 1]} : vector<8x512xf32> to vector<8x128xf32>
    %117 = arith.negf %116 : vector<8x128xf32>
    %118 = math.exp %117 : vector<8x128xf32>
    %cst_26 = arith.constant 1.000000e+00 : f32
    %119 = vector.broadcast %cst_26 : f32 to vector<8x128xf32>
    %120 = arith.addf %119, %118 : vector<8x128xf32>
    %121 = arith.divf %119, %120 : vector<8x128xf32>
    %122 = arith.mulf %113, %65 : vector<8x128xf32>
    %123 = arith.mulf %107, %115 : vector<8x128xf32>
    %124 = arith.addf %122, %123 : vector<8x128xf32>
    %125 = math.tanh %124 : vector<8x128xf32>
    %126 = arith.mulf %121, %125 : vector<8x128xf32>
    %c2_i32 = arith.constant 2 : i32
    %127 = arith.index_cast %c2_i32 : i32 to index
    %c0_27 = arith.constant 0 : index
    %c0_28 = arith.constant 0 : index
    %128 = vector.load %arg1[%127, %c0_27, %c0_28] : memref<8x8x128xf32, #tpu.memory_space<vmem>>, vector<1x8x128xf32>
    %129 = vector.shape_cast %128 : vector<1x8x128xf32> to vector<8x128xf32>
    %130 = tpu.concatenate %129, %98 in 1 : vector<8x128xf32>, vector<8x128xf32> -> vector<8x256xf32>
    %cst_29 = arith.constant dense<0.000000e+00> : vector<8x512xf32>
    %131 = tpu.matmul %130, %0, %cst_29 {dimension_numbers = #tpu.dot_dimension_numbers<[1], [0], [0], [1], [0, 0, 1, 1], [], []>} : vector<8x256xf32>, vector<256x512xf32>, vector<8x512xf32> -> vector<8x512xf32>
    %132 = arith.addf %131, %4 : vector<8x512xf32>
    %133 = vector.extract_strided_slice %132 {offsets = [0, 0], sizes = [8, 128], strides = [1, 1]} : vector<8x512xf32> to vector<8x128xf32>
    %134 = arith.negf %133 : vector<8x128xf32>
    %135 = math.exp %134 : vector<8x128xf32>
    %cst_30 = arith.constant 1.000000e+00 : f32
    %136 = vector.broadcast %cst_30 : f32 to vector<8x128xf32>
    %137 = arith.addf %136, %135 : vector<8x128xf32>
    %138 = arith.divf %136, %137 : vector<8x128xf32>
    %139 = vector.extract_strided_slice %132 {offsets = [0, 128], sizes = [8, 128], strides = [1, 1]} : vector<8x512xf32> to vector<8x128xf32>
    %140 = arith.negf %139 : vector<8x128xf32>
    %141 = math.exp %140 : vector<8x128xf32>
    %cst_31 = arith.constant 1.000000e+00 : f32
    %142 = vector.broadcast %cst_31 : f32 to vector<8x128xf32>
    %143 = arith.addf %142, %141 : vector<8x128xf32>
    %144 = arith.divf %142, %143 : vector<8x128xf32>
    %145 = vector.extract_strided_slice %132 {offsets = [0, 256], sizes = [8, 128], strides = [1, 1]} : vector<8x512xf32> to vector<8x128xf32>
    %146 = math.tanh %145 : vector<8x128xf32>
    %147 = vector.extract_strided_slice %132 {offsets = [0, 384], sizes = [8, 128], strides = [1, 1]} : vector<8x512xf32> to vector<8x128xf32>
    %148 = arith.negf %147 : vector<8x128xf32>
    %149 = math.exp %148 : vector<8x128xf32>
    %cst_32 = arith.constant 1.000000e+00 : f32
    %150 = vector.broadcast %cst_32 : f32 to vector<8x128xf32>
    %151 = arith.addf %150, %149 : vector<8x128xf32>
    %152 = arith.divf %150, %151 : vector<8x128xf32>
    %153 = arith.mulf %144, %96 : vector<8x128xf32>
    %154 = arith.mulf %138, %146 : vector<8x128xf32>
    %155 = arith.addf %153, %154 : vector<8x128xf32>
    %156 = math.tanh %155 : vector<8x128xf32>
    %157 = arith.mulf %152, %156 : vector<8x128xf32>
    %158 = tpu.concatenate %157, %126 in 1 : vector<8x128xf32>, vector<8x128xf32> -> vector<8x256xf32>
    %cst_33 = arith.constant dense<0.000000e+00> : vector<8x512xf32>
    %159 = tpu.matmul %158, %1, %cst_33 {dimension_numbers = #tpu.dot_dimension_numbers<[1], [0], [0], [1], [0, 0, 1, 1], [], []>} : vector<8x256xf32>, vector<256x512xf32>, vector<8x512xf32> -> vector<8x512xf32>
    %160 = arith.addf %159, %7 : vector<8x512xf32>
    %161 = vector.extract_strided_slice %160 {offsets = [0, 0], sizes = [8, 128], strides = [1, 1]} : vector<8x512xf32> to vector<8x128xf32>
    %162 = arith.negf %161 : vector<8x128xf32>
    %163 = math.exp %162 : vector<8x128xf32>
    %cst_34 = arith.constant 1.000000e+00 : f32
    %164 = vector.broadcast %cst_34 : f32 to vector<8x128xf32>
    %165 = arith.addf %164, %163 : vector<8x128xf32>
    %166 = arith.divf %164, %165 : vector<8x128xf32>
    %167 = vector.extract_strided_slice %160 {offsets = [0, 128], sizes = [8, 128], strides = [1, 1]} : vector<8x512xf32> to vector<8x128xf32>
    %168 = arith.negf %167 : vector<8x128xf32>
    %169 = math.exp %168 : vector<8x128xf32>
    %cst_35 = arith.constant 1.000000e+00 : f32
    %170 = vector.broadcast %cst_35 : f32 to vector<8x128xf32>
    %171 = arith.addf %170, %169 : vector<8x128xf32>
    %172 = arith.divf %170, %171 : vector<8x128xf32>
    %173 = vector.extract_strided_slice %160 {offsets = [0, 256], sizes = [8, 128], strides = [1, 1]} : vector<8x512xf32> to vector<8x128xf32>
    %174 = math.tanh %173 : vector<8x128xf32>
    %175 = vector.extract_strided_slice %160 {offsets = [0, 384], sizes = [8, 128], strides = [1, 1]} : vector<8x512xf32> to vector<8x128xf32>
    %176 = arith.negf %175 : vector<8x128xf32>
    %177 = math.exp %176 : vector<8x128xf32>
    %cst_36 = arith.constant 1.000000e+00 : f32
    %178 = vector.broadcast %cst_36 : f32 to vector<8x128xf32>
    %179 = arith.addf %178, %177 : vector<8x128xf32>
    %180 = arith.divf %178, %179 : vector<8x128xf32>
    %181 = arith.mulf %172, %124 : vector<8x128xf32>
    %182 = arith.mulf %166, %174 : vector<8x128xf32>
    %183 = arith.addf %181, %182 : vector<8x128xf32>
    %184 = math.tanh %183 : vector<8x128xf32>
    %185 = arith.mulf %180, %184 : vector<8x128xf32>
    %c3_i32 = arith.constant 3 : i32
    %186 = arith.index_cast %c3_i32 : i32 to index
    %c0_37 = arith.constant 0 : index
    %c0_38 = arith.constant 0 : index
    %187 = vector.load %arg1[%186, %c0_37, %c0_38] : memref<8x8x128xf32, #tpu.memory_space<vmem>>, vector<1x8x128xf32>
    %188 = vector.shape_cast %187 : vector<1x8x128xf32> to vector<8x128xf32>
    %189 = tpu.concatenate %188, %157 in 1 : vector<8x128xf32>, vector<8x128xf32> -> vector<8x256xf32>
    %cst_39 = arith.constant dense<0.000000e+00> : vector<8x512xf32>
    %190 = tpu.matmul %189, %0, %cst_39 {dimension_numbers = #tpu.dot_dimension_numbers<[1], [0], [0], [1], [0, 0, 1, 1], [], []>} : vector<8x256xf32>, vector<256x512xf32>, vector<8x512xf32> -> vector<8x512xf32>
    %191 = arith.addf %190, %4 : vector<8x512xf32>
    %192 = vector.extract_strided_slice %191 {offsets = [0, 0], sizes = [8, 128], strides = [1, 1]} : vector<8x512xf32> to vector<8x128xf32>
    %193 = arith.negf %192 : vector<8x128xf32>
    %194 = math.exp %193 : vector<8x128xf32>
    %cst_40 = arith.constant 1.000000e+00 : f32
    %195 = vector.broadcast %cst_40 : f32 to vector<8x128xf32>
    %196 = arith.addf %195, %194 : vector<8x128xf32>
    %197 = arith.divf %195, %196 : vector<8x128xf32>
    %198 = vector.extract_strided_slice %191 {offsets = [0, 128], sizes = [8, 128], strides = [1, 1]} : vector<8x512xf32> to vector<8x128xf32>
    %199 = arith.negf %198 : vector<8x128xf32>
    %200 = math.exp %199 : vector<8x128xf32>
    %cst_41 = arith.constant 1.000000e+00 : f32
    %201 = vector.broadcast %cst_41 : f32 to vector<8x128xf32>
    %202 = arith.addf %201, %200 : vector<8x128xf32>
    %203 = arith.divf %201, %202 : vector<8x128xf32>
    %204 = vector.extract_strided_slice %191 {offsets = [0, 256], sizes = [8, 128], strides = [1, 1]} : vector<8x512xf32> to vector<8x128xf32>
    %205 = math.tanh %204 : vector<8x128xf32>
    %206 = vector.extract_strided_slice %191 {offsets = [0, 384], sizes = [8, 128], strides = [1, 1]} : vector<8x512xf32> to vector<8x128xf32>
    %207 = arith.negf %206 : vector<8x128xf32>
    %208 = math.exp %207 : vector<8x128xf32>
    %cst_42 = arith.constant 1.000000e+00 : f32
    %209 = vector.broadcast %cst_42 : f32 to vector<8x128xf32>
    %210 = arith.addf %209, %208 : vector<8x128xf32>
    %211 = arith.divf %209, %210 : vector<8x128xf32>
    %212 = arith.mulf %203, %155 : vector<8x128xf32>
    %213 = arith.mulf %197, %205 : vector<8x128xf32>
    %214 = arith.addf %212, %213 : vector<8x128xf32>
    %215 = math.tanh %214 : vector<8x128xf32>
    %216 = arith.mulf %211, %215 : vector<8x128xf32>
    %217 = tpu.concatenate %216, %185 in 1 : vector<8x128xf32>, vector<8x128xf32> -> vector<8x256xf32>
    %cst_43 = arith.constant dense<0.000000e+00> : vector<8x512xf32>
    %218 = tpu.matmul %217, %1, %cst_43 {dimension_numbers = #tpu.dot_dimension_numbers<[1], [0], [0], [1], [0, 0, 1, 1], [], []>} : vector<8x256xf32>, vector<256x512xf32>, vector<8x512xf32> -> vector<8x512xf32>
    %219 = arith.addf %218, %7 : vector<8x512xf32>
    %220 = vector.extract_strided_slice %219 {offsets = [0, 0], sizes = [8, 128], strides = [1, 1]} : vector<8x512xf32> to vector<8x128xf32>
    %221 = arith.negf %220 : vector<8x128xf32>
    %222 = math.exp %221 : vector<8x128xf32>
    %cst_44 = arith.constant 1.000000e+00 : f32
    %223 = vector.broadcast %cst_44 : f32 to vector<8x128xf32>
    %224 = arith.addf %223, %222 : vector<8x128xf32>
    %225 = arith.divf %223, %224 : vector<8x128xf32>
    %226 = vector.extract_strided_slice %219 {offsets = [0, 128], sizes = [8, 128], strides = [1, 1]} : vector<8x512xf32> to vector<8x128xf32>
    %227 = arith.negf %226 : vector<8x128xf32>
    %228 = math.exp %227 : vector<8x128xf32>
    %cst_45 = arith.constant 1.000000e+00 : f32
    %229 = vector.broadcast %cst_45 : f32 to vector<8x128xf32>
    %230 = arith.addf %229, %228 : vector<8x128xf32>
    %231 = arith.divf %229, %230 : vector<8x128xf32>
    %232 = vector.extract_strided_slice %219 {offsets = [0, 256], sizes = [8, 128], strides = [1, 1]} : vector<8x512xf32> to vector<8x128xf32>
    %233 = math.tanh %232 : vector<8x128xf32>
    %234 = vector.extract_strided_slice %219 {offsets = [0, 384], sizes = [8, 128], strides = [1, 1]} : vector<8x512xf32> to vector<8x128xf32>
    %235 = arith.negf %234 : vector<8x128xf32>
    %236 = math.exp %235 : vector<8x128xf32>
    %cst_46 = arith.constant 1.000000e+00 : f32
    %237 = vector.broadcast %cst_46 : f32 to vector<8x128xf32>
    %238 = arith.addf %237, %236 : vector<8x128xf32>
    %239 = arith.divf %237, %238 : vector<8x128xf32>
    %240 = arith.mulf %231, %183 : vector<8x128xf32>
    %241 = arith.mulf %225, %233 : vector<8x128xf32>
    %242 = arith.addf %240, %241 : vector<8x128xf32>
    %243 = math.tanh %242 : vector<8x128xf32>
    %244 = arith.mulf %239, %243 : vector<8x128xf32>
    %c4_i32 = arith.constant 4 : i32
    %245 = arith.index_cast %c4_i32 : i32 to index
    %c0_47 = arith.constant 0 : index
    %c0_48 = arith.constant 0 : index
    %246 = vector.load %arg1[%245, %c0_47, %c0_48] : memref<8x8x128xf32, #tpu.memory_space<vmem>>, vector<1x8x128xf32>
    %247 = vector.shape_cast %246 : vector<1x8x128xf32> to vector<8x128xf32>
    %248 = tpu.concatenate %247, %216 in 1 : vector<8x128xf32>, vector<8x128xf32> -> vector<8x256xf32>
    %cst_49 = arith.constant dense<0.000000e+00> : vector<8x512xf32>
    %249 = tpu.matmul %248, %0, %cst_49 {dimension_numbers = #tpu.dot_dimension_numbers<[1], [0], [0], [1], [0, 0, 1, 1], [], []>} : vector<8x256xf32>, vector<256x512xf32>, vector<8x512xf32> -> vector<8x512xf32>
    %250 = arith.addf %249, %4 : vector<8x512xf32>
    %251 = vector.extract_strided_slice %250 {offsets = [0, 0], sizes = [8, 128], strides = [1, 1]} : vector<8x512xf32> to vector<8x128xf32>
    %252 = arith.negf %251 : vector<8x128xf32>
    %253 = math.exp %252 : vector<8x128xf32>
    %cst_50 = arith.constant 1.000000e+00 : f32
    %254 = vector.broadcast %cst_50 : f32 to vector<8x128xf32>
    %255 = arith.addf %254, %253 : vector<8x128xf32>
    %256 = arith.divf %254, %255 : vector<8x128xf32>
    %257 = vector.extract_strided_slice %250 {offsets = [0, 128], sizes = [8, 128], strides = [1, 1]} : vector<8x512xf32> to vector<8x128xf32>
    %258 = arith.negf %257 : vector<8x128xf32>
    %259 = math.exp %258 : vector<8x128xf32>
    %cst_51 = arith.constant 1.000000e+00 : f32
    %260 = vector.broadcast %cst_51 : f32 to vector<8x128xf32>
    %261 = arith.addf %260, %259 : vector<8x128xf32>
    %262 = arith.divf %260, %261 : vector<8x128xf32>
    %263 = vector.extract_strided_slice %250 {offsets = [0, 256], sizes = [8, 128], strides = [1, 1]} : vector<8x512xf32> to vector<8x128xf32>
    %264 = math.tanh %263 : vector<8x128xf32>
    %265 = vector.extract_strided_slice %250 {offsets = [0, 384], sizes = [8, 128], strides = [1, 1]} : vector<8x512xf32> to vector<8x128xf32>
    %266 = arith.negf %265 : vector<8x128xf32>
    %267 = math.exp %266 : vector<8x128xf32>
    %cst_52 = arith.constant 1.000000e+00 : f32
    %268 = vector.broadcast %cst_52 : f32 to vector<8x128xf32>
    %269 = arith.addf %268, %267 : vector<8x128xf32>
    %270 = arith.divf %268, %269 : vector<8x128xf32>
    %271 = arith.mulf %262, %214 : vector<8x128xf32>
    %272 = arith.mulf %256, %264 : vector<8x128xf32>
    %273 = arith.addf %271, %272 : vector<8x128xf32>
    %274 = math.tanh %273 : vector<8x128xf32>
    %275 = arith.mulf %270, %274 : vector<8x128xf32>
    %276 = tpu.concatenate %275, %244 in 1 : vector<8x128xf32>, vector<8x128xf32> -> vector<8x256xf32>
    %cst_53 = arith.constant dense<0.000000e+00> : vector<8x512xf32>
    %277 = tpu.matmul %276, %1, %cst_53 {dimension_numbers = #tpu.dot_dimension_numbers<[1], [0], [0], [1], [0, 0, 1, 1], [], []>} : vector<8x256xf32>, vector<256x512xf32>, vector<8x512xf32> -> vector<8x512xf32>
    %278 = arith.addf %277, %7 : vector<8x512xf32>
    %279 = vector.extract_strided_slice %278 {offsets = [0, 0], sizes = [8, 128], strides = [1, 1]} : vector<8x512xf32> to vector<8x128xf32>
    %280 = arith.negf %279 : vector<8x128xf32>
    %281 = math.exp %280 : vector<8x128xf32>
    %cst_54 = arith.constant 1.000000e+00 : f32
    %282 = vector.broadcast %cst_54 : f32 to vector<8x128xf32>
    %283 = arith.addf %282, %281 : vector<8x128xf32>
    %284 = arith.divf %282, %283 : vector<8x128xf32>
    %285 = vector.extract_strided_slice %278 {offsets = [0, 128], sizes = [8, 128], strides = [1, 1]} : vector<8x512xf32> to vector<8x128xf32>
    %286 = arith.negf %285 : vector<8x128xf32>
    %287 = math.exp %286 : vector<8x128xf32>
    %cst_55 = arith.constant 1.000000e+00 : f32
    %288 = vector.broadcast %cst_55 : f32 to vector<8x128xf32>
    %289 = arith.addf %288, %287 : vector<8x128xf32>
    %290 = arith.divf %288, %289 : vector<8x128xf32>
    %291 = vector.extract_strided_slice %278 {offsets = [0, 256], sizes = [8, 128], strides = [1, 1]} : vector<8x512xf32> to vector<8x128xf32>
    %292 = math.tanh %291 : vector<8x128xf32>
    %293 = vector.extract_strided_slice %278 {offsets = [0, 384], sizes = [8, 128], strides = [1, 1]} : vector<8x512xf32> to vector<8x128xf32>
    %294 = arith.negf %293 : vector<8x128xf32>
    %295 = math.exp %294 : vector<8x128xf32>
    %cst_56 = arith.constant 1.000000e+00 : f32
    %296 = vector.broadcast %cst_56 : f32 to vector<8x128xf32>
    %297 = arith.addf %296, %295 : vector<8x128xf32>
    %298 = arith.divf %296, %297 : vector<8x128xf32>
    %299 = arith.mulf %290, %242 : vector<8x128xf32>
    %300 = arith.mulf %284, %292 : vector<8x128xf32>
    %301 = arith.addf %299, %300 : vector<8x128xf32>
    %302 = math.tanh %301 : vector<8x128xf32>
    %303 = arith.mulf %298, %302 : vector<8x128xf32>
    %c5_i32 = arith.constant 5 : i32
    %304 = arith.index_cast %c5_i32 : i32 to index
    %c0_57 = arith.constant 0 : index
    %c0_58 = arith.constant 0 : index
    %305 = vector.load %arg1[%304, %c0_57, %c0_58] : memref<8x8x128xf32, #tpu.memory_space<vmem>>, vector<1x8x128xf32>
    %306 = vector.shape_cast %305 : vector<1x8x128xf32> to vector<8x128xf32>
    %307 = tpu.concatenate %306, %275 in 1 : vector<8x128xf32>, vector<8x128xf32> -> vector<8x256xf32>
    %cst_59 = arith.constant dense<0.000000e+00> : vector<8x512xf32>
    %308 = tpu.matmul %307, %0, %cst_59 {dimension_numbers = #tpu.dot_dimension_numbers<[1], [0], [0], [1], [0, 0, 1, 1], [], []>} : vector<8x256xf32>, vector<256x512xf32>, vector<8x512xf32> -> vector<8x512xf32>
    %309 = arith.addf %308, %4 : vector<8x512xf32>
    %310 = vector.extract_strided_slice %309 {offsets = [0, 0], sizes = [8, 128], strides = [1, 1]} : vector<8x512xf32> to vector<8x128xf32>
    %311 = arith.negf %310 : vector<8x128xf32>
    %312 = math.exp %311 : vector<8x128xf32>
    %cst_60 = arith.constant 1.000000e+00 : f32
    %313 = vector.broadcast %cst_60 : f32 to vector<8x128xf32>
    %314 = arith.addf %313, %312 : vector<8x128xf32>
    %315 = arith.divf %313, %314 : vector<8x128xf32>
    %316 = vector.extract_strided_slice %309 {offsets = [0, 128], sizes = [8, 128], strides = [1, 1]} : vector<8x512xf32> to vector<8x128xf32>
    %317 = arith.negf %316 : vector<8x128xf32>
    %318 = math.exp %317 : vector<8x128xf32>
    %cst_61 = arith.constant 1.000000e+00 : f32
    %319 = vector.broadcast %cst_61 : f32 to vector<8x128xf32>
    %320 = arith.addf %319, %318 : vector<8x128xf32>
    %321 = arith.divf %319, %320 : vector<8x128xf32>
    %322 = vector.extract_strided_slice %309 {offsets = [0, 256], sizes = [8, 128], strides = [1, 1]} : vector<8x512xf32> to vector<8x128xf32>
    %323 = math.tanh %322 : vector<8x128xf32>
    %324 = vector.extract_strided_slice %309 {offsets = [0, 384], sizes = [8, 128], strides = [1, 1]} : vector<8x512xf32> to vector<8x128xf32>
    %325 = arith.negf %324 : vector<8x128xf32>
    %326 = math.exp %325 : vector<8x128xf32>
    %cst_62 = arith.constant 1.000000e+00 : f32
    %327 = vector.broadcast %cst_62 : f32 to vector<8x128xf32>
    %328 = arith.addf %327, %326 : vector<8x128xf32>
    %329 = arith.divf %327, %328 : vector<8x128xf32>
    %330 = arith.mulf %321, %273 : vector<8x128xf32>
    %331 = arith.mulf %315, %323 : vector<8x128xf32>
    %332 = arith.addf %330, %331 : vector<8x128xf32>
    %333 = math.tanh %332 : vector<8x128xf32>
    %334 = arith.mulf %329, %333 : vector<8x128xf32>
    %335 = tpu.concatenate %334, %303 in 1 : vector<8x128xf32>, vector<8x128xf32> -> vector<8x256xf32>
    %cst_63 = arith.constant dense<0.000000e+00> : vector<8x512xf32>
    %336 = tpu.matmul %335, %1, %cst_63 {dimension_numbers = #tpu.dot_dimension_numbers<[1], [0], [0], [1], [0, 0, 1, 1], [], []>} : vector<8x256xf32>, vector<256x512xf32>, vector<8x512xf32> -> vector<8x512xf32>
    %337 = arith.addf %336, %7 : vector<8x512xf32>
    %338 = vector.extract_strided_slice %337 {offsets = [0, 0], sizes = [8, 128], strides = [1, 1]} : vector<8x512xf32> to vector<8x128xf32>
    %339 = arith.negf %338 : vector<8x128xf32>
    %340 = math.exp %339 : vector<8x128xf32>
    %cst_64 = arith.constant 1.000000e+00 : f32
    %341 = vector.broadcast %cst_64 : f32 to vector<8x128xf32>
    %342 = arith.addf %341, %340 : vector<8x128xf32>
    %343 = arith.divf %341, %342 : vector<8x128xf32>
    %344 = vector.extract_strided_slice %337 {offsets = [0, 128], sizes = [8, 128], strides = [1, 1]} : vector<8x512xf32> to vector<8x128xf32>
    %345 = arith.negf %344 : vector<8x128xf32>
    %346 = math.exp %345 : vector<8x128xf32>
    %cst_65 = arith.constant 1.000000e+00 : f32
    %347 = vector.broadcast %cst_65 : f32 to vector<8x128xf32>
    %348 = arith.addf %347, %346 : vector<8x128xf32>
    %349 = arith.divf %347, %348 : vector<8x128xf32>
    %350 = vector.extract_strided_slice %337 {offsets = [0, 256], sizes = [8, 128], strides = [1, 1]} : vector<8x512xf32> to vector<8x128xf32>
    %351 = math.tanh %350 : vector<8x128xf32>
    %352 = vector.extract_strided_slice %337 {offsets = [0, 384], sizes = [8, 128], strides = [1, 1]} : vector<8x512xf32> to vector<8x128xf32>
    %353 = arith.negf %352 : vector<8x128xf32>
    %354 = math.exp %353 : vector<8x128xf32>
    %cst_66 = arith.constant 1.000000e+00 : f32
    %355 = vector.broadcast %cst_66 : f32 to vector<8x128xf32>
    %356 = arith.addf %355, %354 : vector<8x128xf32>
    %357 = arith.divf %355, %356 : vector<8x128xf32>
    %358 = arith.mulf %349, %301 : vector<8x128xf32>
    %359 = arith.mulf %343, %351 : vector<8x128xf32>
    %360 = arith.addf %358, %359 : vector<8x128xf32>
    %361 = math.tanh %360 : vector<8x128xf32>
    %362 = arith.mulf %357, %361 : vector<8x128xf32>
    %c6_i32 = arith.constant 6 : i32
    %363 = arith.index_cast %c6_i32 : i32 to index
    %c0_67 = arith.constant 0 : index
    %c0_68 = arith.constant 0 : index
    %364 = vector.load %arg1[%363, %c0_67, %c0_68] : memref<8x8x128xf32, #tpu.memory_space<vmem>>, vector<1x8x128xf32>
    %365 = vector.shape_cast %364 : vector<1x8x128xf32> to vector<8x128xf32>
    %366 = tpu.concatenate %365, %334 in 1 : vector<8x128xf32>, vector<8x128xf32> -> vector<8x256xf32>
    %cst_69 = arith.constant dense<0.000000e+00> : vector<8x512xf32>
    %367 = tpu.matmul %366, %0, %cst_69 {dimension_numbers = #tpu.dot_dimension_numbers<[1], [0], [0], [1], [0, 0, 1, 1], [], []>} : vector<8x256xf32>, vector<256x512xf32>, vector<8x512xf32> -> vector<8x512xf32>
    %368 = arith.addf %367, %4 : vector<8x512xf32>
    %369 = vector.extract_strided_slice %368 {offsets = [0, 0], sizes = [8, 128], strides = [1, 1]} : vector<8x512xf32> to vector<8x128xf32>
    %370 = arith.negf %369 : vector<8x128xf32>
    %371 = math.exp %370 : vector<8x128xf32>
    %cst_70 = arith.constant 1.000000e+00 : f32
    %372 = vector.broadcast %cst_70 : f32 to vector<8x128xf32>
    %373 = arith.addf %372, %371 : vector<8x128xf32>
    %374 = arith.divf %372, %373 : vector<8x128xf32>
    %375 = vector.extract_strided_slice %368 {offsets = [0, 128], sizes = [8, 128], strides = [1, 1]} : vector<8x512xf32> to vector<8x128xf32>
    %376 = arith.negf %375 : vector<8x128xf32>
    %377 = math.exp %376 : vector<8x128xf32>
    %cst_71 = arith.constant 1.000000e+00 : f32
    %378 = vector.broadcast %cst_71 : f32 to vector<8x128xf32>
    %379 = arith.addf %378, %377 : vector<8x128xf32>
    %380 = arith.divf %378, %379 : vector<8x128xf32>
    %381 = vector.extract_strided_slice %368 {offsets = [0, 256], sizes = [8, 128], strides = [1, 1]} : vector<8x512xf32> to vector<8x128xf32>
    %382 = math.tanh %381 : vector<8x128xf32>
    %383 = vector.extract_strided_slice %368 {offsets = [0, 384], sizes = [8, 128], strides = [1, 1]} : vector<8x512xf32> to vector<8x128xf32>
    %384 = arith.negf %383 : vector<8x128xf32>
    %385 = math.exp %384 : vector<8x128xf32>
    %cst_72 = arith.constant 1.000000e+00 : f32
    %386 = vector.broadcast %cst_72 : f32 to vector<8x128xf32>
    %387 = arith.addf %386, %385 : vector<8x128xf32>
    %388 = arith.divf %386, %387 : vector<8x128xf32>
    %389 = arith.mulf %380, %332 : vector<8x128xf32>
    %390 = arith.mulf %374, %382 : vector<8x128xf32>
    %391 = arith.addf %389, %390 : vector<8x128xf32>
    %392 = math.tanh %391 : vector<8x128xf32>
    %393 = arith.mulf %388, %392 : vector<8x128xf32>
    %394 = tpu.concatenate %393, %362 in 1 : vector<8x128xf32>, vector<8x128xf32> -> vector<8x256xf32>
    %cst_73 = arith.constant dense<0.000000e+00> : vector<8x512xf32>
    %395 = tpu.matmul %394, %1, %cst_73 {dimension_numbers = #tpu.dot_dimension_numbers<[1], [0], [0], [1], [0, 0, 1, 1], [], []>} : vector<8x256xf32>, vector<256x512xf32>, vector<8x512xf32> -> vector<8x512xf32>
    %396 = arith.addf %395, %7 : vector<8x512xf32>
    %397 = vector.extract_strided_slice %396 {offsets = [0, 0], sizes = [8, 128], strides = [1, 1]} : vector<8x512xf32> to vector<8x128xf32>
    %398 = arith.negf %397 : vector<8x128xf32>
    %399 = math.exp %398 : vector<8x128xf32>
    %cst_74 = arith.constant 1.000000e+00 : f32
    %400 = vector.broadcast %cst_74 : f32 to vector<8x128xf32>
    %401 = arith.addf %400, %399 : vector<8x128xf32>
    %402 = arith.divf %400, %401 : vector<8x128xf32>
    %403 = vector.extract_strided_slice %396 {offsets = [0, 128], sizes = [8, 128], strides = [1, 1]} : vector<8x512xf32> to vector<8x128xf32>
    %404 = arith.negf %403 : vector<8x128xf32>
    %405 = math.exp %404 : vector<8x128xf32>
    %cst_75 = arith.constant 1.000000e+00 : f32
    %406 = vector.broadcast %cst_75 : f32 to vector<8x128xf32>
    %407 = arith.addf %406, %405 : vector<8x128xf32>
    %408 = arith.divf %406, %407 : vector<8x128xf32>
    %409 = vector.extract_strided_slice %396 {offsets = [0, 256], sizes = [8, 128], strides = [1, 1]} : vector<8x512xf32> to vector<8x128xf32>
    %410 = math.tanh %409 : vector<8x128xf32>
    %411 = vector.extract_strided_slice %396 {offsets = [0, 384], sizes = [8, 128], strides = [1, 1]} : vector<8x512xf32> to vector<8x128xf32>
    %412 = arith.negf %411 : vector<8x128xf32>
    %413 = math.exp %412 : vector<8x128xf32>
    %cst_76 = arith.constant 1.000000e+00 : f32
    %414 = vector.broadcast %cst_76 : f32 to vector<8x128xf32>
    %415 = arith.addf %414, %413 : vector<8x128xf32>
    %416 = arith.divf %414, %415 : vector<8x128xf32>
    %417 = arith.mulf %408, %360 : vector<8x128xf32>
    %418 = arith.mulf %402, %410 : vector<8x128xf32>
    %419 = arith.addf %417, %418 : vector<8x128xf32>
    %420 = math.tanh %419 : vector<8x128xf32>
    %421 = arith.mulf %416, %420 : vector<8x128xf32>
    %c7_i32 = arith.constant 7 : i32
    %422 = arith.index_cast %c7_i32 : i32 to index
    %c0_77 = arith.constant 0 : index
    %c0_78 = arith.constant 0 : index
    %423 = vector.load %arg1[%422, %c0_77, %c0_78] : memref<8x8x128xf32, #tpu.memory_space<vmem>>, vector<1x8x128xf32>
    %424 = vector.shape_cast %423 : vector<1x8x128xf32> to vector<8x128xf32>
    %425 = tpu.concatenate %424, %393 in 1 : vector<8x128xf32>, vector<8x128xf32> -> vector<8x256xf32>
    %cst_79 = arith.constant dense<0.000000e+00> : vector<8x512xf32>
    %426 = tpu.matmul %425, %0, %cst_79 {dimension_numbers = #tpu.dot_dimension_numbers<[1], [0], [0], [1], [0, 0, 1, 1], [], []>} : vector<8x256xf32>, vector<256x512xf32>, vector<8x512xf32> -> vector<8x512xf32>
    %427 = arith.addf %426, %4 : vector<8x512xf32>
    %428 = vector.extract_strided_slice %427 {offsets = [0, 0], sizes = [8, 128], strides = [1, 1]} : vector<8x512xf32> to vector<8x128xf32>
    %429 = arith.negf %428 : vector<8x128xf32>
    %430 = math.exp %429 : vector<8x128xf32>
    %cst_80 = arith.constant 1.000000e+00 : f32
    %431 = vector.broadcast %cst_80 : f32 to vector<8x128xf32>
    %432 = arith.addf %431, %430 : vector<8x128xf32>
    %433 = arith.divf %431, %432 : vector<8x128xf32>
    %434 = vector.extract_strided_slice %427 {offsets = [0, 128], sizes = [8, 128], strides = [1, 1]} : vector<8x512xf32> to vector<8x128xf32>
    %435 = arith.negf %434 : vector<8x128xf32>
    %436 = math.exp %435 : vector<8x128xf32>
    %cst_81 = arith.constant 1.000000e+00 : f32
    %437 = vector.broadcast %cst_81 : f32 to vector<8x128xf32>
    %438 = arith.addf %437, %436 : vector<8x128xf32>
    %439 = arith.divf %437, %438 : vector<8x128xf32>
    %440 = vector.extract_strided_slice %427 {offsets = [0, 256], sizes = [8, 128], strides = [1, 1]} : vector<8x512xf32> to vector<8x128xf32>
    %441 = math.tanh %440 : vector<8x128xf32>
    %442 = vector.extract_strided_slice %427 {offsets = [0, 384], sizes = [8, 128], strides = [1, 1]} : vector<8x512xf32> to vector<8x128xf32>
    %443 = arith.negf %442 : vector<8x128xf32>
    %444 = math.exp %443 : vector<8x128xf32>
    %cst_82 = arith.constant 1.000000e+00 : f32
    %445 = vector.broadcast %cst_82 : f32 to vector<8x128xf32>
    %446 = arith.addf %445, %444 : vector<8x128xf32>
    %447 = arith.divf %445, %446 : vector<8x128xf32>
    %448 = arith.mulf %439, %391 : vector<8x128xf32>
    %449 = arith.mulf %433, %441 : vector<8x128xf32>
    %450 = arith.addf %448, %449 : vector<8x128xf32>
    %451 = math.tanh %450 : vector<8x128xf32>
    %452 = arith.mulf %447, %451 : vector<8x128xf32>
    %453 = tpu.concatenate %452, %421 in 1 : vector<8x128xf32>, vector<8x128xf32> -> vector<8x256xf32>
    %cst_83 = arith.constant dense<0.000000e+00> : vector<8x512xf32>
    %454 = tpu.matmul %453, %1, %cst_83 {dimension_numbers = #tpu.dot_dimension_numbers<[1], [0], [0], [1], [0, 0, 1, 1], [], []>} : vector<8x256xf32>, vector<256x512xf32>, vector<8x512xf32> -> vector<8x512xf32>
    %455 = arith.addf %454, %7 : vector<8x512xf32>
    %456 = vector.extract_strided_slice %455 {offsets = [0, 0], sizes = [8, 128], strides = [1, 1]} : vector<8x512xf32> to vector<8x128xf32>
    %457 = arith.negf %456 : vector<8x128xf32>
    %458 = math.exp %457 : vector<8x128xf32>
    %cst_84 = arith.constant 1.000000e+00 : f32
    %459 = vector.broadcast %cst_84 : f32 to vector<8x128xf32>
    %460 = arith.addf %459, %458 : vector<8x128xf32>
    %461 = arith.divf %459, %460 : vector<8x128xf32>
    %462 = vector.extract_strided_slice %455 {offsets = [0, 128], sizes = [8, 128], strides = [1, 1]} : vector<8x512xf32> to vector<8x128xf32>
    %463 = arith.negf %462 : vector<8x128xf32>
    %464 = math.exp %463 : vector<8x128xf32>
    %cst_85 = arith.constant 1.000000e+00 : f32
    %465 = vector.broadcast %cst_85 : f32 to vector<8x128xf32>
    %466 = arith.addf %465, %464 : vector<8x128xf32>
    %467 = arith.divf %465, %466 : vector<8x128xf32>
    %468 = vector.extract_strided_slice %455 {offsets = [0, 256], sizes = [8, 128], strides = [1, 1]} : vector<8x512xf32> to vector<8x128xf32>
    %469 = math.tanh %468 : vector<8x128xf32>
    %470 = vector.extract_strided_slice %455 {offsets = [0, 384], sizes = [8, 128], strides = [1, 1]} : vector<8x512xf32> to vector<8x128xf32>
    %471 = arith.negf %470 : vector<8x128xf32>
    %472 = math.exp %471 : vector<8x128xf32>
    %cst_86 = arith.constant 1.000000e+00 : f32
    %473 = vector.broadcast %cst_86 : f32 to vector<8x128xf32>
    %474 = arith.addf %473, %472 : vector<8x128xf32>
    %475 = arith.divf %473, %474 : vector<8x128xf32>
    %476 = arith.mulf %467, %419 : vector<8x128xf32>
    %477 = arith.mulf %461, %469 : vector<8x128xf32>
    %478 = arith.addf %476, %477 : vector<8x128xf32>
    %479 = math.tanh %478 : vector<8x128xf32>
    %480 = arith.mulf %475, %479 : vector<8x128xf32>
    %c8_i32 = arith.constant 8 : i32
    %c0_87 = arith.constant 0 : index
    %c0_88 = arith.constant 0 : index
    %481 = vector.load %arg6[%c0_87, %c0_88] : memref<128x128xf32, #tpu.memory_space<vmem>>, vector<128x128xf32>
    %cst_89 = arith.constant dense<0.000000e+00> : vector<8x128xf32>
    %482 = tpu.matmul %480, %481, %cst_89 {dimension_numbers = #tpu.dot_dimension_numbers<[1], [0], [0], [1], [0, 0, 1, 1], [], []>} : vector<8x128xf32>, vector<128x128xf32>, vector<8x128xf32> -> vector<8x128xf32>
    %c0_90 = arith.constant 0 : index
    %c0_91 = arith.constant 0 : index
    %483 = vector.load %arg7[%c0_90, %c0_91] : memref<1x128xf32, #tpu.memory_space<vmem>>, vector<1x128xf32>
    %484 = vector.broadcast %483 : vector<1x128xf32> to vector<8x128xf32>
    %485 = arith.addf %482, %484 : vector<8x128xf32>
    %486 = tpu.iota {dimensions = array<i32: 1>} : vector<8x128xi32>
    %c2_i32_92 = arith.constant 2 : i32
    %487 = vector.broadcast %c2_i32_92 : i32 to vector<8x128xi32>
    %488 = arith.cmpi slt, %486, %487 : vector<8x128xi32>
    %cst_93 = arith.constant -1.000000e+30 : f32
    %489 = vector.broadcast %cst_93 : f32 to vector<8x128xf32>
    %490 = arith.select %488, %485, %489 : vector<8x128xi1>, vector<8x128xf32>
    %cst_94 = arith.constant dense<0xFF800000> : vector<8xf32>
    %491 = vector.multi_reduction <maximumf>, %490, %cst_94 [1] : vector<8x128xf32> to vector<8xf32>
    %cst_95 = arith.constant 0xFF800000 : f32
    %492 = vector.broadcast %cst_95 : f32 to vector<8xf32>
    %493 = arith.maximumf %492, %491 : vector<8xf32>
    %494 = vector.shape_cast %493 : vector<8xf32> to vector<8x1xf32>
    %495 = vector.broadcast %494 : vector<8x1xf32> to vector<8x128xf32>
    %496 = arith.subf %490, %495 : vector<8x128xf32>
    %497 = math.exp %496 : vector<8x128xf32>
    %cst_96 = arith.constant dense<0.000000e+00> : vector<8xf32>
    %498 = vector.multi_reduction <add>, %497, %cst_96 [1] : vector<8x128xf32> to vector<8xf32>
    %499 = vector.shape_cast %498 : vector<8xf32> to vector<8x1xf32>
    %500 = vector.broadcast %499 : vector<8x1xf32> to vector<8x128xf32>
    %501 = arith.divf %497, %500 : vector<8x128xf32>
    %c0_97 = arith.constant 0 : index
    %c0_98 = arith.constant 0 : index
    %502 = vector.load %arg8[%c0_97, %c0_98] : memref<8x128xf32, #tpu.memory_space<vmem>>, vector<8x128xf32>
    tpu.vector_store %arg8[%c0_97, %c0_98], %501 {strides = array<i32>} : memref<8x128xf32, #tpu.memory_space<vmem>>, vector<8x128xf32>,
    return
  }
  func.func @transform_0(%arg0: i32) -> (i32, i32, i32) {
    %c0_i32 = arith.constant 0 : i32
    %c0_i32_0 = arith.constant 0 : i32
    %c0_i32_1 = arith.constant 0 : i32
    return %c0_i32, %arg0, %c0_i32_0 : i32, i32, i32
  }
  func.func @transform_1(%arg0: i32) -> (i32, i32) {
    %c0_i32 = arith.constant 0 : i32
    %c0_i32_0 = arith.constant 0 : i32
    %c0_i32_1 = arith.constant 0 : i32
    return %c0_i32, %c0_i32_0 : i32, i32
  }
  func.func @transform_2(%arg0: i32) -> (i32, i32) {
    %c0_i32 = arith.constant 0 : i32
    %c0_i32_0 = arith.constant 0 : i32
    %c0_i32_1 = arith.constant 0 : i32
    return %c0_i32, %c0_i32_0 : i32, i32
  }
  func.func @transform_3(%arg0: i32) -> (i32, i32) {
    %c0_i32 = arith.constant 0 : i32
    %c0_i32_0 = arith.constant 0 : i32
    %c0_i32_1 = arith.constant 0 : i32
    return %c0_i32, %c0_i32_0 : i32, i32
  }
  func.func @transform_4(%arg0: i32) -> (i32, i32) {
    %c0_i32 = arith.constant 0 : i32
    %c0_i32_0 = arith.constant 0 : i32
    %c0_i32_1 = arith.constant 0 : i32
    return %c0_i32, %c0_i32_0 : i32, i32
  }
  func.func @transform_5(%arg0: i32) -> (i32, i32) {
    %c0_i32 = arith.constant 0 : i32
    %c0_i32_0 = arith.constant 0 : i32
    %c0_i32_1 = arith.constant 0 : i32
    return %c0_i32, %c0_i32_0 : i32, i32
  }
  func.func @transform_6(%arg0: i32) -> (i32, i32) {
    %c0_i32 = arith.constant 0 : i32
    %c0_i32_0 = arith.constant 0 : i32
    %c0_i32_1 = arith.constant 0 : i32
    return %c0_i32, %c0_i32_0 : i32, i32
  }
  func.func @transform_7(%arg0: i32) -> (i32, i32) {
    %c0_i32 = arith.constant 0 : i32
    %c0_i32_0 = arith.constant 0 : i32
    return %arg0, %c0_i32 : i32, i32
  }
}

</mosaic_0001>

<bundles_post_ra>
// kernel: tpu_custom_call.1
= control target key start
LH: loop header
LB: loop body
LE: loop exit
PB: predicated region body
PF: predicated region fallthrough
CT: control target
= control target key end

     0   :  { %12 = vsyncpa [#allocation3], 0  ;;  %s8633_s0 = inlined_call_operand.hbm [shape: f32[8,8,128], index: 0, kind: input, shape index: {}]   ;;  %s8634_s1 = inlined_call_operand.hbm [shape: f32[256,512], index: 1, kind: input, shape index: {}]   ;;  %s8635_s2 = inlined_call_operand.hbm [shape: f32[1,512], index: 2, kind: input, shape index: {}]   ;;  %s8636_s3 = inlined_call_operand.hbm [shape: f32[256,512], index: 3, kind: input, shape index: {}]   ;;  %s8637_s4 = inlined_call_operand.vmem [shape: f32[1,512], index: 4, kind: input, shape index: {}]   ;;  %s8638_s5 = inlined_call_operand.hbm [shape: f32[128,128], index: 5, kind: input, shape index: {}]   ;;  %s8639_s6 = inlined_call_operand.vmem [shape: f32[1,128], index: 6, kind: input, shape index: {}]   ;;  %s8640_s7 = inlined_call_operand.hbm [shape: f32[8,128], index: 7, kind: output, shape index: {}]  }
   0x1   :  { %13 = vsyncpa [#allocation6], 0 }
   0x2   :  { %14 = vsyncpa [#allocation9], 0 }
   0x3   :  { %15 = vsyncpa [#allocation4], 0  ;;  %s4516_s24 = smov [#allocation5]  }
   0x4   :  { %s33_s25 = sshll.u32 %s4516_s24, 4  ;;  %s34_s25 = int_to_ptr.vmem [resolvable:$true] %s33_s25 }
   0x5   :  { %s4396_s26 = scalar_lea.vmem %s34_s25, 16384  ;;  %p4401_p1 = scmp.lt.s32.totalorder %s34_s25, %s34_s25 }
   0x6   :  { %p4397_p0 = scmp.ne.s32.totalorder %s34_s25, %s4396_s26  ;;  %p4402_p2 = scmp.lt.s32.totalorder %s4396_s26, %s4396_s26 }
   0x8   :  { %p4403_p3 = por %p4402_p2, %p4401_p1 }
   0xa   :  { %p4404_p4 = pnand %p4403_p3, %p4397_p0 }
   0xc   :  { %4407 = shalt.err (!%p4404_p4)
}
   0xd   :  { %s4517_s27 = smov 512   ;;  %s4518_s28 = smov 32  }
   0xe   :  { %39 = dma.hbm_to_vmem [thread:$0]  %s8634_s1, 16384, %s34_s25, [#allocation6], %s4517_s27, %s4517_s27, %s4518_s28  }
   0xf   :  { %s4519_s8 = smov [#allocation8]   ;;  %s4520_s10 = smov [#allocation2]  }
  0x10   :  { %s55_s9 = sshll.u32 %s4519_s8, 4  ;;  %s21_s11 = sshll.u32 %s4520_s10, 4  ;;  %s56_s9 = int_to_ptr.vmem [resolvable:$true] %s55_s9  ;;  %s22_s11 = int_to_ptr.vmem [resolvable:$true] %s21_s11 }
  0x11   :  { %s4416_s12 = scalar_lea.vmem %s56_s9, 16384  ;;  %p4421_p6 = scmp.lt.s32.totalorder %s56_s9, %s56_s9 }
  0x12   :  { %p4417_p5 = scmp.ne.s32.totalorder %s56_s9, %s4416_s12  ;;  %p4422_p7 = scmp.lt.s32.totalorder %s4416_s12, %s4416_s12 }
  0x14   :  { %p4423_p8 = por %p4422_p7, %p4421_p6 }
  0x16   :  { %p4424_p9 = pnand %p4423_p8, %p4417_p5 }
  0x18   :  { %4427 = shalt.err (!%p4424_p9)
}
  0x19   :  { %61 = dma.hbm_to_vmem [thread:$0]  %s8636_s3, 16384, %s56_s9, [#allocation9], %s4517_s27, %s4517_s27, %s4518_s28  }
  0x1a   :  { %s4436_s15 = scalar_lea.vmem %s22_s11, 1024  ;;  %p4441_p11 = scmp.lt.s32.totalorder %s22_s11, %s22_s11 }
  0x1b   :  { %p4437_p10 = scmp.ne.s32.totalorder %s22_s11, %s4436_s15  ;;  %p4442_p12 = scmp.lt.s32.totalorder %s4436_s15, %s4436_s15 }
  0x1d   :  { %p4443_p13 = por %p4442_p12, %p4441_p11 }
  0x1f   :  { %p4444_p0 = pnand %p4443_p13, %p4437_p10 }
  0x21   :  { %4447 = shalt.err (!%p4444_p0)
}
  0x22   :  { %s4521_s1 = smov 128   ;;  %s4522_s16 = smov 8  }
  0x23   :  { %27 = dma.hbm_to_vmem [thread:$0]  %s8633_s0, 1024, %s22_s11, [#allocation3], %s4521_s1, %s4521_s1, %s4522_s16  }
  0x24   :  { %s4523_s19 = smov [#allocation7]   ;;  %s4524_s21 = smov [#allocation10]  }
  0x25   :  { %s46_s20 = sshll.u32 %s4523_s19, 4  ;;  %s69_s22 = sshll.u32 %s4524_s21, 4  ;;  %s47_s20 = int_to_ptr.vmem [resolvable:$true] %s46_s20  ;;  %s70_s22 = int_to_ptr.vmem [resolvable:$true] %s69_s22 }
  0x26   :  { %s4456_s3 = scalar_lea.vmem %s47_s20, 64  ;;  %p4461_p2 = scmp.lt.s32.totalorder %s47_s20, %s47_s20 }
  0x27   :  { %p4457_p1 = scmp.ne.s32.totalorder %s47_s20, %s4456_s3  ;;  %p4462_p3 = scmp.lt.s32.totalorder %s4456_s3, %s4456_s3 }
  0x29   :  { %p4463_p4 = por %p4462_p3, %p4461_p2 }
  0x2b   :  { %p4464_p5 = pnand %p4463_p4, %p4457_p1 }
  0x2d   :  { %4467 = shalt.err (!%p4464_p5)
}
  0x2e   :  { %49 = dma.hbm_to_vmem [thread:$0]  %s8635_s2, 64, %s47_s20, [#allocation6]  }
  0x2f   :  { %s4476_s25 = scalar_lea.vmem %s70_s22, 2048  ;;  %p4481_p7 = scmp.lt.s32.totalorder %s70_s22, %s70_s22 }
  0x30   :  { %p4477_p6 = scmp.ne.s32.totalorder %s70_s22, %s4476_s25  ;;  %p4482_p8 = scmp.lt.s32.totalorder %s4476_s25, %s4476_s25 }
  0x32   :  { %p4483_p9 = por %p4482_p8, %p4481_p7 }
  0x34   :  { %p4484_p10 = pnand %p4483_p9, %p4477_p6 }
  0x36   :  { %4487 = shalt.err (!%p4484_p10)
}
  0x37   :  { %75 = dma.hbm_to_vmem [thread:$0]  %s8638_s5, 2048, %s70_s22, [#allocation9], %s4521_s1, %s4521_s1, %s4522_s16  }
  0x38   :  { %4508 = dma.done.wait [#allocation3], 1024  }
  0x39   :  { %4509 = vsyncadd [#allocation3], 4294966272 }
  0x3a   :  { %4510 = dma.done.wait [#allocation6], 16448  }
  0x3b   :  { %4511 = vsyncadd [#allocation6], 4294950848 }
  0x3c   :  { %4512 = dma.done.wait [#allocation9], 18432  }
  0x3d   :  { %4513 = vsyncadd [#allocation9], 4294948864  ;;  %v8641_v0 = vmov 0.0   ;;  %v154_v1 = vld [vmem:[#allocation5 + $0x1e8] sm:$0xff]  ;;  %v153_v2 = vld [vmem:[#allocation5 + $0x1e0] sm:$0xff]  ;;  %vm4526_vm0 = vmmov 0  }
  0x3e   :  { %458 = vmatprep.mubr.f32.mxu0 %v8641_v0  ;;  %529 = vmatprep.mubr.f32.mxu1 %v8641_v0  ;;  %v150_v3 = vld [vmem:[#allocation5 + $0x1c8] sm:$0xff]  ;;  %v149_v4 = vld [vmem:[#allocation5 + $0x1c0] sm:$0xff]  ;;  %v4585_v9 = vld [vmem:[#allocation5 + $0x1f8] sm:$0xff]  ;;  %s4527_s28 = smov [#allocation11]  }
  0x3f   :  { %394 = vmatprep.subr.mxu0 %v154_v1  ;;  %v146_v5 = vld [vmem:[#allocation5 + $0x1a8] sm:$0xff]  ;;  %v145_v6 = vld [vmem:[#allocation5 + $0x1a0] sm:$0xff]  ;;  %465 = vmatprep.subr.mxu1 %v4585_v9  ;;  %v155_v11 = vld [vmem:[#allocation5 + $0x1f0] sm:$0xff]  ;;  %s3177_s29 = sshll.u32 %s4527_s28, 4  ;;  %s3178_s29 = int_to_ptr.vmem [resolvable:$true] %s3177_s29 }
  0x40   :  { %395 = vmatpush1.msra.mxu0 %v153_v2  ;;  %v142_v7 = vld [vmem:[#allocation5 + $0x188] sm:$0xff]  ;;  %v141_v8 = vld [vmem:[#allocation5 + $0x180] sm:$0xff]  ;;  %466 = vmatpush1.msra.mxu1 %v155_v11  ;;  %v152_v13 = vld [vmem:[#allocation5 + $0x1d8] sm:$0xff]  ;;  %p4493_p12 = scmp.lt.s32.totalorder %s3178_s29, %s3178_s29 }
  0x41   :  { %396 = vmatprep.subr.mxu0 %v150_v3  ;;  %v138_v10 = vld [vmem:[#allocation5 + $0x168] sm:$0xff]  ;;  %v137_v12 = vld [vmem:[#allocation5 + $0x160] sm:$0xff]  ;;  %v151_v14 = vld [vmem:[#allocation5 + $0x1d0] sm:$0xff]  ;;  %467 = vmatprep.subr.mxu1 %v152_v13 }
  0x42   :  { %397 = vmatpush1.msra.mxu0 %v149_v4  ;;  %v134_v15 = vld [vmem:[#allocation5 + $0x148] sm:$0xff]  ;;  %v148_v16 = vld [vmem:[#allocation5 + $0x1b8] sm:$0xff]  ;;  %v133_v17 = vld [vmem:[#allocation5 + $0x140] sm:$0xff]  ;;  %468 = vmatpush1.msra.mxu1 %v151_v14 }
  0x43   :  { %398 = vmatprep.subr.mxu0 %v146_v5  ;;  %v147_v18 = vld [vmem:[#allocation5 + $0x1b0] sm:$0xff]  ;;  %v144_v19 = vld [vmem:[#allocation5 + $0x198] sm:$0xff]  ;;  %v130_v20 = vld [vmem:[#allocation5 + $0x128] sm:$0xff]  ;;  %469 = vmatprep.subr.mxu1 %v148_v16 }
  0x44   :  { %399 = vmatpush1.msra.mxu0 %v145_v6  ;;  %v143_v21 = vld [vmem:[#allocation5 + $0x190] sm:$0xff]  ;;  %v129_v22 = vld [vmem:[#allocation5 + $0x120] sm:$0xff]  ;;  %470 = vmatpush1.msra.mxu1 %v147_v18  ;;  %v140_v23 = vld [vmem:[#allocation5 + $0x178] sm:$0xff] }
  0x45   :  { %400 = vmatprep.subr.mxu0 %v142_v7  ;;  %v126_v24 = vld [vmem:[#allocation5 + $0x108] sm:$0xff]  ;;  %471 = vmatprep.subr.mxu1 %v144_v19  ;;  %v139_v25 = vld [vmem:[#allocation5 + $0x170] sm:$0xff]  ;;  %v125_v26 = vld [vmem:[#allocation5 + $0x100] sm:$0xff] }
  0x46   :  { %401 = vmatpush1.msra.mxu0 %v141_v8  ;;  %472 = vmatpush1.msra.mxu1 %v143_v21  ;;  %v136_v27 = vld [vmem:[#allocation5 + $0x158] sm:$0xff]  ;;  %v122_v28 = vld [vmem:[#allocation5 + $0xe8] sm:$0xff]  ;;  %v135_v29 = vld [vmem:[#allocation5 + $0x150] sm:$0xff] }
  0x47   :  { %402 = vmatprep.subr.mxu0 %v138_v10  ;;  %473 = vmatprep.subr.mxu1 %v140_v23  ;;  %v121_v30 = vld [vmem:[#allocation5 + $0xe0] sm:$0xff]  ;;  %v132_v31 = vld [vmem:[#allocation5 + $0x138] sm:$0xff]  ;;  %v118_v32 = vld [vmem:[#allocation5 + $0xc8] sm:$0xff] }
  0x48   :  { %403 = vmatpush1.msra.mxu0 %v137_v12  ;;  %474 = vmatpush1.msra.mxu1 %v139_v25  ;;  %v131_v33 = vld [vmem:[#allocation5 + $0x130] sm:$0xff]  ;;  %v117_v34 = vld [vmem:[#allocation5 + $0xc0] sm:$0xff]  ;;  %v128_v35 = vld [vmem:[#allocation5 + $0x118] sm:$0xff] }
  0x49   :  { %404 = vmatprep.subr.mxu0 %v134_v15  ;;  %475 = vmatprep.subr.mxu1 %v136_v27  ;;  %v114_v36 = vld [vmem:[#allocation5 + $0xa8] sm:$0xff]  ;;  %v127_v37 = vld [vmem:[#allocation5 + $0x110] sm:$0xff]  ;;  %v113_v38 = vld [vmem:[#allocation5 + $0xa0] sm:$0xff] }
  0x4a   :  { %405 = vmatpush1.msra.mxu0 %v133_v17  ;;  %476 = vmatpush1.msra.mxu1 %v135_v29  ;;  %v124_v39 = vld [vmem:[#allocation5 + $0xf8] sm:$0xff]  ;;  %v110_v40 = vld [vmem:[#allocation5 + $0x88] sm:$0xff]  ;;  %v123_v41 = vld [vmem:[#allocation5 + $0xf0] sm:$0xff] }
  0x4b   :  { %406 = vmatprep.subr.mxu0 %v130_v20  ;;  %477 = vmatprep.subr.mxu1 %v132_v31  ;;  %v109_v42 = vld [vmem:[#allocation5 + $0x80] sm:$0xff]  ;;  %v120_v43 = vld [vmem:[#allocation5 + $0xd8] sm:$0xff]  ;;  %v106_v44 = vld [vmem:[#allocation5 + $0x68] sm:$0xff] }
  0x4c   :  { %407 = vmatpush1.msra.mxu0 %v129_v22  ;;  %478 = vmatpush1.msra.mxu1 %v131_v33  ;;  %v119_v45 = vld [vmem:[#allocation5 + $0xd0] sm:$0xff]  ;;  %v105_v46 = vld [vmem:[#allocation5 + $0x60] sm:$0xff]  ;;  %v116_v47 = vld [vmem:[#allocation5 + $0xb8] sm:$0xff] }
  0x4d   :  { %408 = vmatprep.subr.mxu0 %v126_v24  ;;  %479 = vmatprep.subr.mxu1 %v128_v35  ;;  %v102_v48 = vld [vmem:[#allocation5 + $0x48] sm:$0xff]  ;;  %v115_v49 = vld [vmem:[#allocation5 + $0xb0] sm:$0xff]  ;;  %v101_v50 = vld [vmem:[#allocation5 + $0x40] sm:$0xff] }
  0x4e   :  { %409 = vmatpush1.msra.mxu0 %v125_v26  ;;  %480 = vmatpush1.msra.mxu1 %v127_v37  ;;  %v112_v51 = vld [vmem:[#allocation5 + $0x98] sm:$0xff]  ;;  %v98_v52 = vld [vmem:[#allocation5 + $0x28] sm:$0xff]  ;;  %v111_v53 = vld [vmem:[#allocation5 + $0x90] sm:$0xff] }
  0x4f   :  { %410 = vmatprep.subr.mxu0 %v122_v28  ;;  %481 = vmatprep.subr.mxu1 %v124_v39  ;;  %v97_v54 = vld [vmem:[#allocation5 + $0x20] sm:$0xff]  ;;  %v108_v55 = vld [vmem:[#allocation5 + $0x78] sm:$0xff]  ;;  %v94_v56 = vld [vmem:[#allocation5 + $0x8] sm:$0xff] }
  0x50   :  { %411 = vmatpush1.msra.mxu0 %v121_v30  ;;  %482 = vmatpush1.msra.mxu1 %v123_v41  ;;  %v107_v57 = vld [vmem:[#allocation5 + $0x70] sm:$0xff]  ;;  %v93_v58 = vld [vmem:[#allocation5] sm:$0xff]  ;;  %v4588_v59 = vld [vmem:[#allocation5 + $0x58] sm:$0xff] }
  0x51   :  { %412 = vmatprep.subr.mxu0 %v118_v32  ;;  %483 = vmatprep.subr.mxu1 %v120_v43  ;;  %v218_v60 = vld [vmem:[#allocation5 + $0x3e8] sm:$0xff]  ;;  %v4590_v61 = vld [vmem:[#allocation5 + $0x50] sm:$0xff]  ;;  %v217_v62 = vld [vmem:[#allocation5 + $0x3e0] sm:$0xff] }
  0x52   :  { %413 = vmatpush1.msra.mxu0 %v117_v34  ;;  %484 = vmatpush1.msra.mxu1 %v119_v45  ;;  %v4592_v63 = vld [vmem:[#allocation5 + $0x38] sm:$0xff]  ;;  %v4594_v1 = vld [vmem:[#allocation5 + $0x3c8] sm:$0xff]  ;;  %v4597_v2 = vld [vmem:[#allocation5 + $0x30] sm:$0xff] }
  0x53   :  { %414 = vmatprep.subr.mxu0 %v114_v36  ;;  %485 = vmatprep.subr.mxu1 %v116_v47  ;;  %v4599_v3 = vld [vmem:[#allocation5 + $0x3c0] sm:$0xff]  ;;  %v4602_v4 = vld [vmem:[#allocation5 + $0x18] sm:$0xff]  ;;  %v4604_v5 = vld [vmem:[#allocation5 + $0x3a8] sm:$0xff] }
  0x54   :  { %415 = vmatpush1.msra.mxu0 %v113_v38  ;;  %486 = vmatpush1.msra.mxu1 %v115_v49  ;;  %v4607_v6 = vld [vmem:[#allocation5 + $0x10] sm:$0xff]  ;;  %v4610_v7 = vld [vmem:[#allocation5 + $0x3a0] sm:$0xff]  ;;  %v4613_v8 = vld [vmem:[#allocation5 + $0x3f8] sm:$0xff] }
  0x55   :  { %416 = vmatprep.subr.mxu0 %v110_v40  ;;  %487 = vmatprep.subr.mxu1 %v112_v51  ;;  %v4616_v10 = vld [vmem:[#allocation5 + $0x388] sm:$0xff]  ;;  %v4619_v11 = vld [vmem:[#allocation5 + $0x3f0] sm:$0xff]  ;;  %v4622_v12 = vld [vmem:[#allocation5 + $0x380] sm:$0xff] }
  0x56   :  { %417 = vmatpush1.msra.mxu0 %v109_v42  ;;  %488 = vmatpush1.msra.mxu1 %v111_v53  ;;  %v4625_v13 = vld [vmem:[#allocation5 + $0x3d8] sm:$0xff]  ;;  %v4628_v14 = vld [vmem:[#allocation5 + $0x368] sm:$0xff]  ;;  %v4631_v15 = vld [vmem:[#allocation5 + $0x3d0] sm:$0xff] }
  0x57   :  { %418 = vmatprep.subr.mxu0 %v106_v44  ;;  %489 = vmatprep.subr.mxu1 %v108_v55  ;;  %v4634_v16 = vld [vmem:[#allocation5 + $0x360] sm:$0xff]  ;;  %v4637_v17 = vld [vmem:[#allocation5 + $0x3b8] sm:$0xff]  ;;  %v4640_v18 = vld [vmem:[#allocation5 + $0x348] sm:$0xff] }
  0x58   :  { %419 = vmatpush1.msra.mxu0 %v105_v46  ;;  %490 = vmatpush1.msra.mxu1 %v107_v57  ;;  %v4643_v19 = vld [vmem:[#allocation5 + $0x3b0] sm:$0xff]  ;;  %v4646_v20 = vld [vmem:[#allocation5 + $0x340] sm:$0xff]  ;;  %v4649_v21 = vld [vmem:[#allocation5 + $0x398] sm:$0xff] }
  0x59   :  { %420 = vmatprep.subr.mxu0 %v102_v48  ;;  %491 = vmatprep.subr.mxu1 %v4588_v59  ;;  %v4652_v22 = vld [vmem:[#allocation5 + $0x328] sm:$0xff]  ;;  %v4655_v23 = vld [vmem:[#allocation5 + $0x390] sm:$0xff]  ;;  %v4658_v24 = vld [vmem:[#allocation5 + $0x320] sm:$0xff] }
  0x5a   :  { %421 = vmatpush1.msra.mxu0 %v101_v50  ;;  %492 = vmatpush1.msra.mxu1 %v4590_v61  ;;  %v4661_v25 = vld [vmem:[#allocation5 + $0x378] sm:$0xff]  ;;  %v4664_v26 = vld [vmem:[#allocation5 + $0x308] sm:$0xff]  ;;  %v4667_v27 = vld [vmem:[#allocation5 + $0x370] sm:$0xff] }
  0x5b   :  { %422 = vmatprep.subr.mxu0 %v98_v52  ;;  %493 = vmatprep.subr.mxu1 %v4592_v63  ;;  %v4670_v28 = vld [vmem:[#allocation5 + $0x300] sm:$0xff]  ;;  %v4673_v29 = vld [vmem:[#allocation5 + $0x358] sm:$0xff]  ;;  %v4676_v30 = vld [vmem:[#allocation5 + $0x2e8] sm:$0xff] }
  0x5c   :  { %423 = vmatpush1.msra.mxu0 %v97_v54  ;;  %494 = vmatpush1.msra.mxu1 %v4597_v2  ;;  %v4679_v31 = vld [vmem:[#allocation5 + $0x350] sm:$0xff]  ;;  %v4682_v32 = vld [vmem:[#allocation5 + $0x2e0] sm:$0xff]  ;;  %v4685_v33 = vld [vmem:[#allocation5 + $0x338] sm:$0xff] }
  0x5d   :  { %424 = vmatprep.subr.mxu0 %v94_v56  ;;  %495 = vmatprep.subr.mxu1 %v4602_v4  ;;  %v4688_v34 = vld [vmem:[#allocation5 + $0x2c8] sm:$0xff]  ;;  %v4691_v35 = vld [vmem:[#allocation5 + $0x330] sm:$0xff]  ;;  %v4694_v36 = vld [vmem:[#allocation5 + $0x2c0] sm:$0xff] }
  0x5e   :  { %425 = vmatpush1.msra.mxu0 %v93_v58  ;;  %496 = vmatpush1.msra.mxu1 %v4607_v6  ;;  %v4697_v37 = vld [vmem:[#allocation5 + $0x318] sm:$0xff]  ;;  %v4700_v38 = vld [vmem:[#allocation5 + $0x2a8] sm:$0xff]  ;;  %v4703_v39 = vld [vmem:[#allocation5 + $0x310] sm:$0xff] }
  0x5f   :  { %426 = vmatprep.subr.mxu0 %v218_v60  ;;  %497 = vmatprep.subr.mxu1 %v4613_v8  ;;  %v4706_v40 = vld [vmem:[#allocation5 + $0x2a0] sm:$0xff]  ;;  %v4709_v41 = vld [vmem:[#allocation5 + $0x2f8] sm:$0xff]  ;;  %v4712_v42 = vld [vmem:[#allocation5 + $0x288] sm:$0xff] }
  0x60   :  { %427 = vmatpush2.msra.mxu0 %v217_v62  ;;  %498 = vmatpush2.msra.mxu1 %v4619_v11  ;;  %9408 = vst [vmem:[#allocation16_spill] sm:$0xff] %v4712_v42  ;;  %v4715_v43 = vld [vmem:[#allocation5 + $0x2f0] sm:$0xff]  ;;  %v4718_v44 = vld [vmem:[#allocation5 + $0x280] sm:$0xff]  ;;  %v4721_v45 = vld [vmem:[#allocation5 + $0x2d8] sm:$0xff] }
  0x61   :  { %428 = vmatprep.subr.mxu0 %v4594_v1  ;;  %499 = vmatprep.subr.mxu1 %v4625_v13  ;;  %9409 = vst [vmem:[#allocation17_spill] sm:$0xff] %v4718_v44  ;;  %v4724_v46 = vld [vmem:[#allocation5 + $0x268] sm:$0xff]  ;;  %v4727_v47 = vld [vmem:[#allocation5 + $0x2d0] sm:$0xff]  ;;  %v4730_v48 = vld [vmem:[#allocation5 + $0x260] sm:$0xff] }
  0x62   :  { %429 = vmatpush2.msra.mxu0 %v4599_v3  ;;  %500 = vmatpush2.msra.mxu1 %v4631_v15  ;;  %9410 = vst [vmem:[#allocation18_spill] sm:$0xff] %v4724_v46  ;;  %9411 = vst [vmem:[#allocation19_spill] sm:$0xff] %v4727_v47  ;;  %v4733_v49 = vld [vmem:[#allocation5 + $0x2b8] sm:$0xff]  ;;  %v4736_v50 = vld [vmem:[#allocation5 + $0x248] sm:$0xff] }
  0x63   :  { %430 = vmatprep.subr.mxu0 %v4604_v5  ;;  %501 = vmatprep.subr.mxu1 %v4637_v17  ;;  %9412 = vst [vmem:[#allocation20_spill] sm:$0xff] %v4730_v48  ;;  %9413 = vst [vmem:[#allocation21_spill] sm:$0xff] %v4733_v49  ;;  %v4739_v51 = vld [vmem:[#allocation5 + $0x2b0] sm:$0xff]  ;;  %v4742_v52 = vld [vmem:[#allocation5 + $0x240] sm:$0xff] }
  0x64   :  { %431 = vmatpush2.msra.mxu0 %v4610_v7  ;;  %502 = vmatpush2.msra.mxu1 %v4643_v19  ;;  %9414 = vst [vmem:[#allocation22_spill] sm:$0xff] %v4736_v50  ;;  %9415 = vst [vmem:[#allocation23_spill] sm:$0xff] %v4739_v51  ;;  %v4745_v53 = vld [vmem:[#allocation5 + $0x298] sm:$0xff]  ;;  %v4748_v54 = vld [vmem:[#allocation5 + $0x228] sm:$0xff] }
  0x65   :  { %432 = vmatprep.subr.mxu0 %v4616_v10  ;;  %503 = vmatprep.subr.mxu1 %v4649_v21  ;;  %9416 = vst [vmem:[#allocation24_spill] sm:$0xff] %v4742_v52  ;;  %9417 = vst [vmem:[#allocation25_spill] sm:$0xff] %v4745_v53  ;;  %v4751_v55 = vld [vmem:[#allocation5 + $0x290] sm:$0xff]  ;;  %v4754_v56 = vld [vmem:[#allocation5 + $0x220] sm:$0xff] }
  0x66   :  { %433 = vmatpush2.msra.mxu0 %v4622_v12  ;;  %504 = vmatpush2.msra.mxu1 %v4655_v23  ;;  %9418 = vst [vmem:[#allocation26_spill] sm:$0xff] %v4748_v54  ;;  %9419 = vst [vmem:[#allocation27_spill] sm:$0xff] %v4751_v55  ;;  %v4757_v57 = vld [vmem:[#allocation5 + $0x278] sm:$0xff]  ;;  %v4760_v58 = vld [vmem:[#allocation5 + $0x208] sm:$0xff] }
  0x67   :  { %434 = vmatprep.subr.mxu0 %v4628_v14  ;;  %505 = vmatprep.subr.mxu1 %v4661_v25  ;;  %9420 = vst [vmem:[#allocation28_spill] sm:$0xff] %v4754_v56  ;;  %9421 = vst [vmem:[#allocation29_spill] sm:$0xff] %v4757_v57  ;;  %v4763_v60 = vld [vmem:[#allocation5 + $0x270] sm:$0xff]  ;;  %v4766_v62 = vld [vmem:[#allocation5 + $0x200] sm:$0xff] }
  0x68   :  { %435 = vmatpush2.msra.mxu0 %v4634_v16  ;;  %506 = vmatpush2.msra.mxu1 %v4667_v27  ;;  %9422 = vst [vmem:[#allocation30_spill] sm:$0xff] %v4760_v58  ;;  %9423 = vst [vmem:[#allocation31_spill] sm:$0xff] %v4763_v60  ;;  %v4769_v0 = vld [vmem:[#allocation5 + $0x258] sm:$0xff] }
  0x69   :  { %436 = vmatprep.subr.mxu0 %v4640_v18  ;;  %507 = vmatprep.subr.mxu1 %v4673_v29  ;;  %9424 = vst [vmem:[#allocation32_spill] sm:$0xff] %v4766_v62  ;;  %9425 = vst [vmem:[#allocation33_spill] sm:$0xff] %v4769_v0 }
  0x6a   :  { %437 = vmatpush2.msra.mxu0 %v4646_v20  ;;  %508 = vmatpush2.msra.mxu1 %v4679_v31 }
  0x6b   :  { %438 = vmatprep.subr.mxu0 %v4652_v22  ;;  %509 = vmatprep.subr.mxu1 %v4685_v33 }
  0x6c   :  { %439 = vmatpush2.msra.mxu0 %v4658_v24  ;;  %510 = vmatpush2.msra.mxu1 %v4691_v35 }
  0x6d   :  { %440 = vmatprep.subr.mxu0 %v4664_v26  ;;  %511 = vmatprep.subr.mxu1 %v4697_v37 }
  0x6e   :  { %441 = vmatpush2.msra.mxu0 %v4670_v28  ;;  %512 = vmatpush2.msra.mxu1 %v4703_v39 }
  0x6f   :  { %442 = vmatprep.subr.mxu0 %v4676_v30  ;;  %513 = vmatprep.subr.mxu1 %v4709_v41 }
  0x70   :  { %443 = vmatpush2.msra.mxu0 %v4682_v32  ;;  %514 = vmatpush2.msra.mxu1 %v4715_v43 }
  0x71   :  { %444 = vmatprep.subr.mxu0 %v4688_v34  ;;  %515 = vmatprep.subr.mxu1 %v4721_v45 }
  0x72   :  { %445 = vmatpush2.msra.mxu0 %v4694_v36  ;;  %516 = vmatpush2.msra.mxu1 %v4727_v47 }
  0x73   :  { %446 = vmatprep.subr.mxu0 %v4700_v38  ;;  %517 = vmatprep.subr.mxu1 %v4733_v49 }
  0x74   :  { %447 = vmatpush2.msra.mxu0 %v4706_v40  ;;  %518 = vmatpush2.msra.mxu1 %v4739_v51 }
  0x75   :  { %448 = vmatprep.subr.mxu0 %v4712_v42  ;;  %519 = vmatprep.subr.mxu1 %v4745_v53  ;;  %v4806_v53 = vld [vmem:[#allocation8 + $0x1a8] sm:$0xff] }
  0x76   :  { %449 = vmatpush2.msra.mxu0 %v4718_v44  ;;  %520 = vmatpush2.msra.mxu1 %v4751_v55  ;;  %v4783_v55 = vld [vmem:[#allocation5 + $0x230] sm:$0xff]  ;;  %9437 = vst [vmem:[#allocation45_spill] sm:$0xff] %v4806_v53 }
  0x77   :  { %450 = vmatprep.subr.mxu0 %v4724_v46  ;;  %521 = vmatprep.subr.mxu1 %v4757_v57  ;;  %9429 = vst [vmem:[#allocation37_spill] sm:$0xff] %v4783_v55  ;;  %v4788_v57 = vld [vmem:[#allocation5 + $0x218] sm:$0xff] }
  0x78   :  { %451 = vmatpush2.msra.mxu0 %v4730_v48  ;;  %522 = vmatpush2.msra.mxu1 %v4763_v60  ;;  %v4777_v48 = vld [vmem:[#allocation5 + $0x238] sm:$0xff]  ;;  %9431 = vst [vmem:[#allocation39_spill] sm:$0xff] %v4788_v57  ;;  %v4793_v60 = vld [vmem:[#allocation5 + $0x210] sm:$0xff] }
  0x79   :  { %452 = vmatprep.subr.mxu0 %v4736_v50  ;;  %v393_v50 = vld [vmem:[#allocation2] sm:$0xff]  ;;  %9427 = vst [vmem:[#allocation35_spill] sm:$0xff] %v4777_v48  ;;  %523 = vmatprep.subr.mxu1 %v4769_v0  ;;  %9433 = vst [vmem:[#allocation41_spill] sm:$0xff] %v4793_v60 }
  0x7a   :  { %453 = vmatpush2.msra.mxu0 %v4742_v52  ;;  %v4773_v52 = vld [vmem:[#allocation5 + $0x250] sm:$0xff]  ;;  %v4800_v0 = vld [vmem:[#allocation8 + $0x1f8] sm:$0xff] }
  0x7b   :  { %454 = vmatprep.subr.mxu0 %v4748_v54  ;;  %9426 = vst [vmem:[#allocation34_spill] sm:$0xff] %v4773_v52  ;;  %v4779_v54 = vld [vmem:[#allocation8 + $0x1e8] sm:$0xff]  ;;  %524 = vmatpush2.msra.mxu1 %v4773_v52  ;;  %9435 = vst [vmem:[#allocation43_spill] sm:$0xff] %v4800_v0  ;;  %v4804_v52 = vld [vmem:[#allocation8 + $0x1f0] sm:$0xff] }
  0x7c   :  { %455 = vmatpush2.msra.mxu0 %v4754_v56  ;;  %9428 = vst [vmem:[#allocation36_spill] sm:$0xff] %v4779_v54  ;;  %v4785_v56 = vld [vmem:[#allocation8 + $0x1e0] sm:$0xff]  ;;  %525 = vmatprep.subr.mxu1 %v4777_v48  ;;  %9436 = vst [vmem:[#allocation44_spill] sm:$0xff] %v4804_v52 }
  0x7d   :  { %456 = vmatprep.subr.mxu0 %v4760_v58  ;;  %9430 = vst [vmem:[#allocation38_spill] sm:$0xff] %v4785_v56  ;;  %v4790_v58 = vld [vmem:[#allocation8 + $0x1c8] sm:$0xff]  ;;  %526 = vmatpush2.msra.mxu1 %v4783_v55  ;;  %v4812_v48 = vld [vmem:[#allocation8 + $0x1a0] sm:$0xff] }
  0x7e   :  { %457 = vmatpush2.msra.mxu0 %v4766_v62  ;;  %9432 = vst [vmem:[#allocation40_spill] sm:$0xff] %v4790_v58  ;;  %v4796_v62 = vld [vmem:[#allocation8 + $0x1c0] sm:$0xff]  ;;  %527 = vmatprep.subr.mxu1 %v4788_v57  ;;  %9439 = vst [vmem:[#allocation47_spill] sm:$0xff] %v4812_v48  ;;  %v4817_v57 = vld [vmem:[#allocation8 + $0x188] sm:$0xff] }
  0x7f   :  { %459 = vmatmul.mubr.f32.vlgmr.msra.gmra.mxu0 %v393_v50  ;;  %560 = vmatprep.subr.mxu0 %v4779_v54  ;;  %9434 = vst [vmem:[#allocation42_spill] sm:$0xff] %v4796_v62  ;;  %v4810_v54 = vld [vmem:[#allocation8 + $0x1d8] sm:$0xff]  ;;  %9441 = vst [vmem:[#allocation49_spill] sm:$0xff] %v4817_v57 }
  0x80   :  { %561 = vmatpush1.msra.mxu0 %v4785_v56  ;;  %528 = vmatpush2.msra.mxu1 %v4793_v60  ;;  %9438 = vst [vmem:[#allocation46_spill] sm:$0xff] %v4810_v54  ;;  %v4815_v56 = vld [vmem:[#allocation8 + $0x1d0] sm:$0xff]  ;;  %v4823_v60 = vld [vmem:[#allocation8 + $0x180] sm:$0xff] }
  0x81   :  { %562 = vmatprep.subr.mxu0 %v4790_v58  ;;  %530 = vmatmul.mubr.f32.vlgmr.msra.gmra.mxu1 %v393_v50  ;;  %9440 = vst [vmem:[#allocation48_spill] sm:$0xff] %v4815_v56  ;;  %v4821_v58 = vld [vmem:[#allocation8 + $0x1b8] sm:$0xff]  ;;  %9443 = vst [vmem:[#allocation51_spill] sm:$0xff] %v4823_v60 }
  0x82   :  { %563 = vmatpush1.msra.mxu0 %v4796_v62  ;;  %631 = vmatprep.subr.mxu1 %v4800_v0  ;;  %9442 = vst [vmem:[#allocation50_spill] sm:$0xff] %v4821_v58  ;;  %v4827_v62 = vld [vmem:[#allocation8 + $0x1b0] sm:$0xff]  ;;  %v4831_v50 = vld [vmem:[#allocation8 + $0x198] sm:$0xff]  ;;  %v5135_v0 = vld [vmem:[#allocation8 + $0x248] sm:$0xff] }
  0x83   :  { %632 = vmatpush1.msra.mxu1 %v4804_v52  ;;  %564 = vmatprep.subr.mxu0 %v4806_v53  ;;  %9444 = vst [vmem:[#allocation52_spill] sm:$0xff] %v4827_v62  ;;  %9445 = vst [vmem:[#allocation53_spill] sm:$0xff] %v4831_v50  ;;  %v9446_v53 = vmov 0.0   ;;  %v5119_v52 = vld [vmem:[#allocation8 + $0x298] sm:$0xff] }
  0x84   :  { %633 = vmatprep.subr.mxu1 %v4810_v54  ;;  %565 = vmatpush1.msra.mxu0 %v4812_v48  ;;  %v4839_v48 = vld [vmem:[#allocation8 + $0x168] sm:$0xff]  ;;  %v4841_v54 = vld [vmem:[#allocation8 + $0x190] sm:$0xff]  ;;  %9542 = vst [vmem:[#allocation149_spill] sm:$0xff] %v5119_v52  ;;  %9547 = vst [vmem:[#allocation154_spill] sm:$0xff] %v5135_v0 }
  0x85   :  { %634 = vmatpush1.msra.mxu1 %v4815_v56  ;;  %566 = vmatprep.subr.mxu0 %v4817_v57  ;;  %9447 = vst [vmem:[#allocation54_spill] sm:$0xff] %v4839_v48  ;;  %9448 = vst [vmem:[#allocation55_spill] sm:$0xff] %v4841_v54  ;;  %v4845_v57 = vld [vmem:[#allocation8 + $0x160] sm:$0xff]  ;;  %v5111_v56 = vld [vmem:[#allocation8 + $0x288] sm:$0xff] }
  0x86   :  { %635 = vmatprep.subr.mxu1 %v4821_v58  ;;  %567 = vmatpush1.msra.mxu0 %v4823_v60  ;;  %9449 = vst [vmem:[#allocation56_spill] sm:$0xff] %v4845_v57  ;;  %v4847_v58 = vld [vmem:[#allocation8 + $0x178] sm:$0xff]  ;;  %v4851_v60 = vld [vmem:[#allocation8 + $0x148] sm:$0xff]  ;;  %9539 = vst [vmem:[#allocation146_spill] sm:$0xff] %v5111_v56 }
  0x87   :  { %636 = vmatpush1.msra.mxu1 %v4827_v62  ;;  %624 = vmatprep.mubr.f32.mxu0 %v9446_v53  ;;  %9450 = vst [vmem:[#allocation57_spill] sm:$0xff] %v4847_v58  ;;  %9451 = vst [vmem:[#allocation58_spill] sm:$0xff] %v4851_v60  ;;  %v5103_v62 = vld [vmem:[#allocation8 + $0x2d0] sm:$0xff] }
  0x88   :  { %637 = vmatprep.subr.mxu1 %v4831_v50  ;;  %695 = vmatprep.mubr.f32.mxu1 %v9446_v53  ;;  %v4853_v50 = vld [vmem:[#allocation8 + $0x170] sm:$0xff]  ;;  %v4857_v53 = vld [vmem:[#allocation8 + $0x140] sm:$0xff]  ;;  %9536 = vst [vmem:[#allocation143_spill] sm:$0xff] %v5103_v62 }
  0x89   :  { %568 = vmatprep.subr.mxu0 %v4839_v48  ;;  %638 = vmatpush1.msra.mxu1 %v4841_v54  ;;  %9452 = vst [vmem:[#allocation59_spill] sm:$0xff] %v4853_v50  ;;  %9453 = vst [vmem:[#allocation60_spill] sm:$0xff] %v4857_v53  ;;  %v4859_v48 = vld [vmem:[#allocation8 + $0x158] sm:$0xff]  ;;  %v4863_v54 = vld [vmem:[#allocation8 + $0x128] sm:$0xff] }
  0x8a   :  { %569 = vmatpush1.msra.mxu0 %v4845_v57  ;;  %639 = vmatprep.subr.mxu1 %v4847_v58  ;;  %9454 = vst [vmem:[#allocation61_spill] sm:$0xff] %v4859_v48  ;;  %9455 = vst [vmem:[#allocation62_spill] sm:$0xff] %v4863_v54  ;;  %v4865_v57 = vld [vmem:[#allocation8 + $0x150] sm:$0xff]  ;;  %v4869_v58 = vld [vmem:[#allocation8 + $0x120] sm:$0xff] }
  0x8b   :  { %570 = vmatprep.subr.mxu0 %v4851_v60  ;;  %640 = vmatpush1.msra.mxu1 %v4853_v50  ;;  %9456 = vst [vmem:[#allocation63_spill] sm:$0xff] %v4865_v57  ;;  %9457 = vst [vmem:[#allocation64_spill] sm:$0xff] %v4869_v58  ;;  %v4871_v60 = vld [vmem:[#allocation8 + $0x138] sm:$0xff]  ;;  %v4875_v50 = vld [vmem:[#allocation8 + $0x108] sm:$0xff] }
  0x8c   :  { %571 = vmatpush1.msra.mxu0 %v4857_v53  ;;  %641 = vmatprep.subr.mxu1 %v4859_v48  ;;  %9458 = vst [vmem:[#allocation65_spill] sm:$0xff] %v4871_v60  ;;  %9459 = vst [vmem:[#allocation66_spill] sm:$0xff] %v4875_v50  ;;  %v4877_v53 = vld [vmem:[#allocation8 + $0x130] sm:$0xff]  ;;  %v4881_v48 = vld [vmem:[#allocation8 + $0x100] sm:$0xff] }
  0x8d   :  { %572 = vmatprep.subr.mxu0 %v4863_v54  ;;  %642 = vmatpush1.msra.mxu1 %v4865_v57  ;;  %9460 = vst [vmem:[#allocation67_spill] sm:$0xff] %v4877_v53  ;;  %9461 = vst [vmem:[#allocation68_spill] sm:$0xff] %v4881_v48  ;;  %v4883_v54 = vld [vmem:[#allocation8 + $0x118] sm:$0xff]  ;;  %v4887_v57 = vld [vmem:[#allocation8 + $0xe8] sm:$0xff] }
  0x8e   :  { %573 = vmatpush1.msra.mxu0 %v4869_v58  ;;  %643 = vmatprep.subr.mxu1 %v4871_v60  ;;  %9462 = vst [vmem:[#allocation69_spill] sm:$0xff] %v4883_v54  ;;  %9463 = vst [vmem:[#allocation70_spill] sm:$0xff] %v4887_v57  ;;  %v4889_v58 = vld [vmem:[#allocation8 + $0x110] sm:$0xff]  ;;  %v4893_v60 = vld [vmem:[#allocation8 + $0xe0] sm:$0xff] }
  0x8f   :  { %574 = vmatprep.subr.mxu0 %v4875_v50  ;;  %644 = vmatpush1.msra.mxu1 %v4877_v53  ;;  %9464 = vst [vmem:[#allocation71_spill] sm:$0xff] %v4889_v58  ;;  %9465 = vst [vmem:[#allocation72_spill] sm:$0xff] %v4893_v60  ;;  %v4895_v50 = vld [vmem:[#allocation8 + $0xf8] sm:$0xff]  ;;  %v4899_v53 = vld [vmem:[#allocation8 + $0xc8] sm:$0xff] }
  0x90   :  { %575 = vmatpush1.msra.mxu0 %v4881_v48  ;;  %645 = vmatprep.subr.mxu1 %v4883_v54  ;;  %9466 = vst [vmem:[#allocation73_spill] sm:$0xff] %v4895_v50  ;;  %9467 = vst [vmem:[#allocation74_spill] sm:$0xff] %v4899_v53  ;;  %v4901_v48 = vld [vmem:[#allocation8 + $0xf0] sm:$0xff]  ;;  %v4905_v54 = vld [vmem:[#allocation8 + $0xc0] sm:$0xff] }
  0x91   :  { %576 = vmatprep.subr.mxu0 %v4887_v57  ;;  %646 = vmatpush1.msra.mxu1 %v4889_v58  ;;  %9468 = vst [vmem:[#allocation75_spill] sm:$0xff] %v4901_v48  ;;  %9469 = vst [vmem:[#allocation76_spill] sm:$0xff] %v4905_v54  ;;  %v4907_v57 = vld [vmem:[#allocation8 + $0xd8] sm:$0xff]  ;;  %v4911_v58 = vld [vmem:[#allocation8 + $0xa8] sm:$0xff] }
  0x92   :  { %577 = vmatpush1.msra.mxu0 %v4893_v60  ;;  %647 = vmatprep.subr.mxu1 %v4895_v50  ;;  %9470 = vst [vmem:[#allocation77_spill] sm:$0xff] %v4907_v57  ;;  %9471 = vst [vmem:[#allocation78_spill] sm:$0xff] %v4911_v58  ;;  %v4913_v60 = vld [vmem:[#allocation8 + $0xd0] sm:$0xff]  ;;  %v4917_v50 = vld [vmem:[#allocation8 + $0xa0] sm:$0xff] }
  0x93   :  { %578 = vmatprep.subr.mxu0 %v4899_v53  ;;  %648 = vmatpush1.msra.mxu1 %v4901_v48  ;;  %9472 = vst [vmem:[#allocation79_spill] sm:$0xff] %v4913_v60  ;;  %9473 = vst [vmem:[#allocation80_spill] sm:$0xff] %v4917_v50  ;;  %v4919_v53 = vld [vmem:[#allocation8 + $0xb8] sm:$0xff]  ;;  %v4923_v48 = vld [vmem:[#allocation8 + $0x88] sm:$0xff] }
  0x94   :  { %579 = vmatpush1.msra.mxu0 %v4905_v54  ;;  %649 = vmatprep.subr.mxu1 %v4907_v57  ;;  %9474 = vst [vmem:[#allocation81_spill] sm:$0xff] %v4919_v53  ;;  %9475 = vst [vmem:[#allocation82_spill] sm:$0xff] %v4923_v48  ;;  %v4925_v54 = vld [vmem:[#allocation8 + $0xb0] sm:$0xff]  ;;  %v4929_v57 = vld [vmem:[#allocation8 + $0x80] sm:$0xff] }
  0x95   :  { %580 = vmatprep.subr.mxu0 %v4911_v58  ;;  %650 = vmatpush1.msra.mxu1 %v4913_v60  ;;  %9476 = vst [vmem:[#allocation83_spill] sm:$0xff] %v4925_v54  ;;  %9477 = vst [vmem:[#allocation84_spill] sm:$0xff] %v4929_v57  ;;  %v4931_v58 = vld [vmem:[#allocation8 + $0x98] sm:$0xff]  ;;  %v4935_v60 = vld [vmem:[#allocation8 + $0x68] sm:$0xff] }
  0x96   :  { %581 = vmatpush1.msra.mxu0 %v4917_v50  ;;  %651 = vmatprep.subr.mxu1 %v4919_v53  ;;  %9478 = vst [vmem:[#allocation85_spill] sm:$0xff] %v4931_v58  ;;  %9479 = vst [vmem:[#allocation86_spill] sm:$0xff] %v4935_v60  ;;  %v4937_v50 = vld [vmem:[#allocation8 + $0x90] sm:$0xff]  ;;  %v4941_v53 = vld [vmem:[#allocation8 + $0x60] sm:$0xff] }
  0x97   :  { %582 = vmatprep.subr.mxu0 %v4923_v48  ;;  %652 = vmatpush1.msra.mxu1 %v4925_v54  ;;  %9480 = vst [vmem:[#allocation87_spill] sm:$0xff] %v4937_v50  ;;  %9481 = vst [vmem:[#allocation88_spill] sm:$0xff] %v4941_v53  ;;  %v4943_v48 = vld [vmem:[#allocation8 + $0x78] sm:$0xff]  ;;  %v4947_v54 = vld [vmem:[#allocation8 + $0x48] sm:$0xff] }
  0x98   :  { %583 = vmatpush1.msra.mxu0 %v4929_v57  ;;  %653 = vmatprep.subr.mxu1 %v4931_v58  ;;  %9482 = vst [vmem:[#allocation89_spill] sm:$0xff] %v4943_v48  ;;  %9483 = vst [vmem:[#allocation90_spill] sm:$0xff] %v4947_v54  ;;  %v4949_v57 = vld [vmem:[#allocation8 + $0x70] sm:$0xff]  ;;  %v4953_v58 = vld [vmem:[#allocation8 + $0x40] sm:$0xff] }
  0x99   :  { %584 = vmatprep.subr.mxu0 %v4935_v60  ;;  %654 = vmatpush1.msra.mxu1 %v4937_v50  ;;  %9484 = vst [vmem:[#allocation91_spill] sm:$0xff] %v4949_v57  ;;  %9485 = vst [vmem:[#allocation92_spill] sm:$0xff] %v4953_v58  ;;  %v4955_v60 = vld [vmem:[#allocation8 + $0x58] sm:$0xff]  ;;  %v4959_v50 = vld [vmem:[#allocation8 + $0x28] sm:$0xff] }
  0x9a   :  { %585 = vmatpush1.msra.mxu0 %v4941_v53  ;;  %655 = vmatprep.subr.mxu1 %v4943_v48  ;;  %9486 = vst [vmem:[#allocation93_spill] sm:$0xff] %v4955_v60  ;;  %9487 = vst [vmem:[#allocation94_spill] sm:$0xff] %v4959_v50  ;;  %v4961_v53 = vld [vmem:[#allocation8 + $0x50] sm:$0xff]  ;;  %v4965_v48 = vld [vmem:[#allocation8 + $0x20] sm:$0xff] }
  0x9b   :  { %586 = vmatprep.subr.mxu0 %v4947_v54  ;;  %656 = vmatpush1.msra.mxu1 %v4949_v57  ;;  %9488 = vst [vmem:[#allocation95_spill] sm:$0xff] %v4961_v53  ;;  %9489 = vst [vmem:[#allocation96_spill] sm:$0xff] %v4965_v48  ;;  %v4967_v54 = vld [vmem:[#allocation8 + $0x38] sm:$0xff]  ;;  %v4971_v57 = vld [vmem:[#allocation8 + $0x8] sm:$0xff] }
  0x9c   :  { %587 = vmatpush1.msra.mxu0 %v4953_v58  ;;  %657 = vmatprep.subr.mxu1 %v4955_v60  ;;  %9490 = vst [vmem:[#allocation97_spill] sm:$0xff] %v4967_v54  ;;  %9491 = vst [vmem:[#allocation98_spill] sm:$0xff] %v4971_v57  ;;  %v4973_v58 = vld [vmem:[#allocation8 + $0x30] sm:$0xff]  ;;  %v4977_v60 = vld [vmem:[#allocation8] sm:$0xff] }
  0x9d   :  { %588 = vmatprep.subr.mxu0 %v4959_v50  ;;  %658 = vmatpush1.msra.mxu1 %v4961_v53  ;;  %9492 = vst [vmem:[#allocation99_spill] sm:$0xff] %v4973_v58  ;;  %9493 = vst [vmem:[#allocation100_spill] sm:$0xff] %v4977_v60  ;;  %v4979_v50 = vld [vmem:[#allocation8 + $0x18] sm:$0xff]  ;;  %v4983_v53 = vld [vmem:[#allocation8 + $0x3e8] sm:$0xff] }
  0x9e   :  { %589 = vmatpush1.msra.mxu0 %v4965_v48  ;;  %659 = vmatprep.subr.mxu1 %v4967_v54  ;;  %9494 = vst [vmem:[#allocation101_spill] sm:$0xff] %v4979_v50  ;;  %9495 = vst [vmem:[#allocation102_spill] sm:$0xff] %v4983_v53  ;;  %v4985_v48 = vld [vmem:[#allocation8 + $0x10] sm:$0xff]  ;;  %v4989_v54 = vld [vmem:[#allocation8 + $0x3e0] sm:$0xff] }
  0x9f   :  { %590 = vmatprep.subr.mxu0 %v4971_v57  ;;  %660 = vmatpush1.msra.mxu1 %v4973_v58  ;;  %9496 = vst [vmem:[#allocation103_spill] sm:$0xff] %v4985_v48  ;;  %9497 = vst [vmem:[#allocation104_spill] sm:$0xff] %v4989_v54  ;;  %v4991_v57 = vld [vmem:[#allocation8 + $0x3f8] sm:$0xff]  ;;  %v4995_v58 = vld [vmem:[#allocation8 + $0x3c8] sm:$0xff] }
  0xa0   :  { %591 = vmatpush1.msra.mxu0 %v4977_v60  ;;  %661 = vmatprep.subr.mxu1 %v4979_v50  ;;  %9498 = vst [vmem:[#allocation105_spill] sm:$0xff] %v4991_v57  ;;  %9499 = vst [vmem:[#allocation106_spill] sm:$0xff] %v4995_v58  ;;  %v4997_v60 = vld [vmem:[#allocation8 + $0x3f0] sm:$0xff]  ;;  %v5001_v50 = vld [vmem:[#allocation8 + $0x3c0] sm:$0xff] }
  0xa1   :  { %592 = vmatprep.subr.mxu0 %v4983_v53  ;;  %662 = vmatpush1.msra.mxu1 %v4985_v48  ;;  %9500 = vst [vmem:[#allocation107_spill] sm:$0xff] %v4997_v60  ;;  %9501 = vst [vmem:[#allocation108_spill] sm:$0xff] %v5001_v50  ;;  %v5003_v53 = vld [vmem:[#allocation8 + $0x3d8] sm:$0xff]  ;;  %v5007_v48 = vld [vmem:[#allocation8 + $0x3a8] sm:$0xff] }
  0xa2   :  { %593 = vmatpush2.msra.mxu0 %v4989_v54  ;;  %663 = vmatprep.subr.mxu1 %v4991_v57  ;;  %9502 = vst [vmem:[#allocation109_spill] sm:$0xff] %v5003_v53  ;;  %9503 = vst [vmem:[#allocation110_spill] sm:$0xff] %v5007_v48  ;;  %v5009_v54 = vld [vmem:[#allocation8 + $0x3d0] sm:$0xff]  ;;  %v5013_v57 = vld [vmem:[#allocation8 + $0x3a0] sm:$0xff] }
  0xa3   :  { %594 = vmatprep.subr.mxu0 %v4995_v58  ;;  %664 = vmatpush2.msra.mxu1 %v4997_v60  ;;  %9504 = vst [vmem:[#allocation111_spill] sm:$0xff] %v5009_v54  ;;  %9505 = vst [vmem:[#allocation112_spill] sm:$0xff] %v5013_v57  ;;  %v5015_v58 = vld [vmem:[#allocation8 + $0x3b8] sm:$0xff]  ;;  %v5019_v60 = vld [vmem:[#allocation8 + $0x388] sm:$0xff] }
  0xa4   :  { %595 = vmatpush2.msra.mxu0 %v5001_v50  ;;  %665 = vmatprep.subr.mxu1 %v5003_v53  ;;  %9506 = vst [vmem:[#allocation113_spill] sm:$0xff] %v5015_v58  ;;  %9507 = vst [vmem:[#allocation114_spill] sm:$0xff] %v5019_v60  ;;  %v5021_v50 = vld [vmem:[#allocation8 + $0x3b0] sm:$0xff]  ;;  %v5025_v53 = vld [vmem:[#allocation8 + $0x380] sm:$0xff] }
  0xa5   :  { %596 = vmatprep.subr.mxu0 %v5007_v48  ;;  %666 = vmatpush2.msra.mxu1 %v5009_v54  ;;  %9508 = vst [vmem:[#allocation115_spill] sm:$0xff] %v5021_v50  ;;  %9509 = vst [vmem:[#allocation116_spill] sm:$0xff] %v5025_v53  ;;  %v5027_v48 = vld [vmem:[#allocation8 + $0x398] sm:$0xff]  ;;  %v5031_v54 = vld [vmem:[#allocation8 + $0x368] sm:$0xff] }
  0xa6   :  { %597 = vmatpush2.msra.mxu0 %v5013_v57  ;;  %667 = vmatprep.subr.mxu1 %v5015_v58  ;;  %9510 = vst [vmem:[#allocation117_spill] sm:$0xff] %v5027_v48  ;;  %9511 = vst [vmem:[#allocation118_spill] sm:$0xff] %v5031_v54  ;;  %v5033_v57 = vld [vmem:[#allocation8 + $0x390] sm:$0xff]  ;;  %v5037_v58 = vld [vmem:[#allocation8 + $0x360] sm:$0xff] }
  0xa7   :  { %598 = vmatprep.subr.mxu0 %v5019_v60  ;;  %668 = vmatpush2.msra.mxu1 %v5021_v50  ;;  %9512 = vst [vmem:[#allocation119_spill] sm:$0xff] %v5033_v57  ;;  %9513 = vst [vmem:[#allocation120_spill] sm:$0xff] %v5037_v58  ;;  %v5039_v60 = vld [vmem:[#allocation8 + $0x378] sm:$0xff]  ;;  %v5043_v50 = vld [vmem:[#allocation8 + $0x348] sm:$0xff] }
  0xa8   :  { %599 = vmatpush2.msra.mxu0 %v5025_v53  ;;  %669 = vmatprep.subr.mxu1 %v5027_v48  ;;  %9514 = vst [vmem:[#allocation121_spill] sm:$0xff] %v5039_v60  ;;  %9515 = vst [vmem:[#allocation122_spill] sm:$0xff] %v5043_v50  ;;  %v5045_v53 = vld [vmem:[#allocation8 + $0x370] sm:$0xff]  ;;  %v5049_v48 = vld [vmem:[#allocation8 + $0x340] sm:$0xff] }
  0xa9   :  { %600 = vmatprep.subr.mxu0 %v5031_v54  ;;  %670 = vmatpush2.msra.mxu1 %v5033_v57  ;;  %9516 = vst [vmem:[#allocation123_spill] sm:$0xff] %v5045_v53  ;;  %9517 = vst [vmem:[#allocation124_spill] sm:$0xff] %v5049_v48  ;;  %v5051_v54 = vld [vmem:[#allocation8 + $0x358] sm:$0xff]  ;;  %v5055_v57 = vld [vmem:[#allocation8 + $0x328] sm:$0xff] }
  0xaa   :  { %601 = vmatpush2.msra.mxu0 %v5037_v58  ;;  %671 = vmatprep.subr.mxu1 %v5039_v60  ;;  %9518 = vst [vmem:[#allocation125_spill] sm:$0xff] %v5051_v54  ;;  %9519 = vst [vmem:[#allocation126_spill] sm:$0xff] %v5055_v57  ;;  %v5057_v58 = vld [vmem:[#allocation8 + $0x350] sm:$0xff]  ;;  %v5061_v60 = vld [vmem:[#allocation8 + $0x320] sm:$0xff] }
  0xab   :  { %602 = vmatprep.subr.mxu0 %v5043_v50  ;;  %672 = vmatpush2.msra.mxu1 %v5045_v53  ;;  %9520 = vst [vmem:[#allocation127_spill] sm:$0xff] %v5057_v58  ;;  %9521 = vst [vmem:[#allocation128_spill] sm:$0xff] %v5061_v60  ;;  %v5063_v50 = vld [vmem:[#allocation8 + $0x338] sm:$0xff]  ;;  %v5067_v53 = vld [vmem:[#allocation8 + $0x308] sm:$0xff] }
  0xac   :  { %603 = vmatpush2.msra.mxu0 %v5049_v48  ;;  %673 = vmatprep.subr.mxu1 %v5051_v54  ;;  %9522 = vst [vmem:[#allocation129_spill] sm:$0xff] %v5063_v50  ;;  %9523 = vst [vmem:[#allocation130_spill] sm:$0xff] %v5067_v53  ;;  %v5069_v48 = vld [vmem:[#allocation8 + $0x330] sm:$0xff]  ;;  %v5073_v54 = vld [vmem:[#allocation8 + $0x300] sm:$0xff] }
  0xad   :  { %604 = vmatprep.subr.mxu0 %v5055_v57  ;;  %674 = vmatpush2.msra.mxu1 %v5057_v58  ;;  %9524 = vst [vmem:[#allocation131_spill] sm:$0xff] %v5069_v48  ;;  %9525 = vst [vmem:[#allocation132_spill] sm:$0xff] %v5073_v54  ;;  %v5075_v57 = vld [vmem:[#allocation8 + $0x318] sm:$0xff]  ;;  %v5079_v58 = vld [vmem:[#allocation8 + $0x2e8] sm:$0xff] }
  0xae   :  { %605 = vmatpush2.msra.mxu0 %v5061_v60  ;;  %675 = vmatprep.subr.mxu1 %v5063_v50  ;;  %9526 = vst [vmem:[#allocation133_spill] sm:$0xff] %v5075_v57  ;;  %9527 = vst [vmem:[#allocation134_spill] sm:$0xff] %v5079_v58  ;;  %v5081_v60 = vld [vmem:[#allocation8 + $0x310] sm:$0xff]  ;;  %v5085_v50 = vld [vmem:[#allocation8 + $0x2e0] sm:$0xff] }
  0xaf   :  { %606 = vmatprep.subr.mxu0 %v5067_v53  ;;  %676 = vmatpush2.msra.mxu1 %v5069_v48  ;;  %9528 = vst [vmem:[#allocation135_spill] sm:$0xff] %v5081_v60  ;;  %9529 = vst [vmem:[#allocation136_spill] sm:$0xff] %v5085_v50  ;;  %v5087_v53 = vld [vmem:[#allocation8 + $0x2f8] sm:$0xff]  ;;  %v5091_v48 = vld [vmem:[#allocation8 + $0x2c8] sm:$0xff] }
  0xb0   :  { %607 = vmatpush2.msra.mxu0 %v5073_v54  ;;  %677 = vmatprep.subr.mxu1 %v5075_v57  ;;  %9530 = vst [vmem:[#allocation137_spill] sm:$0xff] %v5087_v53  ;;  %9531 = vst [vmem:[#allocation138_spill] sm:$0xff] %v5091_v48  ;;  %v5093_v54 = vld [vmem:[#allocation8 + $0x2f0] sm:$0xff]  ;;  %v5095_v57 = vld [vmem:[#allocation8 + $0x2c0] sm:$0xff] }
  0xb1   :  { %608 = vmatprep.subr.mxu0 %v5079_v58  ;;  %678 = vmatpush2.msra.mxu1 %v5081_v60  ;;  %9532 = vst [vmem:[#allocation139_spill] sm:$0xff] %v5093_v54  ;;  %9533 = vst [vmem:[#allocation140_spill] sm:$0xff] %v5095_v57  ;;  %v5099_v58 = vld [vmem:[#allocation8 + $0x2d8] sm:$0xff]  ;;  %v5101_v60 = vld [vmem:[#allocation8 + $0x2a8] sm:$0xff] }
  0xb2   :  { %609 = vmatpush2.msra.mxu0 %v5085_v50  ;;  %679 = vmatprep.subr.mxu1 %v5087_v53  ;;  %9534 = vst [vmem:[#allocation141_spill] sm:$0xff] %v5099_v58  ;;  %9535 = vst [vmem:[#allocation142_spill] sm:$0xff] %v5101_v60  ;;  %v5107_v53 = vld [vmem:[#allocation8 + $0x2a0] sm:$0xff]  ;;  %v5109_v50 = vld [vmem:[#allocation8 + $0x2b8] sm:$0xff] }
  0xb3   :  { %610 = vmatprep.subr.mxu0 %v5091_v48  ;;  %680 = vmatpush2.msra.mxu1 %v5093_v54  ;;  %9537 = vst [vmem:[#allocation144_spill] sm:$0xff] %v5107_v53  ;;  %9538 = vst [vmem:[#allocation145_spill] sm:$0xff] %v5109_v50  ;;  %v5115_v54 = vld [vmem:[#allocation8 + $0x2b0] sm:$0xff]  ;;  %v5117_v48 = vld [vmem:[#allocation8 + $0x280] sm:$0xff] }
  0xb4   :  { %611 = vmatpush2.msra.mxu0 %v5095_v57  ;;  %681 = vmatprep.subr.mxu1 %v5099_v58  ;;  %9540 = vst [vmem:[#allocation147_spill] sm:$0xff] %v5115_v54  ;;  %9541 = vst [vmem:[#allocation148_spill] sm:$0xff] %v5117_v48  ;;  %v5123_v58 = vld [vmem:[#allocation8 + $0x268] sm:$0xff]  ;;  %v5125_v57 = vld [vmem:[#allocation8 + $0x290] sm:$0xff] }
  0xb5   :  { %612 = vmatprep.subr.mxu0 %v5101_v60  ;;  %682 = vmatpush2.msra.mxu1 %v5103_v62  ;;  %9543 = vst [vmem:[#allocation150_spill] sm:$0xff] %v5123_v58  ;;  %9544 = vst [vmem:[#allocation151_spill] sm:$0xff] %v5125_v57  ;;  %v5129_v60 = vld [vmem:[#allocation8 + $0x260] sm:$0xff]  ;;  %v5131_v62 = vld [vmem:[#allocation8 + $0x278] sm:$0xff] }
  0xb6   :  { %613 = vmatpush2.msra.mxu0 %v5107_v53  ;;  %683 = vmatprep.subr.mxu1 %v5109_v50  ;;  %9545 = vst [vmem:[#allocation152_spill] sm:$0xff] %v5129_v60  ;;  %9546 = vst [vmem:[#allocation153_spill] sm:$0xff] %v5131_v62  ;;  %v5137_v53 = vld [vmem:[#allocation8 + $0x270] sm:$0xff]  ;;  %v5141_v50 = vld [vmem:[#allocation8 + $0x240] sm:$0xff] }
  0xb7   :  { %614 = vmatprep.subr.mxu0 %v5111_v56  ;;  %684 = vmatpush2.msra.mxu1 %v5115_v54  ;;  %9548 = vst [vmem:[#allocation155_spill] sm:$0xff] %v5137_v53  ;;  %9549 = vst [vmem:[#allocation156_spill] sm:$0xff] %v5141_v50  ;;  %v5143_v56 = vld [vmem:[#allocation8 + $0x258] sm:$0xff]  ;;  %v5147_v54 = vld [vmem:[#allocation8 + $0x228] sm:$0xff] }
  0xb8   :  { %615 = vmatpush2.msra.mxu0 %v5117_v48  ;;  %685 = vmatprep.subr.mxu1 %v5119_v52  ;;  %9550 = vst [vmem:[#allocation157_spill] sm:$0xff] %v5143_v56  ;;  %9551 = vst [vmem:[#allocation158_spill] sm:$0xff] %v5147_v54  ;;  %v5149_v48 = vld [vmem:[#allocation8 + $0x250] sm:$0xff]  ;;  %v5153_v52 = vld [vmem:[#allocation8 + $0x220] sm:$0xff] }
  0xb9   :  { %616 = vmatprep.subr.mxu0 %v5123_v58  ;;  %686 = vmatpush2.msra.mxu1 %v5125_v57  ;;  %9552 = vst [vmem:[#allocation159_spill] sm:$0xff] %v5149_v48  ;;  %9553 = vst [vmem:[#allocation160_spill] sm:$0xff] %v5153_v52  ;;  %v5155_v58 = vld [vmem:[#allocation8 + $0x238] sm:$0xff]  ;;  %v5159_v57 = vld [vmem:[#allocation8 + $0x208] sm:$0xff] }
  0xba   :  { %617 = vmatpush2.msra.mxu0 %v5129_v60  ;;  %687 = vmatprep.subr.mxu1 %v5131_v62  ;;  %9554 = vst [vmem:[#allocation161_spill] sm:$0xff] %v5155_v58  ;;  %9555 = vst [vmem:[#allocation162_spill] sm:$0xff] %v5159_v57  ;;  %v5161_v60 = vld [vmem:[#allocation8 + $0x230] sm:$0xff]  ;;  %v5165_v62 = vld [vmem:[#allocation8 + $0x200] sm:$0xff] }
  0xbb   :  { %618 = vmatprep.subr.mxu0 %v5135_v0  ;;  %688 = vmatpush2.msra.mxu1 %v5137_v53  ;;  %9556 = vst [vmem:[#allocation163_spill] sm:$0xff] %v5161_v60  ;;  %9557 = vst [vmem:[#allocation164_spill] sm:$0xff] %v5165_v62  ;;  %v5167_v0 = vld [vmem:[#allocation8 + $0x218] sm:$0xff]  ;;  %v5171_v53 = vld [vmem:[#allocation8 + $0x210] sm:$0xff] }
  0xbc   :  { %619 = vmatpush2.msra.mxu0 %v5141_v50  ;;  %689 = vmatprep.subr.mxu1 %v5143_v56  ;;  %9558 = vst [vmem:[#allocation165_spill] sm:$0xff] %v5167_v0  ;;  %9559 = vst [vmem:[#allocation166_spill] sm:$0xff] %v5171_v53 }
  0xbd   :  { %620 = vmatprep.subr.mxu0 %v5147_v54  ;;  %690 = vmatpush2.msra.mxu1 %v5149_v48  ;;  %v5178_v48 = vld [vmem:[#allocation5 + $0x1e8] sm:$0xff]  ;;  %v349_v54 = vld [vmem:[#allocation7] sm:$0xf] }
  0xbe   :  { %621 = vmatpush2.msra.mxu0 %v5153_v52  ;;  %691 = vmatprep.subr.mxu1 %v5155_v58  ;;  %9560 = vst [vmem:[#allocation167_spill] sm:$0xff] %v5178_v48  ;;  %v8788_v52 = vlaneseq }
  0xbf   :  { %622 = vmatprep.subr.mxu0 %v5159_v57  ;;  %692 = vmatpush2.msra.mxu1 %v5161_v60 }
  0xc0   :  { %623 = vmatpush2.msra.mxu0 %v5165_v62  ;;  %693 = vmatprep.subr.mxu1 %v5167_v0  ;;  %v5183_v58 = vshrl.u32 %v8788_v52, 7 }
  0xc1   :  { %694 = vmatpush2.msra.mxu1 %v5171_v53  ;;  %728 = vmatprep.subr.mxu0 %v5178_v48 }
  0xc2   :  { %799 = vmatprep.subr.mxu1 %v4585_v9  ;;  %9561 = vst [vmem:[#allocation168_spill] sm:$0xff] %v5183_v58  ;;  %v8792_v57 = vsub.s32 0, %v5183_v58  ;;  %v8794_v60 = vsub.s32 1, %v5183_v58  ;;  %v8799_v50 = vsub.s32 3, %v5183_v58 }
  0xc4   :  { %v5189_v0 = vrot.slane %v349_v54, %v8792_v57  ;;  %v5193_v53 = vrot.slane %v349_v54, %v8794_v60  ;;  %v8805_v57 = vsub.s32 2, %v5183_v58  ;;  %v5201_v51 = vrot.slane %v349_v54, %v8799_v50 }
  0xc6   :  { %9562 = vst [vmem:[#allocation169_spill] sm:$0xff] %v5189_v0  ;;  %9563 = vst [vmem:[#allocation170_spill] sm:$0xff] %v5193_v53 }
 0x13f   :  { %v460_v48 = vpop.f32.mrf.mxu0 }
 0x140   :  { %v461_v9 = vadd.f32 %v460_v48, %v5189_v0  ;;  %v5205_v48 = vrot.slane %v349_v54, %v8805_v57 }
 0x141   :  { %v462_v62 = vpop.f32.mrf.mxu0  ;;  %v531_v46 = vpop.f32.mrf.mxu1 }
 0x142   :  { %v3188_v56 = vmul.f32 -1.442695, %v461_v9  ;;  %v463_v52 = vadd.f32 %v462_v62, %v5193_v53  ;;  %v532_v62 = vadd.f32 %v531_v46, %v5205_v48 }
 0x143   :  { %v533_v60 = vpop.f32.mrf.mxu1 }
 0x144   :  { %3301 = vpow2.f32 %v3188_v56  ;;  %v3189_v55 = vmul.f32 -1.442695, %v463_v52  ;;  %v534_v9 = vadd.f32 %v533_v60, %v5201_v51 }
 0x146   :  { %3303 = vpow2.f32 %v3189_v55  ;;  %v3190_v53 = vmul.f32 -1.442695, %v534_v9 }
 0x147   :  { %3305 = vtanh.f32 %v532_v62  ;;  %v5236_v62 = vld [vmem:[#allocation5 + $0x188] sm:$0xff] }
 0x148   :  { %3307 = vpow2.f32 %v3190_v53  ;;  %v5212_v53 = vld [vmem:[#allocation5 + $0x1e0] sm:$0xff] }
 0x151   :  { %v3302_v56 = vpop.eup %3301 }
 0x152   :  { %v539_v52 = vadd.f32 1.0, %v3302_v56  ;;  %v5239_v56 = vld [vmem:[#allocation5 + $0x1b8] sm:$0xff] }
 0x153   :  { %v3304_v55 = vpop.eup %3303 }
 0x154   :  { %3309 = vrcp.f32 %v539_v52  ;;  %v545_v0 = vadd.f32 1.0, %v3304_v55  ;;  %v3306_v50 = vpop.eup %3305  ;;  %v5242_v52 = vld [vmem:[#allocation5 + $0x180] sm:$0xff]  ;;  %v5245_v55 = vld [vmem:[#allocation5 + $0x1b0] sm:$0xff] }
 0x155   :  { %v3308_v44 = vpop.eup %3307  ;;  %9564 = vst [vmem:[#allocation171_spill] sm:$0xff] %v5242_v52  ;;  %9565 = vst [vmem:[#allocation172_spill] sm:$0xff] %v5245_v55 }
 0x156   :  { %3311 = vrcp.f32 %v545_v0  ;;  %v552_v58 = vadd.f32 1.0, %v3308_v44  ;;  %v5215_v0 = vld [vmem:[#allocation5 + $0x1c8] sm:$0xff]  ;;  %v5221_v44 = vld [vmem:[#allocation5 + $0x1f0] sm:$0xff] }
 0x158   :  { %3313 = vrcp.f32 %v552_v58  ;;  %v5230_v58 = vld [vmem:[#allocation5 + $0x1a0] sm:$0xff] }
 0x161   :  { %v3310_v49 = vpop.eup %3309 }
 0x162   :  { %v556_v57 = vmul.f32 %v3310_v49, %v3306_v50  ;;  %v5224_v49 = vld [vmem:[#allocation5 + $0x1a8] sm:$0xff]  ;;  %v5233_v50 = vld [vmem:[#allocation5 + $0x1d0] sm:$0xff] }
 0x163   :  { %v3312_v42 = vpop.eup %3311 }
 0x164   :  { %v555_v54 = vmul.f32 0.0, %v3312_v42  ;;  %v5218_v42 = vld [vmem:[#allocation5 + $0x1c0] sm:$0xff] }
 0x165   :  { %v3314_v46 = vpop.eup %3313 }
 0x166   :  { %v5209_v47 = vadd.f32 %v556_v57, %v555_v54  ;;  %v5227_v57 = vld [vmem:[#allocation5 + $0x1d8] sm:$0xff]  ;;  %v5248_v54 = vld [vmem:[#allocation5 + $0x168] sm:$0xff] }
 0x167   :  { %9566 = vst [vmem:[#allocation173_spill] sm:$0xff] %v5248_v54 }
 0x168   :  { %3315 = vtanh.f32 %v5209_v47 }
 0x175   :  { %v3316_v60 = vpop.eup %3315 }
 0x176   :  { %v559_v9 = vmul.f32 %v3316_v60, %v3314_v46  ;;  %v5251_v46 = vld [vmem:[#allocation5 + $0x198] sm:$0xff]  ;;  %v5254_v60 = vld [vmem:[#allocation5 + $0x160] sm:$0xff] }
 0x177   :  { %9567 = vst [vmem:[#allocation174_spill] sm:$0xff] %v5251_v46  ;;  %9568 = vst [vmem:[#allocation175_spill] sm:$0xff] %v5254_v60 }
 0x178   :  { %625 = vmatmul.mubr.f32.vlgmr.msra.gmra.mxu0 %v559_v9  ;;  %696 = vmatmul.mubr.f32.vlgmr.msra.gmra.mxu1 %v559_v9 }
 0x179   :  { %729 = vmatpush1.msra.mxu0 %v5212_v53  ;;  %792 = vmatprep.mubr.f32.mxu0 %v559_v9 }
 0x17a   :  { %730 = vmatprep.subr.mxu0 %v5215_v0  ;;  %863 = vmatprep.mubr.f32.mxu1 %v559_v9  ;;  %v5257_v9 = vld [vmem:[#allocation5 + $0x190] sm:$0xff] }
 0x17b   :  { %731 = vmatpush1.msra.mxu0 %v5218_v42  ;;  %800 = vmatpush1.msra.mxu1 %v5221_v44  ;;  %9569 = vst [vmem:[#allocation176_spill] sm:$0xff] %v5257_v9 }
 0x17c   :  { %732 = vmatprep.subr.mxu0 %v5224_v49  ;;  %801 = vmatprep.subr.mxu1 %v5227_v57 }
 0x17d   :  { %733 = vmatpush1.msra.mxu0 %v5230_v58  ;;  %802 = vmatpush1.msra.mxu1 %v5233_v50 }
 0x17e   :  { %734 = vmatprep.subr.mxu0 %v5236_v62  ;;  %803 = vmatprep.subr.mxu1 %v5239_v56 }
 0x17f   :  { %735 = vmatpush1.msra.mxu0 %v5242_v52  ;;  %804 = vmatpush1.msra.mxu1 %v5245_v55  ;;  %v5260_v52 = vld [vmem:[#allocation5 + $0x148] sm:$0xff]  ;;  %v5263_v55 = vld [vmem:[#allocation5 + $0x178] sm:$0xff] }
 0x180   :  { %736 = vmatprep.subr.mxu0 %v5248_v54  ;;  %805 = vmatprep.subr.mxu1 %v5251_v46  ;;  %9570 = vst [vmem:[#allocation177_spill] sm:$0xff] %v5260_v52  ;;  %9571 = vst [vmem:[#allocation178_spill] sm:$0xff] %v5263_v55  ;;  %v5266_v54 = vld [vmem:[#allocation5 + $0x140] sm:$0xff]  ;;  %v5269_v46 = vld [vmem:[#allocation5 + $0x170] sm:$0xff] }
 0x181   :  { %737 = vmatpush1.msra.mxu0 %v5254_v60  ;;  %806 = vmatpush1.msra.mxu1 %v5257_v9  ;;  %9572 = vst [vmem:[#allocation179_spill] sm:$0xff] %v5266_v54  ;;  %9573 = vst [vmem:[#allocation180_spill] sm:$0xff] %v5269_v46  ;;  %v5272_v60 = vld [vmem:[#allocation5 + $0x128] sm:$0xff]  ;;  %v5275_v9 = vld [vmem:[#allocation5 + $0x158] sm:$0xff] }
 0x182   :  { %738 = vmatprep.subr.mxu0 %v5260_v52  ;;  %807 = vmatprep.subr.mxu1 %v5263_v55  ;;  %9574 = vst [vmem:[#allocation181_spill] sm:$0xff] %v5272_v60  ;;  %9575 = vst [vmem:[#allocation182_spill] sm:$0xff] %v5275_v9  ;;  %v5278_v52 = vld [vmem:[#allocation5 + $0x120] sm:$0xff]  ;;  %v5281_v55 = vld [vmem:[#allocation5 + $0x150] sm:$0xff] }
 0x183   :  { %739 = vmatpush1.msra.mxu0 %v5266_v54  ;;  %808 = vmatpush1.msra.mxu1 %v5269_v46  ;;  %9576 = vst [vmem:[#allocation183_spill] sm:$0xff] %v5278_v52  ;;  %9577 = vst [vmem:[#allocation184_spill] sm:$0xff] %v5281_v55  ;;  %v5284_v54 = vld [vmem:[#allocation5 + $0x108] sm:$0xff]  ;;  %v5287_v46 = vld [vmem:[#allocation5 + $0x138] sm:$0xff] }
 0x184   :  { %740 = vmatprep.subr.mxu0 %v5272_v60  ;;  %809 = vmatprep.subr.mxu1 %v5275_v9  ;;  %9578 = vst [vmem:[#allocation185_spill] sm:$0xff] %v5284_v54  ;;  %9579 = vst [vmem:[#allocation186_spill] sm:$0xff] %v5287_v46  ;;  %v5290_v60 = vld [vmem:[#allocation5 + $0x100] sm:$0xff]  ;;  %v5293_v9 = vld [vmem:[#allocation5 + $0x130] sm:$0xff] }
 0x185   :  { %741 = vmatpush1.msra.mxu0 %v5278_v52  ;;  %810 = vmatpush1.msra.mxu1 %v5281_v55  ;;  %9580 = vst [vmem:[#allocation187_spill] sm:$0xff] %v5290_v60  ;;  %9581 = vst [vmem:[#allocation188_spill] sm:$0xff] %v5293_v9  ;;  %v5296_v52 = vld [vmem:[#allocation5 + $0xe8] sm:$0xff]  ;;  %v5299_v55 = vld [vmem:[#allocation5 + $0x118] sm:$0xff] }
 0x186   :  { %742 = vmatprep.subr.mxu0 %v5284_v54  ;;  %811 = vmatprep.subr.mxu1 %v5287_v46  ;;  %9582 = vst [vmem:[#allocation189_spill] sm:$0xff] %v5296_v52  ;;  %9583 = vst [vmem:[#allocation190_spill] sm:$0xff] %v5299_v55  ;;  %v5302_v54 = vld [vmem:[#allocation5 + $0xe0] sm:$0xff]  ;;  %v5305_v46 = vld [vmem:[#allocation5 + $0x110] sm:$0xff] }
 0x187   :  { %743 = vmatpush1.msra.mxu0 %v5290_v60  ;;  %812 = vmatpush1.msra.mxu1 %v5293_v9  ;;  %9584 = vst [vmem:[#allocation191_spill] sm:$0xff] %v5302_v54  ;;  %9585 = vst [vmem:[#allocation192_spill] sm:$0xff] %v5305_v46  ;;  %v5308_v60 = vld [vmem:[#allocation5 + $0xc8] sm:$0xff]  ;;  %v5311_v9 = vld [vmem:[#allocation5 + $0xf8] sm:$0xff] }
 0x188   :  { %744 = vmatprep.subr.mxu0 %v5296_v52  ;;  %813 = vmatprep.subr.mxu1 %v5299_v55  ;;  %9586 = vst [vmem:[#allocation193_spill] sm:$0xff] %v5308_v60  ;;  %9587 = vst [vmem:[#allocation194_spill] sm:$0xff] %v5311_v9  ;;  %v5314_v52 = vld [vmem:[#allocation5 + $0xc0] sm:$0xff]  ;;  %v5317_v55 = vld [vmem:[#allocation5 + $0xf0] sm:$0xff] }
 0x189   :  { %745 = vmatpush1.msra.mxu0 %v5302_v54  ;;  %814 = vmatpush1.msra.mxu1 %v5305_v46  ;;  %9588 = vst [vmem:[#allocation195_spill] sm:$0xff] %v5314_v52  ;;  %9589 = vst [vmem:[#allocation196_spill] sm:$0xff] %v5317_v55  ;;  %v5320_v54 = vld [vmem:[#allocation5 + $0xa8] sm:$0xff]  ;;  %v5323_v46 = vld [vmem:[#allocation5 + $0xd8] sm:$0xff] }
 0x18a   :  { %746 = vmatprep.subr.mxu0 %v5308_v60  ;;  %815 = vmatprep.subr.mxu1 %v5311_v9  ;;  %9590 = vst [vmem:[#allocation197_spill] sm:$0xff] %v5320_v54  ;;  %9591 = vst [vmem:[#allocation198_spill] sm:$0xff] %v5323_v46  ;;  %v5326_v60 = vld [vmem:[#allocation5 + $0xa0] sm:$0xff]  ;;  %v5329_v9 = vld [vmem:[#allocation5 + $0xd0] sm:$0xff] }
 0x18b   :  { %747 = vmatpush1.msra.mxu0 %v5314_v52  ;;  %816 = vmatpush1.msra.mxu1 %v5317_v55  ;;  %9592 = vst [vmem:[#allocation199_spill] sm:$0xff] %v5326_v60  ;;  %9593 = vst [vmem:[#allocation200_spill] sm:$0xff] %v5329_v9  ;;  %v5332_v52 = vld [vmem:[#allocation5 + $0x88] sm:$0xff]  ;;  %v5335_v55 = vld [vmem:[#allocation5 + $0xb8] sm:$0xff] }
 0x18c   :  { %748 = vmatprep.subr.mxu0 %v5320_v54  ;;  %817 = vmatprep.subr.mxu1 %v5323_v46  ;;  %9594 = vst [vmem:[#allocation201_spill] sm:$0xff] %v5332_v52  ;;  %9595 = vst [vmem:[#allocation202_spill] sm:$0xff] %v5335_v55  ;;  %v5338_v54 = vld [vmem:[#allocation5 + $0x80] sm:$0xff]  ;;  %v5341_v46 = vld [vmem:[#allocation5 + $0xb0] sm:$0xff] }
 0x18d   :  { %749 = vmatpush1.msra.mxu0 %v5326_v60  ;;  %818 = vmatpush1.msra.mxu1 %v5329_v9  ;;  %9596 = vst [vmem:[#allocation203_spill] sm:$0xff] %v5338_v54  ;;  %9597 = vst [vmem:[#allocation204_spill] sm:$0xff] %v5341_v46  ;;  %v5344_v60 = vld [vmem:[#allocation5 + $0x68] sm:$0xff]  ;;  %v5347_v9 = vld [vmem:[#allocation5 + $0x98] sm:$0xff] }
 0x18e   :  { %750 = vmatprep.subr.mxu0 %v5332_v52  ;;  %819 = vmatprep.subr.mxu1 %v5335_v55  ;;  %9598 = vst [vmem:[#allocation205_spill] sm:$0xff] %v5344_v60  ;;  %9599 = vst [vmem:[#allocation206_spill] sm:$0xff] %v5347_v9  ;;  %v5350_v52 = vld [vmem:[#allocation5 + $0x60] sm:$0xff]  ;;  %v5353_v55 = vld [vmem:[#allocation5 + $0x90] sm:$0xff] }
 0x18f   :  { %751 = vmatpush1.msra.mxu0 %v5338_v54  ;;  %820 = vmatpush1.msra.mxu1 %v5341_v46  ;;  %9600 = vst [vmem:[#allocation207_spill] sm:$0xff] %v5350_v52  ;;  %9601 = vst [vmem:[#allocation208_spill] sm:$0xff] %v5353_v55  ;;  %v5356_v54 = vld [vmem:[#allocation5 + $0x48] sm:$0xff]  ;;  %v5359_v46 = vld [vmem:[#allocation5 + $0x78] sm:$0xff] }
 0x190   :  { %752 = vmatprep.subr.mxu0 %v5344_v60  ;;  %821 = vmatprep.subr.mxu1 %v5347_v9  ;;  %9602 = vst [vmem:[#allocation209_spill] sm:$0xff] %v5359_v46  ;;  %v5362_v60 = vld [vmem:[#allocation5 + $0x40] sm:$0xff]  ;;  %v5365_v9 = vld [vmem:[#allocation5 + $0x70] sm:$0xff] }
 0x191   :  { %753 = vmatpush1.msra.mxu0 %v5350_v52  ;;  %822 = vmatpush1.msra.mxu1 %v5353_v55  ;;  %9603 = vst [vmem:[#allocation210_spill] sm:$0xff] %v5362_v60  ;;  %v5368_v52 = vld [vmem:[#allocation5 + $0x28] sm:$0xff]  ;;  %v5372_v55 = vld [vmem:[#allocation5 + $0x20] sm:$0xff] }
 0x192   :  { %754 = vmatprep.subr.mxu0 %v5356_v54  ;;  %823 = vmatprep.subr.mxu1 %v5359_v46  ;;  %9604 = vst [vmem:[#allocation211_spill] sm:$0xff] %v5368_v52  ;;  %v5376_v46 = vld [vmem:[#allocation5 + $0x8] sm:$0xff] }
 0x193   :  { %755 = vmatpush1.msra.mxu0 %v5362_v60  ;;  %824 = vmatpush1.msra.mxu1 %v5365_v9  ;;  %v5380_v60 = vld [vmem:[#allocation5] sm:$0xff] }
 0x194   :  { %756 = vmatprep.subr.mxu0 %v5368_v52  ;;  %825 = vmatprep.subr.mxu1 %v4588_v59  ;;  %v5384_v52 = vld [vmem:[#allocation5 + $0x3e8] sm:$0xff]  ;;  %v5388_v59 = vld [vmem:[#allocation5 + $0x3e0] sm:$0xff] }
 0x195   :  { %757 = vmatpush1.msra.mxu0 %v5372_v55  ;;  %826 = vmatpush1.msra.mxu1 %v4590_v61  ;;  %v9605_v61 = vld [vmem:[#allocation19_spill] sm:$0xff] }
 0x196   :  { %758 = vmatprep.subr.mxu0 %v5376_v46  ;;  %827 = vmatprep.subr.mxu1 %v4592_v63  ;;  %v9606_v63 = vld [vmem:[#allocation16_spill] sm:$0xff] }
 0x197   :  { %759 = vmatpush1.msra.mxu0 %v5380_v60  ;;  %828 = vmatpush1.msra.mxu1 %v4597_v2  ;;  %v9608_v2 = vld [vmem:[#allocation17_spill] sm:$0xff] }
 0x198   :  { %760 = vmatprep.subr.mxu0 %v5384_v52  ;;  %829 = vmatprep.subr.mxu1 %v4602_v4  ;;  %v9610_v4 = vld [vmem:[#allocation18_spill] sm:$0xff] }
 0x199   :  { %761 = vmatpush2.msra.mxu0 %v5388_v59  ;;  %830 = vmatpush1.msra.mxu1 %v4607_v6  ;;  %v9612_v6 = vld [vmem:[#allocation20_spill] sm:$0xff] }
 0x19a   :  { %762 = vmatprep.subr.mxu0 %v4594_v1  ;;  %831 = vmatprep.subr.mxu1 %v4613_v8  ;;  %v9607_v1 = vld [vmem:[#allocation21_spill] sm:$0xff]  ;;  %v9614_v8 = vld [vmem:[#allocation22_spill] sm:$0xff] }
 0x19b   :  { %763 = vmatpush2.msra.mxu0 %v4599_v3  ;;  %832 = vmatpush2.msra.mxu1 %v4619_v11  ;;  %v9609_v3 = vld [vmem:[#allocation23_spill] sm:$0xff]  ;;  %v9616_v11 = vld [vmem:[#allocation24_spill] sm:$0xff] }
 0x19c   :  { %764 = vmatprep.subr.mxu0 %v4604_v5  ;;  %833 = vmatprep.subr.mxu1 %v4625_v13  ;;  %v9611_v5 = vld [vmem:[#allocation25_spill] sm:$0xff]  ;;  %v9618_v13 = vld [vmem:[#allocation26_spill] sm:$0xff] }
 0x19d   :  { %765 = vmatpush2.msra.mxu0 %v4610_v7  ;;  %834 = vmatpush2.msra.mxu1 %v4631_v15  ;;  %v9613_v7 = vld [vmem:[#allocation27_spill] sm:$0xff]  ;;  %v9620_v15 = vld [vmem:[#allocation28_spill] sm:$0xff] }
 0x19e   :  { %766 = vmatprep.subr.mxu0 %v4616_v10  ;;  %835 = vmatprep.subr.mxu1 %v4637_v17  ;;  %v9615_v10 = vld [vmem:[#allocation29_spill] sm:$0xff]  ;;  %v9621_v17 = vld [vmem:[#allocation34_spill] sm:$0xff] }
 0x19f   :  { %767 = vmatpush2.msra.mxu0 %v4622_v12  ;;  %836 = vmatpush2.msra.mxu1 %v4643_v19  ;;  %v9617_v12 = vld [vmem:[#allocation31_spill] sm:$0xff] }
 0x1a0   :  { %768 = vmatprep.subr.mxu0 %v4628_v14  ;;  %837 = vmatprep.subr.mxu1 %v4649_v21  ;;  %v9619_v14 = vld [vmem:[#allocation33_spill] sm:$0xff]  ;;  %v9623_v19 = vld [vmem:[#allocation35_spill] sm:$0xff] }
 0x1a1   :  { %769 = vmatpush2.msra.mxu0 %v4634_v16  ;;  %838 = vmatpush2.msra.mxu1 %v4655_v23  ;;  %v727_v16 = vld [vmem:[#allocation2 + $0x8] sm:$0xff]  ;;  %v9625_v21 = vld [vmem:[#allocation37_spill] sm:$0xff] }
 0x1a2   :  { %770 = vmatprep.subr.mxu0 %v4640_v18  ;;  %839 = vmatprep.subr.mxu1 %v4661_v25  ;;  %v9622_v18 = vld [vmem:[#allocation30_spill] sm:$0xff]  ;;  %v9627_v23 = vld [vmem:[#allocation41_spill] sm:$0xff] }
 0x1a3   :  { %771 = vmatpush2.msra.mxu0 %v4646_v20  ;;  %840 = vmatpush2.msra.mxu1 %v4667_v27  ;;  %v9624_v20 = vld [vmem:[#allocation32_spill] sm:$0xff]  ;;  %v9629_v25 = vld [vmem:[#allocation38_spill] sm:$0xff] }
 0x1a4   :  { %772 = vmatprep.subr.mxu0 %v4652_v22  ;;  %841 = vmatprep.subr.mxu1 %v4673_v29  ;;  %v9626_v22 = vld [vmem:[#allocation39_spill] sm:$0xff]  ;;  %v9631_v27 = vld [vmem:[#allocation40_spill] sm:$0xff]  ;;  %v9633_v29 = vld [vmem:[#allocation42_spill] sm:$0xff] }
 0x1a5   :  { %773 = vmatpush2.msra.mxu0 %v4658_v24  ;;  %842 = vmatpush2.msra.mxu1 %v4679_v31  ;;  %v9628_v24 = vld [vmem:[#allocation36_spill] sm:$0xff]  ;;  %v9635_v31 = vld [vmem:[#allocation45_spill] sm:$0xff] }
 0x1a6   :  { %774 = vmatprep.subr.mxu0 %v4664_v26  ;;  %843 = vmatprep.subr.mxu1 %v4685_v33  ;;  %v9630_v26 = vld [vmem:[#allocation43_spill] sm:$0xff] }
 0x1a7   :  { %775 = vmatpush2.msra.mxu0 %v4670_v28  ;;  %844 = vmatpush2.msra.mxu1 %v4691_v35  ;;  %v9632_v28 = vld [vmem:[#allocation44_spill] sm:$0xff]  ;;  %v9637_v33 = vld [vmem:[#allocation47_spill] sm:$0xff]  ;;  %v9639_v35 = vld [vmem:[#allocation49_spill] sm:$0xff] }
 0x1a8   :  { %776 = vmatprep.subr.mxu0 %v4676_v30  ;;  %845 = vmatprep.subr.mxu1 %v4697_v37  ;;  %v9634_v30 = vld [vmem:[#allocation46_spill] sm:$0xff]  ;;  %v9641_v37 = vld [vmem:[#allocation51_spill] sm:$0xff] }
 0x1a9   :  { %777 = vmatpush2.msra.mxu0 %v4682_v32  ;;  %846 = vmatpush2.msra.mxu1 %v4703_v39  ;;  %v9636_v32 = vld [vmem:[#allocation48_spill] sm:$0xff]  ;;  %v9643_v39 = vld [vmem:[#allocation54_spill] sm:$0xff] }
 0x1aa   :  { %778 = vmatprep.subr.mxu0 %v4688_v34  ;;  %847 = vmatprep.subr.mxu1 %v4709_v41  ;;  %v9638_v34 = vld [vmem:[#allocation50_spill] sm:$0xff]  ;;  %v9645_v41 = vld [vmem:[#allocation56_spill] sm:$0xff] }
 0x1ab   :  { %779 = vmatpush2.msra.mxu0 %v4694_v36  ;;  %848 = vmatpush2.msra.mxu1 %v4715_v43  ;;  %v9640_v36 = vld [vmem:[#allocation52_spill] sm:$0xff]  ;;  %v9646_v43 = vld [vmem:[#allocation57_spill] sm:$0xff] }
 0x1ac   :  { %780 = vmatprep.subr.mxu0 %v4700_v38  ;;  %849 = vmatprep.subr.mxu1 %v4721_v45  ;;  %v9642_v38 = vld [vmem:[#allocation53_spill] sm:$0xff]  ;;  %v9647_v45 = vld [vmem:[#allocation58_spill] sm:$0xff] }
 0x1ad   :  { %781 = vmatpush2.msra.mxu0 %v4706_v40  ;;  %850 = vmatpush2.msra.mxu1 %v9605_v61  ;;  %v9644_v40 = vld [vmem:[#allocation55_spill] sm:$0xff] }
 0x1ae   :  { %782 = vmatprep.subr.mxu0 %v9606_v63  ;;  %851 = vmatprep.subr.mxu1 %v9607_v1  ;;  %v9648_v61 = vld [vmem:[#allocation59_spill] sm:$0xff]  ;;  %v9649_v63 = vld [vmem:[#allocation60_spill] sm:$0xff]  ;;  %v9650_v1 = vld [vmem:[#allocation61_spill] sm:$0xff] }
 0x1af   :  { %783 = vmatpush2.msra.mxu0 %v9608_v2  ;;  %852 = vmatpush2.msra.mxu1 %v9609_v3  ;;  %v9651_v2 = vld [vmem:[#allocation62_spill] sm:$0xff]  ;;  %v9652_v3 = vld [vmem:[#allocation63_spill] sm:$0xff] }
 0x1b0   :  { %784 = vmatprep.subr.mxu0 %v9610_v4  ;;  %853 = vmatprep.subr.mxu1 %v9611_v5  ;;  %v9653_v4 = vld [vmem:[#allocation64_spill] sm:$0xff]  ;;  %v9654_v5 = vld [vmem:[#allocation65_spill] sm:$0xff] }
 0x1b1   :  { %785 = vmatpush2.msra.mxu0 %v9612_v6  ;;  %854 = vmatpush2.msra.mxu1 %v9613_v7  ;;  %v9655_v6 = vld [vmem:[#allocation66_spill] sm:$0xff]  ;;  %v9656_v7 = vld [vmem:[#allocation67_spill] sm:$0xff] }
 0x1b2   :  { %786 = vmatprep.subr.mxu0 %v9614_v8  ;;  %855 = vmatprep.subr.mxu1 %v9615_v10  ;;  %v9657_v8 = vld [vmem:[#allocation68_spill] sm:$0xff]  ;;  %v9658_v10 = vld [vmem:[#allocation69_spill] sm:$0xff] }
 0x1b3   :  { %787 = vmatpush2.msra.mxu0 %v9616_v11  ;;  %856 = vmatpush2.msra.mxu1 %v9617_v12  ;;  %v9659_v11 = vld [vmem:[#allocation70_spill] sm:$0xff]  ;;  %v9660_v12 = vld [vmem:[#allocation71_spill] sm:$0xff] }
 0x1b4   :  { %788 = vmatprep.subr.mxu0 %v9618_v13  ;;  %857 = vmatprep.subr.mxu1 %v9619_v14  ;;  %v9661_v13 = vld [vmem:[#allocation72_spill] sm:$0xff]  ;;  %v9662_v14 = vld [vmem:[#allocation73_spill] sm:$0xff] }
 0x1b5   :  { %789 = vmatpush2.msra.mxu0 %v9620_v15  ;;  %858 = vmatpush2.msra.mxu1 %v9621_v17  ;;  %v9663_v15 = vld [vmem:[#allocation74_spill] sm:$0xff]  ;;  %v9665_v17 = vld [vmem:[#allocation76_spill] sm:$0xff] }
 0x1b6   :  { %790 = vmatprep.subr.mxu0 %v9622_v18  ;;  %859 = vmatprep.subr.mxu1 %v9623_v19  ;;  %v9666_v18 = vld [vmem:[#allocation77_spill] sm:$0xff]  ;;  %v9667_v19 = vld [vmem:[#allocation78_spill] sm:$0xff] }
 0x1b7   :  { %791 = vmatpush2.msra.mxu0 %v9624_v20  ;;  %860 = vmatpush2.msra.mxu1 %v9625_v21  ;;  %v9668_v20 = vld [vmem:[#allocation79_spill] sm:$0xff]  ;;  %v9669_v21 = vld [vmem:[#allocation80_spill] sm:$0xff] }
 0x1b8   :  { %793 = vmatmul.mubr.f32.vlgmr.msra.gmra.mxu0 %v727_v16  ;;  %861 = vmatprep.subr.mxu1 %v9626_v22  ;;  %v9670_v22 = vld [vmem:[#allocation81_spill] sm:$0xff] }
 0x1b9   :  { %862 = vmatpush2.msra.mxu1 %v9627_v23  ;;  %894 = vmatprep.subr.mxu0 %v9628_v24  ;;  %v9671_v23 = vld [vmem:[#allocation82_spill] sm:$0xff]  ;;  %v9672_v24 = vld [vmem:[#allocation83_spill] sm:$0xff] }
 0x1ba   :  { %864 = vmatmul.mubr.f32.vlgmr.msra.gmra.mxu1 %v727_v16  ;;  %895 = vmatpush1.msra.mxu0 %v9629_v25  ;;  %v9664_v16 = vld [vmem:[#allocation75_spill] sm:$0xff]  ;;  %v9673_v25 = vld [vmem:[#allocation84_spill] sm:$0xff] }
 0x1bb   :  { %965 = vmatprep.subr.mxu1 %v9630_v26  ;;  %896 = vmatprep.subr.mxu0 %v9631_v27  ;;  %v9674_v26 = vld [vmem:[#allocation85_spill] sm:$0xff]  ;;  %v9675_v27 = vld [vmem:[#allocation86_spill] sm:$0xff] }
 0x1bc   :  { %966 = vmatpush1.msra.mxu1 %v9632_v28  ;;  %897 = vmatpush1.msra.mxu0 %v9633_v29  ;;  %v9676_v28 = vld [vmem:[#allocation87_spill] sm:$0xff]  ;;  %v9677_v29 = vld [vmem:[#allocation88_spill] sm:$0xff] }
 0x1bd   :  { %967 = vmatprep.subr.mxu1 %v9634_v30  ;;  %898 = vmatprep.subr.mxu0 %v9635_v31  ;;  %v9678_v30 = vld [vmem:[#allocation89_spill] sm:$0xff]  ;;  %v9679_v31 = vld [vmem:[#allocation90_spill] sm:$0xff] }
 0x1be   :  { %968 = vmatpush1.msra.mxu1 %v9636_v32  ;;  %899 = vmatpush1.msra.mxu0 %v9637_v33  ;;  %v9680_v32 = vld [vmem:[#allocation91_spill] sm:$0xff]  ;;  %v9681_v33 = vld [vmem:[#allocation92_spill] sm:$0xff] }
 0x1bf   :  { %969 = vmatprep.subr.mxu1 %v9638_v34  ;;  %900 = vmatprep.subr.mxu0 %v9639_v35  ;;  %v9682_v34 = vld [vmem:[#allocation93_spill] sm:$0xff]  ;;  %v9683_v35 = vld [vmem:[#allocation94_spill] sm:$0xff] }
 0x1c0   :  { %970 = vmatpush1.msra.mxu1 %v9640_v36  ;;  %901 = vmatpush1.msra.mxu0 %v9641_v37  ;;  %v9684_v36 = vld [vmem:[#allocation95_spill] sm:$0xff]  ;;  %v9685_v37 = vld [vmem:[#allocation96_spill] sm:$0xff] }
 0x1c1   :  { %971 = vmatprep.subr.mxu1 %v9642_v38  ;;  %902 = vmatprep.subr.mxu0 %v9643_v39  ;;  %v9686_v38 = vld [vmem:[#allocation97_spill] sm:$0xff]  ;;  %v9687_v39 = vld [vmem:[#allocation98_spill] sm:$0xff] }
 0x1c2   :  { %972 = vmatpush1.msra.mxu1 %v9644_v40  ;;  %903 = vmatpush1.msra.mxu0 %v9645_v41  ;;  %v9688_v40 = vld [vmem:[#allocation99_spill] sm:$0xff]  ;;  %v9689_v41 = vld [vmem:[#allocation100_spill] sm:$0xff] }
 0x1c3   :  { %973 = vmatprep.subr.mxu1 %v9646_v43  ;;  %904 = vmatprep.subr.mxu0 %v9647_v45  ;;  %v9690_v43 = vld [vmem:[#allocation101_spill] sm:$0xff]  ;;  %v9691_v45 = vld [vmem:[#allocation102_spill] sm:$0xff] }
 0x1c4   :  { %974 = vmatpush1.msra.mxu1 %v9648_v61  ;;  %905 = vmatpush1.msra.mxu0 %v9649_v63  ;;  %v9692_v61 = vld [vmem:[#allocation103_spill] sm:$0xff]  ;;  %v9693_v63 = vld [vmem:[#allocation104_spill] sm:$0xff] }
 0x1c5   :  { %975 = vmatprep.subr.mxu1 %v9650_v1  ;;  %906 = vmatprep.subr.mxu0 %v9651_v2  ;;  %v9694_v1 = vld [vmem:[#allocation105_spill] sm:$0xff]  ;;  %v9695_v2 = vld [vmem:[#allocation106_spill] sm:$0xff] }
 0x1c6   :  { %976 = vmatpush1.msra.mxu1 %v9652_v3  ;;  %907 = vmatpush1.msra.mxu0 %v9653_v4  ;;  %v9696_v3 = vld [vmem:[#allocation107_spill] sm:$0xff]  ;;  %v9697_v4 = vld [vmem:[#allocation108_spill] sm:$0xff] }
 0x1c7   :  { %977 = vmatprep.subr.mxu1 %v9654_v5  ;;  %908 = vmatprep.subr.mxu0 %v9655_v6  ;;  %v9698_v5 = vld [vmem:[#allocation109_spill] sm:$0xff]  ;;  %v9699_v6 = vld [vmem:[#allocation110_spill] sm:$0xff] }
 0x1c8   :  { %978 = vmatpush1.msra.mxu1 %v9656_v7  ;;  %909 = vmatpush1.msra.mxu0 %v9657_v8  ;;  %v9700_v7 = vld [vmem:[#allocation111_spill] sm:$0xff]  ;;  %v9701_v8 = vld [vmem:[#allocation112_spill] sm:$0xff] }
 0x1c9   :  { %979 = vmatprep.subr.mxu1 %v9658_v10  ;;  %910 = vmatprep.subr.mxu0 %v9659_v11  ;;  %v9702_v10 = vld [vmem:[#allocation113_spill] sm:$0xff]  ;;  %v9703_v11 = vld [vmem:[#allocation114_spill] sm:$0xff] }
 0x1ca   :  { %980 = vmatpush1.msra.mxu1 %v9660_v12  ;;  %911 = vmatpush1.msra.mxu0 %v9661_v13  ;;  %v9704_v12 = vld [vmem:[#allocation115_spill] sm:$0xff]  ;;  %v9705_v13 = vld [vmem:[#allocation116_spill] sm:$0xff] }
 0x1cb   :  { %981 = vmatprep.subr.mxu1 %v9662_v14  ;;  %912 = vmatprep.subr.mxu0 %v9663_v15  ;;  %v9706_v14 = vld [vmem:[#allocation117_spill] sm:$0xff]  ;;  %v9707_v15 = vld [vmem:[#allocation118_spill] sm:$0xff] }
 0x1cc   :  { %982 = vmatpush1.msra.mxu1 %v9664_v16  ;;  %913 = vmatpush1.msra.mxu0 %v9665_v17  ;;  %v9708_v16 = vld [vmem:[#allocation119_spill] sm:$0xff]  ;;  %v9709_v17 = vld [vmem:[#allocation120_spill] sm:$0xff] }
 0x1cd   :  { %983 = vmatprep.subr.mxu1 %v9666_v18  ;;  %914 = vmatprep.subr.mxu0 %v9667_v19  ;;  %v9710_v18 = vld [vmem:[#allocation121_spill] sm:$0xff]  ;;  %v9711_v19 = vld [vmem:[#allocation122_spill] sm:$0xff] }
 0x1ce   :  { %984 = vmatpush1.msra.mxu1 %v9668_v20  ;;  %915 = vmatpush1.msra.mxu0 %v9669_v21  ;;  %v9712_v20 = vld [vmem:[#allocation123_spill] sm:$0xff]  ;;  %v9713_v21 = vld [vmem:[#allocation124_spill] sm:$0xff] }
 0x1cf   :  { %985 = vmatprep.subr.mxu1 %v9670_v22  ;;  %916 = vmatprep.subr.mxu0 %v9671_v23  ;;  %v9714_v22 = vld [vmem:[#allocation125_spill] sm:$0xff]  ;;  %v9715_v23 = vld [vmem:[#allocation126_spill] sm:$0xff] }
 0x1d0   :  { %986 = vmatpush1.msra.mxu1 %v9672_v24  ;;  %917 = vmatpush1.msra.mxu0 %v9673_v25  ;;  %v9716_v24 = vld [vmem:[#allocation127_spill] sm:$0xff]  ;;  %v9717_v25 = vld [vmem:[#allocation128_spill] sm:$0xff] }
 0x1d1   :  { %987 = vmatprep.subr.mxu1 %v9674_v26  ;;  %918 = vmatprep.subr.mxu0 %v9675_v27  ;;  %v9718_v26 = vld [vmem:[#allocation129_spill] sm:$0xff]  ;;  %v9719_v27 = vld [vmem:[#allocation130_spill] sm:$0xff] }
 0x1d2   :  { %988 = vmatpush1.msra.mxu1 %v9676_v28  ;;  %919 = vmatpush1.msra.mxu0 %v9677_v29  ;;  %v9720_v28 = vld [vmem:[#allocation131_spill] sm:$0xff]  ;;  %v9721_v29 = vld [vmem:[#allocation132_spill] sm:$0xff] }
 0x1d3   :  { %989 = vmatprep.subr.mxu1 %v9678_v30  ;;  %920 = vmatprep.subr.mxu0 %v9679_v31  ;;  %v9722_v30 = vld [vmem:[#allocation133_spill] sm:$0xff]  ;;  %v9723_v31 = vld [vmem:[#allocation134_spill] sm:$0xff] }
 0x1d4   :  { %990 = vmatpush1.msra.mxu1 %v9680_v32  ;;  %921 = vmatpush1.msra.mxu0 %v9681_v33  ;;  %v9724_v32 = vld [vmem:[#allocation135_spill] sm:$0xff]  ;;  %v9725_v33 = vld [vmem:[#allocation136_spill] sm:$0xff] }
 0x1d5   :  { %991 = vmatprep.subr.mxu1 %v9682_v34  ;;  %922 = vmatprep.subr.mxu0 %v9683_v35  ;;  %v9726_v34 = vld [vmem:[#allocation137_spill] sm:$0xff]  ;;  %v9727_v35 = vld [vmem:[#allocation138_spill] sm:$0xff] }
 0x1d6   :  { %992 = vmatpush1.msra.mxu1 %v9684_v36  ;;  %923 = vmatpush1.msra.mxu0 %v9685_v37  ;;  %v9728_v36 = vld [vmem:[#allocation139_spill] sm:$0xff]  ;;  %v9729_v37 = vld [vmem:[#allocation140_spill] sm:$0xff] }
 0x1d7   :  { %993 = vmatprep.subr.mxu1 %v9686_v38  ;;  %924 = vmatprep.subr.mxu0 %v9687_v39  ;;  %v9730_v38 = vld [vmem:[#allocation141_spill] sm:$0xff]  ;;  %v9731_v39 = vld [vmem:[#allocation142_spill] sm:$0xff] }
 0x1d8   :  { %994 = vmatpush1.msra.mxu1 %v9688_v40  ;;  %925 = vmatpush1.msra.mxu0 %v9689_v41  ;;  %v9732_v40 = vld [vmem:[#allocation143_spill] sm:$0xff]  ;;  %v9733_v41 = vld [vmem:[#allocation144_spill] sm:$0xff] }
 0x1d9   :  { %995 = vmatprep.subr.mxu1 %v9690_v43  ;;  %926 = vmatprep.subr.mxu0 %v9691_v45  ;;  %v9734_v43 = vld [vmem:[#allocation145_spill] sm:$0xff]  ;;  %v9735_v45 = vld [vmem:[#allocation146_spill] sm:$0xff] }
 0x1da   :  { %996 = vmatpush1.msra.mxu1 %v9692_v61  ;;  %927 = vmatpush2.msra.mxu0 %v9693_v63  ;;  %v9736_v61 = vld [vmem:[#allocation147_spill] sm:$0xff]  ;;  %v9737_v63 = vld [vmem:[#allocation148_spill] sm:$0xff] }
 0x1db   :  { %997 = vmatprep.subr.mxu1 %v9694_v1  ;;  %928 = vmatprep.subr.mxu0 %v9695_v2  ;;  %v9738_v1 = vld [vmem:[#allocation149_spill] sm:$0xff]  ;;  %v9739_v2 = vld [vmem:[#allocation150_spill] sm:$0xff] }
 0x1dc   :  { %998 = vmatpush2.msra.mxu1 %v9696_v3  ;;  %929 = vmatpush2.msra.mxu0 %v9697_v4  ;;  %v9740_v3 = vld [vmem:[#allocation151_spill] sm:$0xff]  ;;  %v9741_v4 = vld [vmem:[#allocation152_spill] sm:$0xff] }
 0x1dd   :  { %999 = vmatprep.subr.mxu1 %v9698_v5  ;;  %930 = vmatprep.subr.mxu0 %v9699_v6  ;;  %v9742_v5 = vld [vmem:[#allocation153_spill] sm:$0xff]  ;;  %v9743_v6 = vld [vmem:[#allocation154_spill] sm:$0xff] }
 0x1de   :  { %1000 = vmatpush2.msra.mxu1 %v9700_v7  ;;  %931 = vmatpush2.msra.mxu0 %v9701_v8  ;;  %v9744_v7 = vld [vmem:[#allocation155_spill] sm:$0xff]  ;;  %v9745_v8 = vld [vmem:[#allocation156_spill] sm:$0xff] }
 0x1df   :  { %1001 = vmatprep.subr.mxu1 %v9702_v10  ;;  %932 = vmatprep.subr.mxu0 %v9703_v11  ;;  %v9746_v10 = vld [vmem:[#allocation157_spill] sm:$0xff]  ;;  %v9747_v11 = vld [vmem:[#allocation158_spill] sm:$0xff] }
 0x1e0   :  { %1002 = vmatpush2.msra.mxu1 %v9704_v12  ;;  %933 = vmatpush2.msra.mxu0 %v9705_v13  ;;  %v9748_v12 = vld [vmem:[#allocation159_spill] sm:$0xff]  ;;  %v9749_v13 = vld [vmem:[#allocation160_spill] sm:$0xff] }
 0x1e1   :  { %1003 = vmatprep.subr.mxu1 %v9706_v14  ;;  %934 = vmatprep.subr.mxu0 %v9707_v15  ;;  %v9750_v14 = vld [vmem:[#allocation161_spill] sm:$0xff]  ;;  %v9751_v15 = vld [vmem:[#allocation162_spill] sm:$0xff] }
 0x1e2   :  { %1004 = vmatpush2.msra.mxu1 %v9708_v16  ;;  %935 = vmatpush2.msra.mxu0 %v9709_v17  ;;  %v9752_v16 = vld [vmem:[#allocation163_spill] sm:$0xff]  ;;  %v9753_v17 = vld [vmem:[#allocation164_spill] sm:$0xff] }
 0x1e3   :  { %1005 = vmatprep.subr.mxu1 %v9710_v18  ;;  %936 = vmatprep.subr.mxu0 %v9711_v19  ;;  %v9754_v18 = vld [vmem:[#allocation165_spill] sm:$0xff]  ;;  %v9755_v19 = vld [vmem:[#allocation167_spill] sm:$0xff] }
 0x1e4   :  { %1006 = vmatpush2.msra.mxu1 %v9712_v20  ;;  %937 = vmatpush2.msra.mxu0 %v9713_v21  ;;  %v9756_v20 = vld [vmem:[#allocation166_spill] sm:$0xff] }
 0x1e5   :  { %1007 = vmatprep.subr.mxu1 %v9714_v22  ;;  %938 = vmatprep.subr.mxu0 %v9715_v23  ;;  %v5583_v21 = vld [vmem:[#allocation5 + $0x1f8] sm:$0xff]  ;;  %v371_v22 = vld [vmem:[%s8637_s4] sm:$0xf]  ;;  %v9757_v23 = vld [vmem:[#allocation168_spill] sm:$0xff] }
 0x1e6   :  { %1008 = vmatpush2.msra.mxu1 %v9716_v24  ;;  %939 = vmatpush2.msra.mxu0 %v9717_v25  ;;  %v9758_v24 = vsub.s32 0, %v9757_v23 }
 0x1e7   :  { %1009 = vmatprep.subr.mxu1 %v9718_v26  ;;  %940 = vmatprep.subr.mxu0 %v9719_v27  ;;  %v9760_v26 = vsub.s32 1, %v9757_v23 }
 0x1e8   :  { %1010 = vmatpush2.msra.mxu1 %v9720_v28  ;;  %941 = vmatpush2.msra.mxu0 %v9721_v29  ;;  %v5591_v25 = vrot.slane %v371_v22, %v9758_v24 }
 0x1e9   :  { %1011 = vmatprep.subr.mxu1 %v9722_v30  ;;  %942 = vmatprep.subr.mxu0 %v9723_v31  ;;  %v5595_v27 = vrot.slane %v371_v22, %v9760_v26 }
 0x1ea   :  { %1012 = vmatpush2.msra.mxu1 %v9724_v32  ;;  %943 = vmatpush2.msra.mxu0 %v9725_v33  ;;  %9759 = vst [vmem:[#allocation19_spill] sm:$0xff] %v5591_v25 }
 0x1eb   :  { %1013 = vmatprep.subr.mxu1 %v9726_v34  ;;  %944 = vmatprep.subr.mxu0 %v9727_v35  ;;  %9761 = vst [vmem:[#allocation16_spill] sm:$0xff] %v5595_v27  ;;  %v9762_v35 = vsub.s32 3, %v9757_v23 }
 0x1ec   :  { %1014 = vmatpush2.msra.mxu1 %v9728_v36  ;;  %945 = vmatpush2.msra.mxu0 %v9729_v37 }
 0x1ed   :  { %1015 = vmatprep.subr.mxu1 %v9730_v38  ;;  %946 = vmatprep.subr.mxu0 %v9731_v39  ;;  %v5601_v36 = vrot.slane %v371_v22, %v9762_v35  ;;  %v9763_v39 = vsub.s32 2, %v9757_v23 }
 0x1ee   :  { %1016 = vmatpush2.msra.mxu1 %v9732_v40  ;;  %947 = vmatpush2.msra.mxu0 %v9733_v41 }
 0x1ef   :  { %1017 = vmatprep.subr.mxu1 %v9734_v43  ;;  %948 = vmatprep.subr.mxu0 %v9735_v45  ;;  %v5606_v40 = vrot.slane %v371_v22, %v9763_v39 }
 0x1f0   :  { %1018 = vmatpush2.msra.mxu1 %v9736_v61  ;;  %949 = vmatpush2.msra.mxu0 %v9737_v63 }
 0x1f1   :  { %1019 = vmatprep.subr.mxu1 %v9738_v1  ;;  %950 = vmatprep.subr.mxu0 %v9739_v2 }
 0x1f2   :  { %1020 = vmatpush2.msra.mxu1 %v9740_v3  ;;  %951 = vmatpush2.msra.mxu0 %v9741_v4 }
 0x1f3   :  { %1021 = vmatprep.subr.mxu1 %v9742_v5  ;;  %952 = vmatprep.subr.mxu0 %v9743_v6 }
 0x1f4   :  { %1022 = vmatpush2.msra.mxu1 %v9744_v7  ;;  %953 = vmatpush2.msra.mxu0 %v9745_v8 }
 0x1f5   :  { %1023 = vmatprep.subr.mxu1 %v9746_v10  ;;  %954 = vmatprep.subr.mxu0 %v9747_v11 }
 0x1f6   :  { %1024 = vmatpush2.msra.mxu1 %v9748_v12  ;;  %955 = vmatpush2.msra.mxu0 %v9749_v13 }
 0x1f7   :  { %1025 = vmatprep.subr.mxu1 %v9750_v14  ;;  %956 = vmatprep.subr.mxu0 %v9751_v15  ;;  %v9764_v15 = vld [vmem:[#allocation169_spill] sm:$0xff] }
 0x1f8   :  { %1026 = vmatpush2.msra.mxu1 %v9752_v16  ;;  %957 = vmatpush2.msra.mxu0 %v9753_v17 }
 0x1f9   :  { %1027 = vmatprep.subr.mxu1 %v9754_v18  ;;  %1062 = vmatprep.subr.mxu0 %v9755_v19  ;;  %v9765_v19 = vld [vmem:[#allocation170_spill] sm:$0xff] }
 0x1fa   :  { %1028 = vmatpush2.msra.mxu1 %v9756_v20 }
 0x1fb   :  { %1133 = vmatprep.subr.mxu1 %v5583_v21 }
 0x238   :  { %v626_v28 = vpop.f32.mrf.mxu0  ;;  %v697_v33 = vpop.f32.mrf.mxu1 }
 0x239   :  { %v627_v29 = vadd.f32 %v626_v28, %v5591_v25  ;;  %v698_v45 = vadd.f32 %v697_v33, %v5606_v40 }
 0x23a   :  { %v628_v30 = vpop.f32.mrf.mxu0  ;;  %v699_v37 = vpop.f32.mrf.mxu1 }
 0x23b   :  { %v3191_v31 = vmul.f32 -1.442695, %v627_v29  ;;  %v629_v32 = vadd.f32 %v628_v30, %v5595_v27  ;;  %v700_v38 = vadd.f32 %v699_v37, %v5601_v36 }
 0x23d   :  { %3317 = vpow2.f32 %v3191_v31  ;;  %v3192_v34 = vmul.f32 -1.442695, %v629_v32  ;;  %v3193_v41 = vmul.f32 -1.442695, %v700_v38 }
 0x23f   :  { %3319 = vpow2.f32 %v3192_v34 }
 0x240   :  { %3321 = vpow2.f32 %v3193_v41 }
 0x24a   :  { %v3318_v43 = vpop.eup %3317 }
 0x24b   :  { %v705_v61 = vadd.f32 1.0, %v3318_v43 }
 0x24c   :  { %v3320_v63 = vpop.eup %3319 }
 0x24d   :  { %3323 = vrcp.f32 %v705_v61  ;;  %v711_v1 = vadd.f32 1.0, %v3320_v63  ;;  %v3322_v2 = vpop.eup %3321 }
 0x24e   :  { %3325 = vtanh.f32 %v698_v45  ;;  %v718_v6 = vadd.f32 1.0, %v3322_v2  ;;  %v9777_v2 = vld [vmem:[#allocation182_spill] sm:$0xff] }
 0x24f   :  { %3327 = vrcp.f32 %v711_v1 }
 0x250   :  { %3329 = vrcp.f32 %v718_v6  ;;  %v9781_v6 = vld [vmem:[#allocation186_spill] sm:$0xff] }
 0x25a   :  { %v3324_v3 = vpop.eup %3323 }
 0x25b   :  { %v3326_v4 = vpop.eup %3325 }
 0x25c   :  { %v3328_v5 = vpop.eup %3327  ;;  %v722_v8 = vmul.f32 %v3326_v4, %v3324_v3  ;;  %v9778_v3 = vld [vmem:[#allocation183_spill] sm:$0xff]  ;;  %v9779_v4 = vld [vmem:[#allocation184_spill] sm:$0xff] }
 0x25d   :  { %v721_v7 = vmul.f32 0.0, %v3328_v5  ;;  %v3330_v11 = vpop.eup %3329  ;;  %v9780_v5 = vld [vmem:[#allocation185_spill] sm:$0xff] }
 0x25f   :  { %v5609_v10 = vadd.f32 %v722_v8, %v721_v7  ;;  %v9782_v7 = vld [vmem:[#allocation187_spill] sm:$0xff]  ;;  %v9783_v8 = vld [vmem:[#allocation188_spill] sm:$0xff] }
 0x261   :  { %3331 = vtanh.f32 %v5609_v10 }
 0x26e   :  { %v3332_v12 = vpop.eup %3331 }
 0x26f   :  { %v725_v13 = vmul.f32 %v3332_v12, %v3330_v11  ;;  %v9784_v11 = vld [vmem:[#allocation189_spill] sm:$0xff]  ;;  %v9785_v12 = vld [vmem:[#allocation190_spill] sm:$0xff] }
 0x271   :  { %958 = vmatprep.mubr.f32.mxu0 %v725_v13  ;;  %1029 = vmatprep.mubr.f32.mxu1 %v725_v13  ;;  %v9786_v13 = vld [vmem:[#allocation191_spill] sm:$0xff] }
 0x278   :  { %v794_v14 = vpop.f32.mrf.mxu0 }
 0x279   :  { %v795_v16 = vadd.f32 %v794_v14, %v9764_v15  ;;  %v9787_v14 = vld [vmem:[#allocation192_spill] sm:$0xff] }
 0x27a   :  { %v796_v17 = vpop.f32.mrf.mxu0  ;;  %v865_v23 = vpop.f32.mrf.mxu1 }
 0x27b   :  { %v3194_v18 = vmul.f32 -1.442695, %v795_v16  ;;  %v797_v20 = vadd.f32 %v796_v17, %v9765_v19  ;;  %v866_v28 = vadd.f32 %v865_v23, %v5205_v48  ;;  %v9788_v16 = vld [vmem:[#allocation193_spill] sm:$0xff]  ;;  %v9789_v17 = vld [vmem:[#allocation194_spill] sm:$0xff] }
 0x27c   :  { %v867_v24 = vpop.f32.mrf.mxu1  ;;  %v9793_v23 = vld [vmem:[#allocation198_spill] sm:$0xff] }
 0x27d   :  { %3333 = vpow2.f32 %v3194_v18  ;;  %v3195_v22 = vmul.f32 -1.442695, %v797_v20  ;;  %v868_v26 = vadd.f32 %v867_v24, %v5201_v51  ;;  %v9790_v18 = vld [vmem:[#allocation195_spill] sm:$0xff]  ;;  %v9791_v20 = vld [vmem:[#allocation196_spill] sm:$0xff] }
 0x27e   :  { %v9794_v24 = vld [vmem:[#allocation199_spill] sm:$0xff] }
 0x27f   :  { %3335 = vpow2.f32 %v3195_v22  ;;  %v3196_v29 = vmul.f32 -1.442695, %v868_v26  ;;  %v9792_v22 = vld [vmem:[#allocation197_spill] sm:$0xff]  ;;  %v9795_v26 = vld [vmem:[#allocation200_spill] sm:$0xff] }
 0x280   :  { %3337 = vtanh.f32 %v866_v28  ;;  %v9796_v28 = vld [vmem:[#allocation201_spill] sm:$0xff] }
 0x281   :  { %3339 = vpow2.f32 %v3196_v29  ;;  %v9797_v29 = vld [vmem:[#allocation202_spill] sm:$0xff] }
 0x28a   :  { %v3334_v30 = vpop.eup %3333 }
 0x28b   :  { %v873_v31 = vadd.f32 1.0, %v3334_v30  ;;  %v9798_v30 = vld [vmem:[#allocation203_spill] sm:$0xff] }
 0x28c   :  { %v3336_v32 = vpop.eup %3335 }
 0x28d   :  { %3341 = vrcp.f32 %v873_v31  ;;  %v879_v33 = vadd.f32 1.0, %v3336_v32  ;;  %v3338_v34 = vpop.eup %3337  ;;  %v9799_v31 = vld [vmem:[#allocation204_spill] sm:$0xff]  ;;  %v9800_v32 = vld [vmem:[#allocation205_spill] sm:$0xff] }
 0x28e   :  { %v3340_v35 = vpop.eup %3339 }
 0x28f   :  { %3343 = vrcp.f32 %v879_v33  ;;  %v886_v39 = vadd.f32 1.0, %v3340_v35  ;;  %v9801_v33 = vld [vmem:[#allocation206_spill] sm:$0xff]  ;;  %v9803_v35 = vld [vmem:[#allocation208_spill] sm:$0xff] }
 0x291   :  { %3345 = vrcp.f32 %v886_v39  ;;  %v9806_v39 = vld [vmem:[#allocation211_spill] sm:$0xff] }
 0x29a   :  { %v3342_v37 = vpop.eup %3341 }
 0x29b   :  { %v890_v43 = vmul.f32 %v3342_v37, %v3338_v34  ;;  %v9802_v34 = vld [vmem:[#allocation207_spill] sm:$0xff]  ;;  %v9804_v37 = vld [vmem:[#allocation209_spill] sm:$0xff] }
 0x29c   :  { %v3344_v38 = vpop.eup %3343 }
 0x29d   :  { %v889_v41 = vmul.f32 %v3344_v38, %v5209_v47  ;;  %v9766_v47 = vld [vmem:[#allocation171_spill] sm:$0xff]  ;;  %v9805_v38 = vld [vmem:[#allocation210_spill] sm:$0xff] }
 0x29e   :  { %v3346_v61 = vpop.eup %3345 }
 0x29f   :  { %v5617_v45 = vadd.f32 %v890_v43, %v889_v41  ;;  %v5673_v41 = vld [vmem:[#allocation5 + $0x58] sm:$0xff]  ;;  %v5677_v43 = vld [vmem:[#allocation5 + $0x50] sm:$0xff] }
 0x2a1   :  { %3347 = vtanh.f32 %v5617_v45 }
 0x2ae   :  { %v3348_v63 = vpop.eup %3347 }
 0x2af   :  { %v893_v1 = vmul.f32 %v3348_v63, %v3346_v61  ;;  %v5689_v61 = vld [vmem:[#allocation5 + $0x18] sm:$0xff]  ;;  %v5702_v63 = vld [vmem:[#allocation5 + $0x3c0] sm:$0xff] }
 0x2b1   :  { %959 = vmatmul.mubr.f32.vlgmr.msra.gmra.mxu0 %v893_v1  ;;  %1030 = vmatmul.mubr.f32.vlgmr.msra.gmra.mxu1 %v893_v1 }
 0x2b2   :  { %1063 = vmatpush1.msra.mxu0 %v5212_v53  ;;  %1126 = vmatprep.mubr.f32.mxu0 %v893_v1  ;;  %v9767_v53 = vld [vmem:[#allocation172_spill] sm:$0xff] }
 0x2b3   :  { %1064 = vmatprep.subr.mxu0 %v5215_v0  ;;  %1197 = vmatprep.mubr.f32.mxu1 %v893_v1  ;;  %v9768_v0 = vld [vmem:[#allocation173_spill] sm:$0xff] }
 0x2b4   :  { %1065 = vmatpush1.msra.mxu0 %v5218_v42  ;;  %1134 = vmatpush1.msra.mxu1 %v5221_v44  ;;  %v9769_v42 = vld [vmem:[#allocation174_spill] sm:$0xff]  ;;  %v9770_v44 = vld [vmem:[#allocation175_spill] sm:$0xff] }
 0x2b5   :  { %1066 = vmatprep.subr.mxu0 %v5224_v49  ;;  %1135 = vmatprep.subr.mxu1 %v5227_v57  ;;  %v9771_v49 = vld [vmem:[#allocation176_spill] sm:$0xff]  ;;  %v9772_v57 = vld [vmem:[#allocation177_spill] sm:$0xff] }
 0x2b6   :  { %1067 = vmatpush1.msra.mxu0 %v5230_v58  ;;  %1136 = vmatpush1.msra.mxu1 %v5233_v50  ;;  %v9773_v58 = vld [vmem:[#allocation178_spill] sm:$0xff]  ;;  %v9774_v50 = vld [vmem:[#allocation179_spill] sm:$0xff] }
 0x2b7   :  { %1068 = vmatprep.subr.mxu0 %v5236_v62  ;;  %1137 = vmatprep.subr.mxu1 %v5239_v56  ;;  %v9775_v62 = vld [vmem:[#allocation180_spill] sm:$0xff]  ;;  %v9776_v56 = vld [vmem:[#allocation181_spill] sm:$0xff] }
 0x2b8   :  { %1069 = vmatpush1.msra.mxu0 %v9766_v47  ;;  %1138 = vmatpush1.msra.mxu1 %v9767_v53  ;;  %v5711_v1 = vld [vmem:[#allocation5 + $0x3d8] sm:$0xff]  ;;  %v5714_v47 = vld [vmem:[#allocation5 + $0x3a0] sm:$0xff]  ;;  %v5717_v53 = vld [vmem:[#allocation5 + $0x3d0] sm:$0xff] }
 0x2b9   :  { %1070 = vmatprep.subr.mxu0 %v9768_v0  ;;  %1139 = vmatprep.subr.mxu1 %v9769_v42  ;;  %v5720_v0 = vld [vmem:[#allocation5 + $0x388] sm:$0xff]  ;;  %v5723_v42 = vld [vmem:[#allocation5 + $0x3b8] sm:$0xff] }
 0x2ba   :  { %1071 = vmatpush1.msra.mxu0 %v9770_v44  ;;  %1140 = vmatpush1.msra.mxu1 %v9771_v49  ;;  %v5726_v44 = vld [vmem:[#allocation5 + $0x380] sm:$0xff]  ;;  %v5729_v49 = vld [vmem:[#allocation5 + $0x3b0] sm:$0xff] }
 0x2bb   :  { %1072 = vmatprep.subr.mxu0 %v9772_v57  ;;  %1141 = vmatprep.subr.mxu1 %v9773_v58  ;;  %v5732_v57 = vld [vmem:[#allocation5 + $0x368] sm:$0xff]  ;;  %v5735_v58 = vld [vmem:[#allocation5 + $0x398] sm:$0xff] }
 0x2bc   :  { %1073 = vmatpush1.msra.mxu0 %v9774_v50  ;;  %1142 = vmatpush1.msra.mxu1 %v9775_v62  ;;  %v5738_v50 = vld [vmem:[#allocation5 + $0x360] sm:$0xff]  ;;  %v5741_v62 = vld [vmem:[#allocation5 + $0x390] sm:$0xff] }
 0x2bd   :  { %1074 = vmatprep.subr.mxu0 %v9776_v56  ;;  %1143 = vmatprep.subr.mxu1 %v9777_v2  ;;  %v5744_v56 = vld [vmem:[#allocation5 + $0x348] sm:$0xff]  ;;  %v5747_v2 = vld [vmem:[#allocation5 + $0x378] sm:$0xff] }
 0x2be   :  { %1075 = vmatpush1.msra.mxu0 %v9778_v3  ;;  %1144 = vmatpush1.msra.mxu1 %v9779_v4  ;;  %v5750_v3 = vld [vmem:[#allocation5 + $0x340] sm:$0xff]  ;;  %v5753_v4 = vld [vmem:[#allocation5 + $0x370] sm:$0xff] }
 0x2bf   :  { %1076 = vmatprep.subr.mxu0 %v9780_v5  ;;  %1145 = vmatprep.subr.mxu1 %v9781_v6  ;;  %v5756_v5 = vld [vmem:[#allocation5 + $0x328] sm:$0xff]  ;;  %v5759_v6 = vld [vmem:[#allocation5 + $0x358] sm:$0xff] }
 0x2c0   :  { %1077 = vmatpush1.msra.mxu0 %v9782_v7  ;;  %1146 = vmatpush1.msra.mxu1 %v9783_v8  ;;  %v5762_v7 = vld [vmem:[#allocation5 + $0x320] sm:$0xff]  ;;  %v5765_v8 = vld [vmem:[#allocation5 + $0x350] sm:$0xff] }
 0x2c1   :  { %1078 = vmatprep.subr.mxu0 %v9784_v11  ;;  %1147 = vmatprep.subr.mxu1 %v9785_v12  ;;  %v5768_v11 = vld [vmem:[#allocation5 + $0x308] sm:$0xff]  ;;  %v5771_v12 = vld [vmem:[#allocation5 + $0x338] sm:$0xff] }
 0x2c2   :  { %1079 = vmatpush1.msra.mxu0 %v9786_v13  ;;  %1148 = vmatpush1.msra.mxu1 %v9787_v14  ;;  %v5774_v13 = vld [vmem:[#allocation5 + $0x300] sm:$0xff]  ;;  %v5777_v14 = vld [vmem:[#allocation5 + $0x330] sm:$0xff] }
 0x2c3   :  { %1080 = vmatprep.subr.mxu0 %v9788_v16  ;;  %1149 = vmatprep.subr.mxu1 %v9789_v17  ;;  %v5780_v16 = vld [vmem:[#allocation5 + $0x2e8] sm:$0xff]  ;;  %v5783_v17 = vld [vmem:[#allocation5 + $0x318] sm:$0xff] }
 0x2c4   :  { %1081 = vmatpush1.msra.mxu0 %v9790_v18  ;;  %1150 = vmatpush1.msra.mxu1 %v9791_v20  ;;  %v5786_v18 = vld [vmem:[#allocation5 + $0x2e0] sm:$0xff]  ;;  %v5789_v20 = vld [vmem:[#allocation5 + $0x310] sm:$0xff] }
 0x2c5   :  { %1082 = vmatprep.subr.mxu0 %v9792_v22  ;;  %1151 = vmatprep.subr.mxu1 %v9793_v23  ;;  %v5792_v22 = vld [vmem:[#allocation5 + $0x2c8] sm:$0xff]  ;;  %v5795_v23 = vld [vmem:[#allocation5 + $0x2f8] sm:$0xff] }
 0x2c6   :  { %1083 = vmatpush1.msra.mxu0 %v9794_v24  ;;  %1152 = vmatpush1.msra.mxu1 %v9795_v26  ;;  %v5798_v24 = vld [vmem:[#allocation5 + $0x2c0] sm:$0xff]  ;;  %v5801_v26 = vld [vmem:[#allocation5 + $0x2f0] sm:$0xff] }
 0x2c7   :  { %1084 = vmatprep.subr.mxu0 %v9796_v28  ;;  %1153 = vmatprep.subr.mxu1 %v9797_v29  ;;  %9807 = vst [vmem:[#allocation21_spill] sm:$0xff] %v5798_v24  ;;  %9808 = vst [vmem:[#allocation17_spill] sm:$0xff] %v5801_v26  ;;  %v5804_v28 = vld [vmem:[#allocation5 + $0x2a8] sm:$0xff]  ;;  %v5807_v29 = vld [vmem:[#allocation5 + $0x2d8] sm:$0xff] }
 0x2c8   :  { %1085 = vmatpush1.msra.mxu0 %v9798_v30  ;;  %1154 = vmatpush1.msra.mxu1 %v9799_v31  ;;  %9809 = vst [vmem:[#allocation23_spill] sm:$0xff] %v5804_v28  ;;  %9810 = vst [vmem:[#allocation18_spill] sm:$0xff] %v5807_v29  ;;  %v5810_v30 = vld [vmem:[#allocation5 + $0x2a0] sm:$0xff]  ;;  %v5813_v31 = vld [vmem:[#allocation5 + $0x2d0] sm:$0xff] }
 0x2c9   :  { %1086 = vmatprep.subr.mxu0 %v9800_v32  ;;  %1155 = vmatprep.subr.mxu1 %v9801_v33  ;;  %9811 = vst [vmem:[#allocation25_spill] sm:$0xff] %v5810_v30  ;;  %9812 = vst [vmem:[#allocation20_spill] sm:$0xff] %v5813_v31  ;;  %v5816_v32 = vld [vmem:[#allocation5 + $0x288] sm:$0xff]  ;;  %v5819_v33 = vld [vmem:[#allocation5 + $0x2b8] sm:$0xff] }
 0x2ca   :  { %1087 = vmatpush1.msra.mxu0 %v9802_v34  ;;  %1156 = vmatpush1.msra.mxu1 %v9803_v35  ;;  %9813 = vst [vmem:[#allocation27_spill] sm:$0xff] %v5816_v32  ;;  %9814 = vst [vmem:[#allocation22_spill] sm:$0xff] %v5819_v33  ;;  %v5822_v34 = vld [vmem:[#allocation5 + $0x280] sm:$0xff]  ;;  %v5825_v35 = vld [vmem:[#allocation5 + $0x2b0] sm:$0xff] }
 0x2cb   :  { %1088 = vmatprep.subr.mxu0 %v5356_v54  ;;  %1157 = vmatprep.subr.mxu1 %v9804_v37  ;;  %v5681_v54 = vld [vmem:[#allocation5 + $0x38] sm:$0xff]  ;;  %9815 = vst [vmem:[#allocation29_spill] sm:$0xff] %v5822_v34  ;;  %9816 = vst [vmem:[#allocation24_spill] sm:$0xff] %v5825_v35  ;;  %v5828_v37 = vld [vmem:[#allocation5 + $0x268] sm:$0xff] }
 0x2cc   :  { %1089 = vmatpush1.msra.mxu0 %v9805_v38  ;;  %1158 = vmatpush1.msra.mxu1 %v5365_v9  ;;  %v5685_v9 = vld [vmem:[#allocation5 + $0x30] sm:$0xff]  ;;  %9817 = vst [vmem:[#allocation31_spill] sm:$0xff] %v5828_v37  ;;  %v5831_v38 = vld [vmem:[#allocation5 + $0x298] sm:$0xff] }
 0x2cd   :  { %1090 = vmatprep.subr.mxu0 %v9806_v39  ;;  %1159 = vmatprep.subr.mxu1 %v5673_v41  ;;  %9818 = vst [vmem:[#allocation26_spill] sm:$0xff] %v5831_v38  ;;  %v5834_v39 = vld [vmem:[#allocation5 + $0x260] sm:$0xff] }
 0x2ce   :  { %1091 = vmatpush1.msra.mxu0 %v5372_v55  ;;  %1160 = vmatpush1.msra.mxu1 %v5677_v43  ;;  %v5693_v55 = vld [vmem:[#allocation5 + $0x10] sm:$0xff]  ;;  %9819 = vst [vmem:[#allocation33_spill] sm:$0xff] %v5834_v39 }
 0x2cf   :  { %1092 = vmatprep.subr.mxu0 %v5376_v46  ;;  %1161 = vmatprep.subr.mxu1 %v5681_v54  ;;  %v5696_v46 = vld [vmem:[#allocation5 + $0x3c8] sm:$0xff] }
 0x2d0   :  { %1093 = vmatpush1.msra.mxu0 %v5380_v60  ;;  %1162 = vmatpush1.msra.mxu1 %v5685_v9  ;;  %v5699_v60 = vld [vmem:[#allocation5 + $0x3f8] sm:$0xff] }
 0x2d1   :  { %1094 = vmatprep.subr.mxu0 %v5384_v52  ;;  %1163 = vmatprep.subr.mxu1 %v5689_v61  ;;  %v5705_v52 = vld [vmem:[#allocation5 + $0x3f0] sm:$0xff] }
 0x2d2   :  { %1095 = vmatpush2.msra.mxu0 %v5388_v59  ;;  %1164 = vmatpush1.msra.mxu1 %v5693_v55  ;;  %v5708_v59 = vld [vmem:[#allocation5 + $0x3a8] sm:$0xff] }
 0x2d3   :  { %1096 = vmatprep.subr.mxu0 %v5696_v46  ;;  %1165 = vmatprep.subr.mxu1 %v5699_v60 }
 0x2d4   :  { %1097 = vmatpush2.msra.mxu0 %v5702_v63  ;;  %1166 = vmatpush2.msra.mxu1 %v5705_v52 }
 0x2d5   :  { %1098 = vmatprep.subr.mxu0 %v5708_v59  ;;  %1167 = vmatprep.subr.mxu1 %v5711_v1 }
 0x2d6   :  { %1099 = vmatpush2.msra.mxu0 %v5714_v47  ;;  %1168 = vmatpush2.msra.mxu1 %v5717_v53 }
 0x2d7   :  { %1100 = vmatprep.subr.mxu0 %v5720_v0  ;;  %1169 = vmatprep.subr.mxu1 %v5723_v42 }
 0x2d8   :  { %1101 = vmatpush2.msra.mxu0 %v5726_v44  ;;  %1170 = vmatpush2.msra.mxu1 %v5729_v49 }
 0x2d9   :  { %1102 = vmatprep.subr.mxu0 %v5732_v57  ;;  %1171 = vmatprep.subr.mxu1 %v5735_v58 }
 0x2da   :  { %1103 = vmatpush2.msra.mxu0 %v5738_v50  ;;  %1172 = vmatpush2.msra.mxu1 %v5741_v62 }
 0x2db   :  { %1104 = vmatprep.subr.mxu0 %v5744_v56  ;;  %1173 = vmatprep.subr.mxu1 %v5747_v2 }
 0x2dc   :  { %1105 = vmatpush2.msra.mxu0 %v5750_v3  ;;  %1174 = vmatpush2.msra.mxu1 %v5753_v4 }
 0x2dd   :  { %1106 = vmatprep.subr.mxu0 %v5756_v5  ;;  %1175 = vmatprep.subr.mxu1 %v5759_v6 }
 0x2de   :  { %1107 = vmatpush2.msra.mxu0 %v5762_v7  ;;  %1176 = vmatpush2.msra.mxu1 %v5765_v8 }
 0x2df   :  { %1108 = vmatprep.subr.mxu0 %v5768_v11  ;;  %1177 = vmatprep.subr.mxu1 %v5771_v12 }
 0x2e0   :  { %1109 = vmatpush2.msra.mxu0 %v5774_v13  ;;  %1178 = vmatpush2.msra.mxu1 %v5777_v14 }
 0x2e1   :  { %1110 = vmatprep.subr.mxu0 %v5780_v16  ;;  %1179 = vmatprep.subr.mxu1 %v5783_v17 }
 0x2e2   :  { %1111 = vmatpush2.msra.mxu0 %v5786_v18  ;;  %1180 = vmatpush2.msra.mxu1 %v5789_v20 }
 0x2e3   :  { %1112 = vmatprep.subr.mxu0 %v5792_v22  ;;  %1181 = vmatprep.subr.mxu1 %v5795_v23 }
 0x2e4   :  { %1113 = vmatpush2.msra.mxu0 %v5798_v24  ;;  %1182 = vmatpush2.msra.mxu1 %v5801_v26 }
 0x2e5   :  { %1114 = vmatprep.subr.mxu0 %v5804_v28  ;;  %1183 = vmatprep.subr.mxu1 %v5807_v29 }
 0x2e6   :  { %1115 = vmatpush2.msra.mxu0 %v5810_v30  ;;  %1184 = vmatpush2.msra.mxu1 %v5813_v31 }
 0x2e7   :  { %1116 = vmatprep.subr.mxu0 %v5816_v32  ;;  %1185 = vmatprep.subr.mxu1 %v5819_v33  ;;  %v5837_v33 = vld [vmem:[#allocation5 + $0x290] sm:$0xff] }
 0x2e8   :  { %1117 = vmatpush2.msra.mxu0 %v5822_v34  ;;  %1186 = vmatpush2.msra.mxu1 %v5825_v35  ;;  %9820 = vst [vmem:[#allocation28_spill] sm:$0xff] %v5837_v33  ;;  %v5840_v34 = vld [vmem:[#allocation5 + $0x248] sm:$0xff]  ;;  %v5843_v35 = vld [vmem:[#allocation5 + $0x278] sm:$0xff]  ;;  %v5861_v32 = vld [vmem:[#allocation5 + $0x250] sm:$0xff] }
 0x2e9   :  { %1118 = vmatprep.subr.mxu0 %v5828_v37  ;;  %1187 = vmatprep.subr.mxu1 %v5831_v38  ;;  %9821 = vst [vmem:[#allocation34_spill] sm:$0xff] %v5840_v34  ;;  %9822 = vst [vmem:[#allocation30_spill] sm:$0xff] %v5843_v35  ;;  %v5846_v37 = vld [vmem:[#allocation5 + $0x240] sm:$0xff]  ;;  %v5849_v38 = vld [vmem:[#allocation5 + $0x270] sm:$0xff] }
 0x2ea   :  { %1119 = vmatpush2.msra.mxu0 %v5834_v39  ;;  %1188 = vmatpush2.msra.mxu1 %v5837_v33  ;;  %9823 = vst [vmem:[#allocation35_spill] sm:$0xff] %v5846_v37  ;;  %9824 = vst [vmem:[#allocation32_spill] sm:$0xff] %v5849_v38  ;;  %v5852_v39 = vld [vmem:[#allocation5 + $0x228] sm:$0xff]  ;;  %v5855_v33 = vld [vmem:[#allocation5 + $0x258] sm:$0xff] }
 0x2eb   :  { %1120 = vmatprep.subr.mxu0 %v5840_v34  ;;  %1189 = vmatprep.subr.mxu1 %v5843_v35  ;;  %9825 = vst [vmem:[#allocation37_spill] sm:$0xff] %v5852_v39  ;;  %9826 = vst [vmem:[#allocation39_spill] sm:$0xff] %v5855_v33  ;;  %v5858_v34 = vld [vmem:[#allocation5 + $0x220] sm:$0xff]  ;;  %v1061_v35 = vld [vmem:[#allocation2 + $0x10] sm:$0xff] }
 0x2ec   :  { %1121 = vmatpush2.msra.mxu0 %v5846_v37  ;;  %1190 = vmatpush2.msra.mxu1 %v5849_v38  ;;  %9827 = vst [vmem:[#allocation41_spill] sm:$0xff] %v5858_v34  ;;  %9828 = vst [vmem:[#allocation36_spill] sm:$0xff] %v5861_v32  ;;  %v5864_v37 = vld [vmem:[#allocation5 + $0x208] sm:$0xff]  ;;  %v5867_v38 = vld [vmem:[#allocation5 + $0x238] sm:$0xff] }
 0x2ed   :  { %1122 = vmatprep.subr.mxu0 %v5852_v39  ;;  %1191 = vmatprep.subr.mxu1 %v5855_v33  ;;  %9829 = vst [vmem:[#allocation38_spill] sm:$0xff] %v5864_v37  ;;  %9830 = vst [vmem:[#allocation43_spill] sm:$0xff] %v5867_v38  ;;  %v5870_v39 = vld [vmem:[#allocation5 + $0x200] sm:$0xff]  ;;  %v5873_v33 = vld [vmem:[#allocation5 + $0x230] sm:$0xff] }
 0x2ee   :  { %1123 = vmatpush2.msra.mxu0 %v5858_v34  ;;  %1192 = vmatpush2.msra.mxu1 %v5861_v32  ;;  %9831 = vst [vmem:[#allocation40_spill] sm:$0xff] %v5870_v39  ;;  %9832 = vst [vmem:[#allocation44_spill] sm:$0xff] %v5873_v33  ;;  %v5876_v34 = vld [vmem:[#allocation5 + $0x218] sm:$0xff]  ;;  %v5879_v32 = vld [vmem:[#allocation5 + $0x210] sm:$0xff] }
 0x2ef   :  { %1124 = vmatprep.subr.mxu0 %v5864_v37  ;;  %1193 = vmatprep.subr.mxu1 %v5867_v38  ;;  %9833 = vst [vmem:[#allocation42_spill] sm:$0xff] %v5876_v34  ;;  %9834 = vst [vmem:[#allocation46_spill] sm:$0xff] %v5879_v32  ;;  %v5882_v37 = vld [vmem:[#allocation8 + $0x1e8] sm:$0xff]  ;;  %v5885_v38 = vld [vmem:[#allocation8 + $0x1e0] sm:$0xff] }
 0x2f0   :  { %1125 = vmatpush2.msra.mxu0 %v5870_v39  ;;  %1194 = vmatpush2.msra.mxu1 %v5873_v33  ;;  %9835 = vst [vmem:[#allocation45_spill] sm:$0xff] %v5882_v37  ;;  %9836 = vst [vmem:[#allocation48_spill] sm:$0xff] %v5885_v38  ;;  %v5888_v39 = vld [vmem:[#allocation8 + $0x1f8] sm:$0xff]  ;;  %v5891_v33 = vld [vmem:[#allocation8 + $0x1c8] sm:$0xff] }
 0x2f1   :  { %1127 = vmatmul.mubr.f32.vlgmr.msra.gmra.mxu0 %v1061_v35  ;;  %1195 = vmatprep.subr.mxu1 %v5876_v34  ;;  %9837 = vst [vmem:[#allocation47_spill] sm:$0xff] %v5888_v39  ;;  %9838 = vst [vmem:[#allocation50_spill] sm:$0xff] %v5891_v33  ;;  %v5894_v34 = vld [vmem:[#allocation8 + $0x1f0] sm:$0xff] }
 0x2f2   :  { %1196 = vmatpush2.msra.mxu1 %v5879_v32  ;;  %1228 = vmatprep.subr.mxu0 %v5882_v37  ;;  %9839 = vst [vmem:[#allocation49_spill] sm:$0xff] %v5894_v34  ;;  %v5897_v32 = vld [vmem:[#allocation8 + $0x1c0] sm:$0xff] }
 0x2f3   :  { %1198 = vmatmul.mubr.f32.vlgmr.msra.gmra.mxu1 %v1061_v35  ;;  %1229 = vmatpush1.msra.mxu0 %v5885_v38  ;;  %9840 = vst [vmem:[#allocation52_spill] sm:$0xff] %v5897_v32  ;;  %v5900_v35 = vld [vmem:[#allocation8 + $0x1d8] sm:$0xff]  ;;  %v5903_v38 = vld [vmem:[#allocation8 + $0x1a8] sm:$0xff] }
 0x2f4   :  { %1299 = vmatprep.subr.mxu1 %v5888_v39  ;;  %1230 = vmatprep.subr.mxu0 %v5891_v33  ;;  %9841 = vst [vmem:[#allocation51_spill] sm:$0xff] %v5900_v35  ;;  %9842 = vst [vmem:[#allocation53_spill] sm:$0xff] %v5903_v38  ;;  %v5906_v39 = vld [vmem:[#allocation8 + $0x1d0] sm:$0xff]  ;;  %v5909_v33 = vld [vmem:[#allocation8 + $0x1a0] sm:$0xff] }
 0x2f5   :  { %1300 = vmatpush1.msra.mxu1 %v5894_v34  ;;  %1231 = vmatpush1.msra.mxu0 %v5897_v32  ;;  %9843 = vst [vmem:[#allocation54_spill] sm:$0xff] %v5906_v39  ;;  %9844 = vst [vmem:[#allocation55_spill] sm:$0xff] %v5909_v33  ;;  %v5912_v34 = vld [vmem:[#allocation8 + $0x1b8] sm:$0xff]  ;;  %v5915_v32 = vld [vmem:[#allocation8 + $0x188] sm:$0xff] }
 0x2f6   :  { %1301 = vmatprep.subr.mxu1 %v5900_v35  ;;  %1232 = vmatprep.subr.mxu0 %v5903_v38  ;;  %9845 = vst [vmem:[#allocation56_spill] sm:$0xff] %v5912_v34  ;;  %9846 = vst [vmem:[#allocation57_spill] sm:$0xff] %v5915_v32  ;;  %v5918_v35 = vld [vmem:[#allocation8 + $0x1b0] sm:$0xff]  ;;  %v5921_v38 = vld [vmem:[#allocation8 + $0x180] sm:$0xff] }
 0x2f7   :  { %1302 = vmatpush1.msra.mxu1 %v5906_v39  ;;  %1233 = vmatpush1.msra.mxu0 %v5909_v33  ;;  %9847 = vst [vmem:[#allocation58_spill] sm:$0xff] %v5918_v35  ;;  %9848 = vst [vmem:[#allocation59_spill] sm:$0xff] %v5921_v38  ;;  %v5924_v39 = vld [vmem:[#allocation8 + $0x198] sm:$0xff]  ;;  %v5927_v33 = vld [vmem:[#allocation8 + $0x168] sm:$0xff] }
 0x2f8   :  { %1303 = vmatprep.subr.mxu1 %v5912_v34  ;;  %1234 = vmatprep.subr.mxu0 %v5915_v32  ;;  %9849 = vst [vmem:[#allocation60_spill] sm:$0xff] %v5924_v39  ;;  %9850 = vst [vmem:[#allocation61_spill] sm:$0xff] %v5927_v33  ;;  %v5930_v34 = vld [vmem:[#allocation8 + $0x190] sm:$0xff]  ;;  %v5933_v32 = vld [vmem:[#allocation8 + $0x160] sm:$0xff] }
 0x2f9   :  { %1304 = vmatpush1.msra.mxu1 %v5918_v35  ;;  %1235 = vmatpush1.msra.mxu0 %v5921_v38  ;;  %9851 = vst [vmem:[#allocation62_spill] sm:$0xff] %v5930_v34  ;;  %9852 = vst [vmem:[#allocation63_spill] sm:$0xff] %v5933_v32  ;;  %v5936_v35 = vld [vmem:[#allocation8 + $0x178] sm:$0xff]  ;;  %v5939_v38 = vld [vmem:[#allocation8 + $0x148] sm:$0xff] }
 0x2fa   :  { %1305 = vmatprep.subr.mxu1 %v5924_v39  ;;  %1236 = vmatprep.subr.mxu0 %v5927_v33  ;;  %9853 = vst [vmem:[#allocation64_spill] sm:$0xff] %v5936_v35  ;;  %9854 = vst [vmem:[#allocation65_spill] sm:$0xff] %v5939_v38  ;;  %v5942_v39 = vld [vmem:[#allocation8 + $0x170] sm:$0xff]  ;;  %v5945_v33 = vld [vmem:[#allocation8 + $0x140] sm:$0xff] }
 0x2fb   :  { %1306 = vmatpush1.msra.mxu1 %v5930_v34  ;;  %1237 = vmatpush1.msra.mxu0 %v5933_v32  ;;  %9855 = vst [vmem:[#allocation66_spill] sm:$0xff] %v5942_v39  ;;  %9856 = vst [vmem:[#allocation67_spill] sm:$0xff] %v5945_v33  ;;  %v5948_v34 = vld [vmem:[#allocation8 + $0x158] sm:$0xff]  ;;  %v5951_v32 = vld [vmem:[#allocation8 + $0x128] sm:$0xff] }
 0x2fc   :  { %1307 = vmatprep.subr.mxu1 %v5936_v35  ;;  %1238 = vmatprep.subr.mxu0 %v5939_v38  ;;  %9857 = vst [vmem:[#allocation68_spill] sm:$0xff] %v5948_v34  ;;  %9858 = vst [vmem:[#allocation69_spill] sm:$0xff] %v5951_v32  ;;  %v5954_v35 = vld [vmem:[#allocation8 + $0x150] sm:$0xff]  ;;  %v5957_v38 = vld [vmem:[#allocation8 + $0x120] sm:$0xff] }
 0x2fd   :  { %1308 = vmatpush1.msra.mxu1 %v5942_v39  ;;  %1239 = vmatpush1.msra.mxu0 %v5945_v33  ;;  %9859 = vst [vmem:[#allocation70_spill] sm:$0xff] %v5954_v35  ;;  %9860 = vst [vmem:[#allocation71_spill] sm:$0xff] %v5957_v38  ;;  %v5960_v39 = vld [vmem:[#allocation8 + $0x138] sm:$0xff]  ;;  %v5963_v33 = vld [vmem:[#allocation8 + $0x108] sm:$0xff] }
 0x2fe   :  { %1309 = vmatprep.subr.mxu1 %v5948_v34  ;;  %1240 = vmatprep.subr.mxu0 %v5951_v32  ;;  %9861 = vst [vmem:[#allocation72_spill] sm:$0xff] %v5960_v39  ;;  %9862 = vst [vmem:[#allocation73_spill] sm:$0xff] %v5963_v33  ;;  %v5966_v34 = vld [vmem:[#allocation8 + $0x130] sm:$0xff]  ;;  %v5969_v32 = vld [vmem:[#allocation8 + $0x100] sm:$0xff] }
 0x2ff   :  { %1310 = vmatpush1.msra.mxu1 %v5954_v35  ;;  %1241 = vmatpush1.msra.mxu0 %v5957_v38  ;;  %9863 = vst [vmem:[#allocation74_spill] sm:$0xff] %v5966_v34  ;;  %9864 = vst [vmem:[#allocation75_spill] sm:$0xff] %v5969_v32  ;;  %v5972_v35 = vld [vmem:[#allocation8 + $0x118] sm:$0xff]  ;;  %v5975_v38 = vld [vmem:[#allocation8 + $0xe8] sm:$0xff] }
 0x300   :  { %1311 = vmatprep.subr.mxu1 %v5960_v39  ;;  %1242 = vmatprep.subr.mxu0 %v5963_v33  ;;  %9865 = vst [vmem:[#allocation76_spill] sm:$0xff] %v5972_v35  ;;  %9866 = vst [vmem:[#allocation77_spill] sm:$0xff] %v5975_v38  ;;  %v5978_v39 = vld [vmem:[#allocation8 + $0x110] sm:$0xff]  ;;  %v5981_v33 = vld [vmem:[#allocation8 + $0xe0] sm:$0xff] }
 0x301   :  { %1312 = vmatpush1.msra.mxu1 %v5966_v34  ;;  %1243 = vmatpush1.msra.mxu0 %v5969_v32  ;;  %9867 = vst [vmem:[#allocation78_spill] sm:$0xff] %v5978_v39  ;;  %9868 = vst [vmem:[#allocation79_spill] sm:$0xff] %v5981_v33  ;;  %v5984_v34 = vld [vmem:[#allocation8 + $0xf8] sm:$0xff]  ;;  %v5987_v32 = vld [vmem:[#allocation8 + $0xc8] sm:$0xff] }
 0x302   :  { %1313 = vmatprep.subr.mxu1 %v5972_v35  ;;  %1244 = vmatprep.subr.mxu0 %v5975_v38  ;;  %9869 = vst [vmem:[#allocation80_spill] sm:$0xff] %v5984_v34  ;;  %9870 = vst [vmem:[#allocation81_spill] sm:$0xff] %v5987_v32  ;;  %v5990_v35 = vld [vmem:[#allocation8 + $0xf0] sm:$0xff]  ;;  %v5993_v38 = vld [vmem:[#allocation8 + $0xc0] sm:$0xff] }
 0x303   :  { %1314 = vmatpush1.msra.mxu1 %v5978_v39  ;;  %1245 = vmatpush1.msra.mxu0 %v5981_v33  ;;  %9871 = vst [vmem:[#allocation82_spill] sm:$0xff] %v5990_v35  ;;  %9872 = vst [vmem:[#allocation83_spill] sm:$0xff] %v5993_v38  ;;  %v5996_v39 = vld [vmem:[#allocation8 + $0xd8] sm:$0xff]  ;;  %v5999_v33 = vld [vmem:[#allocation8 + $0xa8] sm:$0xff] }
 0x304   :  { %1315 = vmatprep.subr.mxu1 %v5984_v34  ;;  %1246 = vmatprep.subr.mxu0 %v5987_v32  ;;  %9873 = vst [vmem:[#allocation84_spill] sm:$0xff] %v5996_v39  ;;  %9874 = vst [vmem:[#allocation85_spill] sm:$0xff] %v5999_v33  ;;  %v6002_v34 = vld [vmem:[#allocation8 + $0xd0] sm:$0xff]  ;;  %v6005_v32 = vld [vmem:[#allocation8 + $0xa0] sm:$0xff] }
 0x305   :  { %1316 = vmatpush1.msra.mxu1 %v5990_v35  ;;  %1247 = vmatpush1.msra.mxu0 %v5993_v38  ;;  %9875 = vst [vmem:[#allocation86_spill] sm:$0xff] %v6002_v34  ;;  %9876 = vst [vmem:[#allocation87_spill] sm:$0xff] %v6005_v32  ;;  %v6008_v35 = vld [vmem:[#allocation8 + $0xb8] sm:$0xff]  ;;  %v6011_v38 = vld [vmem:[#allocation8 + $0x88] sm:$0xff] }
 0x306   :  { %1317 = vmatprep.subr.mxu1 %v5996_v39  ;;  %1248 = vmatprep.subr.mxu0 %v5999_v33  ;;  %9877 = vst [vmem:[#allocation88_spill] sm:$0xff] %v6008_v35  ;;  %9878 = vst [vmem:[#allocation89_spill] sm:$0xff] %v6011_v38  ;;  %v6014_v39 = vld [vmem:[#allocation8 + $0xb0] sm:$0xff]  ;;  %v6017_v33 = vld [vmem:[#allocation8 + $0x80] sm:$0xff] }
 0x307   :  { %1318 = vmatpush1.msra.mxu1 %v6002_v34  ;;  %1249 = vmatpush1.msra.mxu0 %v6005_v32  ;;  %9879 = vst [vmem:[#allocation90_spill] sm:$0xff] %v6014_v39  ;;  %9880 = vst [vmem:[#allocation91_spill] sm:$0xff] %v6017_v33  ;;  %v6020_v34 = vld [vmem:[#allocation8 + $0x98] sm:$0xff]  ;;  %v6023_v32 = vld [vmem:[#allocation8 + $0x68] sm:$0xff] }
 0x308   :  { %1319 = vmatprep.subr.mxu1 %v6008_v35  ;;  %1250 = vmatprep.subr.mxu0 %v6011_v38  ;;  %9881 = vst [vmem:[#allocation92_spill] sm:$0xff] %v6020_v34  ;;  %9882 = vst [vmem:[#allocation93_spill] sm:$0xff] %v6023_v32  ;;  %v6026_v35 = vld [vmem:[#allocation8 + $0x90] sm:$0xff]  ;;  %v6029_v38 = vld [vmem:[#allocation8 + $0x60] sm:$0xff] }
 0x309   :  { %1320 = vmatpush1.msra.mxu1 %v6014_v39  ;;  %1251 = vmatpush1.msra.mxu0 %v6017_v33  ;;  %9883 = vst [vmem:[#allocation94_spill] sm:$0xff] %v6026_v35  ;;  %9884 = vst [vmem:[#allocation95_spill] sm:$0xff] %v6029_v38  ;;  %v6032_v39 = vld [vmem:[#allocation8 + $0x78] sm:$0xff]  ;;  %v6035_v33 = vld [vmem:[#allocation8 + $0x48] sm:$0xff] }
 0x30a   :  { %1321 = vmatprep.subr.mxu1 %v6020_v34  ;;  %1252 = vmatprep.subr.mxu0 %v6023_v32  ;;  %9885 = vst [vmem:[#allocation96_spill] sm:$0xff] %v6032_v39  ;;  %9886 = vst [vmem:[#allocation97_spill] sm:$0xff] %v6035_v33  ;;  %v6038_v34 = vld [vmem:[#allocation8 + $0x70] sm:$0xff]  ;;  %v6041_v32 = vld [vmem:[#allocation8 + $0x40] sm:$0xff] }
 0x30b   :  { %1322 = vmatpush1.msra.mxu1 %v6026_v35  ;;  %1253 = vmatpush1.msra.mxu0 %v6029_v38  ;;  %9887 = vst [vmem:[#allocation98_spill] sm:$0xff] %v6038_v34  ;;  %9888 = vst [vmem:[#allocation99_spill] sm:$0xff] %v6041_v32  ;;  %v6044_v35 = vld [vmem:[#allocation8 + $0x58] sm:$0xff]  ;;  %v6047_v38 = vld [vmem:[#allocation8 + $0x28] sm:$0xff] }
 0x30c   :  { %1323 = vmatprep.subr.mxu1 %v6032_v39  ;;  %1254 = vmatprep.subr.mxu0 %v6035_v33  ;;  %9889 = vst [vmem:[#allocation100_spill] sm:$0xff] %v6044_v35  ;;  %9890 = vst [vmem:[#allocation101_spill] sm:$0xff] %v6047_v38  ;;  %v6050_v39 = vld [vmem:[#allocation8 + $0x50] sm:$0xff]  ;;  %v6053_v33 = vld [vmem:[#allocation8 + $0x20] sm:$0xff] }
 0x30d   :  { %1324 = vmatpush1.msra.mxu1 %v6038_v34  ;;  %1255 = vmatpush1.msra.mxu0 %v6041_v32  ;;  %9891 = vst [vmem:[#allocation102_spill] sm:$0xff] %v6050_v39  ;;  %9892 = vst [vmem:[#allocation103_spill] sm:$0xff] %v6053_v33  ;;  %v6056_v34 = vld [vmem:[#allocation8 + $0x38] sm:$0xff]  ;;  %v6059_v32 = vld [vmem:[#allocation8 + $0x8] sm:$0xff] }
 0x30e   :  { %1325 = vmatprep.subr.mxu1 %v6044_v35  ;;  %1256 = vmatprep.subr.mxu0 %v6047_v38  ;;  %9893 = vst [vmem:[#allocation104_spill] sm:$0xff] %v6056_v34  ;;  %9894 = vst [vmem:[#allocation105_spill] sm:$0xff] %v6059_v32  ;;  %v6062_v35 = vld [vmem:[#allocation8 + $0x30] sm:$0xff]  ;;  %v6065_v38 = vld [vmem:[#allocation8] sm:$0xff] }
 0x30f   :  { %1326 = vmatpush1.msra.mxu1 %v6050_v39  ;;  %1257 = vmatpush1.msra.mxu0 %v6053_v33  ;;  %9895 = vst [vmem:[#allocation106_spill] sm:$0xff] %v6062_v35  ;;  %9896 = vst [vmem:[#allocation107_spill] sm:$0xff] %v6065_v38  ;;  %v6068_v39 = vld [vmem:[#allocation8 + $0x18] sm:$0xff]  ;;  %v6071_v33 = vld [vmem:[#allocation8 + $0x3e8] sm:$0xff] }
 0x310   :  { %1327 = vmatprep.subr.mxu1 %v6056_v34  ;;  %1258 = vmatprep.subr.mxu0 %v6059_v32  ;;  %9897 = vst [vmem:[#allocation108_spill] sm:$0xff] %v6068_v39  ;;  %9898 = vst [vmem:[#allocation109_spill] sm:$0xff] %v6071_v33  ;;  %v6074_v34 = vld [vmem:[#allocation8 + $0x10] sm:$0xff]  ;;  %v6077_v32 = vld [vmem:[#allocation8 + $0x3e0] sm:$0xff] }
 0x311   :  { %1328 = vmatpush1.msra.mxu1 %v6062_v35  ;;  %1259 = vmatpush1.msra.mxu0 %v6065_v38  ;;  %9899 = vst [vmem:[#allocation110_spill] sm:$0xff] %v6074_v34  ;;  %9900 = vst [vmem:[#allocation111_spill] sm:$0xff] %v6077_v32  ;;  %v6080_v35 = vld [vmem:[#allocation8 + $0x3f8] sm:$0xff]  ;;  %v6083_v38 = vld [vmem:[#allocation8 + $0x3c8] sm:$0xff] }
 0x312   :  { %1329 = vmatprep.subr.mxu1 %v6068_v39  ;;  %1260 = vmatprep.subr.mxu0 %v6071_v33  ;;  %9901 = vst [vmem:[#allocation112_spill] sm:$0xff] %v6080_v35  ;;  %9902 = vst [vmem:[#allocation113_spill] sm:$0xff] %v6083_v38  ;;  %v6086_v39 = vld [vmem:[#allocation8 + $0x3f0] sm:$0xff]  ;;  %v6089_v33 = vld [vmem:[#allocation8 + $0x3c0] sm:$0xff] }
 0x313   :  { %1330 = vmatpush1.msra.mxu1 %v6074_v34  ;;  %1261 = vmatpush2.msra.mxu0 %v6077_v32  ;;  %9903 = vst [vmem:[#allocation114_spill] sm:$0xff] %v6086_v39  ;;  %9904 = vst [vmem:[#allocation115_spill] sm:$0xff] %v6089_v33  ;;  %v6092_v34 = vld [vmem:[#allocation8 + $0x3d8] sm:$0xff]  ;;  %v6095_v32 = vld [vmem:[#allocation8 + $0x3a8] sm:$0xff] }
 0x314   :  { %1331 = vmatprep.subr.mxu1 %v6080_v35  ;;  %1262 = vmatprep.subr.mxu0 %v6083_v38  ;;  %9905 = vst [vmem:[#allocation116_spill] sm:$0xff] %v6092_v34  ;;  %9906 = vst [vmem:[#allocation117_spill] sm:$0xff] %v6095_v32  ;;  %v6098_v35 = vld [vmem:[#allocation8 + $0x3d0] sm:$0xff]  ;;  %v6101_v38 = vld [vmem:[#allocation8 + $0x3a0] sm:$0xff] }
 0x315   :  { %1332 = vmatpush2.msra.mxu1 %v6086_v39  ;;  %1263 = vmatpush2.msra.mxu0 %v6089_v33  ;;  %9907 = vst [vmem:[#allocation118_spill] sm:$0xff] %v6098_v35  ;;  %9908 = vst [vmem:[#allocation119_spill] sm:$0xff] %v6101_v38  ;;  %v6104_v39 = vld [vmem:[#allocation8 + $0x3b8] sm:$0xff]  ;;  %v6107_v33 = vld [vmem:[#allocation8 + $0x388] sm:$0xff] }
 0x316   :  { %1333 = vmatprep.subr.mxu1 %v6092_v34  ;;  %1264 = vmatprep.subr.mxu0 %v6095_v32  ;;  %9909 = vst [vmem:[#allocation120_spill] sm:$0xff] %v6104_v39  ;;  %9910 = vst [vmem:[#allocation121_spill] sm:$0xff] %v6107_v33  ;;  %v6110_v34 = vld [vmem:[#allocation8 + $0x3b0] sm:$0xff]  ;;  %v6113_v32 = vld [vmem:[#allocation8 + $0x380] sm:$0xff] }
 0x317   :  { %1334 = vmatpush2.msra.mxu1 %v6098_v35  ;;  %1265 = vmatpush2.msra.mxu0 %v6101_v38  ;;  %9911 = vst [vmem:[#allocation122_spill] sm:$0xff] %v6110_v34  ;;  %9912 = vst [vmem:[#allocation123_spill] sm:$0xff] %v6113_v32  ;;  %v6116_v35 = vld [vmem:[#allocation8 + $0x398] sm:$0xff]  ;;  %v6119_v38 = vld [vmem:[#allocation8 + $0x368] sm:$0xff] }
 0x318   :  { %1335 = vmatprep.subr.mxu1 %v6104_v39  ;;  %1266 = vmatprep.subr.mxu0 %v6107_v33  ;;  %9913 = vst [vmem:[#allocation124_spill] sm:$0xff] %v6116_v35  ;;  %9914 = vst [vmem:[#allocation125_spill] sm:$0xff] %v6119_v38  ;;  %v6122_v39 = vld [vmem:[#allocation8 + $0x390] sm:$0xff]  ;;  %v6125_v33 = vld [vmem:[#allocation8 + $0x360] sm:$0xff] }
 0x319   :  { %1336 = vmatpush2.msra.mxu1 %v6110_v34  ;;  %1267 = vmatpush2.msra.mxu0 %v6113_v32  ;;  %9915 = vst [vmem:[#allocation126_spill] sm:$0xff] %v6122_v39  ;;  %9916 = vst [vmem:[#allocation127_spill] sm:$0xff] %v6125_v33  ;;  %v6128_v34 = vld [vmem:[#allocation8 + $0x378] sm:$0xff]  ;;  %v6131_v32 = vld [vmem:[#allocation8 + $0x348] sm:$0xff] }
 0x31a   :  { %1337 = vmatprep.subr.mxu1 %v6116_v35  ;;  %1268 = vmatprep.subr.mxu0 %v6119_v38  ;;  %9917 = vst [vmem:[#allocation128_spill] sm:$0xff] %v6128_v34  ;;  %9918 = vst [vmem:[#allocation129_spill] sm:$0xff] %v6131_v32  ;;  %v6134_v35 = vld [vmem:[#allocation8 + $0x370] sm:$0xff]  ;;  %v6137_v38 = vld [vmem:[#allocation8 + $0x340] sm:$0xff] }
 0x31b   :  { %1338 = vmatpush2.msra.mxu1 %v6122_v39  ;;  %1269 = vmatpush2.msra.mxu0 %v6125_v33  ;;  %9919 = vst [vmem:[#allocation130_spill] sm:$0xff] %v6134_v35  ;;  %9920 = vst [vmem:[#allocation131_spill] sm:$0xff] %v6137_v38  ;;  %v6140_v39 = vld [vmem:[#allocation8 + $0x358] sm:$0xff]  ;;  %v6143_v33 = vld [vmem:[#allocation8 + $0x328] sm:$0xff] }
 0x31c   :  { %1339 = vmatprep.subr.mxu1 %v6128_v34  ;;  %1270 = vmatprep.subr.mxu0 %v6131_v32  ;;  %9921 = vst [vmem:[#allocation132_spill] sm:$0xff] %v6140_v39  ;;  %9922 = vst [vmem:[#allocation133_spill] sm:$0xff] %v6143_v33  ;;  %v6146_v34 = vld [vmem:[#allocation8 + $0x350] sm:$0xff]  ;;  %v6149_v32 = vld [vmem:[#allocation8 + $0x320] sm:$0xff] }
 0x31d   :  { %1340 = vmatpush2.msra.mxu1 %v6134_v35  ;;  %1271 = vmatpush2.msra.mxu0 %v6137_v38  ;;  %9923 = vst [vmem:[#allocation134_spill] sm:$0xff] %v6146_v34  ;;  %9924 = vst [vmem:[#allocation135_spill] sm:$0xff] %v6149_v32  ;;  %v6152_v35 = vld [vmem:[#allocation8 + $0x338] sm:$0xff]  ;;  %v6155_v38 = vld [vmem:[#allocation8 + $0x308] sm:$0xff] }
 0x31e   :  { %1341 = vmatprep.subr.mxu1 %v6140_v39  ;;  %1272 = vmatprep.subr.mxu0 %v6143_v33  ;;  %9925 = vst [vmem:[#allocation136_spill] sm:$0xff] %v6152_v35  ;;  %9926 = vst [vmem:[#allocation137_spill] sm:$0xff] %v6155_v38  ;;  %v6158_v39 = vld [vmem:[#allocation8 + $0x330] sm:$0xff]  ;;  %v6161_v33 = vld [vmem:[#allocation8 + $0x300] sm:$0xff] }
 0x31f   :  { %1342 = vmatpush2.msra.mxu1 %v6146_v34  ;;  %1273 = vmatpush2.msra.mxu0 %v6149_v32  ;;  %9927 = vst [vmem:[#allocation138_spill] sm:$0xff] %v6158_v39  ;;  %9928 = vst [vmem:[#allocation139_spill] sm:$0xff] %v6161_v33  ;;  %v6164_v34 = vld [vmem:[#allocation8 + $0x318] sm:$0xff]  ;;  %v6167_v32 = vld [vmem:[#allocation8 + $0x2e8] sm:$0xff] }
 0x320   :  { %1343 = vmatprep.subr.mxu1 %v6152_v35  ;;  %1274 = vmatprep.subr.mxu0 %v6155_v38  ;;  %9929 = vst [vmem:[#allocation140_spill] sm:$0xff] %v6164_v34  ;;  %9930 = vst [vmem:[#allocation141_spill] sm:$0xff] %v6167_v32  ;;  %v6170_v35 = vld [vmem:[#allocation8 + $0x310] sm:$0xff]  ;;  %v6173_v38 = vld [vmem:[#allocation8 + $0x2e0] sm:$0xff] }
 0x321   :  { %1344 = vmatpush2.msra.mxu1 %v6158_v39  ;;  %1275 = vmatpush2.msra.mxu0 %v6161_v33  ;;  %9931 = vst [vmem:[#allocation142_spill] sm:$0xff] %v6170_v35  ;;  %9932 = vst [vmem:[#allocation143_spill] sm:$0xff] %v6173_v38  ;;  %v6176_v39 = vld [vmem:[#allocation8 + $0x2f8] sm:$0xff]  ;;  %v6179_v33 = vld [vmem:[#allocation8 + $0x2c8] sm:$0xff] }
 0x322   :  { %1345 = vmatprep.subr.mxu1 %v6164_v34  ;;  %1276 = vmatprep.subr.mxu0 %v6167_v32  ;;  %9933 = vst [vmem:[#allocation144_spill] sm:$0xff] %v6176_v39  ;;  %9934 = vst [vmem:[#allocation145_spill] sm:$0xff] %v6179_v33  ;;  %v6182_v34 = vld [vmem:[#allocation8 + $0x2f0] sm:$0xff]  ;;  %v6185_v32 = vld [vmem:[#allocation8 + $0x2c0] sm:$0xff] }
 0x323   :  { %1346 = vmatpush2.msra.mxu1 %v6170_v35  ;;  %1277 = vmatpush2.msra.mxu0 %v6173_v38  ;;  %9935 = vst [vmem:[#allocation146_spill] sm:$0xff] %v6182_v34  ;;  %9936 = vst [vmem:[#allocation147_spill] sm:$0xff] %v6185_v32  ;;  %v6188_v35 = vld [vmem:[#allocation8 + $0x2d8] sm:$0xff]  ;;  %v6191_v38 = vld [vmem:[#allocation8 + $0x2a8] sm:$0xff] }
 0x324   :  { %1347 = vmatprep.subr.mxu1 %v6176_v39  ;;  %1278 = vmatprep.subr.mxu0 %v6179_v33  ;;  %9937 = vst [vmem:[#allocation148_spill] sm:$0xff] %v6188_v35  ;;  %9938 = vst [vmem:[#allocation149_spill] sm:$0xff] %v6191_v38  ;;  %v6194_v39 = vld [vmem:[#allocation8 + $0x2d0] sm:$0xff]  ;;  %v6197_v33 = vld [vmem:[#allocation8 + $0x2a0] sm:$0xff] }
 0x325   :  { %1348 = vmatpush2.msra.mxu1 %v6182_v34  ;;  %1279 = vmatpush2.msra.mxu0 %v6185_v32  ;;  %9939 = vst [vmem:[#allocation150_spill] sm:$0xff] %v6194_v39  ;;  %9940 = vst [vmem:[#allocation151_spill] sm:$0xff] %v6197_v33  ;;  %v6200_v34 = vld [vmem:[#allocation8 + $0x2b8] sm:$0xff]  ;;  %v6203_v32 = vld [vmem:[#allocation8 + $0x288] sm:$0xff] }
 0x326   :  { %1349 = vmatprep.subr.mxu1 %v6188_v35  ;;  %1280 = vmatprep.subr.mxu0 %v6191_v38  ;;  %9941 = vst [vmem:[#allocation152_spill] sm:$0xff] %v6200_v34  ;;  %9942 = vst [vmem:[#allocation153_spill] sm:$0xff] %v6203_v32  ;;  %v6206_v35 = vld [vmem:[#allocation8 + $0x2b0] sm:$0xff]  ;;  %v6209_v38 = vld [vmem:[#allocation8 + $0x280] sm:$0xff] }
 0x327   :  { %1350 = vmatpush2.msra.mxu1 %v6194_v39  ;;  %1281 = vmatpush2.msra.mxu0 %v6197_v33  ;;  %9943 = vst [vmem:[#allocation154_spill] sm:$0xff] %v6206_v35  ;;  %9944 = vst [vmem:[#allocation155_spill] sm:$0xff] %v6209_v38  ;;  %v6212_v39 = vld [vmem:[#allocation8 + $0x298] sm:$0xff]  ;;  %v6215_v33 = vld [vmem:[#allocation8 + $0x268] sm:$0xff] }
 0x328   :  { %1351 = vmatprep.subr.mxu1 %v6200_v34  ;;  %1282 = vmatprep.subr.mxu0 %v6203_v32  ;;  %9945 = vst [vmem:[#allocation156_spill] sm:$0xff] %v6212_v39  ;;  %9946 = vst [vmem:[#allocation157_spill] sm:$0xff] %v6215_v33  ;;  %v6218_v34 = vld [vmem:[#allocation8 + $0x290] sm:$0xff]  ;;  %v6221_v32 = vld [vmem:[#allocation8 + $0x260] sm:$0xff] }
 0x329   :  { %1352 = vmatpush2.msra.mxu1 %v6206_v35  ;;  %1283 = vmatpush2.msra.mxu0 %v6209_v38  ;;  %9947 = vst [vmem:[#allocation158_spill] sm:$0xff] %v6218_v34  ;;  %9948 = vst [vmem:[#allocation159_spill] sm:$0xff] %v6221_v32  ;;  %v6224_v35 = vld [vmem:[#allocation8 + $0x278] sm:$0xff]  ;;  %v6227_v38 = vld [vmem:[#allocation8 + $0x248] sm:$0xff] }
 0x32a   :  { %1353 = vmatprep.subr.mxu1 %v6212_v39  ;;  %1284 = vmatprep.subr.mxu0 %v6215_v33  ;;  %9949 = vst [vmem:[#allocation160_spill] sm:$0xff] %v6224_v35  ;;  %9950 = vst [vmem:[#allocation161_spill] sm:$0xff] %v6227_v38  ;;  %v6230_v39 = vld [vmem:[#allocation8 + $0x270] sm:$0xff]  ;;  %v6233_v33 = vld [vmem:[#allocation8 + $0x240] sm:$0xff] }
 0x32b   :  { %1354 = vmatpush2.msra.mxu1 %v6218_v34  ;;  %1285 = vmatpush2.msra.mxu0 %v6221_v32  ;;  %9951 = vst [vmem:[#allocation162_spill] sm:$0xff] %v6230_v39  ;;  %9952 = vst [vmem:[#allocation163_spill] sm:$0xff] %v6233_v33  ;;  %v6236_v34 = vld [vmem:[#allocation8 + $0x258] sm:$0xff]  ;;  %v6239_v32 = vld [vmem:[#allocation8 + $0x228] sm:$0xff] }
 0x32c   :  { %1355 = vmatprep.subr.mxu1 %v6224_v35  ;;  %1286 = vmatprep.subr.mxu0 %v6227_v38  ;;  %9953 = vst [vmem:[#allocation164_spill] sm:$0xff] %v6236_v34  ;;  %9954 = vst [vmem:[#allocation165_spill] sm:$0xff] %v6239_v32  ;;  %v6242_v35 = vld [vmem:[#allocation8 + $0x250] sm:$0xff]  ;;  %v6245_v38 = vld [vmem:[#allocation8 + $0x220] sm:$0xff] }
 0x32d   :  { %1356 = vmatpush2.msra.mxu1 %v6230_v39  ;;  %1287 = vmatpush2.msra.mxu0 %v6233_v33  ;;  %9955 = vst [vmem:[#allocation167_spill] sm:$0xff] %v6242_v35  ;;  %9956 = vst [vmem:[#allocation166_spill] sm:$0xff] %v6245_v38  ;;  %v6248_v39 = vld [vmem:[#allocation8 + $0x238] sm:$0xff]  ;;  %v6251_v33 = vld [vmem:[#allocation8 + $0x208] sm:$0xff] }
 0x32e   :  { %1357 = vmatprep.subr.mxu1 %v6236_v34  ;;  %1288 = vmatprep.subr.mxu0 %v6239_v32  ;;  %9957 = vst [vmem:[#allocation168_spill] sm:$0xff] %v6248_v39  ;;  %9958 = vst [vmem:[#allocation169_spill] sm:$0xff] %v6251_v33  ;;  %v6254_v34 = vld [vmem:[#allocation8 + $0x230] sm:$0xff]  ;;  %v6257_v32 = vld [vmem:[#allocation8 + $0x200] sm:$0xff] }
 0x32f   :  { %1358 = vmatpush2.msra.mxu1 %v6242_v35  ;;  %1289 = vmatpush2.msra.mxu0 %v6245_v38  ;;  %9959 = vst [vmem:[#allocation170_spill] sm:$0xff] %v6254_v34  ;;  %9960 = vst [vmem:[#allocation171_spill] sm:$0xff] %v6257_v32  ;;  %v6260_v35 = vld [vmem:[#allocation8 + $0x218] sm:$0xff]  ;;  %v6263_v38 = vld [vmem:[#allocation5 + $0x1e8] sm:$0xff] }
 0x330   :  { %1359 = vmatprep.subr.mxu1 %v6248_v39  ;;  %1290 = vmatprep.subr.mxu0 %v6251_v33  ;;  %9961 = vst [vmem:[#allocation172_spill] sm:$0xff] %v6260_v35  ;;  %9962 = vst [vmem:[#allocation173_spill] sm:$0xff] %v6263_v38  ;;  %v6266_v39 = vld [vmem:[#allocation8 + $0x210] sm:$0xff] }
 0x331   :  { %1360 = vmatpush2.msra.mxu1 %v6254_v34  ;;  %1291 = vmatpush2.msra.mxu0 %v6257_v32  ;;  %9963 = vst [vmem:[#allocation174_spill] sm:$0xff] %v6266_v39 }
 0x332   :  { %1361 = vmatprep.subr.mxu1 %v6260_v35  ;;  %1396 = vmatprep.subr.mxu0 %v6263_v38 }
 0x333   :  { %1362 = vmatpush2.msra.mxu1 %v6266_v39 }
 0x334   :  { %1467 = vmatprep.subr.mxu1 %v5583_v21 }
 0x371   :  { %v960_v33 = vpop.f32.mrf.mxu0  ;;  %v1031_v30 = vpop.f32.mrf.mxu1 }
 0x372   :  { %v961_v34 = vadd.f32 %v960_v33, %v5591_v25  ;;  %v1032_v39 = vadd.f32 %v1031_v30, %v5606_v40 }
 0x373   :  { %v962_v37 = vpop.f32.mrf.mxu0  ;;  %v1033_v29 = vpop.f32.mrf.mxu1 }
 0x374   :  { %v3197_v31 = vmul.f32 -1.442695, %v961_v34  ;;  %v963_v32 = vadd.f32 %v962_v37, %v5595_v27  ;;  %v1034_v38 = vadd.f32 %v1033_v29, %v5601_v36 }
 0x376   :  { %3349 = vpow2.f32 %v3197_v31  ;;  %v3198_v35 = vmul.f32 -1.442695, %v963_v32  ;;  %v3199_v28 = vmul.f32 -1.442695, %v1034_v38 }
 0x378   :  { %3351 = vpow2.f32 %v3198_v35 }
 0x379   :  { %3353 = vpow2.f32 %v3199_v28 }
 0x383   :  { %v3350_v26 = vpop.eup %3349 }
 0x384   :  { %v1039_v24 = vadd.f32 1.0, %v3350_v26 }
 0x385   :  { %v3352_v21 = vpop.eup %3351 }
 0x386   :  { %3355 = vrcp.f32 %v1039_v24  ;;  %v1045_v33 = vadd.f32 1.0, %v3352_v21  ;;  %v3354_v34 = vpop.eup %3353 }
 0x387   :  { %3357 = vtanh.f32 %v1032_v39  ;;  %v1052_v32 = vadd.f32 1.0, %v3354_v34 }
 0x388   :  { %3359 = vrcp.f32 %v1045_v33 }
 0x389   :  { %3361 = vrcp.f32 %v1052_v32 }
 0x393   :  { %v3356_v37 = vpop.eup %3355 }
 0x394   :  { %v3358_v31 = vpop.eup %3357 }
 0x395   :  { %v3360_v27 = vpop.eup %3359  ;;  %v1056_v35 = vmul.f32 %v3358_v31, %v3356_v37 }
 0x396   :  { %v1055_v25 = vmul.f32 %v3360_v27, %v5609_v10  ;;  %v3362_v26 = vpop.eup %3361 }
 0x398   :  { %v6275_v29 = vadd.f32 %v1056_v35, %v1055_v25 }
 0x39a   :  { %3363 = vtanh.f32 %v6275_v29 }
 0x3a7   :  { %v3364_v30 = vpop.eup %3363 }
 0x3a8   :  { %v1059_v28 = vmul.f32 %v3364_v30, %v3362_v26 }
 0x3aa   :  { %1292 = vmatprep.mubr.f32.mxu0 %v1059_v28  ;;  %1363 = vmatprep.mubr.f32.mxu1 %v1059_v28 }
 0x3b1   :  { %v1128_v24 = vpop.f32.mrf.mxu0 }
 0x3b2   :  { %v1129_v38 = vadd.f32 %v1128_v24, %v9764_v15 }
 0x3b3   :  { %v1130_v39 = vpop.f32.mrf.mxu0  ;;  %v1199_v27 = vpop.f32.mrf.mxu1 }
 0x3b4   :  { %v3200_v21 = vmul.f32 -1.442695, %v1129_v38  ;;  %v1131_v33 = vadd.f32 %v1130_v39, %v9765_v19  ;;  %v1200_v37 = vadd.f32 %v1199_v27, %v5205_v48 }
 0x3b5   :  { %v1201_v25 = vpop.f32.mrf.mxu1 }
 0x3b6   :  { %3365 = vpow2.f32 %v3200_v21  ;;  %v3201_v34 = vmul.f32 -1.442695, %v1131_v33  ;;  %v1202_v10 = vadd.f32 %v1201_v25, %v5201_v51 }
 0x3b8   :  { %3367 = vpow2.f32 %v3201_v34  ;;  %v3202_v31 = vmul.f32 -1.442695, %v1202_v10 }
 0x3b9   :  { %3369 = vtanh.f32 %v1200_v37 }
 0x3ba   :  { %3371 = vpow2.f32 %v3202_v31  ;;  %v6286_v31 = vld [vmem:[#allocation5 + $0x1e0] sm:$0xff] }
 0x3c3   :  { %v3366_v32 = vpop.eup %3365 }
 0x3c4   :  { %v1207_v35 = vadd.f32 1.0, %v3366_v32  ;;  %v6289_v32 = vld [vmem:[#allocation5 + $0x1c8] sm:$0xff] }
 0x3c5   :  { %v3368_v26 = vpop.eup %3367 }
 0x3c6   :  { %3373 = vrcp.f32 %v1207_v35  ;;  %v1213_v30 = vadd.f32 1.0, %v3368_v26  ;;  %v3370_v28 = vpop.eup %3369  ;;  %v6295_v35 = vld [vmem:[#allocation5 + $0x1f0] sm:$0xff]  ;;  %v6298_v26 = vld [vmem:[#allocation5 + $0x1a8] sm:$0xff] }
 0x3c7   :  { %v3372_v24 = vpop.eup %3371 }
 0x3c8   :  { %3375 = vrcp.f32 %v1213_v30  ;;  %v1220_v21 = vadd.f32 1.0, %v3372_v24  ;;  %v6301_v30 = vld [vmem:[#allocation5 + $0x1d8] sm:$0xff]  ;;  %v6307_v24 = vld [vmem:[#allocation5 + $0x1d0] sm:$0xff] }
 0x3ca   :  { %3377 = vrcp.f32 %v1220_v21  ;;  %v6316_v21 = vld [vmem:[#allocation5 + $0x180] sm:$0xff] }
 0x3cb   :  { %9964 = vst [vmem:[#allocation175_spill] sm:$0xff] %v6316_v21 }
 0x3d3   :  { %v3374_v38 = vpop.eup %3373 }
 0x3d4   :  { %v1224_v34 = vmul.f32 %v3374_v38, %v3370_v28  ;;  %v6304_v28 = vld [vmem:[#allocation5 + $0x1a0] sm:$0xff]  ;;  %v6310_v38 = vld [vmem:[#allocation5 + $0x188] sm:$0xff] }
 0x3d5   :  { %v3376_v39 = vpop.eup %3375 }
 0x3d6   :  { %v1223_v33 = vmul.f32 %v3376_v39, %v5617_v45  ;;  %v6292_v45 = vld [vmem:[#allocation5 + $0x1c0] sm:$0xff]  ;;  %v6313_v39 = vld [vmem:[#allocation5 + $0x1b8] sm:$0xff] }
 0x3d7   :  { %v3378_v27 = vpop.eup %3377 }
 0x3d8   :  { %v6283_v25 = vadd.f32 %v1224_v34, %v1223_v33  ;;  %v6319_v33 = vld [vmem:[#allocation5 + $0x1b0] sm:$0xff]  ;;  %v6322_v34 = vld [vmem:[#allocation5 + $0x168] sm:$0xff] }
 0x3d9   :  { %9965 = vst [vmem:[#allocation176_spill] sm:$0xff] %v6319_v33  ;;  %9966 = vst [vmem:[#allocation177_spill] sm:$0xff] %v6322_v34 }
 0x3da   :  { %3379 = vtanh.f32 %v6283_v25 }
 0x3e7   :  { %v3380_v10 = vpop.eup %3379 }
 0x3e8   :  { %v1227_v37 = vmul.f32 %v3380_v10, %v3378_v27  ;;  %v6325_v27 = vld [vmem:[#allocation5 + $0x198] sm:$0xff]  ;;  %v6328_v10 = vld [vmem:[#allocation5 + $0x160] sm:$0xff] }
 0x3e9   :  { %9967 = vst [vmem:[#allocation178_spill] sm:$0xff] %v6325_v27  ;;  %9968 = vst [vmem:[#allocation179_spill] sm:$0xff] %v6328_v10 }
 0x3ea   :  { %1293 = vmatmul.mubr.f32.vlgmr.msra.gmra.mxu0 %v1227_v37  ;;  %1364 = vmatmul.mubr.f32.vlgmr.msra.gmra.mxu1 %v1227_v37 }
 0x3eb   :  { %1397 = vmatpush1.msra.mxu0 %v6286_v31  ;;  %1460 = vmatprep.mubr.f32.mxu0 %v1227_v37 }
 0x3ec   :  { %1398 = vmatprep.subr.mxu0 %v6289_v32  ;;  %1531 = vmatprep.mubr.f32.mxu1 %v1227_v37  ;;  %v6331_v37 = vld [vmem:[#allocation5 + $0x190] sm:$0xff] }
 0x3ed   :  { %1399 = vmatpush1.msra.mxu0 %v6292_v45  ;;  %1468 = vmatpush1.msra.mxu1 %v6295_v35  ;;  %9969 = vst [vmem:[#allocation180_spill] sm:$0xff] %v6331_v37 }
 0x3ee   :  { %1400 = vmatprep.subr.mxu0 %v6298_v26  ;;  %1469 = vmatprep.subr.mxu1 %v6301_v30 }
 0x3ef   :  { %1401 = vmatpush1.msra.mxu0 %v6304_v28  ;;  %1470 = vmatpush1.msra.mxu1 %v6307_v24 }
 0x3f0   :  { %1402 = vmatprep.subr.mxu0 %v6310_v38  ;;  %1471 = vmatprep.subr.mxu1 %v6313_v39 }
 0x3f1   :  { %1403 = vmatpush1.msra.mxu0 %v6316_v21  ;;  %1472 = vmatpush1.msra.mxu1 %v6319_v33  ;;  %v6334_v21 = vld [vmem:[#allocation5 + $0x148] sm:$0xff]  ;;  %v6337_v33 = vld [vmem:[#allocation5 + $0x178] sm:$0xff] }
 0x3f2   :  { %1404 = vmatprep.subr.mxu0 %v6322_v34  ;;  %1473 = vmatprep.subr.mxu1 %v6325_v27  ;;  %9970 = vst [vmem:[#allocation181_spill] sm:$0xff] %v6334_v21  ;;  %9971 = vst [vmem:[#allocation182_spill] sm:$0xff] %v6337_v33  ;;  %v6340_v34 = vld [vmem:[#allocation5 + $0x140] sm:$0xff]  ;;  %v6343_v27 = vld [vmem:[#allocation5 + $0x170] sm:$0xff] }
 0x3f3   :  { %1405 = vmatpush1.msra.mxu0 %v6328_v10  ;;  %1474 = vmatpush1.msra.mxu1 %v6331_v37  ;;  %9972 = vst [vmem:[#allocation183_spill] sm:$0xff] %v6340_v34  ;;  %9973 = vst [vmem:[#allocation184_spill] sm:$0xff] %v6343_v27  ;;  %v6346_v10 = vld [vmem:[#allocation5 + $0x128] sm:$0xff]  ;;  %v6349_v37 = vld [vmem:[#allocation5 + $0x158] sm:$0xff] }
 0x3f4   :  { %1406 = vmatprep.subr.mxu0 %v6334_v21  ;;  %1475 = vmatprep.subr.mxu1 %v6337_v33  ;;  %9974 = vst [vmem:[#allocation185_spill] sm:$0xff] %v6346_v10  ;;  %9975 = vst [vmem:[#allocation186_spill] sm:$0xff] %v6349_v37  ;;  %v6352_v21 = vld [vmem:[#allocation5 + $0x120] sm:$0xff]  ;;  %v6355_v33 = vld [vmem:[#allocation5 + $0x150] sm:$0xff] }
 0x3f5   :  { %1407 = vmatpush1.msra.mxu0 %v6340_v34  ;;  %1476 = vmatpush1.msra.mxu1 %v6343_v27  ;;  %9976 = vst [vmem:[#allocation187_spill] sm:$0xff] %v6352_v21  ;;  %9977 = vst [vmem:[#allocation188_spill] sm:$0xff] %v6355_v33  ;;  %v6358_v34 = vld [vmem:[#allocation5 + $0x108] sm:$0xff]  ;;  %v6361_v27 = vld [vmem:[#allocation5 + $0x138] sm:$0xff] }
 0x3f6   :  { %1408 = vmatprep.subr.mxu0 %v6346_v10  ;;  %1477 = vmatprep.subr.mxu1 %v6349_v37  ;;  %9978 = vst [vmem:[#allocation189_spill] sm:$0xff] %v6358_v34  ;;  %9979 = vst [vmem:[#allocation190_spill] sm:$0xff] %v6361_v27  ;;  %v6364_v10 = vld [vmem:[#allocation5 + $0x100] sm:$0xff]  ;;  %v6367_v37 = vld [vmem:[#allocation5 + $0x130] sm:$0xff] }
 0x3f7   :  { %1409 = vmatpush1.msra.mxu0 %v6352_v21  ;;  %1478 = vmatpush1.msra.mxu1 %v6355_v33  ;;  %9980 = vst [vmem:[#allocation191_spill] sm:$0xff] %v6364_v10  ;;  %9981 = vst [vmem:[#allocation192_spill] sm:$0xff] %v6367_v37  ;;  %v6370_v21 = vld [vmem:[#allocation5 + $0xe8] sm:$0xff]  ;;  %v6373_v33 = vld [vmem:[#allocation5 + $0x118] sm:$0xff] }
 0x3f8   :  { %1410 = vmatprep.subr.mxu0 %v6358_v34  ;;  %1479 = vmatprep.subr.mxu1 %v6361_v27  ;;  %9982 = vst [vmem:[#allocation193_spill] sm:$0xff] %v6370_v21  ;;  %9983 = vst [vmem:[#allocation194_spill] sm:$0xff] %v6373_v33  ;;  %v6376_v34 = vld [vmem:[#allocation5 + $0xe0] sm:$0xff]  ;;  %v6379_v27 = vld [vmem:[#allocation5 + $0x110] sm:$0xff] }
 0x3f9   :  { %1411 = vmatpush1.msra.mxu0 %v6364_v10  ;;  %1480 = vmatpush1.msra.mxu1 %v6367_v37  ;;  %9984 = vst [vmem:[#allocation195_spill] sm:$0xff] %v6376_v34  ;;  %9985 = vst [vmem:[#allocation196_spill] sm:$0xff] %v6379_v27  ;;  %v6382_v10 = vld [vmem:[#allocation5 + $0xc8] sm:$0xff]  ;;  %v6385_v37 = vld [vmem:[#allocation5 + $0xf8] sm:$0xff] }
 0x3fa   :  { %1412 = vmatprep.subr.mxu0 %v6370_v21  ;;  %1481 = vmatprep.subr.mxu1 %v6373_v33  ;;  %9986 = vst [vmem:[#allocation197_spill] sm:$0xff] %v6382_v10  ;;  %9987 = vst [vmem:[#allocation198_spill] sm:$0xff] %v6385_v37  ;;  %v6388_v21 = vld [vmem:[#allocation5 + $0xc0] sm:$0xff]  ;;  %v6391_v33 = vld [vmem:[#allocation5 + $0xf0] sm:$0xff] }
 0x3fb   :  { %1413 = vmatpush1.msra.mxu0 %v6376_v34  ;;  %1482 = vmatpush1.msra.mxu1 %v6379_v27  ;;  %9988 = vst [vmem:[#allocation199_spill] sm:$0xff] %v6388_v21  ;;  %9989 = vst [vmem:[#allocation200_spill] sm:$0xff] %v6391_v33  ;;  %v6394_v34 = vld [vmem:[#allocation5 + $0xa8] sm:$0xff]  ;;  %v6397_v27 = vld [vmem:[#allocation5 + $0xd8] sm:$0xff] }
 0x3fc   :  { %1414 = vmatprep.subr.mxu0 %v6382_v10  ;;  %1483 = vmatprep.subr.mxu1 %v6385_v37  ;;  %9990 = vst [vmem:[#allocation201_spill] sm:$0xff] %v6394_v34  ;;  %9991 = vst [vmem:[#allocation202_spill] sm:$0xff] %v6397_v27  ;;  %v6400_v10 = vld [vmem:[#allocation5 + $0xa0] sm:$0xff]  ;;  %v6403_v37 = vld [vmem:[#allocation5 + $0xd0] sm:$0xff] }
 0x3fd   :  { %1415 = vmatpush1.msra.mxu0 %v6388_v21  ;;  %1484 = vmatpush1.msra.mxu1 %v6391_v33  ;;  %9992 = vst [vmem:[#allocation203_spill] sm:$0xff] %v6400_v10  ;;  %9993 = vst [vmem:[#allocation204_spill] sm:$0xff] %v6403_v37  ;;  %v6406_v21 = vld [vmem:[#allocation5 + $0x88] sm:$0xff]  ;;  %v6409_v33 = vld [vmem:[#allocation5 + $0xb8] sm:$0xff] }
 0x3fe   :  { %1416 = vmatprep.subr.mxu0 %v6394_v34  ;;  %1485 = vmatprep.subr.mxu1 %v6397_v27  ;;  %9994 = vst [vmem:[#allocation205_spill] sm:$0xff] %v6406_v21  ;;  %9995 = vst [vmem:[#allocation206_spill] sm:$0xff] %v6409_v33  ;;  %v6412_v34 = vld [vmem:[#allocation5 + $0x80] sm:$0xff]  ;;  %v6415_v27 = vld [vmem:[#allocation5 + $0xb0] sm:$0xff] }
 0x3ff   :  { %1417 = vmatpush1.msra.mxu0 %v6400_v10  ;;  %1486 = vmatpush1.msra.mxu1 %v6403_v37  ;;  %9996 = vst [vmem:[#allocation207_spill] sm:$0xff] %v6412_v34  ;;  %9997 = vst [vmem:[#allocation208_spill] sm:$0xff] %v6415_v27  ;;  %v6418_v10 = vld [vmem:[#allocation5 + $0x68] sm:$0xff]  ;;  %v6421_v37 = vld [vmem:[#allocation5 + $0x98] sm:$0xff] }
 0x400   :  { %1418 = vmatprep.subr.mxu0 %v6406_v21  ;;  %1487 = vmatprep.subr.mxu1 %v6409_v33  ;;  %9998 = vst [vmem:[#allocation209_spill] sm:$0xff] %v6418_v10  ;;  %9999 = vst [vmem:[#allocation210_spill] sm:$0xff] %v6421_v37  ;;  %v6424_v21 = vld [vmem:[#allocation5 + $0x60] sm:$0xff]  ;;  %v6427_v33 = vld [vmem:[#allocation5 + $0x90] sm:$0xff] }
 0x401   :  { %1419 = vmatpush1.msra.mxu0 %v6412_v34  ;;  %1488 = vmatpush1.msra.mxu1 %v6415_v27  ;;  %10000 = vst [vmem:[#allocation211_spill] sm:$0xff] %v6424_v21  ;;  %10001 = vst [vmem:[#allocation212_spill] sm:$0xff] %v6427_v33  ;;  %v6430_v34 = vld [vmem:[#allocation5 + $0x48] sm:$0xff]  ;;  %v6433_v27 = vld [vmem:[#allocation5 + $0x78] sm:$0xff] }
 0x402   :  { %1420 = vmatprep.subr.mxu0 %v6418_v10  ;;  %1489 = vmatprep.subr.mxu1 %v6421_v37  ;;  %10002 = vst [vmem:[#allocation213_spill] sm:$0xff] %v6433_v27  ;;  %v6436_v10 = vld [vmem:[#allocation5 + $0x40] sm:$0xff]  ;;  %v6439_v37 = vld [vmem:[#allocation5 + $0x70] sm:$0xff] }
 0x403   :  { %1421 = vmatpush1.msra.mxu0 %v6424_v21  ;;  %1490 = vmatpush1.msra.mxu1 %v6427_v33  ;;  %10003 = vst [vmem:[#allocation214_spill] sm:$0xff] %v6436_v10  ;;  %v6442_v21 = vld [vmem:[#allocation5 + $0x28] sm:$0xff]  ;;  %v6446_v33 = vld [vmem:[#allocation5 + $0x20] sm:$0xff] }
 0x404   :  { %1422 = vmatprep.subr.mxu0 %v6430_v34  ;;  %1491 = vmatprep.subr.mxu1 %v6433_v27  ;;  %10004 = vst [vmem:[#allocation215_spill] sm:$0xff] %v6442_v21  ;;  %v6450_v27 = vld [vmem:[#allocation5 + $0x8] sm:$0xff] }
 0x405   :  { %1423 = vmatpush1.msra.mxu0 %v6436_v10  ;;  %1492 = vmatpush1.msra.mxu1 %v6439_v37  ;;  %v6454_v10 = vld [vmem:[#allocation5] sm:$0xff] }
 0x406   :  { %1424 = vmatprep.subr.mxu0 %v6442_v21  ;;  %1493 = vmatprep.subr.mxu1 %v5673_v41  ;;  %v6458_v21 = vld [vmem:[#allocation5 + $0x3e8] sm:$0xff]  ;;  %v6462_v41 = vld [vmem:[#allocation5 + $0x3e0] sm:$0xff] }
 0x407   :  { %1425 = vmatpush1.msra.mxu0 %v6446_v33  ;;  %1494 = vmatpush1.msra.mxu1 %v5677_v43  ;;  %v10005_v43 = vld [vmem:[#allocation21_spill] sm:$0xff] }
 0x408   :  { %1426 = vmatprep.subr.mxu0 %v6450_v27  ;;  %1495 = vmatprep.subr.mxu1 %v5681_v54  ;;  %v10006_v54 = vld [vmem:[#allocation17_spill] sm:$0xff] }
 0x409   :  { %1427 = vmatpush1.msra.mxu0 %v6454_v10  ;;  %1496 = vmatpush1.msra.mxu1 %v5685_v9  ;;  %v10007_v9 = vld [vmem:[#allocation23_spill] sm:$0xff] }
 0x40a   :  { %1428 = vmatprep.subr.mxu0 %v6458_v21  ;;  %1497 = vmatprep.subr.mxu1 %v5689_v61  ;;  %v10008_v61 = vld [vmem:[#allocation18_spill] sm:$0xff] }
 0x40b   :  { %1429 = vmatpush2.msra.mxu0 %v6462_v41  ;;  %1498 = vmatpush1.msra.mxu1 %v5693_v55  ;;  %v10009_v55 = vld [vmem:[#allocation25_spill] sm:$0xff] }
 0x40c   :  { %1430 = vmatprep.subr.mxu0 %v5696_v46  ;;  %1499 = vmatprep.subr.mxu1 %v5699_v60  ;;  %v10010_v46 = vld [vmem:[#allocation20_spill] sm:$0xff]  ;;  %v10011_v60 = vld [vmem:[#allocation27_spill] sm:$0xff] }
 0x40d   :  { %1431 = vmatpush2.msra.mxu0 %v5702_v63  ;;  %1500 = vmatpush2.msra.mxu1 %v5705_v52  ;;  %v10012_v63 = vld [vmem:[#allocation22_spill] sm:$0xff]  ;;  %v10013_v52 = vld [vmem:[#allocation29_spill] sm:$0xff] }
 0x40e   :  { %1432 = vmatprep.subr.mxu0 %v5708_v59  ;;  %1501 = vmatprep.subr.mxu1 %v5711_v1  ;;  %v10014_v59 = vld [vmem:[#allocation24_spill] sm:$0xff]  ;;  %v10015_v1 = vld [vmem:[#allocation31_spill] sm:$0xff] }
 0x40f   :  { %1433 = vmatpush2.msra.mxu0 %v5714_v47  ;;  %1502 = vmatpush2.msra.mxu1 %v5717_v53  ;;  %v10016_v47 = vld [vmem:[#allocation26_spill] sm:$0xff]  ;;  %v10017_v53 = vld [vmem:[#allocation33_spill] sm:$0xff] }
 0x410   :  { %1434 = vmatprep.subr.mxu0 %v5720_v0  ;;  %1503 = vmatprep.subr.mxu1 %v5723_v42  ;;  %v10018_v0 = vld [vmem:[#allocation28_spill] sm:$0xff]  ;;  %v10019_v42 = vld [vmem:[#allocation34_spill] sm:$0xff] }
 0x411   :  { %1435 = vmatpush2.msra.mxu0 %v5726_v44  ;;  %1504 = vmatpush2.msra.mxu1 %v5729_v49  ;;  %v10020_v44 = vld [vmem:[#allocation30_spill] sm:$0xff]  ;;  %v10021_v49 = vld [vmem:[#allocation35_spill] sm:$0xff] }
 0x412   :  { %1436 = vmatprep.subr.mxu0 %v5732_v57  ;;  %1505 = vmatprep.subr.mxu1 %v5735_v58  ;;  %v10022_v57 = vld [vmem:[#allocation32_spill] sm:$0xff]  ;;  %v10023_v58 = vld [vmem:[#allocation37_spill] sm:$0xff] }
 0x413   :  { %1437 = vmatpush2.msra.mxu0 %v5738_v50  ;;  %1506 = vmatpush2.msra.mxu1 %v5741_v62  ;;  %v10024_v50 = vld [vmem:[#allocation39_spill] sm:$0xff]  ;;  %v10025_v62 = vld [vmem:[#allocation41_spill] sm:$0xff] }
 0x414   :  { %1438 = vmatprep.subr.mxu0 %v5744_v56  ;;  %1507 = vmatprep.subr.mxu1 %v5747_v2  ;;  %v1395_v56 = vld [vmem:[#allocation2 + $0x18] sm:$0xff]  ;;  %v10026_v2 = vld [vmem:[#allocation36_spill] sm:$0xff] }
 0x415   :  { %1439 = vmatpush2.msra.mxu0 %v5750_v3  ;;  %1508 = vmatpush2.msra.mxu1 %v5753_v4  ;;  %v10027_v3 = vld [vmem:[#allocation38_spill] sm:$0xff]  ;;  %v10028_v4 = vld [vmem:[#allocation43_spill] sm:$0xff] }
 0x416   :  { %1440 = vmatprep.subr.mxu0 %v5756_v5  ;;  %1509 = vmatprep.subr.mxu1 %v5759_v6  ;;  %v10029_v5 = vld [vmem:[#allocation40_spill] sm:$0xff] }
 0x417   :  { %1441 = vmatpush2.msra.mxu0 %v5762_v7  ;;  %1510 = vmatpush2.msra.mxu1 %v5765_v8  ;;  %v10030_v6 = vld [vmem:[#allocation44_spill] sm:$0xff]  ;;  %v10031_v7 = vld [vmem:[#allocation42_spill] sm:$0xff] }
 0x418   :  { %1442 = vmatprep.subr.mxu0 %v5768_v11  ;;  %1511 = vmatprep.subr.mxu1 %v5771_v12  ;;  %v10032_v8 = vld [vmem:[#allocation46_spill] sm:$0xff]  ;;  %v10033_v11 = vld [vmem:[#allocation45_spill] sm:$0xff]  ;;  %v10034_v12 = vld [vmem:[#allocation48_spill] sm:$0xff] }
 0x419   :  { %1443 = vmatpush2.msra.mxu0 %v5774_v13  ;;  %1512 = vmatpush2.msra.mxu1 %v5777_v14  ;;  %v10035_v13 = vld [vmem:[#allocation47_spill] sm:$0xff]  ;;  %v10036_v14 = vld [vmem:[#allocation50_spill] sm:$0xff] }
 0x41a   :  { %1444 = vmatprep.subr.mxu0 %v5780_v16  ;;  %1513 = vmatprep.subr.mxu1 %v5783_v17  ;;  %v10037_v16 = vld [vmem:[#allocation49_spill] sm:$0xff]  ;;  %v10038_v17 = vld [vmem:[#allocation52_spill] sm:$0xff] }
 0x41b   :  { %1445 = vmatpush2.msra.mxu0 %v5786_v18  ;;  %1514 = vmatpush2.msra.mxu1 %v5789_v20  ;;  %v10039_v18 = vld [vmem:[#allocation51_spill] sm:$0xff]  ;;  %v10040_v20 = vld [vmem:[#allocation53_spill] sm:$0xff] }
 0x41c   :  { %1446 = vmatprep.subr.mxu0 %v5792_v22  ;;  %1515 = vmatprep.subr.mxu1 %v5795_v23  ;;  %v10041_v22 = vld [vmem:[#allocation54_spill] sm:$0xff]  ;;  %v10042_v23 = vld [vmem:[#allocation55_spill] sm:$0xff] }
 0x41d   :  { %1447 = vmatpush2.msra.mxu0 %v10005_v43  ;;  %1516 = vmatpush2.msra.mxu1 %v10006_v54  ;;  %v10043_v43 = vld [vmem:[#allocation56_spill] sm:$0xff]  ;;  %v10044_v54 = vld [vmem:[#allocation57_spill] sm:$0xff] }
 0x41e   :  { %1448 = vmatprep.subr.mxu0 %v10007_v9  ;;  %1517 = vmatprep.subr.mxu1 %v10008_v61  ;;  %v10045_v9 = vld [vmem:[#allocation58_spill] sm:$0xff]  ;;  %v10046_v61 = vld [vmem:[#allocation59_spill] sm:$0xff] }
 0x41f   :  { %1449 = vmatpush2.msra.mxu0 %v10009_v55  ;;  %1518 = vmatpush2.msra.mxu1 %v10010_v46  ;;  %v10047_v55 = vld [vmem:[#allocation60_spill] sm:$0xff]  ;;  %v10048_v46 = vld [vmem:[#allocation61_spill] sm:$0xff] }
 0x420   :  { %1450 = vmatprep.subr.mxu0 %v10011_v60  ;;  %1519 = vmatprep.subr.mxu1 %v10012_v63  ;;  %v10049_v60 = vld [vmem:[#allocation62_spill] sm:$0xff]  ;;  %v10050_v63 = vld [vmem:[#allocation63_spill] sm:$0xff] }
 0x421   :  { %1451 = vmatpush2.msra.mxu0 %v10013_v52  ;;  %1520 = vmatpush2.msra.mxu1 %v10014_v59  ;;  %v10051_v52 = vld [vmem:[#allocation64_spill] sm:$0xff]  ;;  %v10052_v59 = vld [vmem:[#allocation65_spill] sm:$0xff] }
 0x422   :  { %1452 = vmatprep.subr.mxu0 %v10015_v1  ;;  %1521 = vmatprep.subr.mxu1 %v10016_v47  ;;  %v10053_v1 = vld [vmem:[#allocation66_spill] sm:$0xff]  ;;  %v10054_v47 = vld [vmem:[#allocation67_spill] sm:$0xff] }
 0x423   :  { %1453 = vmatpush2.msra.mxu0 %v10017_v53  ;;  %1522 = vmatpush2.msra.mxu1 %v10018_v0  ;;  %v10055_v53 = vld [vmem:[#allocation68_spill] sm:$0xff]  ;;  %v10056_v0 = vld [vmem:[#allocation69_spill] sm:$0xff] }
 0x424   :  { %1454 = vmatprep.subr.mxu0 %v10019_v42  ;;  %1523 = vmatprep.subr.mxu1 %v10020_v44  ;;  %v10057_v42 = vld [vmem:[#allocation70_spill] sm:$0xff]  ;;  %v10058_v44 = vld [vmem:[#allocation71_spill] sm:$0xff] }
 0x425   :  { %1455 = vmatpush2.msra.mxu0 %v10021_v49  ;;  %1524 = vmatpush2.msra.mxu1 %v10022_v57  ;;  %v10059_v49 = vld [vmem:[#allocation72_spill] sm:$0xff]  ;;  %v10060_v57 = vld [vmem:[#allocation73_spill] sm:$0xff] }
 0x426   :  { %1456 = vmatprep.subr.mxu0 %v10023_v58  ;;  %1525 = vmatprep.subr.mxu1 %v10024_v50  ;;  %v10061_v58 = vld [vmem:[#allocation74_spill] sm:$0xff]  ;;  %v10062_v50 = vld [vmem:[#allocation75_spill] sm:$0xff] }
 0x427   :  { %1457 = vmatpush2.msra.mxu0 %v10025_v62  ;;  %1526 = vmatpush2.msra.mxu1 %v10026_v2  ;;  %v10063_v62 = vld [vmem:[#allocation76_spill] sm:$0xff]  ;;  %v10065_v2 = vld [vmem:[#allocation78_spill] sm:$0xff] }
 0x428   :  { %1458 = vmatprep.subr.mxu0 %v10027_v3  ;;  %1527 = vmatprep.subr.mxu1 %v10028_v4  ;;  %v10066_v3 = vld [vmem:[#allocation79_spill] sm:$0xff]  ;;  %v10067_v4 = vld [vmem:[#allocation80_spill] sm:$0xff] }
 0x429   :  { %1459 = vmatpush2.msra.mxu0 %v10029_v5  ;;  %1528 = vmatpush2.msra.mxu1 %v10030_v6  ;;  %v10068_v5 = vld [vmem:[#allocation81_spill] sm:$0xff]  ;;  %v10069_v6 = vld [vmem:[#allocation82_spill] sm:$0xff] }
 0x42a   :  { %1461 = vmatmul.mubr.f32.vlgmr.msra.gmra.mxu0 %v1395_v56  ;;  %1529 = vmatprep.subr.mxu1 %v10031_v7  ;;  %v10070_v7 = vld [vmem:[#allocation83_spill] sm:$0xff] }
 0x42b   :  { %1530 = vmatpush2.msra.mxu1 %v10032_v8  ;;  %1562 = vmatprep.subr.mxu0 %v10033_v11  ;;  %v10071_v8 = vld [vmem:[#allocation84_spill] sm:$0xff]  ;;  %v10072_v11 = vld [vmem:[#allocation85_spill] sm:$0xff] }
 0x42c   :  { %1532 = vmatmul.mubr.f32.vlgmr.msra.gmra.mxu1 %v1395_v56  ;;  %1563 = vmatpush1.msra.mxu0 %v10034_v12  ;;  %v10064_v56 = vld [vmem:[#allocation77_spill] sm:$0xff]  ;;  %v10073_v12 = vld [vmem:[#allocation86_spill] sm:$0xff] }
 0x42d   :  { %1633 = vmatprep.subr.mxu1 %v10035_v13  ;;  %1564 = vmatprep.subr.mxu0 %v10036_v14  ;;  %v10074_v13 = vld [vmem:[#allocation87_spill] sm:$0xff]  ;;  %v10075_v14 = vld [vmem:[#allocation88_spill] sm:$0xff] }
 0x42e   :  { %1634 = vmatpush1.msra.mxu1 %v10037_v16  ;;  %1565 = vmatpush1.msra.mxu0 %v10038_v17  ;;  %v10076_v16 = vld [vmem:[#allocation89_spill] sm:$0xff]  ;;  %v10077_v17 = vld [vmem:[#allocation90_spill] sm:$0xff] }
 0x42f   :  { %1635 = vmatprep.subr.mxu1 %v10039_v18  ;;  %1566 = vmatprep.subr.mxu0 %v10040_v20  ;;  %v10078_v18 = vld [vmem:[#allocation91_spill] sm:$0xff]  ;;  %v10079_v20 = vld [vmem:[#allocation92_spill] sm:$0xff] }
 0x430   :  { %1636 = vmatpush1.msra.mxu1 %v10041_v22  ;;  %1567 = vmatpush1.msra.mxu0 %v10042_v23  ;;  %v10080_v22 = vld [vmem:[#allocation93_spill] sm:$0xff]  ;;  %v10081_v23 = vld [vmem:[#allocation94_spill] sm:$0xff] }
 0x431   :  { %1637 = vmatprep.subr.mxu1 %v10043_v43  ;;  %1568 = vmatprep.subr.mxu0 %v10044_v54  ;;  %v10082_v43 = vld [vmem:[#allocation95_spill] sm:$0xff]  ;;  %v10083_v54 = vld [vmem:[#allocation96_spill] sm:$0xff] }
 0x432   :  { %1638 = vmatpush1.msra.mxu1 %v10045_v9  ;;  %1569 = vmatpush1.msra.mxu0 %v10046_v61  ;;  %v10084_v9 = vld [vmem:[#allocation97_spill] sm:$0xff]  ;;  %v10085_v61 = vld [vmem:[#allocation98_spill] sm:$0xff] }
 0x433   :  { %1639 = vmatprep.subr.mxu1 %v10047_v55  ;;  %1570 = vmatprep.subr.mxu0 %v10048_v46  ;;  %v10086_v55 = vld [vmem:[#allocation99_spill] sm:$0xff]  ;;  %v10087_v46 = vld [vmem:[#allocation100_spill] sm:$0xff] }
 0x434   :  { %1640 = vmatpush1.msra.mxu1 %v10049_v60  ;;  %1571 = vmatpush1.msra.mxu0 %v10050_v63  ;;  %v10088_v60 = vld [vmem:[#allocation101_spill] sm:$0xff]  ;;  %v10089_v63 = vld [vmem:[#allocation102_spill] sm:$0xff] }
 0x435   :  { %1641 = vmatprep.subr.mxu1 %v10051_v52  ;;  %1572 = vmatprep.subr.mxu0 %v10052_v59  ;;  %v10090_v52 = vld [vmem:[#allocation103_spill] sm:$0xff]  ;;  %v10091_v59 = vld [vmem:[#allocation104_spill] sm:$0xff] }
 0x436   :  { %1642 = vmatpush1.msra.mxu1 %v10053_v1  ;;  %1573 = vmatpush1.msra.mxu0 %v10054_v47  ;;  %v10092_v1 = vld [vmem:[#allocation105_spill] sm:$0xff]  ;;  %v10093_v47 = vld [vmem:[#allocation106_spill] sm:$0xff] }
 0x437   :  { %1643 = vmatprep.subr.mxu1 %v10055_v53  ;;  %1574 = vmatprep.subr.mxu0 %v10056_v0  ;;  %v10094_v53 = vld [vmem:[#allocation107_spill] sm:$0xff]  ;;  %v10095_v0 = vld [vmem:[#allocation108_spill] sm:$0xff] }
 0x438   :  { %1644 = vmatpush1.msra.mxu1 %v10057_v42  ;;  %1575 = vmatpush1.msra.mxu0 %v10058_v44  ;;  %v10096_v42 = vld [vmem:[#allocation109_spill] sm:$0xff]  ;;  %v10097_v44 = vld [vmem:[#allocation110_spill] sm:$0xff] }
 0x439   :  { %1645 = vmatprep.subr.mxu1 %v10059_v49  ;;  %1576 = vmatprep.subr.mxu0 %v10060_v57  ;;  %v10098_v49 = vld [vmem:[#allocation111_spill] sm:$0xff]  ;;  %v10099_v57 = vld [vmem:[#allocation112_spill] sm:$0xff] }
 0x43a   :  { %1646 = vmatpush1.msra.mxu1 %v10061_v58  ;;  %1577 = vmatpush1.msra.mxu0 %v10062_v50  ;;  %v10100_v58 = vld [vmem:[#allocation113_spill] sm:$0xff]  ;;  %v10101_v50 = vld [vmem:[#allocation114_spill] sm:$0xff] }
 0x43b   :  { %1647 = vmatprep.subr.mxu1 %v10063_v62  ;;  %1578 = vmatprep.subr.mxu0 %v10064_v56  ;;  %v10102_v62 = vld [vmem:[#allocation115_spill] sm:$0xff]  ;;  %v10103_v56 = vld [vmem:[#allocation116_spill] sm:$0xff] }
 0x43c   :  { %1648 = vmatpush1.msra.mxu1 %v10065_v2  ;;  %1579 = vmatpush1.msra.mxu0 %v10066_v3  ;;  %v10104_v2 = vld [vmem:[#allocation117_spill] sm:$0xff]  ;;  %v10105_v3 = vld [vmem:[#allocation118_spill] sm:$0xff] }
 0x43d   :  { %1649 = vmatprep.subr.mxu1 %v10067_v4  ;;  %1580 = vmatprep.subr.mxu0 %v10068_v5  ;;  %v10106_v4 = vld [vmem:[#allocation119_spill] sm:$0xff]  ;;  %v10107_v5 = vld [vmem:[#allocation120_spill] sm:$0xff] }
 0x43e   :  { %1650 = vmatpush1.msra.mxu1 %v10069_v6  ;;  %1581 = vmatpush1.msra.mxu0 %v10070_v7  ;;  %v10108_v6 = vld [vmem:[#allocation121_spill] sm:$0xff]  ;;  %v10109_v7 = vld [vmem:[#allocation122_spill] sm:$0xff] }
 0x43f   :  { %1651 = vmatprep.subr.mxu1 %v10071_v8  ;;  %1582 = vmatprep.subr.mxu0 %v10072_v11  ;;  %v10110_v8 = vld [vmem:[#allocation123_spill] sm:$0xff]  ;;  %v10111_v11 = vld [vmem:[#allocation124_spill] sm:$0xff] }
 0x440   :  { %1652 = vmatpush1.msra.mxu1 %v10073_v12  ;;  %1583 = vmatpush1.msra.mxu0 %v10074_v13  ;;  %v10112_v12 = vld [vmem:[#allocation125_spill] sm:$0xff]  ;;  %v10113_v13 = vld [vmem:[#allocation126_spill] sm:$0xff] }
 0x441   :  { %1653 = vmatprep.subr.mxu1 %v10075_v14  ;;  %1584 = vmatprep.subr.mxu0 %v10076_v16  ;;  %v10114_v14 = vld [vmem:[#allocation127_spill] sm:$0xff]  ;;  %v10115_v16 = vld [vmem:[#allocation128_spill] sm:$0xff] }
 0x442   :  { %1654 = vmatpush1.msra.mxu1 %v10077_v17  ;;  %1585 = vmatpush1.msra.mxu0 %v10078_v18  ;;  %v10116_v17 = vld [vmem:[#allocation129_spill] sm:$0xff]  ;;  %v10117_v18 = vld [vmem:[#allocation130_spill] sm:$0xff] }
 0x443   :  { %1655 = vmatprep.subr.mxu1 %v10079_v20  ;;  %1586 = vmatprep.subr.mxu0 %v10080_v22  ;;  %v10118_v20 = vld [vmem:[#allocation131_spill] sm:$0xff]  ;;  %v10119_v22 = vld [vmem:[#allocation132_spill] sm:$0xff] }
 0x444   :  { %1656 = vmatpush1.msra.mxu1 %v10081_v23  ;;  %1587 = vmatpush1.msra.mxu0 %v10082_v43  ;;  %v10120_v23 = vld [vmem:[#allocation133_spill] sm:$0xff]  ;;  %v10121_v43 = vld [vmem:[#allocation134_spill] sm:$0xff] }
 0x445   :  { %1657 = vmatprep.subr.mxu1 %v10083_v54  ;;  %1588 = vmatprep.subr.mxu0 %v10084_v9  ;;  %v10122_v54 = vld [vmem:[#allocation135_spill] sm:$0xff]  ;;  %v10123_v9 = vld [vmem:[#allocation136_spill] sm:$0xff] }
 0x446   :  { %1658 = vmatpush1.msra.mxu1 %v10085_v61  ;;  %1589 = vmatpush1.msra.mxu0 %v10086_v55  ;;  %v10124_v61 = vld [vmem:[#allocation137_spill] sm:$0xff]  ;;  %v10125_v55 = vld [vmem:[#allocation138_spill] sm:$0xff] }
 0x447   :  { %1659 = vmatprep.subr.mxu1 %v10087_v46  ;;  %1590 = vmatprep.subr.mxu0 %v10088_v60  ;;  %v10126_v46 = vld [vmem:[#allocation139_spill] sm:$0xff]  ;;  %v10127_v60 = vld [vmem:[#allocation140_spill] sm:$0xff] }
 0x448   :  { %1660 = vmatpush1.msra.mxu1 %v10089_v63  ;;  %1591 = vmatpush1.msra.mxu0 %v10090_v52  ;;  %v10128_v63 = vld [vmem:[#allocation141_spill] sm:$0xff]  ;;  %v10129_v52 = vld [vmem:[#allocation142_spill] sm:$0xff] }
 0x449   :  { %1661 = vmatprep.subr.mxu1 %v10091_v59  ;;  %1592 = vmatprep.subr.mxu0 %v10092_v1  ;;  %v10130_v59 = vld [vmem:[#allocation143_spill] sm:$0xff]  ;;  %v10131_v1 = vld [vmem:[#allocation144_spill] sm:$0xff] }
 0x44a   :  { %1662 = vmatpush1.msra.mxu1 %v10093_v47  ;;  %1593 = vmatpush1.msra.mxu0 %v10094_v53  ;;  %v10132_v47 = vld [vmem:[#allocation145_spill] sm:$0xff]  ;;  %v10133_v53 = vld [vmem:[#allocation146_spill] sm:$0xff] }
 0x44b   :  { %1663 = vmatprep.subr.mxu1 %v10095_v0  ;;  %1594 = vmatprep.subr.mxu0 %v10096_v42  ;;  %v10134_v0 = vld [vmem:[#allocation147_spill] sm:$0xff]  ;;  %v10135_v42 = vld [vmem:[#allocation148_spill] sm:$0xff] }
 0x44c   :  { %1664 = vmatpush1.msra.mxu1 %v10097_v44  ;;  %1595 = vmatpush2.msra.mxu0 %v10098_v49  ;;  %v10136_v44 = vld [vmem:[#allocation149_spill] sm:$0xff]  ;;  %v10137_v49 = vld [vmem:[#allocation150_spill] sm:$0xff] }
 0x44d   :  { %1665 = vmatprep.subr.mxu1 %v10099_v57  ;;  %1596 = vmatprep.subr.mxu0 %v10100_v58  ;;  %v10138_v57 = vld [vmem:[#allocation151_spill] sm:$0xff]  ;;  %v10139_v58 = vld [vmem:[#allocation152_spill] sm:$0xff] }
 0x44e   :  { %1666 = vmatpush2.msra.mxu1 %v10101_v50  ;;  %1597 = vmatpush2.msra.mxu0 %v10102_v62  ;;  %v10140_v50 = vld [vmem:[#allocation153_spill] sm:$0xff]  ;;  %v10141_v62 = vld [vmem:[#allocation154_spill] sm:$0xff] }
 0x44f   :  { %1667 = vmatprep.subr.mxu1 %v10103_v56  ;;  %1598 = vmatprep.subr.mxu0 %v10104_v2  ;;  %v10142_v56 = vld [vmem:[#allocation155_spill] sm:$0xff]  ;;  %v10143_v2 = vld [vmem:[#allocation156_spill] sm:$0xff] }
 0x450   :  { %1668 = vmatpush2.msra.mxu1 %v10105_v3  ;;  %1599 = vmatpush2.msra.mxu0 %v10106_v4  ;;  %v10144_v3 = vld [vmem:[#allocation157_spill] sm:$0xff]  ;;  %v10145_v4 = vld [vmem:[#allocation158_spill] sm:$0xff] }
 0x451   :  { %1669 = vmatprep.subr.mxu1 %v10107_v5  ;;  %1600 = vmatprep.subr.mxu0 %v10108_v6  ;;  %v10146_v5 = vld [vmem:[#allocation159_spill] sm:$0xff]  ;;  %v10147_v6 = vld [vmem:[#allocation160_spill] sm:$0xff] }
 0x452   :  { %1670 = vmatpush2.msra.mxu1 %v10109_v7  ;;  %1601 = vmatpush2.msra.mxu0 %v10110_v8  ;;  %v10148_v7 = vld [vmem:[#allocation161_spill] sm:$0xff]  ;;  %v10149_v8 = vld [vmem:[#allocation162_spill] sm:$0xff] }
 0x453   :  { %1671 = vmatprep.subr.mxu1 %v10111_v11  ;;  %1602 = vmatprep.subr.mxu0 %v10112_v12  ;;  %v10150_v11 = vld [vmem:[#allocation163_spill] sm:$0xff]  ;;  %v10151_v12 = vld [vmem:[#allocation164_spill] sm:$0xff] }
 0x454   :  { %1672 = vmatpush2.msra.mxu1 %v10113_v13  ;;  %1603 = vmatpush2.msra.mxu0 %v10114_v14  ;;  %v10152_v13 = vld [vmem:[#allocation165_spill] sm:$0xff]  ;;  %v10153_v14 = vld [vmem:[#allocation167_spill] sm:$0xff] }
 0x455   :  { %1673 = vmatprep.subr.mxu1 %v10115_v16  ;;  %1604 = vmatprep.subr.mxu0 %v10116_v17  ;;  %v10154_v16 = vld [vmem:[#allocation166_spill] sm:$0xff]  ;;  %v10155_v17 = vld [vmem:[#allocation168_spill] sm:$0xff] }
 0x456   :  { %1674 = vmatpush2.msra.mxu1 %v10117_v18  ;;  %1605 = vmatpush2.msra.mxu0 %v10118_v20  ;;  %v10156_v18 = vld [vmem:[#allocation169_spill] sm:$0xff]  ;;  %v10157_v20 = vld [vmem:[#allocation170_spill] sm:$0xff] }
 0x457   :  { %1675 = vmatprep.subr.mxu1 %v10119_v22  ;;  %1606 = vmatprep.subr.mxu0 %v10120_v23  ;;  %v10158_v22 = vld [vmem:[#allocation171_spill] sm:$0xff]  ;;  %v10159_v23 = vld [vmem:[#allocation172_spill] sm:$0xff] }
 0x458   :  { %1676 = vmatpush2.msra.mxu1 %v10121_v43  ;;  %1607 = vmatpush2.msra.mxu0 %v10122_v54  ;;  %v10160_v43 = vld [vmem:[#allocation173_spill] sm:$0xff]  ;;  %v10161_v54 = vld [vmem:[#allocation174_spill] sm:$0xff] }
 0x459   :  { %1677 = vmatprep.subr.mxu1 %v10123_v9  ;;  %1608 = vmatprep.subr.mxu0 %v10124_v61  ;;  %v6657_v9 = vld [vmem:[#allocation5 + $0x1f8] sm:$0xff] }
 0x45a   :  { %1678 = vmatpush2.msra.mxu1 %v10125_v55  ;;  %1609 = vmatpush2.msra.mxu0 %v10126_v46  ;;  %v10162_v55 = vld [vmem:[#allocation19_spill] sm:$0xff] }
 0x45b   :  { %1679 = vmatprep.subr.mxu1 %v10127_v60  ;;  %1610 = vmatprep.subr.mxu0 %v10128_v63 }
 0x45c   :  { %1680 = vmatpush2.msra.mxu1 %v10129_v52  ;;  %1611 = vmatpush2.msra.mxu0 %v10130_v59  ;;  %v10163_v52 = vld [vmem:[#allocation16_spill] sm:$0xff] }
 0x45d   :  { %1681 = vmatprep.subr.mxu1 %v10131_v1  ;;  %1612 = vmatprep.subr.mxu0 %v10132_v47 }
 0x45e   :  { %1682 = vmatpush2.msra.mxu1 %v10133_v53  ;;  %1613 = vmatpush2.msra.mxu0 %v10134_v0 }
 0x45f   :  { %1683 = vmatprep.subr.mxu1 %v10135_v42  ;;  %1614 = vmatprep.subr.mxu0 %v10136_v44 }
 0x460   :  { %1684 = vmatpush2.msra.mxu1 %v10137_v49  ;;  %1615 = vmatpush2.msra.mxu0 %v10138_v57 }
 0x461   :  { %1685 = vmatprep.subr.mxu1 %v10139_v58  ;;  %1616 = vmatprep.subr.mxu0 %v10140_v50 }
 0x462   :  { %1686 = vmatpush2.msra.mxu1 %v10141_v62  ;;  %1617 = vmatpush2.msra.mxu0 %v10142_v56 }
 0x463   :  { %1687 = vmatprep.subr.mxu1 %v10143_v2  ;;  %1618 = vmatprep.subr.mxu0 %v10144_v3 }
 0x464   :  { %1688 = vmatpush2.msra.mxu1 %v10145_v4  ;;  %1619 = vmatpush2.msra.mxu0 %v10146_v5 }
 0x465   :  { %1689 = vmatprep.subr.mxu1 %v10147_v6  ;;  %1620 = vmatprep.subr.mxu0 %v10148_v7 }
 0x466   :  { %1690 = vmatpush2.msra.mxu1 %v10149_v8  ;;  %1621 = vmatpush2.msra.mxu0 %v10150_v11 }
 0x467   :  { %1691 = vmatprep.subr.mxu1 %v10151_v12  ;;  %1622 = vmatprep.subr.mxu0 %v10152_v13 }
 0x468   :  { %1692 = vmatpush2.msra.mxu1 %v10153_v14  ;;  %1623 = vmatpush2.msra.mxu0 %v10154_v16 }
 0x469   :  { %1693 = vmatprep.subr.mxu1 %v10155_v17  ;;  %1624 = vmatprep.subr.mxu0 %v10156_v18 }
 0x46a   :  { %1694 = vmatpush2.msra.mxu1 %v10157_v20  ;;  %1625 = vmatpush2.msra.mxu0 %v10158_v22 }
 0x46b   :  { %1695 = vmatprep.subr.mxu1 %v10159_v23  ;;  %1730 = vmatprep.subr.mxu0 %v10160_v43 }
 0x46c   :  { %1696 = vmatpush2.msra.mxu1 %v10161_v54 }
 0x46d   :  { %1801 = vmatprep.subr.mxu1 %v6657_v9 }
 0x4aa   :  { %v1294_v61 = vpop.f32.mrf.mxu0  ;;  %v1365_v1 = vpop.f32.mrf.mxu1 }
 0x4ab   :  { %v1295_v46 = vadd.f32 %v1294_v61, %v10162_v55  ;;  %v1366_v49 = vadd.f32 %v1365_v1, %v5606_v40 }
 0x4ac   :  { %v1296_v60 = vpop.f32.mrf.mxu0  ;;  %v1367_v53 = vpop.f32.mrf.mxu1 }
 0x4ad   :  { %v3203_v63 = vmul.f32 -1.442695, %v1295_v46  ;;  %v1297_v59 = vadd.f32 %v1296_v60, %v10163_v52  ;;  %v1368_v0 = vadd.f32 %v1367_v53, %v5601_v36 }
 0x4af   :  { %3381 = vpow2.f32 %v3203_v63  ;;  %v3204_v47 = vmul.f32 -1.442695, %v1297_v59  ;;  %v3205_v42 = vmul.f32 -1.442695, %v1368_v0 }
 0x4b1   :  { %3383 = vpow2.f32 %v3204_v47 }
 0x4b2   :  { %3385 = vpow2.f32 %v3205_v42 }
 0x4bc   :  { %v3382_v44 = vpop.eup %3381 }
 0x4bd   :  { %v1373_v57 = vadd.f32 1.0, %v3382_v44 }
 0x4be   :  { %v3384_v58 = vpop.eup %3383 }
 0x4bf   :  { %3387 = vrcp.f32 %v1373_v57  ;;  %v1379_v50 = vadd.f32 1.0, %v3384_v58  ;;  %v3386_v62 = vpop.eup %3385 }
 0x4c0   :  { %3389 = vtanh.f32 %v1366_v49  ;;  %v1386_v4 = vadd.f32 1.0, %v3386_v62  ;;  %v10175_v62 = vld [vmem:[#allocation186_spill] sm:$0xff] }
 0x4c1   :  { %3391 = vrcp.f32 %v1379_v50 }
 0x4c2   :  { %3393 = vrcp.f32 %v1386_v4  ;;  %v10179_v4 = vld [vmem:[#allocation190_spill] sm:$0xff] }
 0x4cc   :  { %v3388_v56 = vpop.eup %3387 }
 0x4cd   :  { %v3390_v2 = vpop.eup %3389 }
 0x4ce   :  { %v3392_v3 = vpop.eup %3391  ;;  %v1390_v5 = vmul.f32 %v3390_v2, %v3388_v56  ;;  %v10176_v56 = vld [vmem:[#allocation187_spill] sm:$0xff]  ;;  %v10177_v2 = vld [vmem:[#allocation188_spill] sm:$0xff] }
 0x4cf   :  { %v1389_v6 = vmul.f32 %v3392_v3, %v6275_v29  ;;  %v3394_v8 = vpop.eup %3393  ;;  %v10178_v3 = vld [vmem:[#allocation189_spill] sm:$0xff] }
 0x4d1   :  { %v6665_v7 = vadd.f32 %v1390_v5, %v1389_v6  ;;  %v10180_v5 = vld [vmem:[#allocation191_spill] sm:$0xff]  ;;  %v10181_v6 = vld [vmem:[#allocation192_spill] sm:$0xff] }
 0x4d3   :  { %3395 = vtanh.f32 %v6665_v7 }
 0x4e0   :  { %v3396_v11 = vpop.eup %3395 }
 0x4e1   :  { %v1393_v12 = vmul.f32 %v3396_v11, %v3394_v8  ;;  %v10182_v8 = vld [vmem:[#allocation193_spill] sm:$0xff]  ;;  %v10183_v11 = vld [vmem:[#allocation194_spill] sm:$0xff] }
 0x4e3   :  { %1626 = vmatprep.mubr.f32.mxu0 %v1393_v12  ;;  %1697 = vmatprep.mubr.f32.mxu1 %v1393_v12  ;;  %v10184_v12 = vld [vmem:[#allocation195_spill] sm:$0xff] }
 0x4ea   :  { %v1462_v13 = vpop.f32.mrf.mxu0 }
 0x4eb   :  { %v1463_v14 = vadd.f32 %v1462_v13, %v9764_v15  ;;  %v10185_v13 = vld [vmem:[#allocation196_spill] sm:$0xff] }
 0x4ec   :  { %v1464_v16 = vpop.f32.mrf.mxu0  ;;  %v1533_v29 = vpop.f32.mrf.mxu1 }
 0x4ed   :  { %v3206_v17 = vmul.f32 -1.442695, %v1463_v14  ;;  %v1465_v18 = vadd.f32 %v1464_v16, %v9765_v19  ;;  %v1534_v43 = vadd.f32 %v1533_v29, %v5205_v48  ;;  %v10186_v14 = vld [vmem:[#allocation197_spill] sm:$0xff]  ;;  %v10187_v16 = vld [vmem:[#allocation198_spill] sm:$0xff] }
 0x4ee   :  { %v1535_v22 = vpop.f32.mrf.mxu1  ;;  %v10191_v29 = vld [vmem:[#allocation202_spill] sm:$0xff] }
 0x4ef   :  { %3397 = vpow2.f32 %v3206_v17  ;;  %v3207_v20 = vmul.f32 -1.442695, %v1465_v18  ;;  %v1536_v23 = vadd.f32 %v1535_v22, %v5201_v51  ;;  %v10188_v17 = vld [vmem:[#allocation199_spill] sm:$0xff]  ;;  %v10189_v18 = vld [vmem:[#allocation200_spill] sm:$0xff] }
 0x4f0   :  { %v10192_v22 = vld [vmem:[#allocation203_spill] sm:$0xff] }
 0x4f1   :  { %3399 = vpow2.f32 %v3207_v20  ;;  %v3208_v54 = vmul.f32 -1.442695, %v1536_v23  ;;  %v10190_v20 = vld [vmem:[#allocation201_spill] sm:$0xff]  ;;  %v10193_v23 = vld [vmem:[#allocation204_spill] sm:$0xff] }
 0x4f2   :  { %3401 = vtanh.f32 %v1534_v43  ;;  %v10194_v43 = vld [vmem:[#allocation205_spill] sm:$0xff] }
 0x4f3   :  { %3403 = vpow2.f32 %v3208_v54  ;;  %v10195_v54 = vld [vmem:[#allocation206_spill] sm:$0xff] }
 0x4fc   :  { %v3398_v61 = vpop.eup %3397 }
 0x4fd   :  { %v1541_v46 = vadd.f32 1.0, %v3398_v61  ;;  %v10196_v61 = vld [vmem:[#allocation207_spill] sm:$0xff] }
 0x4fe   :  { %v3400_v60 = vpop.eup %3399 }
 0x4ff   :  { %3405 = vrcp.f32 %v1541_v46  ;;  %v1547_v63 = vadd.f32 1.0, %v3400_v60  ;;  %v3402_v59 = vpop.eup %3401  ;;  %v10197_v46 = vld [vmem:[#allocation208_spill] sm:$0xff]  ;;  %v10198_v60 = vld [vmem:[#allocation209_spill] sm:$0xff] }
 0x500   :  { %v3404_v1 = vpop.eup %3403 }
 0x501   :  { %3407 = vrcp.f32 %v1547_v63  ;;  %v1554_v0 = vadd.f32 1.0, %v3404_v1  ;;  %v10199_v63 = vld [vmem:[#allocation210_spill] sm:$0xff]  ;;  %v10201_v1 = vld [vmem:[#allocation212_spill] sm:$0xff] }
 0x503   :  { %3409 = vrcp.f32 %v1554_v0  ;;  %v10204_v0 = vld [vmem:[#allocation215_spill] sm:$0xff] }
 0x50c   :  { %v3406_v47 = vpop.eup %3405 }
 0x50d   :  { %v1558_v44 = vmul.f32 %v3406_v47, %v3402_v59  ;;  %v10200_v59 = vld [vmem:[#allocation211_spill] sm:$0xff]  ;;  %v10202_v47 = vld [vmem:[#allocation213_spill] sm:$0xff] }
 0x50e   :  { %v3408_v53 = vpop.eup %3407 }
 0x50f   :  { %v1557_v42 = vmul.f32 %v3408_v53, %v6283_v25  ;;  %v10164_v25 = vld [vmem:[#allocation175_spill] sm:$0xff]  ;;  %v10203_v53 = vld [vmem:[#allocation214_spill] sm:$0xff] }
 0x510   :  { %v3410_v57 = vpop.eup %3409 }
 0x511   :  { %v6673_v49 = vadd.f32 %v1558_v44, %v1557_v42  ;;  %v6729_v42 = vld [vmem:[#allocation5 + $0x58] sm:$0xff]  ;;  %v6733_v44 = vld [vmem:[#allocation5 + $0x50] sm:$0xff] }
 0x513   :  { %3411 = vtanh.f32 %v6673_v49 }
 0x520   :  { %v3412_v58 = vpop.eup %3411 }
 0x521   :  { %v1561_v50 = vmul.f32 %v3412_v58, %v3410_v57  ;;  %v6745_v57 = vld [vmem:[#allocation5 + $0x18] sm:$0xff]  ;;  %v6758_v58 = vld [vmem:[#allocation5 + $0x3c0] sm:$0xff] }
 0x523   :  { %1627 = vmatmul.mubr.f32.vlgmr.msra.gmra.mxu0 %v1561_v50  ;;  %1698 = vmatmul.mubr.f32.vlgmr.msra.gmra.mxu1 %v1561_v50 }
 0x524   :  { %1731 = vmatpush1.msra.mxu0 %v6286_v31  ;;  %1794 = vmatprep.mubr.f32.mxu0 %v1561_v50  ;;  %v10165_v31 = vld [vmem:[#allocation176_spill] sm:$0xff] }
 0x525   :  { %1732 = vmatprep.subr.mxu0 %v6289_v32  ;;  %1865 = vmatprep.mubr.f32.mxu1 %v1561_v50  ;;  %v10166_v32 = vld [vmem:[#allocation177_spill] sm:$0xff] }
 0x526   :  { %1733 = vmatpush1.msra.mxu0 %v6292_v45  ;;  %1802 = vmatpush1.msra.mxu1 %v6295_v35  ;;  %v10167_v45 = vld [vmem:[#allocation178_spill] sm:$0xff]  ;;  %v10168_v35 = vld [vmem:[#allocation179_spill] sm:$0xff] }
 0x527   :  { %1734 = vmatprep.subr.mxu0 %v6298_v26  ;;  %1803 = vmatprep.subr.mxu1 %v6301_v30  ;;  %v10169_v26 = vld [vmem:[#allocation180_spill] sm:$0xff]  ;;  %v10170_v30 = vld [vmem:[#allocation181_spill] sm:$0xff] }
 0x528   :  { %1735 = vmatpush1.msra.mxu0 %v6304_v28  ;;  %1804 = vmatpush1.msra.mxu1 %v6307_v24  ;;  %v10171_v28 = vld [vmem:[#allocation182_spill] sm:$0xff]  ;;  %v10172_v24 = vld [vmem:[#allocation183_spill] sm:$0xff] }
 0x529   :  { %1736 = vmatprep.subr.mxu0 %v6310_v38  ;;  %1805 = vmatprep.subr.mxu1 %v6313_v39  ;;  %v10173_v38 = vld [vmem:[#allocation184_spill] sm:$0xff]  ;;  %v10174_v39 = vld [vmem:[#allocation185_spill] sm:$0xff] }
 0x52a   :  { %1737 = vmatpush1.msra.mxu0 %v10164_v25  ;;  %1806 = vmatpush1.msra.mxu1 %v10165_v31  ;;  %v6767_v50 = vld [vmem:[#allocation5 + $0x3d8] sm:$0xff]  ;;  %v6770_v25 = vld [vmem:[#allocation5 + $0x3a0] sm:$0xff]  ;;  %v6773_v31 = vld [vmem:[#allocation5 + $0x3d0] sm:$0xff] }
 0x52b   :  { %1738 = vmatprep.subr.mxu0 %v10166_v32  ;;  %1807 = vmatprep.subr.mxu1 %v10167_v45  ;;  %v6776_v32 = vld [vmem:[#allocation5 + $0x388] sm:$0xff]  ;;  %v6779_v45 = vld [vmem:[#allocation5 + $0x3b8] sm:$0xff] }
 0x52c   :  { %1739 = vmatpush1.msra.mxu0 %v10168_v35  ;;  %1808 = vmatpush1.msra.mxu1 %v10169_v26  ;;  %v6782_v35 = vld [vmem:[#allocation5 + $0x380] sm:$0xff]  ;;  %v6785_v26 = vld [vmem:[#allocation5 + $0x3b0] sm:$0xff] }
 0x52d   :  { %1740 = vmatprep.subr.mxu0 %v10170_v30  ;;  %1809 = vmatprep.subr.mxu1 %v10171_v28  ;;  %v6788_v30 = vld [vmem:[#allocation5 + $0x368] sm:$0xff]  ;;  %v6791_v28 = vld [vmem:[#allocation5 + $0x398] sm:$0xff] }
 0x52e   :  { %1741 = vmatpush1.msra.mxu0 %v10172_v24  ;;  %1810 = vmatpush1.msra.mxu1 %v10173_v38  ;;  %v6794_v24 = vld [vmem:[#allocation5 + $0x360] sm:$0xff]  ;;  %v6797_v38 = vld [vmem:[#allocation5 + $0x390] sm:$0xff] }
 0x52f   :  { %1742 = vmatprep.subr.mxu0 %v10174_v39  ;;  %1811 = vmatprep.subr.mxu1 %v10175_v62  ;;  %v6800_v39 = vld [vmem:[#allocation5 + $0x348] sm:$0xff]  ;;  %v6803_v62 = vld [vmem:[#allocation5 + $0x378] sm:$0xff] }
 0x530   :  { %1743 = vmatpush1.msra.mxu0 %v10176_v56  ;;  %1812 = vmatpush1.msra.mxu1 %v10177_v2  ;;  %v6806_v56 = vld [vmem:[#allocation5 + $0x340] sm:$0xff]  ;;  %v6809_v2 = vld [vmem:[#allocation5 + $0x370] sm:$0xff] }
 0x531   :  { %1744 = vmatprep.subr.mxu0 %v10178_v3  ;;  %1813 = vmatprep.subr.mxu1 %v10179_v4  ;;  %v6812_v3 = vld [vmem:[#allocation5 + $0x328] sm:$0xff]  ;;  %v6815_v4 = vld [vmem:[#allocation5 + $0x358] sm:$0xff] }
 0x532   :  { %1745 = vmatpush1.msra.mxu0 %v10180_v5  ;;  %1814 = vmatpush1.msra.mxu1 %v10181_v6  ;;  %v6818_v5 = vld [vmem:[#allocation5 + $0x320] sm:$0xff]  ;;  %v6821_v6 = vld [vmem:[#allocation5 + $0x350] sm:$0xff] }
 0x533   :  { %1746 = vmatprep.subr.mxu0 %v10182_v8  ;;  %1815 = vmatprep.subr.mxu1 %v10183_v11  ;;  %v6824_v8 = vld [vmem:[#allocation5 + $0x308] sm:$0xff]  ;;  %v6827_v11 = vld [vmem:[#allocation5 + $0x338] sm:$0xff] }
 0x534   :  { %1747 = vmatpush1.msra.mxu0 %v10184_v12  ;;  %1816 = vmatpush1.msra.mxu1 %v10185_v13  ;;  %v6830_v12 = vld [vmem:[#allocation5 + $0x300] sm:$0xff]  ;;  %v6833_v13 = vld [vmem:[#allocation5 + $0x330] sm:$0xff] }
 0x535   :  { %1748 = vmatprep.subr.mxu0 %v10186_v14  ;;  %1817 = vmatprep.subr.mxu1 %v10187_v16  ;;  %v6836_v14 = vld [vmem:[#allocation5 + $0x2e8] sm:$0xff]  ;;  %v6839_v16 = vld [vmem:[#allocation5 + $0x318] sm:$0xff] }
 0x536   :  { %1749 = vmatpush1.msra.mxu0 %v10188_v17  ;;  %1818 = vmatpush1.msra.mxu1 %v10189_v18  ;;  %v6842_v17 = vld [vmem:[#allocation5 + $0x2e0] sm:$0xff]  ;;  %v6845_v18 = vld [vmem:[#allocation5 + $0x310] sm:$0xff] }
 0x537   :  { %1750 = vmatprep.subr.mxu0 %v10190_v20  ;;  %1819 = vmatprep.subr.mxu1 %v10191_v29  ;;  %v6848_v20 = vld [vmem:[#allocation5 + $0x2c8] sm:$0xff]  ;;  %v6851_v29 = vld [vmem:[#allocation5 + $0x2f8] sm:$0xff] }
 0x538   :  { %1751 = vmatpush1.msra.mxu0 %v10192_v22  ;;  %1820 = vmatpush1.msra.mxu1 %v10193_v23  ;;  %v6854_v22 = vld [vmem:[#allocation5 + $0x2c0] sm:$0xff]  ;;  %v6857_v23 = vld [vmem:[#allocation5 + $0x2f0] sm:$0xff] }
 0x539   :  { %1752 = vmatprep.subr.mxu0 %v10194_v43  ;;  %1821 = vmatprep.subr.mxu1 %v10195_v54  ;;  %10205 = vst [vmem:[#allocation21_spill] sm:$0xff] %v6854_v22  ;;  %10206 = vst [vmem:[#allocation17_spill] sm:$0xff] %v6857_v23  ;;  %v6860_v43 = vld [vmem:[#allocation5 + $0x2a8] sm:$0xff]  ;;  %v6863_v54 = vld [vmem:[#allocation5 + $0x2d8] sm:$0xff] }
 0x53a   :  { %1753 = vmatpush1.msra.mxu0 %v10196_v61  ;;  %1822 = vmatpush1.msra.mxu1 %v10197_v46  ;;  %10207 = vst [vmem:[#allocation23_spill] sm:$0xff] %v6860_v43  ;;  %10208 = vst [vmem:[#allocation18_spill] sm:$0xff] %v6863_v54  ;;  %v6866_v61 = vld [vmem:[#allocation5 + $0x2a0] sm:$0xff]  ;;  %v6869_v46 = vld [vmem:[#allocation5 + $0x2d0] sm:$0xff] }
 0x53b   :  { %1754 = vmatprep.subr.mxu0 %v10198_v60  ;;  %1823 = vmatprep.subr.mxu1 %v10199_v63  ;;  %10209 = vst [vmem:[#allocation25_spill] sm:$0xff] %v6866_v61  ;;  %10210 = vst [vmem:[#allocation20_spill] sm:$0xff] %v6869_v46  ;;  %v6872_v60 = vld [vmem:[#allocation5 + $0x288] sm:$0xff]  ;;  %v6875_v63 = vld [vmem:[#allocation5 + $0x2b8] sm:$0xff] }
 0x53c   :  { %1755 = vmatpush1.msra.mxu0 %v10200_v59  ;;  %1824 = vmatpush1.msra.mxu1 %v10201_v1  ;;  %10211 = vst [vmem:[#allocation27_spill] sm:$0xff] %v6872_v60  ;;  %10212 = vst [vmem:[#allocation22_spill] sm:$0xff] %v6875_v63  ;;  %v6878_v59 = vld [vmem:[#allocation5 + $0x280] sm:$0xff]  ;;  %v6881_v1 = vld [vmem:[#allocation5 + $0x2b0] sm:$0xff] }
 0x53d   :  { %1756 = vmatprep.subr.mxu0 %v6430_v34  ;;  %1825 = vmatprep.subr.mxu1 %v10202_v47  ;;  %v6737_v34 = vld [vmem:[#allocation5 + $0x38] sm:$0xff]  ;;  %10213 = vst [vmem:[#allocation29_spill] sm:$0xff] %v6878_v59  ;;  %10214 = vst [vmem:[#allocation24_spill] sm:$0xff] %v6881_v1  ;;  %v6884_v47 = vld [vmem:[#allocation5 + $0x268] sm:$0xff] }
 0x53e   :  { %1757 = vmatpush1.msra.mxu0 %v10203_v53  ;;  %1826 = vmatpush1.msra.mxu1 %v6439_v37  ;;  %v6741_v37 = vld [vmem:[#allocation5 + $0x30] sm:$0xff]  ;;  %10215 = vst [vmem:[#allocation31_spill] sm:$0xff] %v6884_v47  ;;  %v6887_v53 = vld [vmem:[#allocation5 + $0x298] sm:$0xff] }
 0x53f   :  { %1758 = vmatprep.subr.mxu0 %v10204_v0  ;;  %1827 = vmatprep.subr.mxu1 %v6729_v42  ;;  %10216 = vst [vmem:[#allocation26_spill] sm:$0xff] %v6887_v53  ;;  %v6890_v0 = vld [vmem:[#allocation5 + $0x260] sm:$0xff] }
 0x540   :  { %1759 = vmatpush1.msra.mxu0 %v6446_v33  ;;  %1828 = vmatpush1.msra.mxu1 %v6733_v44  ;;  %v6749_v33 = vld [vmem:[#allocation5 + $0x10] sm:$0xff]  ;;  %10217 = vst [vmem:[#allocation33_spill] sm:$0xff] %v6890_v0 }
 0x541   :  { %1760 = vmatprep.subr.mxu0 %v6450_v27  ;;  %1829 = vmatprep.subr.mxu1 %v6737_v34  ;;  %v6752_v27 = vld [vmem:[#allocation5 + $0x3c8] sm:$0xff] }
 0x542   :  { %1761 = vmatpush1.msra.mxu0 %v6454_v10  ;;  %1830 = vmatpush1.msra.mxu1 %v6741_v37  ;;  %v6755_v10 = vld [vmem:[#allocation5 + $0x3f8] sm:$0xff] }
 0x543   :  { %1762 = vmatprep.subr.mxu0 %v6458_v21  ;;  %1831 = vmatprep.subr.mxu1 %v6745_v57  ;;  %v6761_v21 = vld [vmem:[#allocation5 + $0x3f0] sm:$0xff] }
 0x544   :  { %1763 = vmatpush2.msra.mxu0 %v6462_v41  ;;  %1832 = vmatpush1.msra.mxu1 %v6749_v33  ;;  %v6764_v41 = vld [vmem:[#allocation5 + $0x3a8] sm:$0xff] }
 0x545   :  { %1764 = vmatprep.subr.mxu0 %v6752_v27  ;;  %1833 = vmatprep.subr.mxu1 %v6755_v10 }
 0x546   :  { %1765 = vmatpush2.msra.mxu0 %v6758_v58  ;;  %1834 = vmatpush2.msra.mxu1 %v6761_v21 }
 0x547   :  { %1766 = vmatprep.subr.mxu0 %v6764_v41  ;;  %1835 = vmatprep.subr.mxu1 %v6767_v50 }
 0x548   :  { %1767 = vmatpush2.msra.mxu0 %v6770_v25  ;;  %1836 = vmatpush2.msra.mxu1 %v6773_v31 }
 0x549   :  { %1768 = vmatprep.subr.mxu0 %v6776_v32  ;;  %1837 = vmatprep.subr.mxu1 %v6779_v45 }
 0x54a   :  { %1769 = vmatpush2.msra.mxu0 %v6782_v35  ;;  %1838 = vmatpush2.msra.mxu1 %v6785_v26 }
 0x54b   :  { %1770 = vmatprep.subr.mxu0 %v6788_v30  ;;  %1839 = vmatprep.subr.mxu1 %v6791_v28 }
 0x54c   :  { %1771 = vmatpush2.msra.mxu0 %v6794_v24  ;;  %1840 = vmatpush2.msra.mxu1 %v6797_v38 }
 0x54d   :  { %1772 = vmatprep.subr.mxu0 %v6800_v39  ;;  %1841 = vmatprep.subr.mxu1 %v6803_v62 }
 0x54e   :  { %1773 = vmatpush2.msra.mxu0 %v6806_v56  ;;  %1842 = vmatpush2.msra.mxu1 %v6809_v2 }
 0x54f   :  { %1774 = vmatprep.subr.mxu0 %v6812_v3  ;;  %1843 = vmatprep.subr.mxu1 %v6815_v4 }
 0x550   :  { %1775 = vmatpush2.msra.mxu0 %v6818_v5  ;;  %1844 = vmatpush2.msra.mxu1 %v6821_v6 }
 0x551   :  { %1776 = vmatprep.subr.mxu0 %v6824_v8  ;;  %1845 = vmatprep.subr.mxu1 %v6827_v11 }
 0x552   :  { %1777 = vmatpush2.msra.mxu0 %v6830_v12  ;;  %1846 = vmatpush2.msra.mxu1 %v6833_v13 }
 0x553   :  { %1778 = vmatprep.subr.mxu0 %v6836_v14  ;;  %1847 = vmatprep.subr.mxu1 %v6839_v16 }
 0x554   :  { %1779 = vmatpush2.msra.mxu0 %v6842_v17  ;;  %1848 = vmatpush2.msra.mxu1 %v6845_v18 }
 0x555   :  { %1780 = vmatprep.subr.mxu0 %v6848_v20  ;;  %1849 = vmatprep.subr.mxu1 %v6851_v29 }
 0x556   :  { %1781 = vmatpush2.msra.mxu0 %v6854_v22  ;;  %1850 = vmatpush2.msra.mxu1 %v6857_v23 }
 0x557   :  { %1782 = vmatprep.subr.mxu0 %v6860_v43  ;;  %1851 = vmatprep.subr.mxu1 %v6863_v54 }
 0x558   :  { %1783 = vmatpush2.msra.mxu0 %v6866_v61  ;;  %1852 = vmatpush2.msra.mxu1 %v6869_v46 }
 0x559   :  { %1784 = vmatprep.subr.mxu0 %v6872_v60  ;;  %1853 = vmatprep.subr.mxu1 %v6875_v63  ;;  %v6893_v63 = vld [vmem:[#allocation5 + $0x290] sm:$0xff] }
 0x55a   :  { %1785 = vmatpush2.msra.mxu0 %v6878_v59  ;;  %1854 = vmatpush2.msra.mxu1 %v6881_v1  ;;  %10218 = vst [vmem:[#allocation28_spill] sm:$0xff] %v6893_v63  ;;  %v6896_v59 = vld [vmem:[#allocation5 + $0x248] sm:$0xff]  ;;  %v6899_v1 = vld [vmem:[#allocation5 + $0x278] sm:$0xff]  ;;  %v6917_v60 = vld [vmem:[#allocation5 + $0x250] sm:$0xff] }
 0x55b   :  { %1786 = vmatprep.subr.mxu0 %v6884_v47  ;;  %1855 = vmatprep.subr.mxu1 %v6887_v53  ;;  %10219 = vst [vmem:[#allocation34_spill] sm:$0xff] %v6896_v59  ;;  %10220 = vst [vmem:[#allocation30_spill] sm:$0xff] %v6899_v1  ;;  %v6902_v47 = vld [vmem:[#allocation5 + $0x240] sm:$0xff]  ;;  %v6905_v53 = vld [vmem:[#allocation5 + $0x270] sm:$0xff] }
 0x55c   :  { %1787 = vmatpush2.msra.mxu0 %v6890_v0  ;;  %1856 = vmatpush2.msra.mxu1 %v6893_v63  ;;  %10221 = vst [vmem:[#allocation35_spill] sm:$0xff] %v6902_v47  ;;  %10222 = vst [vmem:[#allocation32_spill] sm:$0xff] %v6905_v53  ;;  %v6908_v0 = vld [vmem:[#allocation5 + $0x228] sm:$0xff]  ;;  %v6911_v63 = vld [vmem:[#allocation5 + $0x258] sm:$0xff] }
 0x55d   :  { %1788 = vmatprep.subr.mxu0 %v6896_v59  ;;  %1857 = vmatprep.subr.mxu1 %v6899_v1  ;;  %10223 = vst [vmem:[#allocation37_spill] sm:$0xff] %v6908_v0  ;;  %10224 = vst [vmem:[#allocation39_spill] sm:$0xff] %v6911_v63  ;;  %v6914_v59 = vld [vmem:[#allocation5 + $0x220] sm:$0xff] }
 0x55e   :  { %1789 = vmatpush2.msra.mxu0 %v6902_v47  ;;  %1858 = vmatpush2.msra.mxu1 %v6905_v53  ;;  %10225 = vst [vmem:[#allocation41_spill] sm:$0xff] %v6914_v59  ;;  %v1729_v1 = vld [vmem:[#allocation2 + $0x20] sm:$0xff]  ;;  %10226 = vst [vmem:[#allocation36_spill] sm:$0xff] %v6917_v60  ;;  %v6920_v47 = vld [vmem:[#allocation5 + $0x208] sm:$0xff] }
 0x55f   :  { %1790 = vmatprep.subr.mxu0 %v6908_v0  ;;  %1859 = vmatprep.subr.mxu1 %v6911_v63  ;;  %10227 = vst [vmem:[#allocation38_spill] sm:$0xff] %v6920_v47  ;;  %v6923_v53 = vld [vmem:[#allocation5 + $0x238] sm:$0xff]  ;;  %v6926_v0 = vld [vmem:[#allocation5 + $0x200] sm:$0xff]  ;;  %v6929_v63 = vld [vmem:[#allocation5 + $0x230] sm:$0xff] }
 0x560   :  { %1791 = vmatpush2.msra.mxu0 %v6914_v59  ;;  %1860 = vmatpush2.msra.mxu1 %v6917_v60  ;;  %10228 = vst [vmem:[#allocation43_spill] sm:$0xff] %v6923_v53  ;;  %10229 = vst [vmem:[#allocation40_spill] sm:$0xff] %v6926_v0  ;;  %v6932_v59 = vld [vmem:[#allocation5 + $0x218] sm:$0xff]  ;;  %v6935_v60 = vld [vmem:[#allocation5 + $0x210] sm:$0xff] }
 0x561   :  { %1792 = vmatprep.subr.mxu0 %v6920_v47  ;;  %1861 = vmatprep.subr.mxu1 %v6923_v53  ;;  %10230 = vst [vmem:[#allocation44_spill] sm:$0xff] %v6929_v63  ;;  %10231 = vst [vmem:[#allocation42_spill] sm:$0xff] %v6932_v59  ;;  %v6938_v47 = vld [vmem:[#allocation8 + $0x1e8] sm:$0xff]  ;;  %v6941_v53 = vld [vmem:[#allocation8 + $0x1e0] sm:$0xff] }
 0x562   :  { %1793 = vmatpush2.msra.mxu0 %v6926_v0  ;;  %1862 = vmatpush2.msra.mxu1 %v6929_v63  ;;  %10232 = vst [vmem:[#allocation46_spill] sm:$0xff] %v6935_v60  ;;  %10233 = vst [vmem:[#allocation45_spill] sm:$0xff] %v6938_v47  ;;  %v6944_v0 = vld [vmem:[#allocation8 + $0x1f8] sm:$0xff]  ;;  %v6947_v63 = vld [vmem:[#allocation8 + $0x1c8] sm:$0xff] }
 0x563   :  { %1795 = vmatmul.mubr.f32.vlgmr.msra.gmra.mxu0 %v1729_v1  ;;  %1863 = vmatprep.subr.mxu1 %v6932_v59  ;;  %10234 = vst [vmem:[#allocation48_spill] sm:$0xff] %v6941_v53  ;;  %10235 = vst [vmem:[#allocation47_spill] sm:$0xff] %v6944_v0  ;;  %v6950_v59 = vld [vmem:[#allocation8 + $0x1f0] sm:$0xff] }
 0x564   :  { %1864 = vmatpush2.msra.mxu1 %v6935_v60  ;;  %1896 = vmatprep.subr.mxu0 %v6938_v47  ;;  %10236 = vst [vmem:[#allocation50_spill] sm:$0xff] %v6947_v63  ;;  %10237 = vst [vmem:[#allocation49_spill] sm:$0xff] %v6950_v59  ;;  %v6953_v60 = vld [vmem:[#allocation8 + $0x1c0] sm:$0xff] }
 0x565   :  { %1866 = vmatmul.mubr.f32.vlgmr.msra.gmra.mxu1 %v1729_v1  ;;  %1897 = vmatpush1.msra.mxu0 %v6941_v53  ;;  %10238 = vst [vmem:[#allocation52_spill] sm:$0xff] %v6953_v60  ;;  %v6956_v1 = vld [vmem:[#allocation8 + $0x1d8] sm:$0xff]  ;;  %v6959_v53 = vld [vmem:[#allocation8 + $0x1a8] sm:$0xff] }
 0x566   :  { %1967 = vmatprep.subr.mxu1 %v6944_v0  ;;  %1898 = vmatprep.subr.mxu0 %v6947_v63  ;;  %10239 = vst [vmem:[#allocation51_spill] sm:$0xff] %v6956_v1  ;;  %10240 = vst [vmem:[#allocation53_spill] sm:$0xff] %v6959_v53  ;;  %v6962_v0 = vld [vmem:[#allocation8 + $0x1d0] sm:$0xff]  ;;  %v6965_v63 = vld [vmem:[#allocation8 + $0x1a0] sm:$0xff] }
 0x567   :  { %1968 = vmatpush1.msra.mxu1 %v6950_v59  ;;  %1899 = vmatpush1.msra.mxu0 %v6953_v60  ;;  %10241 = vst [vmem:[#allocation54_spill] sm:$0xff] %v6962_v0  ;;  %10242 = vst [vmem:[#allocation55_spill] sm:$0xff] %v6965_v63  ;;  %v6968_v59 = vld [vmem:[#allocation8 + $0x1b8] sm:$0xff]  ;;  %v6971_v60 = vld [vmem:[#allocation8 + $0x188] sm:$0xff] }
 0x568   :  { %1969 = vmatprep.subr.mxu1 %v6956_v1  ;;  %1900 = vmatprep.subr.mxu0 %v6959_v53  ;;  %10243 = vst [vmem:[#allocation56_spill] sm:$0xff] %v6968_v59  ;;  %10244 = vst [vmem:[#allocation57_spill] sm:$0xff] %v6971_v60  ;;  %v6974_v1 = vld [vmem:[#allocation8 + $0x1b0] sm:$0xff]  ;;  %v6977_v53 = vld [vmem:[#allocation8 + $0x180] sm:$0xff] }
 0x569   :  { %1970 = vmatpush1.msra.mxu1 %v6962_v0  ;;  %1901 = vmatpush1.msra.mxu0 %v6965_v63  ;;  %10245 = vst [vmem:[#allocation58_spill] sm:$0xff] %v6974_v1  ;;  %10246 = vst [vmem:[#allocation59_spill] sm:$0xff] %v6977_v53  ;;  %v6980_v0 = vld [vmem:[#allocation8 + $0x198] sm:$0xff]  ;;  %v6983_v63 = vld [vmem:[#allocation8 + $0x168] sm:$0xff] }
 0x56a   :  { %1971 = vmatprep.subr.mxu1 %v6968_v59  ;;  %1902 = vmatprep.subr.mxu0 %v6971_v60  ;;  %10247 = vst [vmem:[#allocation60_spill] sm:$0xff] %v6980_v0  ;;  %10248 = vst [vmem:[#allocation61_spill] sm:$0xff] %v6983_v63  ;;  %v6986_v59 = vld [vmem:[#allocation8 + $0x190] sm:$0xff]  ;;  %v6989_v60 = vld [vmem:[#allocation8 + $0x160] sm:$0xff] }
 0x56b   :  { %1972 = vmatpush1.msra.mxu1 %v6974_v1  ;;  %1903 = vmatpush1.msra.mxu0 %v6977_v53  ;;  %10249 = vst [vmem:[#allocation62_spill] sm:$0xff] %v6986_v59  ;;  %10250 = vst [vmem:[#allocation63_spill] sm:$0xff] %v6989_v60  ;;  %v6992_v1 = vld [vmem:[#allocation8 + $0x178] sm:$0xff]  ;;  %v6995_v53 = vld [vmem:[#allocation8 + $0x148] sm:$0xff] }
 0x56c   :  { %1973 = vmatprep.subr.mxu1 %v6980_v0  ;;  %1904 = vmatprep.subr.mxu0 %v6983_v63  ;;  %10251 = vst [vmem:[#allocation64_spill] sm:$0xff] %v6992_v1  ;;  %10252 = vst [vmem:[#allocation65_spill] sm:$0xff] %v6995_v53  ;;  %v6998_v0 = vld [vmem:[#allocation8 + $0x170] sm:$0xff]  ;;  %v7001_v63 = vld [vmem:[#allocation8 + $0x140] sm:$0xff] }
 0x56d   :  { %1974 = vmatpush1.msra.mxu1 %v6986_v59  ;;  %1905 = vmatpush1.msra.mxu0 %v6989_v60  ;;  %10253 = vst [vmem:[#allocation66_spill] sm:$0xff] %v6998_v0  ;;  %10254 = vst [vmem:[#allocation67_spill] sm:$0xff] %v7001_v63  ;;  %v7004_v59 = vld [vmem:[#allocation8 + $0x158] sm:$0xff]  ;;  %v7007_v60 = vld [vmem:[#allocation8 + $0x128] sm:$0xff] }
 0x56e   :  { %1975 = vmatprep.subr.mxu1 %v6992_v1  ;;  %1906 = vmatprep.subr.mxu0 %v6995_v53  ;;  %10255 = vst [vmem:[#allocation68_spill] sm:$0xff] %v7004_v59  ;;  %10256 = vst [vmem:[#allocation69_spill] sm:$0xff] %v7007_v60  ;;  %v7010_v1 = vld [vmem:[#allocation8 + $0x150] sm:$0xff]  ;;  %v7013_v53 = vld [vmem:[#allocation8 + $0x120] sm:$0xff] }
 0x56f   :  { %1976 = vmatpush1.msra.mxu1 %v6998_v0  ;;  %1907 = vmatpush1.msra.mxu0 %v7001_v63  ;;  %10257 = vst [vmem:[#allocation70_spill] sm:$0xff] %v7010_v1  ;;  %10258 = vst [vmem:[#allocation71_spill] sm:$0xff] %v7013_v53  ;;  %v7016_v0 = vld [vmem:[#allocation8 + $0x138] sm:$0xff]  ;;  %v7019_v63 = vld [vmem:[#allocation8 + $0x108] sm:$0xff] }
 0x570   :  { %1977 = vmatprep.subr.mxu1 %v7004_v59  ;;  %1908 = vmatprep.subr.mxu0 %v7007_v60  ;;  %10259 = vst [vmem:[#allocation72_spill] sm:$0xff] %v7016_v0  ;;  %10260 = vst [vmem:[#allocation73_spill] sm:$0xff] %v7019_v63  ;;  %v7022_v59 = vld [vmem:[#allocation8 + $0x130] sm:$0xff]  ;;  %v7025_v60 = vld [vmem:[#allocation8 + $0x100] sm:$0xff] }
 0x571   :  { %1978 = vmatpush1.msra.mxu1 %v7010_v1  ;;  %1909 = vmatpush1.msra.mxu0 %v7013_v53  ;;  %10261 = vst [vmem:[#allocation74_spill] sm:$0xff] %v7022_v59  ;;  %10262 = vst [vmem:[#allocation75_spill] sm:$0xff] %v7025_v60  ;;  %v7028_v1 = vld [vmem:[#allocation8 + $0x118] sm:$0xff]  ;;  %v7031_v53 = vld [vmem:[#allocation8 + $0xe8] sm:$0xff] }
 0x572   :  { %1979 = vmatprep.subr.mxu1 %v7016_v0  ;;  %1910 = vmatprep.subr.mxu0 %v7019_v63  ;;  %10263 = vst [vmem:[#allocation76_spill] sm:$0xff] %v7028_v1  ;;  %10264 = vst [vmem:[#allocation77_spill] sm:$0xff] %v7031_v53  ;;  %v7034_v0 = vld [vmem:[#allocation8 + $0x110] sm:$0xff]  ;;  %v7037_v63 = vld [vmem:[#allocation8 + $0xe0] sm:$0xff] }
 0x573   :  { %1980 = vmatpush1.msra.mxu1 %v7022_v59  ;;  %1911 = vmatpush1.msra.mxu0 %v7025_v60  ;;  %10265 = vst [vmem:[#allocation78_spill] sm:$0xff] %v7034_v0  ;;  %10266 = vst [vmem:[#allocation79_spill] sm:$0xff] %v7037_v63  ;;  %v7040_v59 = vld [vmem:[#allocation8 + $0xf8] sm:$0xff]  ;;  %v7043_v60 = vld [vmem:[#allocation8 + $0xc8] sm:$0xff] }
 0x574   :  { %1981 = vmatprep.subr.mxu1 %v7028_v1  ;;  %1912 = vmatprep.subr.mxu0 %v7031_v53  ;;  %10267 = vst [vmem:[#allocation80_spill] sm:$0xff] %v7040_v59  ;;  %10268 = vst [vmem:[#allocation81_spill] sm:$0xff] %v7043_v60  ;;  %v7046_v1 = vld [vmem:[#allocation8 + $0xf0] sm:$0xff]  ;;  %v7049_v53 = vld [vmem:[#allocation8 + $0xc0] sm:$0xff] }
 0x575   :  { %1982 = vmatpush1.msra.mxu1 %v7034_v0  ;;  %1913 = vmatpush1.msra.mxu0 %v7037_v63  ;;  %10269 = vst [vmem:[#allocation82_spill] sm:$0xff] %v7046_v1  ;;  %10270 = vst [vmem:[#allocation83_spill] sm:$0xff] %v7049_v53  ;;  %v7052_v0 = vld [vmem:[#allocation8 + $0xd8] sm:$0xff]  ;;  %v7055_v63 = vld [vmem:[#allocation8 + $0xa8] sm:$0xff] }
 0x576   :  { %1983 = vmatprep.subr.mxu1 %v7040_v59  ;;  %1914 = vmatprep.subr.mxu0 %v7043_v60  ;;  %10271 = vst [vmem:[#allocation84_spill] sm:$0xff] %v7052_v0  ;;  %10272 = vst [vmem:[#allocation85_spill] sm:$0xff] %v7055_v63  ;;  %v7058_v59 = vld [vmem:[#allocation8 + $0xd0] sm:$0xff]  ;;  %v7061_v60 = vld [vmem:[#allocation8 + $0xa0] sm:$0xff] }
 0x577   :  { %1984 = vmatpush1.msra.mxu1 %v7046_v1  ;;  %1915 = vmatpush1.msra.mxu0 %v7049_v53  ;;  %10273 = vst [vmem:[#allocation86_spill] sm:$0xff] %v7058_v59  ;;  %10274 = vst [vmem:[#allocation87_spill] sm:$0xff] %v7061_v60  ;;  %v7064_v1 = vld [vmem:[#allocation8 + $0xb8] sm:$0xff]  ;;  %v7067_v53 = vld [vmem:[#allocation8 + $0x88] sm:$0xff] }
 0x578   :  { %1985 = vmatprep.subr.mxu1 %v7052_v0  ;;  %1916 = vmatprep.subr.mxu0 %v7055_v63  ;;  %10275 = vst [vmem:[#allocation88_spill] sm:$0xff] %v7064_v1  ;;  %10276 = vst [vmem:[#allocation89_spill] sm:$0xff] %v7067_v53  ;;  %v7070_v0 = vld [vmem:[#allocation8 + $0xb0] sm:$0xff]  ;;  %v7073_v63 = vld [vmem:[#allocation8 + $0x80] sm:$0xff] }
 0x579   :  { %1986 = vmatpush1.msra.mxu1 %v7058_v59  ;;  %1917 = vmatpush1.msra.mxu0 %v7061_v60  ;;  %10277 = vst [vmem:[#allocation90_spill] sm:$0xff] %v7070_v0  ;;  %10278 = vst [vmem:[#allocation91_spill] sm:$0xff] %v7073_v63  ;;  %v7076_v59 = vld [vmem:[#allocation8 + $0x98] sm:$0xff]  ;;  %v7079_v60 = vld [vmem:[#allocation8 + $0x68] sm:$0xff] }
 0x57a   :  { %1987 = vmatprep.subr.mxu1 %v7064_v1  ;;  %1918 = vmatprep.subr.mxu0 %v7067_v53  ;;  %10279 = vst [vmem:[#allocation92_spill] sm:$0xff] %v7076_v59  ;;  %10280 = vst [vmem:[#allocation93_spill] sm:$0xff] %v7079_v60  ;;  %v7082_v1 = vld [vmem:[#allocation8 + $0x90] sm:$0xff]  ;;  %v7085_v53 = vld [vmem:[#allocation8 + $0x60] sm:$0xff] }
 0x57b   :  { %1988 = vmatpush1.msra.mxu1 %v7070_v0  ;;  %1919 = vmatpush1.msra.mxu0 %v7073_v63  ;;  %10281 = vst [vmem:[#allocation94_spill] sm:$0xff] %v7082_v1  ;;  %10282 = vst [vmem:[#allocation95_spill] sm:$0xff] %v7085_v53  ;;  %v7088_v0 = vld [vmem:[#allocation8 + $0x78] sm:$0xff]  ;;  %v7091_v63 = vld [vmem:[#allocation8 + $0x48] sm:$0xff] }
 0x57c   :  { %1989 = vmatprep.subr.mxu1 %v7076_v59  ;;  %1920 = vmatprep.subr.mxu0 %v7079_v60  ;;  %10283 = vst [vmem:[#allocation96_spill] sm:$0xff] %v7088_v0  ;;  %10284 = vst [vmem:[#allocation97_spill] sm:$0xff] %v7091_v63  ;;  %v7094_v59 = vld [vmem:[#allocation8 + $0x70] sm:$0xff]  ;;  %v7097_v60 = vld [vmem:[#allocation8 + $0x40] sm:$0xff] }
 0x57d   :  { %1990 = vmatpush1.msra.mxu1 %v7082_v1  ;;  %1921 = vmatpush1.msra.mxu0 %v7085_v53  ;;  %10285 = vst [vmem:[#allocation98_spill] sm:$0xff] %v7094_v59  ;;  %10286 = vst [vmem:[#allocation99_spill] sm:$0xff] %v7097_v60  ;;  %v7100_v1 = vld [vmem:[#allocation8 + $0x58] sm:$0xff]  ;;  %v7103_v53 = vld [vmem:[#allocation8 + $0x28] sm:$0xff] }
 0x57e   :  { %1991 = vmatprep.subr.mxu1 %v7088_v0  ;;  %1922 = vmatprep.subr.mxu0 %v7091_v63  ;;  %10287 = vst [vmem:[#allocation100_spill] sm:$0xff] %v7100_v1  ;;  %10288 = vst [vmem:[#allocation101_spill] sm:$0xff] %v7103_v53  ;;  %v7106_v0 = vld [vmem:[#allocation8 + $0x50] sm:$0xff]  ;;  %v7109_v63 = vld [vmem:[#allocation8 + $0x20] sm:$0xff] }
 0x57f   :  { %1992 = vmatpush1.msra.mxu1 %v7094_v59  ;;  %1923 = vmatpush1.msra.mxu0 %v7097_v60  ;;  %10289 = vst [vmem:[#allocation102_spill] sm:$0xff] %v7106_v0  ;;  %10290 = vst [vmem:[#allocation103_spill] sm:$0xff] %v7109_v63  ;;  %v7112_v59 = vld [vmem:[#allocation8 + $0x38] sm:$0xff]  ;;  %v7115_v60 = vld [vmem:[#allocation8 + $0x8] sm:$0xff] }
 0x580   :  { %1993 = vmatprep.subr.mxu1 %v7100_v1  ;;  %1924 = vmatprep.subr.mxu0 %v7103_v53  ;;  %10291 = vst [vmem:[#allocation104_spill] sm:$0xff] %v7112_v59  ;;  %10292 = vst [vmem:[#allocation105_spill] sm:$0xff] %v7115_v60  ;;  %v7118_v1 = vld [vmem:[#allocation8 + $0x30] sm:$0xff]  ;;  %v7121_v53 = vld [vmem:[#allocation8] sm:$0xff] }
 0x581   :  { %1994 = vmatpush1.msra.mxu1 %v7106_v0  ;;  %1925 = vmatpush1.msra.mxu0 %v7109_v63  ;;  %10293 = vst [vmem:[#allocation106_spill] sm:$0xff] %v7118_v1  ;;  %10294 = vst [vmem:[#allocation107_spill] sm:$0xff] %v7121_v53  ;;  %v7124_v0 = vld [vmem:[#allocation8 + $0x18] sm:$0xff]  ;;  %v7127_v63 = vld [vmem:[#allocation8 + $0x3e8] sm:$0xff] }
 0x582   :  { %1995 = vmatprep.subr.mxu1 %v7112_v59  ;;  %1926 = vmatprep.subr.mxu0 %v7115_v60  ;;  %10295 = vst [vmem:[#allocation108_spill] sm:$0xff] %v7124_v0  ;;  %10296 = vst [vmem:[#allocation109_spill] sm:$0xff] %v7127_v63  ;;  %v7130_v59 = vld [vmem:[#allocation8 + $0x10] sm:$0xff]  ;;  %v7133_v60 = vld [vmem:[#allocation8 + $0x3e0] sm:$0xff] }
 0x583   :  { %1996 = vmatpush1.msra.mxu1 %v7118_v1  ;;  %1927 = vmatpush1.msra.mxu0 %v7121_v53  ;;  %10297 = vst [vmem:[#allocation110_spill] sm:$0xff] %v7130_v59  ;;  %10298 = vst [vmem:[#allocation111_spill] sm:$0xff] %v7133_v60  ;;  %v7136_v1 = vld [vmem:[#allocation8 + $0x3f8] sm:$0xff]  ;;  %v7139_v53 = vld [vmem:[#allocation8 + $0x3c8] sm:$0xff] }
 0x584   :  { %1997 = vmatprep.subr.mxu1 %v7124_v0  ;;  %1928 = vmatprep.subr.mxu0 %v7127_v63  ;;  %10299 = vst [vmem:[#allocation112_spill] sm:$0xff] %v7136_v1  ;;  %10300 = vst [vmem:[#allocation113_spill] sm:$0xff] %v7139_v53  ;;  %v7142_v0 = vld [vmem:[#allocation8 + $0x3f0] sm:$0xff]  ;;  %v7145_v63 = vld [vmem:[#allocation8 + $0x3c0] sm:$0xff] }
 0x585   :  { %1998 = vmatpush1.msra.mxu1 %v7130_v59  ;;  %1929 = vmatpush2.msra.mxu0 %v7133_v60  ;;  %10301 = vst [vmem:[#allocation114_spill] sm:$0xff] %v7142_v0  ;;  %10302 = vst [vmem:[#allocation115_spill] sm:$0xff] %v7145_v63  ;;  %v7148_v59 = vld [vmem:[#allocation8 + $0x3d8] sm:$0xff]  ;;  %v7151_v60 = vld [vmem:[#allocation8 + $0x3a8] sm:$0xff] }
 0x586   :  { %1999 = vmatprep.subr.mxu1 %v7136_v1  ;;  %1930 = vmatprep.subr.mxu0 %v7139_v53  ;;  %10303 = vst [vmem:[#allocation116_spill] sm:$0xff] %v7148_v59  ;;  %10304 = vst [vmem:[#allocation117_spill] sm:$0xff] %v7151_v60  ;;  %v7154_v1 = vld [vmem:[#allocation8 + $0x3d0] sm:$0xff]  ;;  %v7157_v53 = vld [vmem:[#allocation8 + $0x3a0] sm:$0xff] }
 0x587   :  { %2000 = vmatpush2.msra.mxu1 %v7142_v0  ;;  %1931 = vmatpush2.msra.mxu0 %v7145_v63  ;;  %10305 = vst [vmem:[#allocation118_spill] sm:$0xff] %v7154_v1  ;;  %10306 = vst [vmem:[#allocation119_spill] sm:$0xff] %v7157_v53  ;;  %v7160_v0 = vld [vmem:[#allocation8 + $0x3b8] sm:$0xff]  ;;  %v7163_v63 = vld [vmem:[#allocation8 + $0x388] sm:$0xff] }
 0x588   :  { %2001 = vmatprep.subr.mxu1 %v7148_v59  ;;  %1932 = vmatprep.subr.mxu0 %v7151_v60  ;;  %10307 = vst [vmem:[#allocation120_spill] sm:$0xff] %v7160_v0  ;;  %10308 = vst [vmem:[#allocation121_spill] sm:$0xff] %v7163_v63  ;;  %v7166_v59 = vld [vmem:[#allocation8 + $0x3b0] sm:$0xff]  ;;  %v7169_v60 = vld [vmem:[#allocation8 + $0x380] sm:$0xff] }
 0x589   :  { %2002 = vmatpush2.msra.mxu1 %v7154_v1  ;;  %1933 = vmatpush2.msra.mxu0 %v7157_v53  ;;  %10309 = vst [vmem:[#allocation122_spill] sm:$0xff] %v7166_v59  ;;  %10310 = vst [vmem:[#allocation123_spill] sm:$0xff] %v7169_v60  ;;  %v7172_v1 = vld [vmem:[#allocation8 + $0x398] sm:$0xff]  ;;  %v7175_v53 = vld [vmem:[#allocation8 + $0x368] sm:$0xff] }
 0x58a   :  { %2003 = vmatprep.subr.mxu1 %v7160_v0  ;;  %1934 = vmatprep.subr.mxu0 %v7163_v63  ;;  %10311 = vst [vmem:[#allocation124_spill] sm:$0xff] %v7172_v1  ;;  %10312 = vst [vmem:[#allocation125_spill] sm:$0xff] %v7175_v53  ;;  %v7178_v0 = vld [vmem:[#allocation8 + $0x390] sm:$0xff]  ;;  %v7181_v63 = vld [vmem:[#allocation8 + $0x360] sm:$0xff] }
 0x58b   :  { %2004 = vmatpush2.msra.mxu1 %v7166_v59  ;;  %1935 = vmatpush2.msra.mxu0 %v7169_v60  ;;  %10313 = vst [vmem:[#allocation126_spill] sm:$0xff] %v7178_v0  ;;  %10314 = vst [vmem:[#allocation127_spill] sm:$0xff] %v7181_v63  ;;  %v7184_v59 = vld [vmem:[#allocation8 + $0x378] sm:$0xff]  ;;  %v7187_v60 = vld [vmem:[#allocation8 + $0x348] sm:$0xff] }
 0x58c   :  { %2005 = vmatprep.subr.mxu1 %v7172_v1  ;;  %1936 = vmatprep.subr.mxu0 %v7175_v53  ;;  %10315 = vst [vmem:[#allocation128_spill] sm:$0xff] %v7184_v59  ;;  %10316 = vst [vmem:[#allocation129_spill] sm:$0xff] %v7187_v60  ;;  %v7190_v1 = vld [vmem:[#allocation8 + $0x370] sm:$0xff]  ;;  %v7193_v53 = vld [vmem:[#allocation8 + $0x340] sm:$0xff] }
 0x58d   :  { %2006 = vmatpush2.msra.mxu1 %v7178_v0  ;;  %1937 = vmatpush2.msra.mxu0 %v7181_v63  ;;  %10317 = vst [vmem:[#allocation130_spill] sm:$0xff] %v7190_v1  ;;  %10318 = vst [vmem:[#allocation131_spill] sm:$0xff] %v7193_v53  ;;  %v7196_v0 = vld [vmem:[#allocation8 + $0x358] sm:$0xff]  ;;  %v7199_v63 = vld [vmem:[#allocation8 + $0x328] sm:$0xff] }
 0x58e   :  { %2007 = vmatprep.subr.mxu1 %v7184_v59  ;;  %1938 = vmatprep.subr.mxu0 %v7187_v60  ;;  %10319 = vst [vmem:[#allocation132_spill] sm:$0xff] %v7196_v0  ;;  %10320 = vst [vmem:[#allocation133_spill] sm:$0xff] %v7199_v63  ;;  %v7202_v59 = vld [vmem:[#allocation8 + $0x350] sm:$0xff]  ;;  %v7205_v60 = vld [vmem:[#allocation8 + $0x320] sm:$0xff] }
 0x58f   :  { %2008 = vmatpush2.msra.mxu1 %v7190_v1  ;;  %1939 = vmatpush2.msra.mxu0 %v7193_v53  ;;  %10321 = vst [vmem:[#allocation134_spill] sm:$0xff] %v7202_v59  ;;  %10322 = vst [vmem:[#allocation135_spill] sm:$0xff] %v7205_v60  ;;  %v7208_v1 = vld [vmem:[#allocation8 + $0x338] sm:$0xff]  ;;  %v7211_v53 = vld [vmem:[#allocation8 + $0x308] sm:$0xff] }
 0x590   :  { %2009 = vmatprep.subr.mxu1 %v7196_v0  ;;  %1940 = vmatprep.subr.mxu0 %v7199_v63  ;;  %10323 = vst [vmem:[#allocation136_spill] sm:$0xff] %v7208_v1  ;;  %10324 = vst [vmem:[#allocation137_spill] sm:$0xff] %v7211_v53  ;;  %v7214_v0 = vld [vmem:[#allocation8 + $0x330] sm:$0xff]  ;;  %v7217_v63 = vld [vmem:[#allocation8 + $0x300] sm:$0xff] }
 0x591   :  { %2010 = vmatpush2.msra.mxu1 %v7202_v59  ;;  %1941 = vmatpush2.msra.mxu0 %v7205_v60  ;;  %10325 = vst [vmem:[#allocation138_spill] sm:$0xff] %v7214_v0  ;;  %10326 = vst [vmem:[#allocation139_spill] sm:$0xff] %v7217_v63  ;;  %v7220_v59 = vld [vmem:[#allocation8 + $0x318] sm:$0xff]  ;;  %v7223_v60 = vld [vmem:[#allocation8 + $0x2e8] sm:$0xff] }
 0x592   :  { %2011 = vmatprep.subr.mxu1 %v7208_v1  ;;  %1942 = vmatprep.subr.mxu0 %v7211_v53  ;;  %10327 = vst [vmem:[#allocation140_spill] sm:$0xff] %v7220_v59  ;;  %10328 = vst [vmem:[#allocation141_spill] sm:$0xff] %v7223_v60  ;;  %v7226_v1 = vld [vmem:[#allocation8 + $0x310] sm:$0xff]  ;;  %v7229_v53 = vld [vmem:[#allocation8 + $0x2e0] sm:$0xff] }
 0x593   :  { %2012 = vmatpush2.msra.mxu1 %v7214_v0  ;;  %1943 = vmatpush2.msra.mxu0 %v7217_v63  ;;  %10329 = vst [vmem:[#allocation142_spill] sm:$0xff] %v7226_v1  ;;  %10330 = vst [vmem:[#allocation143_spill] sm:$0xff] %v7229_v53  ;;  %v7232_v0 = vld [vmem:[#allocation8 + $0x2f8] sm:$0xff]  ;;  %v7235_v63 = vld [vmem:[#allocation8 + $0x2c8] sm:$0xff] }
 0x594   :  { %2013 = vmatprep.subr.mxu1 %v7220_v59  ;;  %1944 = vmatprep.subr.mxu0 %v7223_v60  ;;  %10331 = vst [vmem:[#allocation144_spill] sm:$0xff] %v7232_v0  ;;  %10332 = vst [vmem:[#allocation145_spill] sm:$0xff] %v7235_v63  ;;  %v7238_v59 = vld [vmem:[#allocation8 + $0x2f0] sm:$0xff]  ;;  %v7241_v60 = vld [vmem:[#allocation8 + $0x2c0] sm:$0xff] }
 0x595   :  { %2014 = vmatpush2.msra.mxu1 %v7226_v1  ;;  %1945 = vmatpush2.msra.mxu0 %v7229_v53  ;;  %10333 = vst [vmem:[#allocation146_spill] sm:$0xff] %v7238_v59  ;;  %10334 = vst [vmem:[#allocation147_spill] sm:$0xff] %v7241_v60  ;;  %v7244_v1 = vld [vmem:[#allocation8 + $0x2d8] sm:$0xff]  ;;  %v7247_v53 = vld [vmem:[#allocation8 + $0x2a8] sm:$0xff] }
 0x596   :  { %2015 = vmatprep.subr.mxu1 %v7232_v0  ;;  %1946 = vmatprep.subr.mxu0 %v7235_v63  ;;  %10335 = vst [vmem:[#allocation148_spill] sm:$0xff] %v7244_v1  ;;  %10336 = vst [vmem:[#allocation149_spill] sm:$0xff] %v7247_v53  ;;  %v7250_v0 = vld [vmem:[#allocation8 + $0x2d0] sm:$0xff]  ;;  %v7253_v63 = vld [vmem:[#allocation8 + $0x2a0] sm:$0xff] }
 0x597   :  { %2016 = vmatpush2.msra.mxu1 %v7238_v59  ;;  %1947 = vmatpush2.msra.mxu0 %v7241_v60  ;;  %10337 = vst [vmem:[#allocation150_spill] sm:$0xff] %v7250_v0  ;;  %10338 = vst [vmem:[#allocation151_spill] sm:$0xff] %v7253_v63  ;;  %v7256_v59 = vld [vmem:[#allocation8 + $0x2b8] sm:$0xff]  ;;  %v7259_v60 = vld [vmem:[#allocation8 + $0x288] sm:$0xff] }
 0x598   :  { %2017 = vmatprep.subr.mxu1 %v7244_v1  ;;  %1948 = vmatprep.subr.mxu0 %v7247_v53  ;;  %10339 = vst [vmem:[#allocation152_spill] sm:$0xff] %v7256_v59  ;;  %10340 = vst [vmem:[#allocation153_spill] sm:$0xff] %v7259_v60  ;;  %v7262_v1 = vld [vmem:[#allocation8 + $0x2b0] sm:$0xff]  ;;  %v7265_v53 = vld [vmem:[#allocation8 + $0x280] sm:$0xff] }
 0x599   :  { %2018 = vmatpush2.msra.mxu1 %v7250_v0  ;;  %1949 = vmatpush2.msra.mxu0 %v7253_v63  ;;  %10341 = vst [vmem:[#allocation154_spill] sm:$0xff] %v7262_v1  ;;  %10342 = vst [vmem:[#allocation155_spill] sm:$0xff] %v7265_v53  ;;  %v7268_v0 = vld [vmem:[#allocation8 + $0x298] sm:$0xff]  ;;  %v7271_v63 = vld [vmem:[#allocation8 + $0x268] sm:$0xff] }
 0x59a   :  { %2019 = vmatprep.subr.mxu1 %v7256_v59  ;;  %1950 = vmatprep.subr.mxu0 %v7259_v60  ;;  %10343 = vst [vmem:[#allocation156_spill] sm:$0xff] %v7268_v0  ;;  %10344 = vst [vmem:[#allocation157_spill] sm:$0xff] %v7271_v63  ;;  %v7274_v59 = vld [vmem:[#allocation8 + $0x290] sm:$0xff]  ;;  %v7277_v60 = vld [vmem:[#allocation8 + $0x260] sm:$0xff] }
 0x59b   :  { %2020 = vmatpush2.msra.mxu1 %v7262_v1  ;;  %1951 = vmatpush2.msra.mxu0 %v7265_v53  ;;  %10345 = vst [vmem:[#allocation158_spill] sm:$0xff] %v7274_v59  ;;  %10346 = vst [vmem:[#allocation159_spill] sm:$0xff] %v7277_v60  ;;  %v7280_v1 = vld [vmem:[#allocation8 + $0x278] sm:$0xff]  ;;  %v7283_v53 = vld [vmem:[#allocation8 + $0x248] sm:$0xff] }
 0x59c   :  { %2021 = vmatprep.subr.mxu1 %v7268_v0  ;;  %1952 = vmatprep.subr.mxu0 %v7271_v63  ;;  %10347 = vst [vmem:[#allocation160_spill] sm:$0xff] %v7280_v1  ;;  %10348 = vst [vmem:[#allocation161_spill] sm:$0xff] %v7283_v53  ;;  %v7286_v0 = vld [vmem:[#allocation8 + $0x270] sm:$0xff]  ;;  %v7289_v63 = vld [vmem:[#allocation8 + $0x240] sm:$0xff] }
 0x59d   :  { %2022 = vmatpush2.msra.mxu1 %v7274_v59  ;;  %1953 = vmatpush2.msra.mxu0 %v7277_v60  ;;  %10349 = vst [vmem:[#allocation162_spill] sm:$0xff] %v7286_v0  ;;  %10350 = vst [vmem:[#allocation163_spill] sm:$0xff] %v7289_v63  ;;  %v7292_v59 = vld [vmem:[#allocation8 + $0x258] sm:$0xff]  ;;  %v7295_v60 = vld [vmem:[#allocation8 + $0x228] sm:$0xff] }
 0x59e   :  { %2023 = vmatprep.subr.mxu1 %v7280_v1  ;;  %1954 = vmatprep.subr.mxu0 %v7283_v53  ;;  %10351 = vst [vmem:[#allocation164_spill] sm:$0xff] %v7292_v59  ;;  %10352 = vst [vmem:[#allocation165_spill] sm:$0xff] %v7295_v60  ;;  %v7298_v1 = vld [vmem:[#allocation8 + $0x250] sm:$0xff]  ;;  %v7301_v53 = vld [vmem:[#allocation8 + $0x220] sm:$0xff] }
 0x59f   :  { %2024 = vmatpush2.msra.mxu1 %v7286_v0  ;;  %1955 = vmatpush2.msra.mxu0 %v7289_v63  ;;  %10353 = vst [vmem:[#allocation167_spill] sm:$0xff] %v7298_v1  ;;  %10354 = vst [vmem:[#allocation166_spill] sm:$0xff] %v7301_v53  ;;  %v7304_v0 = vld [vmem:[#allocation8 + $0x238] sm:$0xff]  ;;  %v7307_v63 = vld [vmem:[#allocation8 + $0x208] sm:$0xff] }
 0x5a0   :  { %2025 = vmatprep.subr.mxu1 %v7292_v59  ;;  %1956 = vmatprep.subr.mxu0 %v7295_v60  ;;  %10355 = vst [vmem:[#allocation168_spill] sm:$0xff] %v7304_v0  ;;  %10356 = vst [vmem:[#allocation169_spill] sm:$0xff] %v7307_v63  ;;  %v7310_v59 = vld [vmem:[#allocation8 + $0x230] sm:$0xff]  ;;  %v7313_v60 = vld [vmem:[#allocation8 + $0x200] sm:$0xff] }
 0x5a1   :  { %2026 = vmatpush2.msra.mxu1 %v7298_v1  ;;  %1957 = vmatpush2.msra.mxu0 %v7301_v53  ;;  %10357 = vst [vmem:[#allocation170_spill] sm:$0xff] %v7310_v59  ;;  %10358 = vst [vmem:[#allocation171_spill] sm:$0xff] %v7313_v60  ;;  %v7316_v1 = vld [vmem:[#allocation8 + $0x218] sm:$0xff]  ;;  %v7319_v53 = vld [vmem:[#allocation5 + $0x1e8] sm:$0xff] }
 0x5a2   :  { %2027 = vmatprep.subr.mxu1 %v7304_v0  ;;  %1958 = vmatprep.subr.mxu0 %v7307_v63  ;;  %10359 = vst [vmem:[#allocation172_spill] sm:$0xff] %v7316_v1  ;;  %10360 = vst [vmem:[#allocation173_spill] sm:$0xff] %v7319_v53  ;;  %v7322_v0 = vld [vmem:[#allocation8 + $0x210] sm:$0xff] }
 0x5a3   :  { %2028 = vmatpush2.msra.mxu1 %v7310_v59  ;;  %1959 = vmatpush2.msra.mxu0 %v7313_v60  ;;  %10361 = vst [vmem:[#allocation174_spill] sm:$0xff] %v7322_v0 }
 0x5a4   :  { %2029 = vmatprep.subr.mxu1 %v7316_v1  ;;  %2064 = vmatprep.subr.mxu0 %v7319_v53 }
 0x5a5   :  { %2030 = vmatpush2.msra.mxu1 %v7322_v0 }
 0x5a6   :  { %2135 = vmatprep.subr.mxu1 %v6657_v9 }
 0x5e3   :  { %v1628_v63 = vpop.f32.mrf.mxu0  ;;  %v1699_v61 = vpop.f32.mrf.mxu1 }
 0x5e4   :  { %v1629_v59 = vadd.f32 %v1628_v63, %v10162_v55  ;;  %v1700_v0 = vadd.f32 %v1699_v61, %v5606_v40 }
 0x5e5   :  { %v1630_v47 = vpop.f32.mrf.mxu0  ;;  %v1701_v54 = vpop.f32.mrf.mxu1 }
 0x5e6   :  { %v3209_v46 = vmul.f32 -1.442695, %v1629_v59  ;;  %v1631_v60 = vadd.f32 %v1630_v47, %v10163_v52  ;;  %v1702_v53 = vadd.f32 %v1701_v54, %v5601_v36 }
 0x5e8   :  { %3413 = vpow2.f32 %v3209_v46  ;;  %v3210_v1 = vmul.f32 -1.442695, %v1631_v60  ;;  %v3211_v43 = vmul.f32 -1.442695, %v1702_v53 }
 0x5ea   :  { %3415 = vpow2.f32 %v3210_v1 }
 0x5eb   :  { %3417 = vpow2.f32 %v3211_v43 }
 0x5f5   :  { %v3414_v23 = vpop.eup %3413 }
 0x5f6   :  { %v1707_v22 = vadd.f32 1.0, %v3414_v23 }
 0x5f7   :  { %v3416_v9 = vpop.eup %3415 }
 0x5f8   :  { %3419 = vrcp.f32 %v1707_v22  ;;  %v1713_v63 = vadd.f32 1.0, %v3416_v9  ;;  %v3418_v59 = vpop.eup %3417 }
 0x5f9   :  { %3421 = vtanh.f32 %v1700_v0  ;;  %v1720_v60 = vadd.f32 1.0, %v3418_v59 }
 0x5fa   :  { %3423 = vrcp.f32 %v1713_v63 }
 0x5fb   :  { %3425 = vrcp.f32 %v1720_v60 }
 0x605   :  { %v3420_v47 = vpop.eup %3419 }
 0x606   :  { %v3422_v46 = vpop.eup %3421 }
 0x607   :  { %v3424_v52 = vpop.eup %3423  ;;  %v1724_v1 = vmul.f32 %v3422_v46, %v3420_v47 }
 0x608   :  { %v1723_v55 = vmul.f32 %v3424_v52, %v6665_v7  ;;  %v3426_v23 = vpop.eup %3425 }
 0x60a   :  { %v7331_v54 = vadd.f32 %v1724_v1, %v1723_v55 }
 0x60c   :  { %3427 = vtanh.f32 %v7331_v54 }
 0x619   :  { %v3428_v61 = vpop.eup %3427 }
 0x61a   :  { %v1727_v43 = vmul.f32 %v3428_v61, %v3426_v23 }
 0x61c   :  { %1960 = vmatprep.mubr.f32.mxu0 %v1727_v43  ;;  %2031 = vmatprep.mubr.f32.mxu1 %v1727_v43 }
 0x623   :  { %v1796_v22 = vpop.f32.mrf.mxu0 }
 0x624   :  { %v1797_v53 = vadd.f32 %v1796_v22, %v9764_v15 }
 0x625   :  { %v1798_v0 = vpop.f32.mrf.mxu0  ;;  %v1867_v52 = vpop.f32.mrf.mxu1 }
 0x626   :  { %v3212_v9 = vmul.f32 -1.442695, %v1797_v53  ;;  %v1799_v63 = vadd.f32 %v1798_v0, %v9765_v19  ;;  %v1868_v47 = vadd.f32 %v1867_v52, %v5205_v48 }
 0x627   :  { %v1869_v55 = vpop.f32.mrf.mxu1 }
 0x628   :  { %3429 = vpow2.f32 %v3212_v9  ;;  %v3213_v59 = vmul.f32 -1.442695, %v1799_v63  ;;  %v1870_v7 = vadd.f32 %v1869_v55, %v5201_v51 }
 0x62a   :  { %3431 = vpow2.f32 %v3213_v59  ;;  %v3214_v46 = vmul.f32 -1.442695, %v1870_v7 }
 0x62b   :  { %3433 = vtanh.f32 %v1868_v47 }
 0x62c   :  { %3435 = vpow2.f32 %v3214_v46  ;;  %v7342_v46 = vld [vmem:[#allocation5 + $0x1e0] sm:$0xff] }
 0x635   :  { %v3430_v60 = vpop.eup %3429 }
 0x636   :  { %v1875_v1 = vadd.f32 1.0, %v3430_v60  ;;  %v7345_v60 = vld [vmem:[#allocation5 + $0x1c8] sm:$0xff] }
 0x637   :  { %v3432_v23 = vpop.eup %3431 }
 0x638   :  { %3437 = vrcp.f32 %v1875_v1  ;;  %v1881_v61 = vadd.f32 1.0, %v3432_v23  ;;  %v3434_v43 = vpop.eup %3433  ;;  %v7351_v1 = vld [vmem:[#allocation5 + $0x1f0] sm:$0xff]  ;;  %v7354_v23 = vld [vmem:[#allocation5 + $0x1a8] sm:$0xff] }
 0x639   :  { %v3436_v22 = vpop.eup %3435 }
 0x63a   :  { %3439 = vrcp.f32 %v1881_v61  ;;  %v1888_v9 = vadd.f32 1.0, %v3436_v22  ;;  %v7357_v61 = vld [vmem:[#allocation5 + $0x1d8] sm:$0xff]  ;;  %v7363_v22 = vld [vmem:[#allocation5 + $0x1d0] sm:$0xff] }
 0x63c   :  { %3441 = vrcp.f32 %v1888_v9  ;;  %v7372_v9 = vld [vmem:[#allocation5 + $0x180] sm:$0xff] }
 0x63d   :  { %10362 = vst [vmem:[#allocation175_spill] sm:$0xff] %v7372_v9 }
 0x645   :  { %v3438_v53 = vpop.eup %3437 }
 0x646   :  { %v1892_v59 = vmul.f32 %v3438_v53, %v3434_v43  ;;  %v7360_v43 = vld [vmem:[#allocation5 + $0x1a0] sm:$0xff]  ;;  %v7366_v53 = vld [vmem:[#allocation5 + $0x188] sm:$0xff] }
 0x647   :  { %v3440_v0 = vpop.eup %3439 }
 0x648   :  { %v1891_v63 = vmul.f32 %v3440_v0, %v6673_v49  ;;  %v7348_v49 = vld [vmem:[#allocation5 + $0x1c0] sm:$0xff]  ;;  %v7369_v0 = vld [vmem:[#allocation5 + $0x1b8] sm:$0xff] }
 0x649   :  { %v3442_v52 = vpop.eup %3441 }
 0x64a   :  { %v7339_v55 = vadd.f32 %v1892_v59, %v1891_v63  ;;  %v7375_v63 = vld [vmem:[#allocation5 + $0x1b0] sm:$0xff]  ;;  %v7378_v59 = vld [vmem:[#allocation5 + $0x168] sm:$0xff] }
 0x64b   :  { %10363 = vst [vmem:[#allocation176_spill] sm:$0xff] %v7375_v63  ;;  %10364 = vst [vmem:[#allocation177_spill] sm:$0xff] %v7378_v59 }
 0x64c   :  { %3443 = vtanh.f32 %v7339_v55 }
 0x659   :  { %v3444_v7 = vpop.eup %3443 }
 0x65a   :  { %v1895_v47 = vmul.f32 %v3444_v7, %v3442_v52  ;;  %v7381_v52 = vld [vmem:[#allocation5 + $0x198] sm:$0xff]  ;;  %v7384_v7 = vld [vmem:[#allocation5 + $0x160] sm:$0xff] }
 0x65b   :  { %10365 = vst [vmem:[#allocation178_spill] sm:$0xff] %v7381_v52  ;;  %10366 = vst [vmem:[#allocation179_spill] sm:$0xff] %v7384_v7 }
 0x65c   :  { %1961 = vmatmul.mubr.f32.vlgmr.msra.gmra.mxu0 %v1895_v47  ;;  %2032 = vmatmul.mubr.f32.vlgmr.msra.gmra.mxu1 %v1895_v47 }
 0x65d   :  { %2065 = vmatpush1.msra.mxu0 %v7342_v46  ;;  %2128 = vmatprep.mubr.f32.mxu0 %v1895_v47 }
 0x65e   :  { %2066 = vmatprep.subr.mxu0 %v7345_v60  ;;  %2199 = vmatprep.mubr.f32.mxu1 %v1895_v47  ;;  %v7387_v47 = vld [vmem:[#allocation5 + $0x190] sm:$0xff] }
 0x65f   :  { %2067 = vmatpush1.msra.mxu0 %v7348_v49  ;;  %2136 = vmatpush1.msra.mxu1 %v7351_v1  ;;  %10367 = vst [vmem:[#allocation180_spill] sm:$0xff] %v7387_v47 }
 0x660   :  { %2068 = vmatprep.subr.mxu0 %v7354_v23  ;;  %2137 = vmatprep.subr.mxu1 %v7357_v61 }
 0x661   :  { %2069 = vmatpush1.msra.mxu0 %v7360_v43  ;;  %2138 = vmatpush1.msra.mxu1 %v7363_v22 }
 0x662   :  { %2070 = vmatprep.subr.mxu0 %v7366_v53  ;;  %2139 = vmatprep.subr.mxu1 %v7369_v0 }
 0x663   :  { %2071 = vmatpush1.msra.mxu0 %v7372_v9  ;;  %2140 = vmatpush1.msra.mxu1 %v7375_v63  ;;  %v7390_v9 = vld [vmem:[#allocation5 + $0x148] sm:$0xff]  ;;  %v7393_v63 = vld [vmem:[#allocation5 + $0x178] sm:$0xff] }
 0x664   :  { %2072 = vmatprep.subr.mxu0 %v7378_v59  ;;  %2141 = vmatprep.subr.mxu1 %v7381_v52  ;;  %10368 = vst [vmem:[#allocation181_spill] sm:$0xff] %v7390_v9  ;;  %10369 = vst [vmem:[#allocation182_spill] sm:$0xff] %v7393_v63  ;;  %v7396_v59 = vld [vmem:[#allocation5 + $0x140] sm:$0xff]  ;;  %v7399_v52 = vld [vmem:[#allocation5 + $0x170] sm:$0xff] }
 0x665   :  { %2073 = vmatpush1.msra.mxu0 %v7384_v7  ;;  %2142 = vmatpush1.msra.mxu1 %v7387_v47  ;;  %10370 = vst [vmem:[#allocation183_spill] sm:$0xff] %v7396_v59  ;;  %10371 = vst [vmem:[#allocation184_spill] sm:$0xff] %v7399_v52  ;;  %v7402_v7 = vld [vmem:[#allocation5 + $0x128] sm:$0xff]  ;;  %v7405_v47 = vld [vmem:[#allocation5 + $0x158] sm:$0xff] }
 0x666   :  { %2074 = vmatprep.subr.mxu0 %v7390_v9  ;;  %2143 = vmatprep.subr.mxu1 %v7393_v63  ;;  %10372 = vst [vmem:[#allocation185_spill] sm:$0xff] %v7402_v7  ;;  %10373 = vst [vmem:[#allocation186_spill] sm:$0xff] %v7405_v47  ;;  %v7408_v9 = vld [vmem:[#allocation5 + $0x120] sm:$0xff]  ;;  %v7411_v63 = vld [vmem:[#allocation5 + $0x150] sm:$0xff] }
 0x667   :  { %2075 = vmatpush1.msra.mxu0 %v7396_v59  ;;  %2144 = vmatpush1.msra.mxu1 %v7399_v52  ;;  %10374 = vst [vmem:[#allocation187_spill] sm:$0xff] %v7408_v9  ;;  %10375 = vst [vmem:[#allocation188_spill] sm:$0xff] %v7411_v63  ;;  %v7414_v59 = vld [vmem:[#allocation5 + $0x108] sm:$0xff]  ;;  %v7417_v52 = vld [vmem:[#allocation5 + $0x138] sm:$0xff] }
 0x668   :  { %2076 = vmatprep.subr.mxu0 %v7402_v7  ;;  %2145 = vmatprep.subr.mxu1 %v7405_v47  ;;  %10376 = vst [vmem:[#allocation189_spill] sm:$0xff] %v7414_v59  ;;  %10377 = vst [vmem:[#allocation190_spill] sm:$0xff] %v7417_v52  ;;  %v7420_v7 = vld [vmem:[#allocation5 + $0x100] sm:$0xff]  ;;  %v7423_v47 = vld [vmem:[#allocation5 + $0x130] sm:$0xff] }
 0x669   :  { %2077 = vmatpush1.msra.mxu0 %v7408_v9  ;;  %2146 = vmatpush1.msra.mxu1 %v7411_v63  ;;  %10378 = vst [vmem:[#allocation191_spill] sm:$0xff] %v7420_v7  ;;  %10379 = vst [vmem:[#allocation192_spill] sm:$0xff] %v7423_v47  ;;  %v7426_v9 = vld [vmem:[#allocation5 + $0xe8] sm:$0xff]  ;;  %v7429_v63 = vld [vmem:[#allocation5 + $0x118] sm:$0xff] }
 0x66a   :  { %2078 = vmatprep.subr.mxu0 %v7414_v59  ;;  %2147 = vmatprep.subr.mxu1 %v7417_v52  ;;  %10380 = vst [vmem:[#allocation193_spill] sm:$0xff] %v7426_v9  ;;  %10381 = vst [vmem:[#allocation194_spill] sm:$0xff] %v7429_v63  ;;  %v7432_v59 = vld [vmem:[#allocation5 + $0xe0] sm:$0xff]  ;;  %v7435_v52 = vld [vmem:[#allocation5 + $0x110] sm:$0xff] }
 0x66b   :  { %2079 = vmatpush1.msra.mxu0 %v7420_v7  ;;  %2148 = vmatpush1.msra.mxu1 %v7423_v47  ;;  %10382 = vst [vmem:[#allocation195_spill] sm:$0xff] %v7432_v59  ;;  %10383 = vst [vmem:[#allocation196_spill] sm:$0xff] %v7435_v52  ;;  %v7438_v7 = vld [vmem:[#allocation5 + $0xc8] sm:$0xff]  ;;  %v7441_v47 = vld [vmem:[#allocation5 + $0xf8] sm:$0xff] }
 0x66c   :  { %2080 = vmatprep.subr.mxu0 %v7426_v9  ;;  %2149 = vmatprep.subr.mxu1 %v7429_v63  ;;  %10384 = vst [vmem:[#allocation197_spill] sm:$0xff] %v7438_v7  ;;  %10385 = vst [vmem:[#allocation198_spill] sm:$0xff] %v7441_v47  ;;  %v7444_v9 = vld [vmem:[#allocation5 + $0xc0] sm:$0xff]  ;;  %v7447_v63 = vld [vmem:[#allocation5 + $0xf0] sm:$0xff] }
 0x66d   :  { %2081 = vmatpush1.msra.mxu0 %v7432_v59  ;;  %2150 = vmatpush1.msra.mxu1 %v7435_v52  ;;  %10386 = vst [vmem:[#allocation199_spill] sm:$0xff] %v7444_v9  ;;  %10387 = vst [vmem:[#allocation200_spill] sm:$0xff] %v7447_v63  ;;  %v7450_v59 = vld [vmem:[#allocation5 + $0xa8] sm:$0xff]  ;;  %v7453_v52 = vld [vmem:[#allocation5 + $0xd8] sm:$0xff] }
 0x66e   :  { %2082 = vmatprep.subr.mxu0 %v7438_v7  ;;  %2151 = vmatprep.subr.mxu1 %v7441_v47  ;;  %10388 = vst [vmem:[#allocation201_spill] sm:$0xff] %v7450_v59  ;;  %10389 = vst [vmem:[#allocation202_spill] sm:$0xff] %v7453_v52  ;;  %v7456_v7 = vld [vmem:[#allocation5 + $0xa0] sm:$0xff]  ;;  %v7459_v47 = vld [vmem:[#allocation5 + $0xd0] sm:$0xff] }
 0x66f   :  { %2083 = vmatpush1.msra.mxu0 %v7444_v9  ;;  %2152 = vmatpush1.msra.mxu1 %v7447_v63  ;;  %10390 = vst [vmem:[#allocation203_spill] sm:$0xff] %v7456_v7  ;;  %10391 = vst [vmem:[#allocation204_spill] sm:$0xff] %v7459_v47  ;;  %v7462_v9 = vld [vmem:[#allocation5 + $0x88] sm:$0xff]  ;;  %v7465_v63 = vld [vmem:[#allocation5 + $0xb8] sm:$0xff] }
 0x670   :  { %2084 = vmatprep.subr.mxu0 %v7450_v59  ;;  %2153 = vmatprep.subr.mxu1 %v7453_v52  ;;  %10392 = vst [vmem:[#allocation205_spill] sm:$0xff] %v7462_v9  ;;  %10393 = vst [vmem:[#allocation206_spill] sm:$0xff] %v7465_v63  ;;  %v7468_v59 = vld [vmem:[#allocation5 + $0x80] sm:$0xff]  ;;  %v7471_v52 = vld [vmem:[#allocation5 + $0xb0] sm:$0xff] }
 0x671   :  { %2085 = vmatpush1.msra.mxu0 %v7456_v7  ;;  %2154 = vmatpush1.msra.mxu1 %v7459_v47  ;;  %10394 = vst [vmem:[#allocation207_spill] sm:$0xff] %v7468_v59  ;;  %10395 = vst [vmem:[#allocation208_spill] sm:$0xff] %v7471_v52  ;;  %v7474_v7 = vld [vmem:[#allocation5 + $0x68] sm:$0xff]  ;;  %v7477_v47 = vld [vmem:[#allocation5 + $0x98] sm:$0xff] }
 0x672   :  { %2086 = vmatprep.subr.mxu0 %v7462_v9  ;;  %2155 = vmatprep.subr.mxu1 %v7465_v63  ;;  %10396 = vst [vmem:[#allocation209_spill] sm:$0xff] %v7474_v7  ;;  %10397 = vst [vmem:[#allocation210_spill] sm:$0xff] %v7477_v47  ;;  %v7480_v9 = vld [vmem:[#allocation5 + $0x60] sm:$0xff]  ;;  %v7483_v63 = vld [vmem:[#allocation5 + $0x90] sm:$0xff] }
 0x673   :  { %2087 = vmatpush1.msra.mxu0 %v7468_v59  ;;  %2156 = vmatpush1.msra.mxu1 %v7471_v52  ;;  %10398 = vst [vmem:[#allocation211_spill] sm:$0xff] %v7480_v9  ;;  %10399 = vst [vmem:[#allocation212_spill] sm:$0xff] %v7483_v63  ;;  %v7486_v59 = vld [vmem:[#allocation5 + $0x48] sm:$0xff]  ;;  %v7489_v52 = vld [vmem:[#allocation5 + $0x78] sm:$0xff] }
 0x674   :  { %2088 = vmatprep.subr.mxu0 %v7474_v7  ;;  %2157 = vmatprep.subr.mxu1 %v7477_v47  ;;  %10400 = vst [vmem:[#allocation213_spill] sm:$0xff] %v7489_v52  ;;  %v7492_v7 = vld [vmem:[#allocation5 + $0x40] sm:$0xff]  ;;  %v7495_v47 = vld [vmem:[#allocation5 + $0x70] sm:$0xff] }
 0x675   :  { %2089 = vmatpush1.msra.mxu0 %v7480_v9  ;;  %2158 = vmatpush1.msra.mxu1 %v7483_v63  ;;  %10401 = vst [vmem:[#allocation214_spill] sm:$0xff] %v7492_v7  ;;  %v7498_v9 = vld [vmem:[#allocation5 + $0x28] sm:$0xff]  ;;  %v7502_v63 = vld [vmem:[#allocation5 + $0x20] sm:$0xff] }
 0x676   :  { %2090 = vmatprep.subr.mxu0 %v7486_v59  ;;  %2159 = vmatprep.subr.mxu1 %v7489_v52  ;;  %10402 = vst [vmem:[#allocation215_spill] sm:$0xff] %v7498_v9  ;;  %v7506_v52 = vld [vmem:[#allocation5 + $0x8] sm:$0xff] }
 0x677   :  { %2091 = vmatpush1.msra.mxu0 %v7492_v7  ;;  %2160 = vmatpush1.msra.mxu1 %v7495_v47  ;;  %v7510_v7 = vld [vmem:[#allocation5] sm:$0xff] }
 0x678   :  { %2092 = vmatprep.subr.mxu0 %v7498_v9  ;;  %2161 = vmatprep.subr.mxu1 %v6729_v42  ;;  %v7514_v9 = vld [vmem:[#allocation5 + $0x3e8] sm:$0xff]  ;;  %v7518_v42 = vld [vmem:[#allocation5 + $0x3e0] sm:$0xff] }
 0x679   :  { %2093 = vmatpush1.msra.mxu0 %v7502_v63  ;;  %2162 = vmatpush1.msra.mxu1 %v6733_v44  ;;  %v10403_v44 = vld [vmem:[#allocation21_spill] sm:$0xff] }
 0x67a   :  { %2094 = vmatprep.subr.mxu0 %v7506_v52  ;;  %2163 = vmatprep.subr.mxu1 %v6737_v34  ;;  %v10404_v34 = vld [vmem:[#allocation17_spill] sm:$0xff] }
 0x67b   :  { %2095 = vmatpush1.msra.mxu0 %v7510_v7  ;;  %2164 = vmatpush1.msra.mxu1 %v6741_v37  ;;  %v10405_v37 = vld [vmem:[#allocation23_spill] sm:$0xff] }
 0x67c   :  { %2096 = vmatprep.subr.mxu0 %v7514_v9  ;;  %2165 = vmatprep.subr.mxu1 %v6745_v57  ;;  %v10406_v57 = vld [vmem:[#allocation18_spill] sm:$0xff] }
 0x67d   :  { %2097 = vmatpush2.msra.mxu0 %v7518_v42  ;;  %2166 = vmatpush1.msra.mxu1 %v6749_v33  ;;  %v10407_v33 = vld [vmem:[#allocation25_spill] sm:$0xff] }
 0x67e   :  { %2098 = vmatprep.subr.mxu0 %v6752_v27  ;;  %2167 = vmatprep.subr.mxu1 %v6755_v10  ;;  %v10408_v27 = vld [vmem:[#allocation20_spill] sm:$0xff]  ;;  %v10409_v10 = vld [vmem:[#allocation27_spill] sm:$0xff] }
 0x67f   :  { %2099 = vmatpush2.msra.mxu0 %v6758_v58  ;;  %2168 = vmatpush2.msra.mxu1 %v6761_v21  ;;  %v10410_v58 = vld [vmem:[#allocation22_spill] sm:$0xff]  ;;  %v10411_v21 = vld [vmem:[#allocation29_spill] sm:$0xff] }
 0x680   :  { %2100 = vmatprep.subr.mxu0 %v6764_v41  ;;  %2169 = vmatprep.subr.mxu1 %v6767_v50  ;;  %v10412_v41 = vld [vmem:[#allocation24_spill] sm:$0xff]  ;;  %v10413_v50 = vld [vmem:[#allocation31_spill] sm:$0xff] }
 0x681   :  { %2101 = vmatpush2.msra.mxu0 %v6770_v25  ;;  %2170 = vmatpush2.msra.mxu1 %v6773_v31  ;;  %v10414_v25 = vld [vmem:[#allocation26_spill] sm:$0xff]  ;;  %v10415_v31 = vld [vmem:[#allocation33_spill] sm:$0xff] }
 0x682   :  { %2102 = vmatprep.subr.mxu0 %v6776_v32  ;;  %2171 = vmatprep.subr.mxu1 %v6779_v45  ;;  %v10416_v32 = vld [vmem:[#allocation28_spill] sm:$0xff]  ;;  %v10417_v45 = vld [vmem:[#allocation34_spill] sm:$0xff] }
 0x683   :  { %2103 = vmatpush2.msra.mxu0 %v6782_v35  ;;  %2172 = vmatpush2.msra.mxu1 %v6785_v26  ;;  %v10418_v35 = vld [vmem:[#allocation30_spill] sm:$0xff]  ;;  %v10419_v26 = vld [vmem:[#allocation35_spill] sm:$0xff] }
 0x684   :  { %2104 = vmatprep.subr.mxu0 %v6788_v30  ;;  %2173 = vmatprep.subr.mxu1 %v6791_v28  ;;  %v10420_v30 = vld [vmem:[#allocation32_spill] sm:$0xff]  ;;  %v10421_v28 = vld [vmem:[#allocation37_spill] sm:$0xff] }
 0x685   :  { %2105 = vmatpush2.msra.mxu0 %v6794_v24  ;;  %2174 = vmatpush2.msra.mxu1 %v6797_v38  ;;  %v10422_v24 = vld [vmem:[#allocation39_spill] sm:$0xff]  ;;  %v10423_v38 = vld [vmem:[#allocation41_spill] sm:$0xff] }
 0x686   :  { %2106 = vmatprep.subr.mxu0 %v6800_v39  ;;  %2175 = vmatprep.subr.mxu1 %v6803_v62  ;;  %v2063_v39 = vld [vmem:[#allocation2 + $0x28] sm:$0xff] }
 0x687   :  { %2107 = vmatpush2.msra.mxu0 %v6806_v56  ;;  %2176 = vmatpush2.msra.mxu1 %v6809_v2  ;;  %v10424_v62 = vld [vmem:[#allocation36_spill] sm:$0xff]  ;;  %v10425_v56 = vld [vmem:[#allocation38_spill] sm:$0xff]  ;;  %v10426_v2 = vld [vmem:[#allocation43_spill] sm:$0xff] }
 0x688   :  { %2108 = vmatprep.subr.mxu0 %v6812_v3  ;;  %2177 = vmatprep.subr.mxu1 %v6815_v4  ;;  %v10427_v3 = vld [vmem:[#allocation40_spill] sm:$0xff] }
 0x689   :  { %2109 = vmatpush2.msra.mxu0 %v6818_v5  ;;  %2178 = vmatpush2.msra.mxu1 %v6821_v6  ;;  %v10428_v4 = vld [vmem:[#allocation44_spill] sm:$0xff]  ;;  %v10429_v5 = vld [vmem:[#allocation42_spill] sm:$0xff] }
 0x68a   :  { %2110 = vmatprep.subr.mxu0 %v6824_v8  ;;  %2179 = vmatprep.subr.mxu1 %v6827_v11  ;;  %v10430_v6 = vld [vmem:[#allocation46_spill] sm:$0xff]  ;;  %v10431_v8 = vld [vmem:[#allocation45_spill] sm:$0xff]  ;;  %v10432_v11 = vld [vmem:[#allocation48_spill] sm:$0xff] }
 0x68b   :  { %2111 = vmatpush2.msra.mxu0 %v6830_v12  ;;  %2180 = vmatpush2.msra.mxu1 %v6833_v13  ;;  %v10433_v12 = vld [vmem:[#allocation47_spill] sm:$0xff]  ;;  %v10434_v13 = vld [vmem:[#allocation50_spill] sm:$0xff] }
 0x68c   :  { %2112 = vmatprep.subr.mxu0 %v6836_v14  ;;  %2181 = vmatprep.subr.mxu1 %v6839_v16  ;;  %v10435_v14 = vld [vmem:[#allocation49_spill] sm:$0xff]  ;;  %v10436_v16 = vld [vmem:[#allocation52_spill] sm:$0xff] }
 0x68d   :  { %2113 = vmatpush2.msra.mxu0 %v6842_v17  ;;  %2182 = vmatpush2.msra.mxu1 %v6845_v18  ;;  %v10437_v17 = vld [vmem:[#allocation51_spill] sm:$0xff]  ;;  %v10438_v18 = vld [vmem:[#allocation53_spill] sm:$0xff] }
 0x68e   :  { %2114 = vmatprep.subr.mxu0 %v6848_v20  ;;  %2183 = vmatprep.subr.mxu1 %v6851_v29  ;;  %v10439_v20 = vld [vmem:[#allocation54_spill] sm:$0xff]  ;;  %v10440_v29 = vld [vmem:[#allocation55_spill] sm:$0xff] }
 0x68f   :  { %2115 = vmatpush2.msra.mxu0 %v10403_v44  ;;  %2184 = vmatpush2.msra.mxu1 %v10404_v34  ;;  %v10441_v44 = vld [vmem:[#allocation56_spill] sm:$0xff]  ;;  %v10442_v34 = vld [vmem:[#allocation57_spill] sm:$0xff] }
 0x690   :  { %2116 = vmatprep.subr.mxu0 %v10405_v37  ;;  %2185 = vmatprep.subr.mxu1 %v10406_v57  ;;  %v10443_v37 = vld [vmem:[#allocation58_spill] sm:$0xff]  ;;  %v10444_v57 = vld [vmem:[#allocation59_spill] sm:$0xff] }
 0x691   :  { %2117 = vmatpush2.msra.mxu0 %v10407_v33  ;;  %2186 = vmatpush2.msra.mxu1 %v10408_v27  ;;  %v10445_v33 = vld [vmem:[#allocation60_spill] sm:$0xff]  ;;  %v10446_v27 = vld [vmem:[#allocation61_spill] sm:$0xff] }
 0x692   :  { %2118 = vmatprep.subr.mxu0 %v10409_v10  ;;  %2187 = vmatprep.subr.mxu1 %v10410_v58  ;;  %v10447_v10 = vld [vmem:[#allocation62_spill] sm:$0xff]  ;;  %v10448_v58 = vld [vmem:[#allocation63_spill] sm:$0xff] }
 0x693   :  { %2119 = vmatpush2.msra.mxu0 %v10411_v21  ;;  %2188 = vmatpush2.msra.mxu1 %v10412_v41  ;;  %v10449_v21 = vld [vmem:[#allocation64_spill] sm:$0xff]  ;;  %v10450_v41 = vld [vmem:[#allocation65_spill] sm:$0xff] }
 0x694   :  { %2120 = vmatprep.subr.mxu0 %v10413_v50  ;;  %2189 = vmatprep.subr.mxu1 %v10414_v25  ;;  %v10451_v50 = vld [vmem:[#allocation66_spill] sm:$0xff]  ;;  %v10452_v25 = vld [vmem:[#allocation67_spill] sm:$0xff] }
 0x695   :  { %2121 = vmatpush2.msra.mxu0 %v10415_v31  ;;  %2190 = vmatpush2.msra.mxu1 %v10416_v32  ;;  %v10453_v31 = vld [vmem:[#allocation68_spill] sm:$0xff]  ;;  %v10454_v32 = vld [vmem:[#allocation69_spill] sm:$0xff] }
 0x696   :  { %2122 = vmatprep.subr.mxu0 %v10417_v45  ;;  %2191 = vmatprep.subr.mxu1 %v10418_v35  ;;  %v10455_v45 = vld [vmem:[#allocation70_spill] sm:$0xff]  ;;  %v10456_v35 = vld [vmem:[#allocation71_spill] sm:$0xff] }
 0x697   :  { %2123 = vmatpush2.msra.mxu0 %v10419_v26  ;;  %2192 = vmatpush2.msra.mxu1 %v10420_v30  ;;  %v10457_v26 = vld [vmem:[#allocation72_spill] sm:$0xff]  ;;  %v10458_v30 = vld [vmem:[#allocation73_spill] sm:$0xff] }
 0x698   :  { %2124 = vmatprep.subr.mxu0 %v10421_v28  ;;  %2193 = vmatprep.subr.mxu1 %v10422_v24  ;;  %v10459_v28 = vld [vmem:[#allocation74_spill] sm:$0xff]  ;;  %v10460_v24 = vld [vmem:[#allocation75_spill] sm:$0xff] }
 0x699   :  { %2125 = vmatpush2.msra.mxu0 %v10423_v38  ;;  %2194 = vmatpush2.msra.mxu1 %v10424_v62  ;;  %v10461_v38 = vld [vmem:[#allocation76_spill] sm:$0xff]  ;;  %v10463_v62 = vld [vmem:[#allocation78_spill] sm:$0xff] }
 0x69a   :  { %2126 = vmatprep.subr.mxu0 %v10425_v56  ;;  %2195 = vmatprep.subr.mxu1 %v10426_v2  ;;  %v10464_v56 = vld [vmem:[#allocation79_spill] sm:$0xff]  ;;  %v10465_v2 = vld [vmem:[#allocation80_spill] sm:$0xff] }
 0x69b   :  { %2127 = vmatpush2.msra.mxu0 %v10427_v3  ;;  %2196 = vmatpush2.msra.mxu1 %v10428_v4  ;;  %v10466_v3 = vld [vmem:[#allocation81_spill] sm:$0xff]  ;;  %v10467_v4 = vld [vmem:[#allocation82_spill] sm:$0xff] }
 0x69c   :  { %2129 = vmatmul.mubr.f32.vlgmr.msra.gmra.mxu0 %v2063_v39  ;;  %2197 = vmatprep.subr.mxu1 %v10429_v5  ;;  %v10468_v5 = vld [vmem:[#allocation83_spill] sm:$0xff] }
 0x69d   :  { %2198 = vmatpush2.msra.mxu1 %v10430_v6  ;;  %2230 = vmatprep.subr.mxu0 %v10431_v8  ;;  %v10469_v6 = vld [vmem:[#allocation84_spill] sm:$0xff]  ;;  %v10470_v8 = vld [vmem:[#allocation85_spill] sm:$0xff] }
 0x69e   :  { %2200 = vmatmul.mubr.f32.vlgmr.msra.gmra.mxu1 %v2063_v39  ;;  %2231 = vmatpush1.msra.mxu0 %v10432_v11  ;;  %v10462_v39 = vld [vmem:[#allocation77_spill] sm:$0xff]  ;;  %v10471_v11 = vld [vmem:[#allocation86_spill] sm:$0xff] }
 0x69f   :  { %2301 = vmatprep.subr.mxu1 %v10433_v12  ;;  %2232 = vmatprep.subr.mxu0 %v10434_v13  ;;  %v10472_v12 = vld [vmem:[#allocation87_spill] sm:$0xff]  ;;  %v10473_v13 = vld [vmem:[#allocation88_spill] sm:$0xff] }
 0x6a0   :  { %2302 = vmatpush1.msra.mxu1 %v10435_v14  ;;  %2233 = vmatpush1.msra.mxu0 %v10436_v16  ;;  %v10474_v14 = vld [vmem:[#allocation89_spill] sm:$0xff]  ;;  %v10475_v16 = vld [vmem:[#allocation90_spill] sm:$0xff] }
 0x6a1   :  { %2303 = vmatprep.subr.mxu1 %v10437_v17  ;;  %2234 = vmatprep.subr.mxu0 %v10438_v18  ;;  %v10476_v17 = vld [vmem:[#allocation91_spill] sm:$0xff]  ;;  %v10477_v18 = vld [vmem:[#allocation92_spill] sm:$0xff] }
 0x6a2   :  { %2304 = vmatpush1.msra.mxu1 %v10439_v20  ;;  %2235 = vmatpush1.msra.mxu0 %v10440_v29  ;;  %v10478_v20 = vld [vmem:[#allocation93_spill] sm:$0xff]  ;;  %v10479_v29 = vld [vmem:[#allocation94_spill] sm:$0xff] }
 0x6a3   :  { %2305 = vmatprep.subr.mxu1 %v10441_v44  ;;  %2236 = vmatprep.subr.mxu0 %v10442_v34  ;;  %v10480_v44 = vld [vmem:[#allocation95_spill] sm:$0xff]  ;;  %v10481_v34 = vld [vmem:[#allocation96_spill] sm:$0xff] }
 0x6a4   :  { %2306 = vmatpush1.msra.mxu1 %v10443_v37  ;;  %2237 = vmatpush1.msra.mxu0 %v10444_v57  ;;  %v10482_v37 = vld [vmem:[#allocation97_spill] sm:$0xff]  ;;  %v10483_v57 = vld [vmem:[#allocation98_spill] sm:$0xff] }
 0x6a5   :  { %2307 = vmatprep.subr.mxu1 %v10445_v33  ;;  %2238 = vmatprep.subr.mxu0 %v10446_v27  ;;  %v10484_v33 = vld [vmem:[#allocation99_spill] sm:$0xff]  ;;  %v10485_v27 = vld [vmem:[#allocation100_spill] sm:$0xff] }
 0x6a6   :  { %2308 = vmatpush1.msra.mxu1 %v10447_v10  ;;  %2239 = vmatpush1.msra.mxu0 %v10448_v58  ;;  %v10486_v10 = vld [vmem:[#allocation101_spill] sm:$0xff]  ;;  %v10487_v58 = vld [vmem:[#allocation102_spill] sm:$0xff] }
 0x6a7   :  { %2309 = vmatprep.subr.mxu1 %v10449_v21  ;;  %2240 = vmatprep.subr.mxu0 %v10450_v41  ;;  %v10488_v21 = vld [vmem:[#allocation103_spill] sm:$0xff]  ;;  %v10489_v41 = vld [vmem:[#allocation104_spill] sm:$0xff] }
 0x6a8   :  { %2310 = vmatpush1.msra.mxu1 %v10451_v50  ;;  %2241 = vmatpush1.msra.mxu0 %v10452_v25  ;;  %v10490_v50 = vld [vmem:[#allocation105_spill] sm:$0xff]  ;;  %v10491_v25 = vld [vmem:[#allocation106_spill] sm:$0xff] }
 0x6a9   :  { %2311 = vmatprep.subr.mxu1 %v10453_v31  ;;  %2242 = vmatprep.subr.mxu0 %v10454_v32  ;;  %v10492_v31 = vld [vmem:[#allocation107_spill] sm:$0xff]  ;;  %v10493_v32 = vld [vmem:[#allocation108_spill] sm:$0xff] }
 0x6aa   :  { %2312 = vmatpush1.msra.mxu1 %v10455_v45  ;;  %2243 = vmatpush1.msra.mxu0 %v10456_v35  ;;  %v10494_v45 = vld [vmem:[#allocation109_spill] sm:$0xff]  ;;  %v10495_v35 = vld [vmem:[#allocation110_spill] sm:$0xff] }
 0x6ab   :  { %2313 = vmatprep.subr.mxu1 %v10457_v26  ;;  %2244 = vmatprep.subr.mxu0 %v10458_v30  ;;  %v10496_v26 = vld [vmem:[#allocation111_spill] sm:$0xff]  ;;  %v10497_v30 = vld [vmem:[#allocation112_spill] sm:$0xff] }
 0x6ac   :  { %2314 = vmatpush1.msra.mxu1 %v10459_v28  ;;  %2245 = vmatpush1.msra.mxu0 %v10460_v24  ;;  %v10498_v28 = vld [vmem:[#allocation113_spill] sm:$0xff]  ;;  %v10499_v24 = vld [vmem:[#allocation114_spill] sm:$0xff] }
 0x6ad   :  { %2315 = vmatprep.subr.mxu1 %v10461_v38  ;;  %2246 = vmatprep.subr.mxu0 %v10462_v39  ;;  %v10500_v38 = vld [vmem:[#allocation115_spill] sm:$0xff]  ;;  %v10501_v39 = vld [vmem:[#allocation116_spill] sm:$0xff] }
 0x6ae   :  { %2316 = vmatpush1.msra.mxu1 %v10463_v62  ;;  %2247 = vmatpush1.msra.mxu0 %v10464_v56  ;;  %v10502_v62 = vld [vmem:[#allocation117_spill] sm:$0xff]  ;;  %v10503_v56 = vld [vmem:[#allocation118_spill] sm:$0xff] }
 0x6af   :  { %2317 = vmatprep.subr.mxu1 %v10465_v2  ;;  %2248 = vmatprep.subr.mxu0 %v10466_v3  ;;  %v10504_v2 = vld [vmem:[#allocation119_spill] sm:$0xff]  ;;  %v10505_v3 = vld [vmem:[#allocation120_spill] sm:$0xff] }
 0x6b0   :  { %2318 = vmatpush1.msra.mxu1 %v10467_v4  ;;  %2249 = vmatpush1.msra.mxu0 %v10468_v5  ;;  %v10506_v4 = vld [vmem:[#allocation121_spill] sm:$0xff]  ;;  %v10507_v5 = vld [vmem:[#allocation122_spill] sm:$0xff] }
 0x6b1   :  { %2319 = vmatprep.subr.mxu1 %v10469_v6  ;;  %2250 = vmatprep.subr.mxu0 %v10470_v8  ;;  %v10508_v6 = vld [vmem:[#allocation123_spill] sm:$0xff]  ;;  %v10509_v8 = vld [vmem:[#allocation124_spill] sm:$0xff] }
 0x6b2   :  { %2320 = vmatpush1.msra.mxu1 %v10471_v11  ;;  %2251 = vmatpush1.msra.mxu0 %v10472_v12  ;;  %v10510_v11 = vld [vmem:[#allocation125_spill] sm:$0xff]  ;;  %v10511_v12 = vld [vmem:[#allocation126_spill] sm:$0xff] }
 0x6b3   :  { %2321 = vmatprep.subr.mxu1 %v10473_v13  ;;  %2252 = vmatprep.subr.mxu0 %v10474_v14  ;;  %v10512_v13 = vld [vmem:[#allocation127_spill] sm:$0xff]  ;;  %v10513_v14 = vld [vmem:[#allocation128_spill] sm:$0xff] }
 0x6b4   :  { %2322 = vmatpush1.msra.mxu1 %v10475_v16  ;;  %2253 = vmatpush1.msra.mxu0 %v10476_v17  ;;  %v10514_v16 = vld [vmem:[#allocation129_spill] sm:$0xff]  ;;  %v10515_v17 = vld [vmem:[#allocation130_spill] sm:$0xff] }
 0x6b5   :  { %2323 = vmatprep.subr.mxu1 %v10477_v18  ;;  %2254 = vmatprep.subr.mxu0 %v10478_v20  ;;  %v10516_v18 = vld [vmem:[#allocation131_spill] sm:$0xff]  ;;  %v10517_v20 = vld [vmem:[#allocation132_spill] sm:$0xff] }
 0x6b6   :  { %2324 = vmatpush1.msra.mxu1 %v10479_v29  ;;  %2255 = vmatpush1.msra.mxu0 %v10480_v44  ;;  %v10518_v29 = vld [vmem:[#allocation133_spill] sm:$0xff]  ;;  %v10519_v44 = vld [vmem:[#allocation134_spill] sm:$0xff] }
 0x6b7   :  { %2325 = vmatprep.subr.mxu1 %v10481_v34  ;;  %2256 = vmatprep.subr.mxu0 %v10482_v37  ;;  %v10520_v34 = vld [vmem:[#allocation135_spill] sm:$0xff]  ;;  %v10521_v37 = vld [vmem:[#allocation136_spill] sm:$0xff] }
 0x6b8   :  { %2326 = vmatpush1.msra.mxu1 %v10483_v57  ;;  %2257 = vmatpush1.msra.mxu0 %v10484_v33  ;;  %v10522_v57 = vld [vmem:[#allocation137_spill] sm:$0xff]  ;;  %v10523_v33 = vld [vmem:[#allocation138_spill] sm:$0xff] }
 0x6b9   :  { %2327 = vmatprep.subr.mxu1 %v10485_v27  ;;  %2258 = vmatprep.subr.mxu0 %v10486_v10  ;;  %v10524_v27 = vld [vmem:[#allocation139_spill] sm:$0xff]  ;;  %v10525_v10 = vld [vmem:[#allocation140_spill] sm:$0xff] }
 0x6ba   :  { %2328 = vmatpush1.msra.mxu1 %v10487_v58  ;;  %2259 = vmatpush1.msra.mxu0 %v10488_v21  ;;  %v10526_v58 = vld [vmem:[#allocation141_spill] sm:$0xff]  ;;  %v10527_v21 = vld [vmem:[#allocation142_spill] sm:$0xff] }
 0x6bb   :  { %2329 = vmatprep.subr.mxu1 %v10489_v41  ;;  %2260 = vmatprep.subr.mxu0 %v10490_v50  ;;  %v10528_v41 = vld [vmem:[#allocation143_spill] sm:$0xff]  ;;  %v10529_v50 = vld [vmem:[#allocation144_spill] sm:$0xff] }
 0x6bc   :  { %2330 = vmatpush1.msra.mxu1 %v10491_v25  ;;  %2261 = vmatpush1.msra.mxu0 %v10492_v31  ;;  %v10530_v25 = vld [vmem:[#allocation145_spill] sm:$0xff]  ;;  %v10531_v31 = vld [vmem:[#allocation146_spill] sm:$0xff] }
 0x6bd   :  { %2331 = vmatprep.subr.mxu1 %v10493_v32  ;;  %2262 = vmatprep.subr.mxu0 %v10494_v45  ;;  %v10532_v32 = vld [vmem:[#allocation147_spill] sm:$0xff]  ;;  %v10533_v45 = vld [vmem:[#allocation148_spill] sm:$0xff] }
 0x6be   :  { %2332 = vmatpush1.msra.mxu1 %v10495_v35  ;;  %2263 = vmatpush2.msra.mxu0 %v10496_v26  ;;  %v10534_v35 = vld [vmem:[#allocation149_spill] sm:$0xff]  ;;  %v10535_v26 = vld [vmem:[#allocation150_spill] sm:$0xff] }
 0x6bf   :  { %2333 = vmatprep.subr.mxu1 %v10497_v30  ;;  %2264 = vmatprep.subr.mxu0 %v10498_v28  ;;  %v10536_v30 = vld [vmem:[#allocation151_spill] sm:$0xff]  ;;  %v10537_v28 = vld [vmem:[#allocation152_spill] sm:$0xff] }
 0x6c0   :  { %2334 = vmatpush2.msra.mxu1 %v10499_v24  ;;  %2265 = vmatpush2.msra.mxu0 %v10500_v38  ;;  %v10538_v24 = vld [vmem:[#allocation153_spill] sm:$0xff]  ;;  %v10539_v38 = vld [vmem:[#allocation154_spill] sm:$0xff] }
 0x6c1   :  { %2335 = vmatprep.subr.mxu1 %v10501_v39  ;;  %2266 = vmatprep.subr.mxu0 %v10502_v62  ;;  %v10540_v39 = vld [vmem:[#allocation155_spill] sm:$0xff]  ;;  %v10541_v62 = vld [vmem:[#allocation156_spill] sm:$0xff] }
 0x6c2   :  { %2336 = vmatpush2.msra.mxu1 %v10503_v56  ;;  %2267 = vmatpush2.msra.mxu0 %v10504_v2  ;;  %v10542_v56 = vld [vmem:[#allocation157_spill] sm:$0xff]  ;;  %v10543_v2 = vld [vmem:[#allocation158_spill] sm:$0xff] }
 0x6c3   :  { %2337 = vmatprep.subr.mxu1 %v10505_v3  ;;  %2268 = vmatprep.subr.mxu0 %v10506_v4  ;;  %v10544_v3 = vld [vmem:[#allocation159_spill] sm:$0xff]  ;;  %v10545_v4 = vld [vmem:[#allocation160_spill] sm:$0xff] }
 0x6c4   :  { %2338 = vmatpush2.msra.mxu1 %v10507_v5  ;;  %2269 = vmatpush2.msra.mxu0 %v10508_v6  ;;  %v10546_v5 = vld [vmem:[#allocation161_spill] sm:$0xff]  ;;  %v10547_v6 = vld [vmem:[#allocation162_spill] sm:$0xff] }
 0x6c5   :  { %2339 = vmatprep.subr.mxu1 %v10509_v8  ;;  %2270 = vmatprep.subr.mxu0 %v10510_v11  ;;  %v10548_v8 = vld [vmem:[#allocation163_spill] sm:$0xff]  ;;  %v10549_v11 = vld [vmem:[#allocation164_spill] sm:$0xff] }
 0x6c6   :  { %2340 = vmatpush2.msra.mxu1 %v10511_v12  ;;  %2271 = vmatpush2.msra.mxu0 %v10512_v13  ;;  %v10550_v12 = vld [vmem:[#allocation165_spill] sm:$0xff]  ;;  %v10551_v13 = vld [vmem:[#allocation167_spill] sm:$0xff] }
 0x6c7   :  { %2341 = vmatprep.subr.mxu1 %v10513_v14  ;;  %2272 = vmatprep.subr.mxu0 %v10514_v16  ;;  %v10552_v14 = vld [vmem:[#allocation166_spill] sm:$0xff]  ;;  %v10553_v16 = vld [vmem:[#allocation168_spill] sm:$0xff] }
 0x6c8   :  { %2342 = vmatpush2.msra.mxu1 %v10515_v17  ;;  %2273 = vmatpush2.msra.mxu0 %v10516_v18  ;;  %v10554_v17 = vld [vmem:[#allocation169_spill] sm:$0xff]  ;;  %v10555_v18 = vld [vmem:[#allocation170_spill] sm:$0xff] }
 0x6c9   :  { %2343 = vmatprep.subr.mxu1 %v10517_v20  ;;  %2274 = vmatprep.subr.mxu0 %v10518_v29  ;;  %v10556_v20 = vld [vmem:[#allocation171_spill] sm:$0xff]  ;;  %v10557_v29 = vld [vmem:[#allocation172_spill] sm:$0xff] }
 0x6ca   :  { %2344 = vmatpush2.msra.mxu1 %v10519_v44  ;;  %2275 = vmatpush2.msra.mxu0 %v10520_v34  ;;  %v10558_v44 = vld [vmem:[#allocation173_spill] sm:$0xff]  ;;  %v10559_v34 = vld [vmem:[#allocation174_spill] sm:$0xff] }
 0x6cb   :  { %2345 = vmatprep.subr.mxu1 %v10521_v37  ;;  %2276 = vmatprep.subr.mxu0 %v10522_v57  ;;  %v7713_v37 = vld [vmem:[#allocation5 + $0x1f8] sm:$0xff] }
 0x6cc   :  { %2346 = vmatpush2.msra.mxu1 %v10523_v33  ;;  %2277 = vmatpush2.msra.mxu0 %v10524_v27  ;;  %v10560_v33 = vld [vmem:[#allocation19_spill] sm:$0xff] }
 0x6cd   :  { %2347 = vmatprep.subr.mxu1 %v10525_v10  ;;  %2278 = vmatprep.subr.mxu0 %v10526_v58 }
 0x6ce   :  { %2348 = vmatpush2.msra.mxu1 %v10527_v21  ;;  %2279 = vmatpush2.msra.mxu0 %v10528_v41  ;;  %v10561_v21 = vld [vmem:[#allocation16_spill] sm:$0xff] }
 0x6cf   :  { %2349 = vmatprep.subr.mxu1 %v10529_v50  ;;  %2280 = vmatprep.subr.mxu0 %v10530_v25 }
 0x6d0   :  { %2350 = vmatpush2.msra.mxu1 %v10531_v31  ;;  %2281 = vmatpush2.msra.mxu0 %v10532_v32 }
 0x6d1   :  { %2351 = vmatprep.subr.mxu1 %v10533_v45  ;;  %2282 = vmatprep.subr.mxu0 %v10534_v35 }
 0x6d2   :  { %2352 = vmatpush2.msra.mxu1 %v10535_v26  ;;  %2283 = vmatpush2.msra.mxu0 %v10536_v30 }
 0x6d3   :  { %2353 = vmatprep.subr.mxu1 %v10537_v28  ;;  %2284 = vmatprep.subr.mxu0 %v10538_v24 }
 0x6d4   :  { %2354 = vmatpush2.msra.mxu1 %v10539_v38  ;;  %2285 = vmatpush2.msra.mxu0 %v10540_v39 }
 0x6d5   :  { %2355 = vmatprep.subr.mxu1 %v10541_v62  ;;  %2286 = vmatprep.subr.mxu0 %v10542_v56 }
 0x6d6   :  { %2356 = vmatpush2.msra.mxu1 %v10543_v2  ;;  %2287 = vmatpush2.msra.mxu0 %v10544_v3 }
 0x6d7   :  { %2357 = vmatprep.subr.mxu1 %v10545_v4  ;;  %2288 = vmatprep.subr.mxu0 %v10546_v5 }
 0x6d8   :  { %2358 = vmatpush2.msra.mxu1 %v10547_v6  ;;  %2289 = vmatpush2.msra.mxu0 %v10548_v8 }
 0x6d9   :  { %2359 = vmatprep.subr.mxu1 %v10549_v11  ;;  %2290 = vmatprep.subr.mxu0 %v10550_v12 }
 0x6da   :  { %2360 = vmatpush2.msra.mxu1 %v10551_v13  ;;  %2291 = vmatpush2.msra.mxu0 %v10552_v14 }
 0x6db   :  { %2361 = vmatprep.subr.mxu1 %v10553_v16  ;;  %2292 = vmatprep.subr.mxu0 %v10554_v17 }
 0x6dc   :  { %2362 = vmatpush2.msra.mxu1 %v10555_v18  ;;  %2293 = vmatpush2.msra.mxu0 %v10556_v20 }
 0x6dd   :  { %2363 = vmatprep.subr.mxu1 %v10557_v29  ;;  %2398 = vmatprep.subr.mxu0 %v10558_v44 }
 0x6de   :  { %2364 = vmatpush2.msra.mxu1 %v10559_v34 }
 0x6df   :  { %2469 = vmatprep.subr.mxu1 %v7713_v37 }
 0x71c   :  { %v1962_v57 = vpop.f32.mrf.mxu0  ;;  %v2033_v50 = vpop.f32.mrf.mxu1 }
 0x71d   :  { %v1963_v27 = vadd.f32 %v1962_v57, %v10560_v33  ;;  %v2034_v26 = vadd.f32 %v2033_v50, %v5606_v40 }
 0x71e   :  { %v1964_v10 = vpop.f32.mrf.mxu0  ;;  %v2035_v31 = vpop.f32.mrf.mxu1 }
 0x71f   :  { %v3215_v58 = vmul.f32 -1.442695, %v1963_v27  ;;  %v1965_v41 = vadd.f32 %v1964_v10, %v10561_v21  ;;  %v2036_v32 = vadd.f32 %v2035_v31, %v5601_v36 }
 0x721   :  { %3445 = vpow2.f32 %v3215_v58  ;;  %v3216_v25 = vmul.f32 -1.442695, %v1965_v41  ;;  %v3217_v45 = vmul.f32 -1.442695, %v2036_v32 }
 0x723   :  { %3447 = vpow2.f32 %v3216_v25 }
 0x724   :  { %3449 = vpow2.f32 %v3217_v45 }
 0x72e   :  { %v3446_v35 = vpop.eup %3445 }
 0x72f   :  { %v2041_v30 = vadd.f32 1.0, %v3446_v35 }
 0x730   :  { %v3448_v28 = vpop.eup %3447 }
 0x731   :  { %3451 = vrcp.f32 %v2041_v30  ;;  %v2047_v24 = vadd.f32 1.0, %v3448_v28  ;;  %v3450_v38 = vpop.eup %3449 }
 0x732   :  { %3453 = vtanh.f32 %v2034_v26  ;;  %v2054_v2 = vadd.f32 1.0, %v3450_v38  ;;  %v10573_v38 = vld [vmem:[#allocation186_spill] sm:$0xff] }
 0x733   :  { %3455 = vrcp.f32 %v2047_v24 }
 0x734   :  { %3457 = vrcp.f32 %v2054_v2  ;;  %v10577_v2 = vld [vmem:[#allocation190_spill] sm:$0xff] }
 0x73e   :  { %v3452_v39 = vpop.eup %3451 }
 0x73f   :  { %v3454_v62 = vpop.eup %3453 }
 0x740   :  { %v3456_v56 = vpop.eup %3455  ;;  %v2058_v3 = vmul.f32 %v3454_v62, %v3452_v39  ;;  %v10574_v39 = vld [vmem:[#allocation187_spill] sm:$0xff]  ;;  %v10575_v62 = vld [vmem:[#allocation188_spill] sm:$0xff] }
 0x741   :  { %v2057_v4 = vmul.f32 %v3456_v56, %v7331_v54  ;;  %v3458_v6 = vpop.eup %3457  ;;  %v10576_v56 = vld [vmem:[#allocation189_spill] sm:$0xff] }
 0x743   :  { %v7721_v5 = vadd.f32 %v2058_v3, %v2057_v4  ;;  %v10578_v3 = vld [vmem:[#allocation191_spill] sm:$0xff]  ;;  %v10579_v4 = vld [vmem:[#allocation192_spill] sm:$0xff] }
 0x745   :  { %3459 = vtanh.f32 %v7721_v5 }
 0x752   :  { %v3460_v8 = vpop.eup %3459 }
 0x753   :  { %v2061_v11 = vmul.f32 %v3460_v8, %v3458_v6  ;;  %v10580_v6 = vld [vmem:[#allocation193_spill] sm:$0xff]  ;;  %v10581_v8 = vld [vmem:[#allocation194_spill] sm:$0xff] }
 0x755   :  { %2294 = vmatprep.mubr.f32.mxu0 %v2061_v11  ;;  %2365 = vmatprep.mubr.f32.mxu1 %v2061_v11  ;;  %v10582_v11 = vld [vmem:[#allocation195_spill] sm:$0xff] }
 0x75c   :  { %v2130_v12 = vpop.f32.mrf.mxu0 }
 0x75d   :  { %v2131_v13 = vadd.f32 %v2130_v12, %v9764_v15  ;;  %v10583_v12 = vld [vmem:[#allocation196_spill] sm:$0xff] }
 0x75e   :  { %v2132_v14 = vpop.f32.mrf.mxu0  ;;  %v2201_v54 = vpop.f32.mrf.mxu1 }
 0x75f   :  { %v3218_v16 = vmul.f32 -1.442695, %v2131_v13  ;;  %v2133_v17 = vadd.f32 %v2132_v14, %v9765_v19  ;;  %v2202_v44 = vadd.f32 %v2201_v54, %v5205_v48  ;;  %v10584_v13 = vld [vmem:[#allocation197_spill] sm:$0xff]  ;;  %v10585_v14 = vld [vmem:[#allocation198_spill] sm:$0xff] }
 0x760   :  { %v2203_v20 = vpop.f32.mrf.mxu1  ;;  %v10589_v54 = vld [vmem:[#allocation202_spill] sm:$0xff] }
 0x761   :  { %3461 = vpow2.f32 %v3218_v16  ;;  %v3219_v18 = vmul.f32 -1.442695, %v2133_v17  ;;  %v2204_v29 = vadd.f32 %v2203_v20, %v5201_v51  ;;  %v10586_v16 = vld [vmem:[#allocation199_spill] sm:$0xff]  ;;  %v10587_v17 = vld [vmem:[#allocation200_spill] sm:$0xff] }
 0x762   :  { %v10590_v20 = vld [vmem:[#allocation203_spill] sm:$0xff] }
 0x763   :  { %3463 = vpow2.f32 %v3219_v18  ;;  %v3220_v34 = vmul.f32 -1.442695, %v2204_v29  ;;  %v10588_v18 = vld [vmem:[#allocation201_spill] sm:$0xff]  ;;  %v10591_v29 = vld [vmem:[#allocation204_spill] sm:$0xff] }
 0x764   :  { %3465 = vtanh.f32 %v2202_v44  ;;  %v10592_v44 = vld [vmem:[#allocation205_spill] sm:$0xff] }
 0x765   :  { %3467 = vpow2.f32 %v3220_v34  ;;  %v10593_v34 = vld [vmem:[#allocation206_spill] sm:$0xff] }
 0x76e   :  { %v3462_v57 = vpop.eup %3461 }
 0x76f   :  { %v2209_v27 = vadd.f32 1.0, %v3462_v57  ;;  %v10594_v57 = vld [vmem:[#allocation207_spill] sm:$0xff] }
 0x770   :  { %v3464_v10 = vpop.eup %3463 }
 0x771   :  { %3469 = vrcp.f32 %v2209_v27  ;;  %v2215_v58 = vadd.f32 1.0, %v3464_v10  ;;  %v3466_v41 = vpop.eup %3465  ;;  %v10595_v27 = vld [vmem:[#allocation208_spill] sm:$0xff]  ;;  %v10596_v10 = vld [vmem:[#allocation209_spill] sm:$0xff] }
 0x772   :  { %v3468_v50 = vpop.eup %3467 }
 0x773   :  { %3471 = vrcp.f32 %v2215_v58  ;;  %v2222_v32 = vadd.f32 1.0, %v3468_v50  ;;  %v10597_v58 = vld [vmem:[#allocation210_spill] sm:$0xff]  ;;  %v10599_v50 = vld [vmem:[#allocation212_spill] sm:$0xff] }
 0x775   :  { %3473 = vrcp.f32 %v2222_v32  ;;  %v10602_v32 = vld [vmem:[#allocation215_spill] sm:$0xff] }
 0x77e   :  { %v3470_v25 = vpop.eup %3469 }
 0x77f   :  { %v2226_v35 = vmul.f32 %v3470_v25, %v3466_v41  ;;  %v10598_v41 = vld [vmem:[#allocation211_spill] sm:$0xff]  ;;  %v10600_v25 = vld [vmem:[#allocation213_spill] sm:$0xff] }
 0x780   :  { %v3472_v31 = vpop.eup %3471 }
 0x781   :  { %v2225_v45 = vmul.f32 %v3472_v31, %v7339_v55  ;;  %v10562_v55 = vld [vmem:[#allocation175_spill] sm:$0xff]  ;;  %v10601_v31 = vld [vmem:[#allocation214_spill] sm:$0xff] }
 0x782   :  { %v3474_v30 = vpop.eup %3473 }
 0x783   :  { %v7729_v26 = vadd.f32 %v2226_v35, %v2225_v45  ;;  %v7785_v45 = vld [vmem:[#allocation5 + $0x58] sm:$0xff]  ;;  %v7789_v35 = vld [vmem:[#allocation5 + $0x50] sm:$0xff] }
 0x785   :  { %3475 = vtanh.f32 %v7729_v26 }
 0x792   :  { %v3476_v28 = vpop.eup %3475 }
 0x793   :  { %v2229_v24 = vmul.f32 %v3476_v28, %v3474_v30  ;;  %v7801_v30 = vld [vmem:[#allocation5 + $0x18] sm:$0xff]  ;;  %v7814_v28 = vld [vmem:[#allocation5 + $0x3c0] sm:$0xff] }
 0x795   :  { %2295 = vmatmul.mubr.f32.vlgmr.msra.gmra.mxu0 %v2229_v24  ;;  %2366 = vmatmul.mubr.f32.vlgmr.msra.gmra.mxu1 %v2229_v24 }
 0x796   :  { %2399 = vmatpush1.msra.mxu0 %v7342_v46  ;;  %2462 = vmatprep.mubr.f32.mxu0 %v2229_v24  ;;  %v10563_v46 = vld [vmem:[#allocation176_spill] sm:$0xff] }
 0x797   :  { %2400 = vmatprep.subr.mxu0 %v7345_v60  ;;  %2533 = vmatprep.mubr.f32.mxu1 %v2229_v24  ;;  %v10564_v60 = vld [vmem:[#allocation177_spill] sm:$0xff] }
 0x798   :  { %2401 = vmatpush1.msra.mxu0 %v7348_v49  ;;  %2470 = vmatpush1.msra.mxu1 %v7351_v1  ;;  %v10565_v49 = vld [vmem:[#allocation178_spill] sm:$0xff]  ;;  %v10566_v1 = vld [vmem:[#allocation179_spill] sm:$0xff] }
 0x799   :  { %2402 = vmatprep.subr.mxu0 %v7354_v23  ;;  %2471 = vmatprep.subr.mxu1 %v7357_v61  ;;  %v10567_v23 = vld [vmem:[#allocation180_spill] sm:$0xff]  ;;  %v10568_v61 = vld [vmem:[#allocation181_spill] sm:$0xff] }
 0x79a   :  { %2403 = vmatpush1.msra.mxu0 %v7360_v43  ;;  %2472 = vmatpush1.msra.mxu1 %v7363_v22  ;;  %v10569_v43 = vld [vmem:[#allocation182_spill] sm:$0xff]  ;;  %v10570_v22 = vld [vmem:[#allocation183_spill] sm:$0xff] }
 0x79b   :  { %2404 = vmatprep.subr.mxu0 %v7366_v53  ;;  %2473 = vmatprep.subr.mxu1 %v7369_v0  ;;  %v10571_v53 = vld [vmem:[#allocation184_spill] sm:$0xff]  ;;  %v10572_v0 = vld [vmem:[#allocation185_spill] sm:$0xff] }
 0x79c   :  { %2405 = vmatpush1.msra.mxu0 %v10562_v55  ;;  %2474 = vmatpush1.msra.mxu1 %v10563_v46  ;;  %v7823_v24 = vld [vmem:[#allocation5 + $0x3d8] sm:$0xff]  ;;  %v7826_v55 = vld [vmem:[#allocation5 + $0x3a0] sm:$0xff]  ;;  %v7829_v46 = vld [vmem:[#allocation5 + $0x3d0] sm:$0xff] }
 0x79d   :  { %2406 = vmatprep.subr.mxu0 %v10564_v60  ;;  %2475 = vmatprep.subr.mxu1 %v10565_v49  ;;  %v7832_v60 = vld [vmem:[#allocation5 + $0x388] sm:$0xff]  ;;  %v7835_v49 = vld [vmem:[#allocation5 + $0x3b8] sm:$0xff] }
 0x79e   :  { %2407 = vmatpush1.msra.mxu0 %v10566_v1  ;;  %2476 = vmatpush1.msra.mxu1 %v10567_v23  ;;  %v7838_v1 = vld [vmem:[#allocation5 + $0x380] sm:$0xff]  ;;  %v7841_v23 = vld [vmem:[#allocation5 + $0x3b0] sm:$0xff] }
 0x79f   :  { %2408 = vmatprep.subr.mxu0 %v10568_v61  ;;  %2477 = vmatprep.subr.mxu1 %v10569_v43  ;;  %v7844_v61 = vld [vmem:[#allocation5 + $0x368] sm:$0xff]  ;;  %v7847_v43 = vld [vmem:[#allocation5 + $0x398] sm:$0xff] }
 0x7a0   :  { %2409 = vmatpush1.msra.mxu0 %v10570_v22  ;;  %2478 = vmatpush1.msra.mxu1 %v10571_v53  ;;  %v7850_v22 = vld [vmem:[#allocation5 + $0x360] sm:$0xff]  ;;  %v7853_v53 = vld [vmem:[#allocation5 + $0x390] sm:$0xff] }
 0x7a1   :  { %2410 = vmatprep.subr.mxu0 %v10572_v0  ;;  %2479 = vmatprep.subr.mxu1 %v10573_v38  ;;  %v7856_v0 = vld [vmem:[#allocation5 + $0x348] sm:$0xff]  ;;  %v7859_v38 = vld [vmem:[#allocation5 + $0x378] sm:$0xff] }
 0x7a2   :  { %2411 = vmatpush1.msra.mxu0 %v10574_v39  ;;  %2480 = vmatpush1.msra.mxu1 %v10575_v62  ;;  %v7862_v39 = vld [vmem:[#allocation5 + $0x340] sm:$0xff]  ;;  %v7865_v62 = vld [vmem:[#allocation5 + $0x370] sm:$0xff] }
 0x7a3   :  { %2412 = vmatprep.subr.mxu0 %v10576_v56  ;;  %2481 = vmatprep.subr.mxu1 %v10577_v2  ;;  %v7868_v56 = vld [vmem:[#allocation5 + $0x328] sm:$0xff]  ;;  %v7871_v2 = vld [vmem:[#allocation5 + $0x358] sm:$0xff] }
 0x7a4   :  { %2413 = vmatpush1.msra.mxu0 %v10578_v3  ;;  %2482 = vmatpush1.msra.mxu1 %v10579_v4  ;;  %v7874_v3 = vld [vmem:[#allocation5 + $0x320] sm:$0xff]  ;;  %v7877_v4 = vld [vmem:[#allocation5 + $0x350] sm:$0xff] }
 0x7a5   :  { %2414 = vmatprep.subr.mxu0 %v10580_v6  ;;  %2483 = vmatprep.subr.mxu1 %v10581_v8  ;;  %v7880_v6 = vld [vmem:[#allocation5 + $0x308] sm:$0xff]  ;;  %v7883_v8 = vld [vmem:[#allocation5 + $0x338] sm:$0xff] }
 0x7a6   :  { %2415 = vmatpush1.msra.mxu0 %v10582_v11  ;;  %2484 = vmatpush1.msra.mxu1 %v10583_v12  ;;  %v7886_v11 = vld [vmem:[#allocation5 + $0x300] sm:$0xff]  ;;  %v7889_v12 = vld [vmem:[#allocation5 + $0x330] sm:$0xff] }
 0x7a7   :  { %2416 = vmatprep.subr.mxu0 %v10584_v13  ;;  %2485 = vmatprep.subr.mxu1 %v10585_v14  ;;  %v7892_v13 = vld [vmem:[#allocation5 + $0x2e8] sm:$0xff]  ;;  %v7895_v14 = vld [vmem:[#allocation5 + $0x318] sm:$0xff] }
 0x7a8   :  { %2417 = vmatpush1.msra.mxu0 %v10586_v16  ;;  %2486 = vmatpush1.msra.mxu1 %v10587_v17  ;;  %v7898_v16 = vld [vmem:[#allocation5 + $0x2e0] sm:$0xff]  ;;  %v7901_v17 = vld [vmem:[#allocation5 + $0x310] sm:$0xff] }
 0x7a9   :  { %2418 = vmatprep.subr.mxu0 %v10588_v18  ;;  %2487 = vmatprep.subr.mxu1 %v10589_v54  ;;  %v7904_v18 = vld [vmem:[#allocation5 + $0x2c8] sm:$0xff]  ;;  %v7907_v54 = vld [vmem:[#allocation5 + $0x2f8] sm:$0xff] }
 0x7aa   :  { %2419 = vmatpush1.msra.mxu0 %v10590_v20  ;;  %2488 = vmatpush1.msra.mxu1 %v10591_v29  ;;  %v7910_v20 = vld [vmem:[#allocation5 + $0x2c0] sm:$0xff]  ;;  %v7913_v29 = vld [vmem:[#allocation5 + $0x2f0] sm:$0xff] }
 0x7ab   :  { %2420 = vmatprep.subr.mxu0 %v10592_v44  ;;  %2489 = vmatprep.subr.mxu1 %v10593_v34  ;;  %10603 = vst [vmem:[#allocation21_spill] sm:$0xff] %v7910_v20  ;;  %10604 = vst [vmem:[#allocation17_spill] sm:$0xff] %v7913_v29  ;;  %v7916_v44 = vld [vmem:[#allocation5 + $0x2a8] sm:$0xff]  ;;  %v7919_v34 = vld [vmem:[#allocation5 + $0x2d8] sm:$0xff] }
 0x7ac   :  { %2421 = vmatpush1.msra.mxu0 %v10594_v57  ;;  %2490 = vmatpush1.msra.mxu1 %v10595_v27  ;;  %10605 = vst [vmem:[#allocation23_spill] sm:$0xff] %v7916_v44  ;;  %10606 = vst [vmem:[#allocation18_spill] sm:$0xff] %v7919_v34  ;;  %v7922_v57 = vld [vmem:[#allocation5 + $0x2a0] sm:$0xff]  ;;  %v7925_v27 = vld [vmem:[#allocation5 + $0x2d0] sm:$0xff] }
 0x7ad   :  { %2422 = vmatprep.subr.mxu0 %v10596_v10  ;;  %2491 = vmatprep.subr.mxu1 %v10597_v58  ;;  %10607 = vst [vmem:[#allocation25_spill] sm:$0xff] %v7922_v57  ;;  %10608 = vst [vmem:[#allocation20_spill] sm:$0xff] %v7925_v27  ;;  %v7928_v10 = vld [vmem:[#allocation5 + $0x288] sm:$0xff]  ;;  %v7931_v58 = vld [vmem:[#allocation5 + $0x2b8] sm:$0xff] }
 0x7ae   :  { %2423 = vmatpush1.msra.mxu0 %v10598_v41  ;;  %2492 = vmatpush1.msra.mxu1 %v10599_v50  ;;  %10609 = vst [vmem:[#allocation27_spill] sm:$0xff] %v7928_v10  ;;  %10610 = vst [vmem:[#allocation22_spill] sm:$0xff] %v7931_v58  ;;  %v7934_v41 = vld [vmem:[#allocation5 + $0x280] sm:$0xff]  ;;  %v7937_v50 = vld [vmem:[#allocation5 + $0x2b0] sm:$0xff] }
 0x7af   :  { %2424 = vmatprep.subr.mxu0 %v7486_v59  ;;  %2493 = vmatprep.subr.mxu1 %v10600_v25  ;;  %v7793_v59 = vld [vmem:[#allocation5 + $0x38] sm:$0xff]  ;;  %10611 = vst [vmem:[#allocation29_spill] sm:$0xff] %v7934_v41  ;;  %10612 = vst [vmem:[#allocation24_spill] sm:$0xff] %v7937_v50  ;;  %v7940_v25 = vld [vmem:[#allocation5 + $0x268] sm:$0xff] }
 0x7b0   :  { %2425 = vmatpush1.msra.mxu0 %v10601_v31  ;;  %2494 = vmatpush1.msra.mxu1 %v7495_v47  ;;  %v7797_v47 = vld [vmem:[#allocation5 + $0x30] sm:$0xff]  ;;  %10613 = vst [vmem:[#allocation31_spill] sm:$0xff] %v7940_v25  ;;  %v7943_v31 = vld [vmem:[#allocation5 + $0x298] sm:$0xff] }
 0x7b1   :  { %2426 = vmatprep.subr.mxu0 %v10602_v32  ;;  %2495 = vmatprep.subr.mxu1 %v7785_v45  ;;  %10614 = vst [vmem:[#allocation26_spill] sm:$0xff] %v7943_v31  ;;  %v7946_v32 = vld [vmem:[#allocation5 + $0x260] sm:$0xff] }
 0x7b2   :  { %2427 = vmatpush1.msra.mxu0 %v7502_v63  ;;  %2496 = vmatpush1.msra.mxu1 %v7789_v35  ;;  %v7805_v63 = vld [vmem:[#allocation5 + $0x10] sm:$0xff]  ;;  %10615 = vst [vmem:[#allocation33_spill] sm:$0xff] %v7946_v32 }
 0x7b3   :  { %2428 = vmatprep.subr.mxu0 %v7506_v52  ;;  %2497 = vmatprep.subr.mxu1 %v7793_v59  ;;  %v7808_v52 = vld [vmem:[#allocation5 + $0x3c8] sm:$0xff] }
 0x7b4   :  { %2429 = vmatpush1.msra.mxu0 %v7510_v7  ;;  %2498 = vmatpush1.msra.mxu1 %v7797_v47  ;;  %v7811_v7 = vld [vmem:[#allocation5 + $0x3f8] sm:$0xff] }
 0x7b5   :  { %2430 = vmatprep.subr.mxu0 %v7514_v9  ;;  %2499 = vmatprep.subr.mxu1 %v7801_v30  ;;  %v7817_v9 = vld [vmem:[#allocation5 + $0x3f0] sm:$0xff] }
 0x7b6   :  { %2431 = vmatpush2.msra.mxu0 %v7518_v42  ;;  %2500 = vmatpush1.msra.mxu1 %v7805_v63  ;;  %v7820_v42 = vld [vmem:[#allocation5 + $0x3a8] sm:$0xff] }
 0x7b7   :  { %2432 = vmatprep.subr.mxu0 %v7808_v52  ;;  %2501 = vmatprep.subr.mxu1 %v7811_v7 }
 0x7b8   :  { %2433 = vmatpush2.msra.mxu0 %v7814_v28  ;;  %2502 = vmatpush2.msra.mxu1 %v7817_v9 }
 0x7b9   :  { %2434 = vmatprep.subr.mxu0 %v7820_v42  ;;  %2503 = vmatprep.subr.mxu1 %v7823_v24 }
 0x7ba   :  { %2435 = vmatpush2.msra.mxu0 %v7826_v55  ;;  %2504 = vmatpush2.msra.mxu1 %v7829_v46 }
 0x7bb   :  { %2436 = vmatprep.subr.mxu0 %v7832_v60  ;;  %2505 = vmatprep.subr.mxu1 %v7835_v49 }
 0x7bc   :  { %2437 = vmatpush2.msra.mxu0 %v7838_v1  ;;  %2506 = vmatpush2.msra.mxu1 %v7841_v23 }
 0x7bd   :  { %2438 = vmatprep.subr.mxu0 %v7844_v61  ;;  %2507 = vmatprep.subr.mxu1 %v7847_v43 }
 0x7be   :  { %2439 = vmatpush2.msra.mxu0 %v7850_v22  ;;  %2508 = vmatpush2.msra.mxu1 %v7853_v53 }
 0x7bf   :  { %2440 = vmatprep.subr.mxu0 %v7856_v0  ;;  %2509 = vmatprep.subr.mxu1 %v7859_v38 }
 0x7c0   :  { %2441 = vmatpush2.msra.mxu0 %v7862_v39  ;;  %2510 = vmatpush2.msra.mxu1 %v7865_v62 }
 0x7c1   :  { %2442 = vmatprep.subr.mxu0 %v7868_v56  ;;  %2511 = vmatprep.subr.mxu1 %v7871_v2 }
 0x7c2   :  { %2443 = vmatpush2.msra.mxu0 %v7874_v3  ;;  %2512 = vmatpush2.msra.mxu1 %v7877_v4 }
 0x7c3   :  { %2444 = vmatprep.subr.mxu0 %v7880_v6  ;;  %2513 = vmatprep.subr.mxu1 %v7883_v8 }
 0x7c4   :  { %2445 = vmatpush2.msra.mxu0 %v7886_v11  ;;  %2514 = vmatpush2.msra.mxu1 %v7889_v12 }
 0x7c5   :  { %2446 = vmatprep.subr.mxu0 %v7892_v13  ;;  %2515 = vmatprep.subr.mxu1 %v7895_v14 }
 0x7c6   :  { %2447 = vmatpush2.msra.mxu0 %v7898_v16  ;;  %2516 = vmatpush2.msra.mxu1 %v7901_v17 }
 0x7c7   :  { %2448 = vmatprep.subr.mxu0 %v7904_v18  ;;  %2517 = vmatprep.subr.mxu1 %v7907_v54 }
 0x7c8   :  { %2449 = vmatpush2.msra.mxu0 %v7910_v20  ;;  %2518 = vmatpush2.msra.mxu1 %v7913_v29 }
 0x7c9   :  { %2450 = vmatprep.subr.mxu0 %v7916_v44  ;;  %2519 = vmatprep.subr.mxu1 %v7919_v34 }
 0x7ca   :  { %2451 = vmatpush2.msra.mxu0 %v7922_v57  ;;  %2520 = vmatpush2.msra.mxu1 %v7925_v27 }
 0x7cb   :  { %2452 = vmatprep.subr.mxu0 %v7928_v10  ;;  %2521 = vmatprep.subr.mxu1 %v7931_v58  ;;  %v7949_v58 = vld [vmem:[#allocation5 + $0x290] sm:$0xff] }
 0x7cc   :  { %2453 = vmatpush2.msra.mxu0 %v7934_v41  ;;  %2522 = vmatpush2.msra.mxu1 %v7937_v50  ;;  %10616 = vst [vmem:[#allocation28_spill] sm:$0xff] %v7949_v58  ;;  %v7952_v41 = vld [vmem:[#allocation5 + $0x248] sm:$0xff]  ;;  %v7955_v50 = vld [vmem:[#allocation5 + $0x278] sm:$0xff]  ;;  %v7973_v10 = vld [vmem:[#allocation5 + $0x250] sm:$0xff] }
 0x7cd   :  { %2454 = vmatprep.subr.mxu0 %v7940_v25  ;;  %2523 = vmatprep.subr.mxu1 %v7943_v31  ;;  %10617 = vst [vmem:[#allocation34_spill] sm:$0xff] %v7952_v41  ;;  %10618 = vst [vmem:[#allocation30_spill] sm:$0xff] %v7955_v50  ;;  %v7958_v25 = vld [vmem:[#allocation5 + $0x240] sm:$0xff]  ;;  %v7961_v31 = vld [vmem:[#allocation5 + $0x270] sm:$0xff] }
 0x7ce   :  { %2455 = vmatpush2.msra.mxu0 %v7946_v32  ;;  %2524 = vmatpush2.msra.mxu1 %v7949_v58  ;;  %10619 = vst [vmem:[#allocation35_spill] sm:$0xff] %v7958_v25  ;;  %10620 = vst [vmem:[#allocation32_spill] sm:$0xff] %v7961_v31  ;;  %v7964_v32 = vld [vmem:[#allocation5 + $0x228] sm:$0xff]  ;;  %v7967_v58 = vld [vmem:[#allocation5 + $0x258] sm:$0xff] }
 0x7cf   :  { %2456 = vmatprep.subr.mxu0 %v7952_v41  ;;  %2525 = vmatprep.subr.mxu1 %v7955_v50  ;;  %10621 = vst [vmem:[#allocation37_spill] sm:$0xff] %v7964_v32  ;;  %10622 = vst [vmem:[#allocation39_spill] sm:$0xff] %v7967_v58  ;;  %v7970_v41 = vld [vmem:[#allocation5 + $0x220] sm:$0xff]  ;;  %v2397_v50 = vld [vmem:[#allocation2 + $0x30] sm:$0xff] }
 0x7d0   :  { %2457 = vmatpush2.msra.mxu0 %v7958_v25  ;;  %2526 = vmatpush2.msra.mxu1 %v7961_v31  ;;  %10623 = vst [vmem:[#allocation41_spill] sm:$0xff] %v7970_v41  ;;  %10624 = vst [vmem:[#allocation36_spill] sm:$0xff] %v7973_v10  ;;  %v7976_v25 = vld [vmem:[#allocation5 + $0x208] sm:$0xff]  ;;  %v7979_v31 = vld [vmem:[#allocation5 + $0x238] sm:$0xff] }
 0x7d1   :  { %2458 = vmatprep.subr.mxu0 %v7964_v32  ;;  %2527 = vmatprep.subr.mxu1 %v7967_v58  ;;  %10625 = vst [vmem:[#allocation38_spill] sm:$0xff] %v7976_v25  ;;  %10626 = vst [vmem:[#allocation43_spill] sm:$0xff] %v7979_v31  ;;  %v7982_v32 = vld [vmem:[#allocation5 + $0x200] sm:$0xff]  ;;  %v7985_v58 = vld [vmem:[#allocation5 + $0x230] sm:$0xff] }
 0x7d2   :  { %2459 = vmatpush2.msra.mxu0 %v7970_v41  ;;  %2528 = vmatpush2.msra.mxu1 %v7973_v10  ;;  %10627 = vst [vmem:[#allocation40_spill] sm:$0xff] %v7982_v32  ;;  %10628 = vst [vmem:[#allocation44_spill] sm:$0xff] %v7985_v58  ;;  %v7988_v41 = vld [vmem:[#allocation5 + $0x218] sm:$0xff]  ;;  %v7991_v10 = vld [vmem:[#allocation5 + $0x210] sm:$0xff] }
 0x7d3   :  { %2460 = vmatprep.subr.mxu0 %v7976_v25  ;;  %2529 = vmatprep.subr.mxu1 %v7979_v31  ;;  %10629 = vst [vmem:[#allocation42_spill] sm:$0xff] %v7988_v41  ;;  %10630 = vst [vmem:[#allocation46_spill] sm:$0xff] %v7991_v10  ;;  %v7994_v25 = vld [vmem:[#allocation8 + $0x1e8] sm:$0xff]  ;;  %v7997_v31 = vld [vmem:[#allocation8 + $0x1e0] sm:$0xff] }
 0x7d4   :  { %2461 = vmatpush2.msra.mxu0 %v7982_v32  ;;  %2530 = vmatpush2.msra.mxu1 %v7985_v58  ;;  %10631 = vst [vmem:[#allocation45_spill] sm:$0xff] %v7994_v25  ;;  %10632 = vst [vmem:[#allocation48_spill] sm:$0xff] %v7997_v31  ;;  %v8000_v32 = vld [vmem:[#allocation8 + $0x1f8] sm:$0xff]  ;;  %v8003_v58 = vld [vmem:[#allocation8 + $0x1c8] sm:$0xff] }
 0x7d5   :  { %2463 = vmatmul.mubr.f32.vlgmr.msra.gmra.mxu0 %v2397_v50  ;;  %2531 = vmatprep.subr.mxu1 %v7988_v41  ;;  %10633 = vst [vmem:[#allocation47_spill] sm:$0xff] %v8000_v32  ;;  %10634 = vst [vmem:[#allocation50_spill] sm:$0xff] %v8003_v58  ;;  %v8006_v41 = vld [vmem:[#allocation8 + $0x1f0] sm:$0xff] }
 0x7d6   :  { %2532 = vmatpush2.msra.mxu1 %v7991_v10  ;;  %2564 = vmatprep.subr.mxu0 %v7994_v25  ;;  %10635 = vst [vmem:[#allocation49_spill] sm:$0xff] %v8006_v41  ;;  %v8009_v10 = vld [vmem:[#allocation8 + $0x1c0] sm:$0xff]  ;;  %v8375_v25 = vld [vmem:[#allocation8 + $0x210] sm:$0xff] }
 0x7d7   :  { %2534 = vmatmul.mubr.f32.vlgmr.msra.gmra.mxu1 %v2397_v50  ;;  %2565 = vmatpush1.msra.mxu0 %v7997_v31  ;;  %10636 = vst [vmem:[#allocation52_spill] sm:$0xff] %v8009_v10  ;;  %v8012_v50 = vld [vmem:[#allocation8 + $0x1d8] sm:$0xff]  ;;  %v8015_v31 = vld [vmem:[#allocation8 + $0x1a8] sm:$0xff]  ;;  %10758 = vst [vmem:[#allocation173_spill] sm:$0xff] %v8375_v25 }
 0x7d8   :  { %2635 = vmatprep.subr.mxu1 %v8000_v32  ;;  %2566 = vmatprep.subr.mxu0 %v8003_v58  ;;  %10637 = vst [vmem:[#allocation51_spill] sm:$0xff] %v8012_v50  ;;  %10638 = vst [vmem:[#allocation53_spill] sm:$0xff] %v8015_v31  ;;  %v8018_v32 = vld [vmem:[#allocation8 + $0x1d0] sm:$0xff]  ;;  %v8021_v58 = vld [vmem:[#allocation8 + $0x1a0] sm:$0xff] }
 0x7d9   :  { %2636 = vmatpush1.msra.mxu1 %v8006_v41  ;;  %2567 = vmatpush1.msra.mxu0 %v8009_v10  ;;  %10639 = vst [vmem:[#allocation54_spill] sm:$0xff] %v8018_v32  ;;  %10640 = vst [vmem:[#allocation55_spill] sm:$0xff] %v8021_v58  ;;  %v8024_v41 = vld [vmem:[#allocation8 + $0x1b8] sm:$0xff]  ;;  %v8027_v10 = vld [vmem:[#allocation8 + $0x188] sm:$0xff] }
 0x7da   :  { %2637 = vmatprep.subr.mxu1 %v8012_v50  ;;  %2568 = vmatprep.subr.mxu0 %v8015_v31  ;;  %10641 = vst [vmem:[#allocation56_spill] sm:$0xff] %v8024_v41  ;;  %10642 = vst [vmem:[#allocation57_spill] sm:$0xff] %v8027_v10  ;;  %v8030_v50 = vld [vmem:[#allocation8 + $0x1b0] sm:$0xff]  ;;  %v8033_v31 = vld [vmem:[#allocation8 + $0x180] sm:$0xff] }
 0x7db   :  { %2638 = vmatpush1.msra.mxu1 %v8018_v32  ;;  %2569 = vmatpush1.msra.mxu0 %v8021_v58  ;;  %10643 = vst [vmem:[#allocation58_spill] sm:$0xff] %v8030_v50  ;;  %10644 = vst [vmem:[#allocation59_spill] sm:$0xff] %v8033_v31  ;;  %v8036_v32 = vld [vmem:[#allocation8 + $0x198] sm:$0xff]  ;;  %v8039_v58 = vld [vmem:[#allocation8 + $0x168] sm:$0xff] }
 0x7dc   :  { %2639 = vmatprep.subr.mxu1 %v8024_v41  ;;  %2570 = vmatprep.subr.mxu0 %v8027_v10  ;;  %10645 = vst [vmem:[#allocation60_spill] sm:$0xff] %v8036_v32  ;;  %10646 = vst [vmem:[#allocation61_spill] sm:$0xff] %v8039_v58  ;;  %v8042_v41 = vld [vmem:[#allocation8 + $0x190] sm:$0xff]  ;;  %v8045_v10 = vld [vmem:[#allocation8 + $0x160] sm:$0xff] }
 0x7dd   :  { %2640 = vmatpush1.msra.mxu1 %v8030_v50  ;;  %2571 = vmatpush1.msra.mxu0 %v8033_v31  ;;  %10647 = vst [vmem:[#allocation62_spill] sm:$0xff] %v8042_v41  ;;  %10648 = vst [vmem:[#allocation63_spill] sm:$0xff] %v8045_v10  ;;  %v8048_v50 = vld [vmem:[#allocation8 + $0x178] sm:$0xff]  ;;  %v8051_v31 = vld [vmem:[#allocation8 + $0x148] sm:$0xff] }
 0x7de   :  { %2641 = vmatprep.subr.mxu1 %v8036_v32  ;;  %2572 = vmatprep.subr.mxu0 %v8039_v58  ;;  %10649 = vst [vmem:[#allocation64_spill] sm:$0xff] %v8048_v50  ;;  %10650 = vst [vmem:[#allocation65_spill] sm:$0xff] %v8051_v31  ;;  %v8054_v32 = vld [vmem:[#allocation8 + $0x170] sm:$0xff]  ;;  %v8057_v58 = vld [vmem:[#allocation8 + $0x140] sm:$0xff] }
 0x7df   :  { %2642 = vmatpush1.msra.mxu1 %v8042_v41  ;;  %2573 = vmatpush1.msra.mxu0 %v8045_v10  ;;  %10651 = vst [vmem:[#allocation66_spill] sm:$0xff] %v8054_v32  ;;  %10652 = vst [vmem:[#allocation67_spill] sm:$0xff] %v8057_v58  ;;  %v8060_v41 = vld [vmem:[#allocation8 + $0x158] sm:$0xff]  ;;  %v8063_v10 = vld [vmem:[#allocation8 + $0x128] sm:$0xff] }
 0x7e0   :  { %2643 = vmatprep.subr.mxu1 %v8048_v50  ;;  %2574 = vmatprep.subr.mxu0 %v8051_v31  ;;  %10653 = vst [vmem:[#allocation68_spill] sm:$0xff] %v8060_v41  ;;  %10654 = vst [vmem:[#allocation69_spill] sm:$0xff] %v8063_v10  ;;  %v8066_v50 = vld [vmem:[#allocation8 + $0x150] sm:$0xff]  ;;  %v8069_v31 = vld [vmem:[#allocation8 + $0x120] sm:$0xff] }
 0x7e1   :  { %2644 = vmatpush1.msra.mxu1 %v8054_v32  ;;  %2575 = vmatpush1.msra.mxu0 %v8057_v58  ;;  %10655 = vst [vmem:[#allocation70_spill] sm:$0xff] %v8066_v50  ;;  %10656 = vst [vmem:[#allocation71_spill] sm:$0xff] %v8069_v31  ;;  %v8072_v32 = vld [vmem:[#allocation8 + $0x138] sm:$0xff]  ;;  %v8075_v58 = vld [vmem:[#allocation8 + $0x108] sm:$0xff] }
 0x7e2   :  { %2645 = vmatprep.subr.mxu1 %v8060_v41  ;;  %2576 = vmatprep.subr.mxu0 %v8063_v10  ;;  %10657 = vst [vmem:[#allocation72_spill] sm:$0xff] %v8072_v32  ;;  %10658 = vst [vmem:[#allocation73_spill] sm:$0xff] %v8075_v58  ;;  %v8078_v41 = vld [vmem:[#allocation8 + $0x130] sm:$0xff]  ;;  %v8081_v10 = vld [vmem:[#allocation8 + $0x100] sm:$0xff] }
 0x7e3   :  { %2646 = vmatpush1.msra.mxu1 %v8066_v50  ;;  %2577 = vmatpush1.msra.mxu0 %v8069_v31  ;;  %10659 = vst [vmem:[#allocation74_spill] sm:$0xff] %v8078_v41  ;;  %10660 = vst [vmem:[#allocation75_spill] sm:$0xff] %v8081_v10  ;;  %v8084_v50 = vld [vmem:[#allocation8 + $0x118] sm:$0xff]  ;;  %v8087_v31 = vld [vmem:[#allocation8 + $0xe8] sm:$0xff] }
 0x7e4   :  { %2647 = vmatprep.subr.mxu1 %v8072_v32  ;;  %2578 = vmatprep.subr.mxu0 %v8075_v58  ;;  %10661 = vst [vmem:[#allocation76_spill] sm:$0xff] %v8084_v50  ;;  %10662 = vst [vmem:[#allocation77_spill] sm:$0xff] %v8087_v31  ;;  %v8090_v32 = vld [vmem:[#allocation8 + $0x110] sm:$0xff]  ;;  %v8093_v58 = vld [vmem:[#allocation8 + $0xe0] sm:$0xff] }
 0x7e5   :  { %2648 = vmatpush1.msra.mxu1 %v8078_v41  ;;  %2579 = vmatpush1.msra.mxu0 %v8081_v10  ;;  %10663 = vst [vmem:[#allocation78_spill] sm:$0xff] %v8090_v32  ;;  %10664 = vst [vmem:[#allocation79_spill] sm:$0xff] %v8093_v58  ;;  %v8096_v41 = vld [vmem:[#allocation8 + $0xf8] sm:$0xff]  ;;  %v8099_v10 = vld [vmem:[#allocation8 + $0xc8] sm:$0xff] }
 0x7e6   :  { %2649 = vmatprep.subr.mxu1 %v8084_v50  ;;  %2580 = vmatprep.subr.mxu0 %v8087_v31  ;;  %10665 = vst [vmem:[#allocation80_spill] sm:$0xff] %v8096_v41  ;;  %10666 = vst [vmem:[#allocation81_spill] sm:$0xff] %v8099_v10  ;;  %v8102_v50 = vld [vmem:[#allocation8 + $0xf0] sm:$0xff]  ;;  %v8105_v31 = vld [vmem:[#allocation8 + $0xc0] sm:$0xff] }
 0x7e7   :  { %2650 = vmatpush1.msra.mxu1 %v8090_v32  ;;  %2581 = vmatpush1.msra.mxu0 %v8093_v58  ;;  %10667 = vst [vmem:[#allocation82_spill] sm:$0xff] %v8102_v50  ;;  %10668 = vst [vmem:[#allocation83_spill] sm:$0xff] %v8105_v31  ;;  %v8108_v32 = vld [vmem:[#allocation8 + $0xd8] sm:$0xff]  ;;  %v8111_v58 = vld [vmem:[#allocation8 + $0xa8] sm:$0xff] }
 0x7e8   :  { %2651 = vmatprep.subr.mxu1 %v8096_v41  ;;  %2582 = vmatprep.subr.mxu0 %v8099_v10  ;;  %10669 = vst [vmem:[#allocation84_spill] sm:$0xff] %v8108_v32  ;;  %10670 = vst [vmem:[#allocation85_spill] sm:$0xff] %v8111_v58  ;;  %v8114_v41 = vld [vmem:[#allocation8 + $0xd0] sm:$0xff]  ;;  %v8117_v10 = vld [vmem:[#allocation8 + $0xa0] sm:$0xff] }
 0x7e9   :  { %2652 = vmatpush1.msra.mxu1 %v8102_v50  ;;  %2583 = vmatpush1.msra.mxu0 %v8105_v31  ;;  %10671 = vst [vmem:[#allocation86_spill] sm:$0xff] %v8114_v41  ;;  %10672 = vst [vmem:[#allocation87_spill] sm:$0xff] %v8117_v10  ;;  %v8120_v50 = vld [vmem:[#allocation8 + $0xb8] sm:$0xff]  ;;  %v8123_v31 = vld [vmem:[#allocation8 + $0x88] sm:$0xff] }
 0x7ea   :  { %2653 = vmatprep.subr.mxu1 %v8108_v32  ;;  %2584 = vmatprep.subr.mxu0 %v8111_v58  ;;  %10673 = vst [vmem:[#allocation88_spill] sm:$0xff] %v8120_v50  ;;  %10674 = vst [vmem:[#allocation89_spill] sm:$0xff] %v8123_v31  ;;  %v8126_v32 = vld [vmem:[#allocation8 + $0xb0] sm:$0xff]  ;;  %v8129_v58 = vld [vmem:[#allocation8 + $0x80] sm:$0xff] }
 0x7eb   :  { %2654 = vmatpush1.msra.mxu1 %v8114_v41  ;;  %2585 = vmatpush1.msra.mxu0 %v8117_v10  ;;  %10675 = vst [vmem:[#allocation90_spill] sm:$0xff] %v8126_v32  ;;  %10676 = vst [vmem:[#allocation91_spill] sm:$0xff] %v8129_v58  ;;  %v8132_v41 = vld [vmem:[#allocation8 + $0x98] sm:$0xff]  ;;  %v8135_v10 = vld [vmem:[#allocation8 + $0x68] sm:$0xff] }
 0x7ec   :  { %2655 = vmatprep.subr.mxu1 %v8120_v50  ;;  %2586 = vmatprep.subr.mxu0 %v8123_v31  ;;  %10677 = vst [vmem:[#allocation92_spill] sm:$0xff] %v8132_v41  ;;  %10678 = vst [vmem:[#allocation93_spill] sm:$0xff] %v8135_v10  ;;  %v8138_v50 = vld [vmem:[#allocation8 + $0x90] sm:$0xff]  ;;  %v8141_v31 = vld [vmem:[#allocation8 + $0x60] sm:$0xff] }
 0x7ed   :  { %2656 = vmatpush1.msra.mxu1 %v8126_v32  ;;  %2587 = vmatpush1.msra.mxu0 %v8129_v58  ;;  %10679 = vst [vmem:[#allocation94_spill] sm:$0xff] %v8138_v50  ;;  %10680 = vst [vmem:[#allocation95_spill] sm:$0xff] %v8141_v31  ;;  %v8144_v32 = vld [vmem:[#allocation8 + $0x78] sm:$0xff]  ;;  %v8147_v58 = vld [vmem:[#allocation8 + $0x48] sm:$0xff] }
 0x7ee   :  { %2657 = vmatprep.subr.mxu1 %v8132_v41  ;;  %2588 = vmatprep.subr.mxu0 %v8135_v10  ;;  %10681 = vst [vmem:[#allocation96_spill] sm:$0xff] %v8144_v32  ;;  %10682 = vst [vmem:[#allocation97_spill] sm:$0xff] %v8147_v58  ;;  %v8150_v41 = vld [vmem:[#allocation8 + $0x70] sm:$0xff]  ;;  %v8153_v10 = vld [vmem:[#allocation8 + $0x40] sm:$0xff] }
 0x7ef   :  { %2658 = vmatpush1.msra.mxu1 %v8138_v50  ;;  %2589 = vmatpush1.msra.mxu0 %v8141_v31  ;;  %10683 = vst [vmem:[#allocation98_spill] sm:$0xff] %v8150_v41  ;;  %10684 = vst [vmem:[#allocation99_spill] sm:$0xff] %v8153_v10  ;;  %v8156_v50 = vld [vmem:[#allocation8 + $0x58] sm:$0xff]  ;;  %v8159_v31 = vld [vmem:[#allocation8 + $0x28] sm:$0xff] }
 0x7f0   :  { %2659 = vmatprep.subr.mxu1 %v8144_v32  ;;  %2590 = vmatprep.subr.mxu0 %v8147_v58  ;;  %10685 = vst [vmem:[#allocation100_spill] sm:$0xff] %v8156_v50  ;;  %10686 = vst [vmem:[#allocation101_spill] sm:$0xff] %v8159_v31  ;;  %v8162_v32 = vld [vmem:[#allocation8 + $0x50] sm:$0xff]  ;;  %v8165_v58 = vld [vmem:[#allocation8 + $0x20] sm:$0xff] }
 0x7f1   :  { %2660 = vmatpush1.msra.mxu1 %v8150_v41  ;;  %2591 = vmatpush1.msra.mxu0 %v8153_v10  ;;  %10687 = vst [vmem:[#allocation102_spill] sm:$0xff] %v8162_v32  ;;  %10688 = vst [vmem:[#allocation103_spill] sm:$0xff] %v8165_v58  ;;  %v8168_v41 = vld [vmem:[#allocation8 + $0x38] sm:$0xff]  ;;  %v8171_v10 = vld [vmem:[#allocation8 + $0x8] sm:$0xff] }
 0x7f2   :  { %2661 = vmatprep.subr.mxu1 %v8156_v50  ;;  %2592 = vmatprep.subr.mxu0 %v8159_v31  ;;  %10689 = vst [vmem:[#allocation104_spill] sm:$0xff] %v8168_v41  ;;  %10690 = vst [vmem:[#allocation105_spill] sm:$0xff] %v8171_v10  ;;  %v8174_v50 = vld [vmem:[#allocation8 + $0x30] sm:$0xff]  ;;  %v8177_v31 = vld [vmem:[#allocation8] sm:$0xff] }
 0x7f3   :  { %2662 = vmatpush1.msra.mxu1 %v8162_v32  ;;  %2593 = vmatpush1.msra.mxu0 %v8165_v58  ;;  %10691 = vst [vmem:[#allocation106_spill] sm:$0xff] %v8174_v50  ;;  %10692 = vst [vmem:[#allocation107_spill] sm:$0xff] %v8177_v31  ;;  %v8180_v32 = vld [vmem:[#allocation8 + $0x18] sm:$0xff]  ;;  %v8183_v58 = vld [vmem:[#allocation8 + $0x3e8] sm:$0xff] }
 0x7f4   :  { %2663 = vmatprep.subr.mxu1 %v8168_v41  ;;  %2594 = vmatprep.subr.mxu0 %v8171_v10  ;;  %10693 = vst [vmem:[#allocation108_spill] sm:$0xff] %v8180_v32  ;;  %10694 = vst [vmem:[#allocation109_spill] sm:$0xff] %v8183_v58  ;;  %v8186_v41 = vld [vmem:[#allocation8 + $0x10] sm:$0xff]  ;;  %v8189_v10 = vld [vmem:[#allocation8 + $0x3e0] sm:$0xff] }
 0x7f5   :  { %2664 = vmatpush1.msra.mxu1 %v8174_v50  ;;  %2595 = vmatpush1.msra.mxu0 %v8177_v31  ;;  %10695 = vst [vmem:[#allocation110_spill] sm:$0xff] %v8186_v41  ;;  %10696 = vst [vmem:[#allocation111_spill] sm:$0xff] %v8189_v10  ;;  %v8192_v50 = vld [vmem:[#allocation8 + $0x3f8] sm:$0xff]  ;;  %v8195_v31 = vld [vmem:[#allocation8 + $0x3c8] sm:$0xff] }
 0x7f6   :  { %2665 = vmatprep.subr.mxu1 %v8180_v32  ;;  %2596 = vmatprep.subr.mxu0 %v8183_v58  ;;  %10697 = vst [vmem:[#allocation112_spill] sm:$0xff] %v8192_v50  ;;  %10698 = vst [vmem:[#allocation113_spill] sm:$0xff] %v8195_v31  ;;  %v8198_v32 = vld [vmem:[#allocation8 + $0x3f0] sm:$0xff]  ;;  %v8201_v58 = vld [vmem:[#allocation8 + $0x3c0] sm:$0xff] }
 0x7f7   :  { %2666 = vmatpush1.msra.mxu1 %v8186_v41  ;;  %2597 = vmatpush2.msra.mxu0 %v8189_v10  ;;  %10699 = vst [vmem:[#allocation114_spill] sm:$0xff] %v8198_v32  ;;  %10700 = vst [vmem:[#allocation115_spill] sm:$0xff] %v8201_v58  ;;  %v8204_v41 = vld [vmem:[#allocation8 + $0x3d8] sm:$0xff]  ;;  %v8207_v10 = vld [vmem:[#allocation8 + $0x3a8] sm:$0xff] }
 0x7f8   :  { %2667 = vmatprep.subr.mxu1 %v8192_v50  ;;  %2598 = vmatprep.subr.mxu0 %v8195_v31  ;;  %10701 = vst [vmem:[#allocation116_spill] sm:$0xff] %v8204_v41  ;;  %10702 = vst [vmem:[#allocation117_spill] sm:$0xff] %v8207_v10  ;;  %v8210_v50 = vld [vmem:[#allocation8 + $0x3d0] sm:$0xff]  ;;  %v8213_v31 = vld [vmem:[#allocation8 + $0x3a0] sm:$0xff] }
 0x7f9   :  { %2668 = vmatpush2.msra.mxu1 %v8198_v32  ;;  %2599 = vmatpush2.msra.mxu0 %v8201_v58  ;;  %10703 = vst [vmem:[#allocation118_spill] sm:$0xff] %v8210_v50  ;;  %10704 = vst [vmem:[#allocation119_spill] sm:$0xff] %v8213_v31  ;;  %v8216_v32 = vld [vmem:[#allocation8 + $0x3b8] sm:$0xff]  ;;  %v8219_v58 = vld [vmem:[#allocation8 + $0x388] sm:$0xff] }
 0x7fa   :  { %2669 = vmatprep.subr.mxu1 %v8204_v41  ;;  %2600 = vmatprep.subr.mxu0 %v8207_v10  ;;  %10705 = vst [vmem:[#allocation120_spill] sm:$0xff] %v8216_v32  ;;  %10706 = vst [vmem:[#allocation121_spill] sm:$0xff] %v8219_v58  ;;  %v8222_v41 = vld [vmem:[#allocation8 + $0x3b0] sm:$0xff]  ;;  %v8225_v10 = vld [vmem:[#allocation8 + $0x380] sm:$0xff] }
 0x7fb   :  { %2670 = vmatpush2.msra.mxu1 %v8210_v50  ;;  %2601 = vmatpush2.msra.mxu0 %v8213_v31  ;;  %10707 = vst [vmem:[#allocation122_spill] sm:$0xff] %v8222_v41  ;;  %10708 = vst [vmem:[#allocation123_spill] sm:$0xff] %v8225_v10  ;;  %v8228_v50 = vld [vmem:[#allocation8 + $0x398] sm:$0xff]  ;;  %v8231_v31 = vld [vmem:[#allocation8 + $0x368] sm:$0xff] }
 0x7fc   :  { %2671 = vmatprep.subr.mxu1 %v8216_v32  ;;  %2602 = vmatprep.subr.mxu0 %v8219_v58  ;;  %10709 = vst [vmem:[#allocation124_spill] sm:$0xff] %v8228_v50  ;;  %10710 = vst [vmem:[#allocation125_spill] sm:$0xff] %v8231_v31  ;;  %v8234_v32 = vld [vmem:[#allocation8 + $0x390] sm:$0xff]  ;;  %v8237_v58 = vld [vmem:[#allocation8 + $0x360] sm:$0xff] }
 0x7fd   :  { %2672 = vmatpush2.msra.mxu1 %v8222_v41  ;;  %2603 = vmatpush2.msra.mxu0 %v8225_v10  ;;  %10711 = vst [vmem:[#allocation126_spill] sm:$0xff] %v8234_v32  ;;  %10712 = vst [vmem:[#allocation127_spill] sm:$0xff] %v8237_v58  ;;  %v8240_v41 = vld [vmem:[#allocation8 + $0x378] sm:$0xff]  ;;  %v8243_v10 = vld [vmem:[#allocation8 + $0x348] sm:$0xff] }
 0x7fe   :  { %2673 = vmatprep.subr.mxu1 %v8228_v50  ;;  %2604 = vmatprep.subr.mxu0 %v8231_v31  ;;  %10713 = vst [vmem:[#allocation128_spill] sm:$0xff] %v8240_v41  ;;  %10714 = vst [vmem:[#allocation129_spill] sm:$0xff] %v8243_v10  ;;  %v8246_v50 = vld [vmem:[#allocation8 + $0x370] sm:$0xff]  ;;  %v8249_v31 = vld [vmem:[#allocation8 + $0x340] sm:$0xff] }
 0x7ff   :  { %2674 = vmatpush2.msra.mxu1 %v8234_v32  ;;  %2605 = vmatpush2.msra.mxu0 %v8237_v58  ;;  %10715 = vst [vmem:[#allocation130_spill] sm:$0xff] %v8246_v50  ;;  %10716 = vst [vmem:[#allocation131_spill] sm:$0xff] %v8249_v31  ;;  %v8252_v32 = vld [vmem:[#allocation8 + $0x358] sm:$0xff]  ;;  %v8255_v58 = vld [vmem:[#allocation8 + $0x328] sm:$0xff] }
 0x800   :  { %2675 = vmatprep.subr.mxu1 %v8240_v41  ;;  %2606 = vmatprep.subr.mxu0 %v8243_v10  ;;  %10717 = vst [vmem:[#allocation132_spill] sm:$0xff] %v8252_v32  ;;  %10718 = vst [vmem:[#allocation133_spill] sm:$0xff] %v8255_v58  ;;  %v8258_v41 = vld [vmem:[#allocation8 + $0x350] sm:$0xff]  ;;  %v8261_v10 = vld [vmem:[#allocation8 + $0x320] sm:$0xff] }
 0x801   :  { %2676 = vmatpush2.msra.mxu1 %v8246_v50  ;;  %2607 = vmatpush2.msra.mxu0 %v8249_v31  ;;  %10719 = vst [vmem:[#allocation134_spill] sm:$0xff] %v8258_v41  ;;  %10720 = vst [vmem:[#allocation135_spill] sm:$0xff] %v8261_v10  ;;  %v8264_v50 = vld [vmem:[#allocation8 + $0x338] sm:$0xff]  ;;  %v8267_v31 = vld [vmem:[#allocation8 + $0x308] sm:$0xff] }
 0x802   :  { %2677 = vmatprep.subr.mxu1 %v8252_v32  ;;  %2608 = vmatprep.subr.mxu0 %v8255_v58  ;;  %10721 = vst [vmem:[#allocation136_spill] sm:$0xff] %v8264_v50  ;;  %10722 = vst [vmem:[#allocation137_spill] sm:$0xff] %v8267_v31  ;;  %v8270_v32 = vld [vmem:[#allocation8 + $0x330] sm:$0xff]  ;;  %v8273_v58 = vld [vmem:[#allocation8 + $0x300] sm:$0xff] }
 0x803   :  { %2678 = vmatpush2.msra.mxu1 %v8258_v41  ;;  %2609 = vmatpush2.msra.mxu0 %v8261_v10  ;;  %10723 = vst [vmem:[#allocation138_spill] sm:$0xff] %v8270_v32  ;;  %10724 = vst [vmem:[#allocation139_spill] sm:$0xff] %v8273_v58  ;;  %v8276_v41 = vld [vmem:[#allocation8 + $0x318] sm:$0xff]  ;;  %v8279_v10 = vld [vmem:[#allocation8 + $0x2e8] sm:$0xff] }
 0x804   :  { %2679 = vmatprep.subr.mxu1 %v8264_v50  ;;  %2610 = vmatprep.subr.mxu0 %v8267_v31  ;;  %10725 = vst [vmem:[#allocation140_spill] sm:$0xff] %v8276_v41  ;;  %10726 = vst [vmem:[#allocation141_spill] sm:$0xff] %v8279_v10  ;;  %v8282_v50 = vld [vmem:[#allocation8 + $0x310] sm:$0xff]  ;;  %v8285_v31 = vld [vmem:[#allocation8 + $0x2e0] sm:$0xff] }
 0x805   :  { %2680 = vmatpush2.msra.mxu1 %v8270_v32  ;;  %2611 = vmatpush2.msra.mxu0 %v8273_v58  ;;  %10727 = vst [vmem:[#allocation142_spill] sm:$0xff] %v8282_v50  ;;  %10728 = vst [vmem:[#allocation143_spill] sm:$0xff] %v8285_v31  ;;  %v8288_v32 = vld [vmem:[#allocation8 + $0x2f8] sm:$0xff]  ;;  %v8291_v58 = vld [vmem:[#allocation8 + $0x2c8] sm:$0xff] }
 0x806   :  { %2681 = vmatprep.subr.mxu1 %v8276_v41  ;;  %2612 = vmatprep.subr.mxu0 %v8279_v10  ;;  %10729 = vst [vmem:[#allocation144_spill] sm:$0xff] %v8288_v32  ;;  %10730 = vst [vmem:[#allocation145_spill] sm:$0xff] %v8291_v58  ;;  %v8294_v41 = vld [vmem:[#allocation8 + $0x2f0] sm:$0xff]  ;;  %v8297_v10 = vld [vmem:[#allocation8 + $0x2c0] sm:$0xff] }
 0x807   :  { %2682 = vmatpush2.msra.mxu1 %v8282_v50  ;;  %2613 = vmatpush2.msra.mxu0 %v8285_v31  ;;  %10731 = vst [vmem:[#allocation146_spill] sm:$0xff] %v8294_v41  ;;  %10732 = vst [vmem:[#allocation147_spill] sm:$0xff] %v8297_v10  ;;  %v8300_v50 = vld [vmem:[#allocation8 + $0x2d8] sm:$0xff]  ;;  %v8303_v31 = vld [vmem:[#allocation8 + $0x2a8] sm:$0xff] }
 0x808   :  { %2683 = vmatprep.subr.mxu1 %v8288_v32  ;;  %2614 = vmatprep.subr.mxu0 %v8291_v58  ;;  %10733 = vst [vmem:[#allocation148_spill] sm:$0xff] %v8300_v50  ;;  %10734 = vst [vmem:[#allocation149_spill] sm:$0xff] %v8303_v31  ;;  %v8306_v32 = vld [vmem:[#allocation8 + $0x2d0] sm:$0xff]  ;;  %v8309_v58 = vld [vmem:[#allocation8 + $0x2a0] sm:$0xff] }
 0x809   :  { %2684 = vmatpush2.msra.mxu1 %v8294_v41  ;;  %2615 = vmatpush2.msra.mxu0 %v8297_v10  ;;  %10735 = vst [vmem:[#allocation150_spill] sm:$0xff] %v8306_v32  ;;  %10736 = vst [vmem:[#allocation151_spill] sm:$0xff] %v8309_v58  ;;  %v8312_v41 = vld [vmem:[#allocation8 + $0x2b8] sm:$0xff]  ;;  %v8315_v10 = vld [vmem:[#allocation8 + $0x288] sm:$0xff] }
 0x80a   :  { %2685 = vmatprep.subr.mxu1 %v8300_v50  ;;  %2616 = vmatprep.subr.mxu0 %v8303_v31  ;;  %10737 = vst [vmem:[#allocation152_spill] sm:$0xff] %v8312_v41  ;;  %10738 = vst [vmem:[#allocation153_spill] sm:$0xff] %v8315_v10  ;;  %v8318_v50 = vld [vmem:[#allocation8 + $0x2b0] sm:$0xff]  ;;  %v8321_v31 = vld [vmem:[#allocation8 + $0x280] sm:$0xff] }
 0x80b   :  { %2686 = vmatpush2.msra.mxu1 %v8306_v32  ;;  %2617 = vmatpush2.msra.mxu0 %v8309_v58  ;;  %10739 = vst [vmem:[#allocation154_spill] sm:$0xff] %v8318_v50  ;;  %10740 = vst [vmem:[#allocation155_spill] sm:$0xff] %v8321_v31  ;;  %v8324_v32 = vld [vmem:[#allocation8 + $0x298] sm:$0xff]  ;;  %v8327_v58 = vld [vmem:[#allocation8 + $0x268] sm:$0xff] }
 0x80c   :  { %2687 = vmatprep.subr.mxu1 %v8312_v41  ;;  %2618 = vmatprep.subr.mxu0 %v8315_v10  ;;  %10741 = vst [vmem:[#allocation156_spill] sm:$0xff] %v8324_v32  ;;  %10742 = vst [vmem:[#allocation157_spill] sm:$0xff] %v8327_v58  ;;  %v8330_v41 = vld [vmem:[#allocation8 + $0x290] sm:$0xff]  ;;  %v8333_v10 = vld [vmem:[#allocation8 + $0x260] sm:$0xff] }
 0x80d   :  { %2688 = vmatpush2.msra.mxu1 %v8318_v50  ;;  %2619 = vmatpush2.msra.mxu0 %v8321_v31  ;;  %10743 = vst [vmem:[#allocation158_spill] sm:$0xff] %v8330_v41  ;;  %10744 = vst [vmem:[#allocation159_spill] sm:$0xff] %v8333_v10  ;;  %v8336_v50 = vld [vmem:[#allocation8 + $0x278] sm:$0xff]  ;;  %v8339_v31 = vld [vmem:[#allocation8 + $0x248] sm:$0xff] }
 0x80e   :  { %2689 = vmatprep.subr.mxu1 %v8324_v32  ;;  %2620 = vmatprep.subr.mxu0 %v8327_v58  ;;  %10745 = vst [vmem:[#allocation160_spill] sm:$0xff] %v8336_v50  ;;  %10746 = vst [vmem:[#allocation161_spill] sm:$0xff] %v8339_v31  ;;  %v8342_v32 = vld [vmem:[#allocation8 + $0x270] sm:$0xff]  ;;  %v8345_v58 = vld [vmem:[#allocation8 + $0x240] sm:$0xff] }
 0x80f   :  { %2690 = vmatpush2.msra.mxu1 %v8330_v41  ;;  %2621 = vmatpush2.msra.mxu0 %v8333_v10  ;;  %10747 = vst [vmem:[#allocation162_spill] sm:$0xff] %v8342_v32  ;;  %10748 = vst [vmem:[#allocation163_spill] sm:$0xff] %v8345_v58  ;;  %v8348_v41 = vld [vmem:[#allocation8 + $0x258] sm:$0xff]  ;;  %v8351_v10 = vld [vmem:[#allocation8 + $0x228] sm:$0xff] }
 0x810   :  { %2691 = vmatprep.subr.mxu1 %v8336_v50  ;;  %2622 = vmatprep.subr.mxu0 %v8339_v31  ;;  %10749 = vst [vmem:[#allocation164_spill] sm:$0xff] %v8348_v41  ;;  %10750 = vst [vmem:[#allocation165_spill] sm:$0xff] %v8351_v10  ;;  %v8354_v50 = vld [vmem:[#allocation8 + $0x250] sm:$0xff]  ;;  %v8357_v31 = vld [vmem:[#allocation8 + $0x220] sm:$0xff] }
 0x811   :  { %2692 = vmatpush2.msra.mxu1 %v8342_v32  ;;  %2623 = vmatpush2.msra.mxu0 %v8345_v58  ;;  %10751 = vst [vmem:[#allocation167_spill] sm:$0xff] %v8354_v50  ;;  %10752 = vst [vmem:[#allocation166_spill] sm:$0xff] %v8357_v31  ;;  %v8360_v32 = vld [vmem:[#allocation8 + $0x238] sm:$0xff]  ;;  %v8363_v58 = vld [vmem:[#allocation8 + $0x208] sm:$0xff] }
 0x812   :  { %2693 = vmatprep.subr.mxu1 %v8348_v41  ;;  %2624 = vmatprep.subr.mxu0 %v8351_v10  ;;  %10753 = vst [vmem:[#allocation168_spill] sm:$0xff] %v8360_v32  ;;  %10754 = vst [vmem:[#allocation169_spill] sm:$0xff] %v8363_v58  ;;  %v8366_v41 = vld [vmem:[#allocation8 + $0x230] sm:$0xff]  ;;  %v8369_v10 = vld [vmem:[#allocation8 + $0x200] sm:$0xff] }
 0x813   :  { %2694 = vmatpush2.msra.mxu1 %v8354_v50  ;;  %2625 = vmatpush2.msra.mxu0 %v8357_v31  ;;  %10755 = vst [vmem:[#allocation170_spill] sm:$0xff] %v8366_v41  ;;  %10756 = vst [vmem:[#allocation171_spill] sm:$0xff] %v8369_v10  ;;  %v8372_v50 = vld [vmem:[#allocation8 + $0x218] sm:$0xff]  ;;  %v4328_v31 = vld [vmem:[#allocation5 + $0x1e8] sm:$0xff] }
 0x814   :  { %2695 = vmatprep.subr.mxu1 %v8360_v32  ;;  %2626 = vmatprep.subr.mxu0 %v8363_v58  ;;  %10757 = vst [vmem:[#allocation172_spill] sm:$0xff] %v8372_v50 }
 0x815   :  { %2696 = vmatpush2.msra.mxu1 %v8366_v41  ;;  %2627 = vmatpush2.msra.mxu0 %v8369_v10 }
 0x816   :  { %2697 = vmatprep.subr.mxu1 %v8372_v50  ;;  %2732 = vmatprep.subr.mxu0 %v4328_v31 }
 0x817   :  { %2698 = vmatpush2.msra.mxu1 %v8375_v25 }
 0x818   :  { %2803 = vmatprep.subr.mxu1 %v7713_v37 }
 0x855   :  { %v2296_v58 = vpop.f32.mrf.mxu0  ;;  %v2367_v10 = vpop.f32.mrf.mxu1 }
 0x856   :  { %v2297_v32 = vadd.f32 %v2296_v58, %v10560_v33  ;;  %v2368_v25 = vadd.f32 %v2367_v10, %v5606_v40 }
 0x857   :  { %v2298_v41 = vpop.f32.mrf.mxu0  ;;  %v2369_v50 = vpop.f32.mrf.mxu1 }
 0x858   :  { %v3221_v27 = vmul.f32 -1.442695, %v2297_v32  ;;  %v2299_v57 = vadd.f32 %v2298_v41, %v10561_v21  ;;  %v2370_v31 = vadd.f32 %v2369_v50, %v5601_v36 }
 0x85a   :  { %3477 = vpow2.f32 %v3221_v27  ;;  %v3222_v34 = vmul.f32 -1.442695, %v2299_v57  ;;  %v3223_v44 = vmul.f32 -1.442695, %v2370_v31 }
 0x85c   :  { %3479 = vpow2.f32 %v3222_v34 }
 0x85d   :  { %3481 = vpow2.f32 %v3223_v44 }
 0x867   :  { %v3478_v29 = vpop.eup %3477 }
 0x868   :  { %v2375_v20 = vadd.f32 1.0, %v3478_v29 }
 0x869   :  { %v3480_v37 = vpop.eup %3479 }
 0x86a   :  { %3483 = vrcp.f32 %v2375_v20  ;;  %v2381_v58 = vadd.f32 1.0, %v3480_v37  ;;  %v3482_v32 = vpop.eup %3481 }
 0x86b   :  { %3485 = vtanh.f32 %v2368_v25  ;;  %v2388_v57 = vadd.f32 1.0, %v3482_v32 }
 0x86c   :  { %3487 = vrcp.f32 %v2381_v58 }
 0x86d   :  { %3489 = vrcp.f32 %v2388_v57 }
 0x877   :  { %v3484_v41 = vpop.eup %3483 }
 0x878   :  { %v3486_v27 = vpop.eup %3485 }
 0x879   :  { %v3488_v21 = vpop.eup %3487  ;;  %v2392_v34 = vmul.f32 %v3486_v27, %v3484_v41 }
 0x87a   :  { %v2391_v33 = vmul.f32 %v3488_v21, %v7721_v5  ;;  %v3490_v29 = vpop.eup %3489 }
 0x87c   :  { %v8384_v50 = vadd.f32 %v2392_v34, %v2391_v33 }
 0x87e   :  { %3491 = vtanh.f32 %v8384_v50 }
 0x88b   :  { %v3492_v10 = vpop.eup %3491 }
 0x88c   :  { %v2395_v44 = vmul.f32 %v3492_v10, %v3490_v29 }
 0x88e   :  { %2628 = vmatprep.mubr.f32.mxu0 %v2395_v44  ;;  %2699 = vmatprep.mubr.f32.mxu1 %v2395_v44 }
 0x895   :  { %v2464_v20 = vpop.f32.mrf.mxu0 }
 0x896   :  { %v2465_v25 = vadd.f32 %v2464_v20, %v9764_v15 }
 0x897   :  { %v2466_v31 = vpop.f32.mrf.mxu0  ;;  %v2535_v21 = vpop.f32.mrf.mxu1 }
 0x898   :  { %v3224_v37 = vmul.f32 -1.442695, %v2465_v25  ;;  %v2467_v58 = vadd.f32 %v2466_v31, %v9765_v19  ;;  %v2536_v41 = vadd.f32 %v2535_v21, %v5205_v48 }
 0x899   :  { %v2537_v33 = vpop.f32.mrf.mxu1 }
 0x89a   :  { %3493 = vpow2.f32 %v3224_v37  ;;  %v3225_v32 = vmul.f32 -1.442695, %v2467_v58  ;;  %v2538_v5 = vadd.f32 %v2537_v33, %v5201_v51 }
 0x89c   :  { %3495 = vpow2.f32 %v3225_v32  ;;  %v3226_v27 = vmul.f32 -1.442695, %v2538_v5 }
 0x89d   :  { %3497 = vtanh.f32 %v2536_v41 }
 0x89e   :  { %3499 = vpow2.f32 %v3226_v27  ;;  %v4330_v27 = vld [vmem:[#allocation5 + $0x1e0] sm:$0xff] }
 0x8a7   :  { %v3494_v57 = vpop.eup %3493 }
 0x8a8   :  { %v2543_v34 = vadd.f32 1.0, %v3494_v57  ;;  %v4331_v57 = vld [vmem:[#allocation5 + $0x1c8] sm:$0xff] }
 0x8a9   :  { %v3496_v29 = vpop.eup %3495 }
 0x8aa   :  { %3501 = vrcp.f32 %v2543_v34  ;;  %v2549_v10 = vadd.f32 1.0, %v3496_v29  ;;  %v3498_v44 = vpop.eup %3497  ;;  %v4332_v34 = vld [vmem:[#allocation5 + $0x1c0] sm:$0xff]  ;;  %v4334_v29 = vld [vmem:[#allocation5 + $0x1a8] sm:$0xff] }
 0x8ab   :  { %v3500_v20 = vpop.eup %3499 }
 0x8ac   :  { %3503 = vrcp.f32 %v2549_v10  ;;  %v2556_v37 = vadd.f32 1.0, %v3500_v20  ;;  %v4335_v10 = vld [vmem:[#allocation5 + $0x1d8] sm:$0xff]  ;;  %v4337_v20 = vld [vmem:[#allocation5 + $0x1d0] sm:$0xff] }
 0x8ae   :  { %3505 = vrcp.f32 %v2556_v37  ;;  %v4340_v37 = vld [vmem:[#allocation5 + $0x180] sm:$0xff] }
 0x8b7   :  { %v3502_v25 = vpop.eup %3501 }
 0x8b8   :  { %v2560_v32 = vmul.f32 %v3502_v25, %v3498_v44  ;;  %v4336_v44 = vld [vmem:[#allocation5 + $0x1a0] sm:$0xff]  ;;  %v4338_v25 = vld [vmem:[#allocation5 + $0x188] sm:$0xff] }
 0x8b9   :  { %v3504_v31 = vpop.eup %3503 }
 0x8ba   :  { %v2559_v58 = vmul.f32 %v3504_v31, %v7729_v26  ;;  %v4333_v26 = vld [vmem:[#allocation5 + $0x1f0] sm:$0xff]  ;;  %v4339_v31 = vld [vmem:[#allocation5 + $0x1b8] sm:$0xff] }
 0x8bb   :  { %v3506_v21 = vpop.eup %3505 }
 0x8bc   :  { %v8392_v33 = vadd.f32 %v2560_v32, %v2559_v58  ;;  %v4341_v58 = vld [vmem:[#allocation5 + $0x1b0] sm:$0xff]  ;;  %v4342_v32 = vld [vmem:[#allocation5 + $0x168] sm:$0xff] }
 0x8be   :  { %3507 = vtanh.f32 %v8392_v33 }
 0x8cb   :  { %v3508_v5 = vpop.eup %3507 }
 0x8cc   :  { %v2563_v41 = vmul.f32 %v3508_v5, %v3506_v21  ;;  %v4343_v21 = vld [vmem:[#allocation5 + $0x198] sm:$0xff]  ;;  %v4344_v5 = vld [vmem:[#allocation5 + $0x160] sm:$0xff] }
 0x8ce   :  { %2629 = vmatmul.mubr.f32.vlgmr.msra.gmra.mxu0 %v2563_v41  ;;  %2700 = vmatmul.mubr.f32.vlgmr.msra.gmra.mxu1 %v2563_v41 }
 0x8cf   :  { %2733 = vmatpush1.msra.mxu0 %v4330_v27  ;;  %2796 = vmatprep.mubr.f32.mxu0 %v2563_v41  ;;  %v4346_v27 = vld [vmem:[#allocation5 + $0x148] sm:$0xff] }
 0x8d0   :  { %2734 = vmatprep.subr.mxu0 %v4331_v57  ;;  %2867 = vmatprep.mubr.f32.mxu1 %v2563_v41  ;;  %v4345_v41 = vld [vmem:[#allocation5 + $0x190] sm:$0xff]  ;;  %v4347_v57 = vld [vmem:[#allocation5 + $0x178] sm:$0xff] }
 0x8d1   :  { %2735 = vmatpush1.msra.mxu0 %v4332_v34  ;;  %2804 = vmatpush1.msra.mxu1 %v4333_v26  ;;  %v4348_v34 = vld [vmem:[#allocation5 + $0x140] sm:$0xff]  ;;  %v4349_v26 = vld [vmem:[#allocation5 + $0x170] sm:$0xff] }
 0x8d2   :  { %2736 = vmatprep.subr.mxu0 %v4334_v29  ;;  %2805 = vmatprep.subr.mxu1 %v4335_v10  ;;  %v4350_v29 = vld [vmem:[#allocation5 + $0x128] sm:$0xff]  ;;  %v4351_v10 = vld [vmem:[#allocation5 + $0x158] sm:$0xff] }
 0x8d3   :  { %2737 = vmatpush1.msra.mxu0 %v4336_v44  ;;  %2806 = vmatpush1.msra.mxu1 %v4337_v20  ;;  %v4352_v44 = vld [vmem:[#allocation5 + $0x120] sm:$0xff]  ;;  %v4353_v20 = vld [vmem:[#allocation5 + $0x150] sm:$0xff] }
 0x8d4   :  { %2738 = vmatprep.subr.mxu0 %v4338_v25  ;;  %2807 = vmatprep.subr.mxu1 %v4339_v31  ;;  %v4354_v25 = vld [vmem:[#allocation5 + $0x108] sm:$0xff]  ;;  %v4355_v31 = vld [vmem:[#allocation5 + $0x138] sm:$0xff] }
 0x8d5   :  { %2739 = vmatpush1.msra.mxu0 %v4340_v37  ;;  %2808 = vmatpush1.msra.mxu1 %v4341_v58  ;;  %v4356_v37 = vld [vmem:[#allocation5 + $0x100] sm:$0xff]  ;;  %v4357_v58 = vld [vmem:[#allocation5 + $0x130] sm:$0xff] }
 0x8d6   :  { %2740 = vmatprep.subr.mxu0 %v4342_v32  ;;  %2809 = vmatprep.subr.mxu1 %v4343_v21  ;;  %v4358_v32 = vld [vmem:[#allocation5 + $0xe8] sm:$0xff]  ;;  %v4359_v21 = vld [vmem:[#allocation5 + $0x118] sm:$0xff] }
 0x8d7   :  { %2741 = vmatpush1.msra.mxu0 %v4344_v5  ;;  %2810 = vmatpush1.msra.mxu1 %v4345_v41  ;;  %v4360_v5 = vld [vmem:[#allocation5 + $0xe0] sm:$0xff]  ;;  %v4361_v41 = vld [vmem:[#allocation5 + $0x110] sm:$0xff] }
 0x8d8   :  { %2742 = vmatprep.subr.mxu0 %v4346_v27  ;;  %2811 = vmatprep.subr.mxu1 %v4347_v57  ;;  %v4362_v27 = vld [vmem:[#allocation5 + $0xc8] sm:$0xff]  ;;  %v4363_v57 = vld [vmem:[#allocation5 + $0xf8] sm:$0xff] }
 0x8d9   :  { %2743 = vmatpush1.msra.mxu0 %v4348_v34  ;;  %2812 = vmatpush1.msra.mxu1 %v4349_v26  ;;  %v4364_v34 = vld [vmem:[#allocation5 + $0xc0] sm:$0xff]  ;;  %v4365_v26 = vld [vmem:[#allocation5 + $0xf0] sm:$0xff] }
 0x8da   :  { %2744 = vmatprep.subr.mxu0 %v4350_v29  ;;  %2813 = vmatprep.subr.mxu1 %v4351_v10  ;;  %v4366_v29 = vld [vmem:[#allocation5 + $0xa8] sm:$0xff]  ;;  %v4367_v10 = vld [vmem:[#allocation5 + $0xd8] sm:$0xff] }
 0x8db   :  { %2745 = vmatpush1.msra.mxu0 %v4352_v44  ;;  %2814 = vmatpush1.msra.mxu1 %v4353_v20  ;;  %v4368_v44 = vld [vmem:[#allocation5 + $0xa0] sm:$0xff]  ;;  %v4369_v20 = vld [vmem:[#allocation5 + $0xd0] sm:$0xff] }
 0x8dc   :  { %2746 = vmatprep.subr.mxu0 %v4354_v25  ;;  %2815 = vmatprep.subr.mxu1 %v4355_v31  ;;  %v4370_v25 = vld [vmem:[#allocation5 + $0x88] sm:$0xff]  ;;  %v4371_v31 = vld [vmem:[#allocation5 + $0xb8] sm:$0xff] }
 0x8dd   :  { %2747 = vmatpush1.msra.mxu0 %v4356_v37  ;;  %2816 = vmatpush1.msra.mxu1 %v4357_v58  ;;  %v4372_v37 = vld [vmem:[#allocation5 + $0x80] sm:$0xff]  ;;  %v4373_v58 = vld [vmem:[#allocation5 + $0xb0] sm:$0xff] }
 0x8de   :  { %2748 = vmatprep.subr.mxu0 %v4358_v32  ;;  %2817 = vmatprep.subr.mxu1 %v4359_v21  ;;  %v4374_v32 = vld [vmem:[#allocation5 + $0x68] sm:$0xff]  ;;  %v4375_v21 = vld [vmem:[#allocation5 + $0x98] sm:$0xff] }
 0x8df   :  { %2749 = vmatpush1.msra.mxu0 %v4360_v5  ;;  %2818 = vmatpush1.msra.mxu1 %v4361_v41  ;;  %v4376_v5 = vld [vmem:[#allocation5 + $0x60] sm:$0xff]  ;;  %v4377_v41 = vld [vmem:[#allocation5 + $0x90] sm:$0xff] }
 0x8e0   :  { %2750 = vmatprep.subr.mxu0 %v4362_v27  ;;  %2819 = vmatprep.subr.mxu1 %v4363_v57  ;;  %v4378_v27 = vld [vmem:[#allocation5 + $0x48] sm:$0xff]  ;;  %v4379_v57 = vld [vmem:[#allocation5 + $0x78] sm:$0xff] }
 0x8e1   :  { %2751 = vmatpush1.msra.mxu0 %v4364_v34  ;;  %2820 = vmatpush1.msra.mxu1 %v4365_v26  ;;  %v4380_v34 = vld [vmem:[#allocation5 + $0x40] sm:$0xff]  ;;  %v4381_v26 = vld [vmem:[#allocation5 + $0x70] sm:$0xff] }
 0x8e2   :  { %2752 = vmatprep.subr.mxu0 %v4366_v29  ;;  %2821 = vmatprep.subr.mxu1 %v4367_v10  ;;  %v4382_v29 = vld [vmem:[#allocation5 + $0x28] sm:$0xff]  ;;  %v4383_v10 = vld [vmem:[#allocation5 + $0x20] sm:$0xff] }
 0x8e3   :  { %2753 = vmatpush1.msra.mxu0 %v4368_v44  ;;  %2822 = vmatpush1.msra.mxu1 %v4369_v20  ;;  %v4384_v44 = vld [vmem:[#allocation5 + $0x8] sm:$0xff]  ;;  %v4385_v20 = vld [vmem:[#allocation5] sm:$0xff] }
 0x8e4   :  { %2754 = vmatprep.subr.mxu0 %v4370_v25  ;;  %2823 = vmatprep.subr.mxu1 %v4371_v31  ;;  %v4386_v25 = vld [vmem:[#allocation5 + $0x3e8] sm:$0xff]  ;;  %v4387_v31 = vld [vmem:[#allocation5 + $0x3e0] sm:$0xff] }
 0x8e5   :  { %2755 = vmatpush1.msra.mxu0 %v4372_v37  ;;  %2824 = vmatpush1.msra.mxu1 %v4373_v58  ;;  %v10798_v37 = vld [vmem:[#allocation58_spill] sm:$0xff]  ;;  %v10799_v58 = vld [vmem:[#allocation57_spill] sm:$0xff] }
 0x8e6   :  { %2756 = vmatprep.subr.mxu0 %v4374_v32  ;;  %2825 = vmatprep.subr.mxu1 %v4375_v21  ;;  %v10800_v32 = vld [vmem:[#allocation60_spill] sm:$0xff]  ;;  %v10801_v21 = vld [vmem:[#allocation59_spill] sm:$0xff] }
 0x8e7   :  { %2757 = vmatpush1.msra.mxu0 %v4376_v5  ;;  %2826 = vmatpush1.msra.mxu1 %v4377_v41  ;;  %v10802_v5 = vld [vmem:[#allocation62_spill] sm:$0xff]  ;;  %v10803_v41 = vld [vmem:[#allocation61_spill] sm:$0xff] }
 0x8e8   :  { %2758 = vmatprep.subr.mxu0 %v4378_v27  ;;  %2827 = vmatprep.subr.mxu1 %v4379_v57  ;;  %v10804_v27 = vld [vmem:[#allocation64_spill] sm:$0xff]  ;;  %v10805_v57 = vld [vmem:[#allocation63_spill] sm:$0xff] }
 0x8e9   :  { %2759 = vmatpush1.msra.mxu0 %v4380_v34  ;;  %2828 = vmatpush1.msra.mxu1 %v4381_v26  ;;  %v10806_v34 = vld [vmem:[#allocation66_spill] sm:$0xff]  ;;  %v10807_v26 = vld [vmem:[#allocation65_spill] sm:$0xff] }
 0x8ea   :  { %2760 = vmatprep.subr.mxu0 %v4382_v29  ;;  %2829 = vmatprep.subr.mxu1 %v7785_v45  ;;  %v10759_v45 = vld [vmem:[#allocation21_spill] sm:$0xff]  ;;  %v10808_v29 = vld [vmem:[#allocation68_spill] sm:$0xff] }
 0x8eb   :  { %2761 = vmatpush1.msra.mxu0 %v4383_v10  ;;  %2830 = vmatpush1.msra.mxu1 %v7789_v35  ;;  %v10760_v35 = vld [vmem:[#allocation17_spill] sm:$0xff]  ;;  %v10809_v10 = vld [vmem:[#allocation67_spill] sm:$0xff] }
 0x8ec   :  { %2762 = vmatprep.subr.mxu0 %v4384_v44  ;;  %2831 = vmatprep.subr.mxu1 %v7793_v59  ;;  %v10761_v59 = vld [vmem:[#allocation23_spill] sm:$0xff]  ;;  %v10810_v44 = vld [vmem:[#allocation70_spill] sm:$0xff] }
 0x8ed   :  { %2763 = vmatpush1.msra.mxu0 %v4385_v20  ;;  %2832 = vmatpush1.msra.mxu1 %v7797_v47  ;;  %v10762_v47 = vld [vmem:[#allocation18_spill] sm:$0xff]  ;;  %v10811_v20 = vld [vmem:[#allocation69_spill] sm:$0xff] }
 0x8ee   :  { %2764 = vmatprep.subr.mxu0 %v4386_v25  ;;  %2833 = vmatprep.subr.mxu1 %v7801_v30  ;;  %v10763_v30 = vld [vmem:[#allocation25_spill] sm:$0xff]  ;;  %v10812_v25 = vld [vmem:[#allocation72_spill] sm:$0xff] }
 0x8ef   :  { %2765 = vmatpush2.msra.mxu0 %v4387_v31  ;;  %2834 = vmatpush1.msra.mxu1 %v7805_v63  ;;  %v10764_v63 = vld [vmem:[#allocation20_spill] sm:$0xff]  ;;  %v10813_v31 = vld [vmem:[#allocation71_spill] sm:$0xff] }
 0x8f0   :  { %2766 = vmatprep.subr.mxu0 %v7808_v52  ;;  %2835 = vmatprep.subr.mxu1 %v7811_v7  ;;  %v10765_v52 = vld [vmem:[#allocation27_spill] sm:$0xff]  ;;  %v10766_v7 = vld [vmem:[#allocation22_spill] sm:$0xff] }
 0x8f1   :  { %2767 = vmatpush2.msra.mxu0 %v7814_v28  ;;  %2836 = vmatpush2.msra.mxu1 %v7817_v9  ;;  %v10767_v28 = vld [vmem:[#allocation29_spill] sm:$0xff]  ;;  %v10768_v9 = vld [vmem:[#allocation24_spill] sm:$0xff] }
 0x8f2   :  { %2768 = vmatprep.subr.mxu0 %v7820_v42  ;;  %2837 = vmatprep.subr.mxu1 %v7823_v24  ;;  %v10769_v42 = vld [vmem:[#allocation31_spill] sm:$0xff]  ;;  %v10770_v24 = vld [vmem:[#allocation26_spill] sm:$0xff] }
 0x8f3   :  { %2769 = vmatpush2.msra.mxu0 %v7826_v55  ;;  %2838 = vmatpush2.msra.mxu1 %v7829_v46  ;;  %v10771_v55 = vld [vmem:[#allocation33_spill] sm:$0xff]  ;;  %v10772_v46 = vld [vmem:[#allocation28_spill] sm:$0xff] }
 0x8f4   :  { %2770 = vmatprep.subr.mxu0 %v7832_v60  ;;  %2839 = vmatprep.subr.mxu1 %v7835_v49  ;;  %v10773_v60 = vld [vmem:[#allocation34_spill] sm:$0xff] }
 0x8f5   :  { %2771 = vmatpush2.msra.mxu0 %v7838_v1  ;;  %2840 = vmatpush2.msra.mxu1 %v7841_v23  ;;  %v10774_v49 = vld [vmem:[#allocation30_spill] sm:$0xff]  ;;  %v10775_v1 = vld [vmem:[#allocation35_spill] sm:$0xff]  ;;  %v10776_v23 = vld [vmem:[#allocation32_spill] sm:$0xff] }
 0x8f6   :  { %2772 = vmatprep.subr.mxu0 %v7844_v61  ;;  %2841 = vmatprep.subr.mxu1 %v7847_v43  ;;  %v10777_v61 = vld [vmem:[#allocation37_spill] sm:$0xff]  ;;  %v10778_v43 = vld [vmem:[#allocation39_spill] sm:$0xff] }
 0x8f7   :  { %2773 = vmatpush2.msra.mxu0 %v7850_v22  ;;  %2842 = vmatpush2.msra.mxu1 %v7853_v53  ;;  %v10779_v22 = vld [vmem:[#allocation41_spill] sm:$0xff] }
 0x8f8   :  { %2774 = vmatprep.subr.mxu0 %v7856_v0  ;;  %2843 = vmatprep.subr.mxu1 %v7859_v38  ;;  %v2731_v53 = vld [vmem:[#allocation2 + $0x38] sm:$0xff]  ;;  %v10780_v0 = vld [vmem:[#allocation36_spill] sm:$0xff] }
 0x8f9   :  { %2775 = vmatpush2.msra.mxu0 %v7862_v39  ;;  %2844 = vmatpush2.msra.mxu1 %v7865_v62  ;;  %v10781_v38 = vld [vmem:[#allocation38_spill] sm:$0xff]  ;;  %v10782_v39 = vld [vmem:[#allocation43_spill] sm:$0xff]  ;;  %v10783_v62 = vld [vmem:[#allocation40_spill] sm:$0xff] }
 0x8fa   :  { %2776 = vmatprep.subr.mxu0 %v7868_v56  ;;  %2845 = vmatprep.subr.mxu1 %v7871_v2  ;;  %v10784_v56 = vld [vmem:[#allocation44_spill] sm:$0xff]  ;;  %v10785_v2 = vld [vmem:[#allocation42_spill] sm:$0xff] }
 0x8fb   :  { %2777 = vmatpush2.msra.mxu0 %v7874_v3  ;;  %2846 = vmatpush2.msra.mxu1 %v7877_v4  ;;  %v10786_v3 = vld [vmem:[#allocation46_spill] sm:$0xff]  ;;  %v10787_v4 = vld [vmem:[#allocation45_spill] sm:$0xff] }
 0x8fc   :  { %2778 = vmatprep.subr.mxu0 %v7880_v6  ;;  %2847 = vmatprep.subr.mxu1 %v7883_v8  ;;  %v10788_v6 = vld [vmem:[#allocation47_spill] sm:$0xff]  ;;  %v10789_v8 = vld [vmem:[#allocation48_spill] sm:$0xff] }
 0x8fd   :  { %2779 = vmatpush2.msra.mxu0 %v7886_v11  ;;  %2848 = vmatpush2.msra.mxu1 %v7889_v12  ;;  %v10790_v11 = vld [vmem:[#allocation49_spill] sm:$0xff]  ;;  %v10791_v12 = vld [vmem:[#allocation50_spill] sm:$0xff] }
 0x8fe   :  { %2780 = vmatprep.subr.mxu0 %v7892_v13  ;;  %2849 = vmatprep.subr.mxu1 %v7895_v14  ;;  %v10792_v13 = vld [vmem:[#allocation51_spill] sm:$0xff]  ;;  %v10793_v14 = vld [vmem:[#allocation52_spill] sm:$0xff] }
 0x8ff   :  { %2781 = vmatpush2.msra.mxu0 %v7898_v16  ;;  %2850 = vmatpush2.msra.mxu1 %v7901_v17  ;;  %v10794_v16 = vld [vmem:[#allocation54_spill] sm:$0xff]  ;;  %v10795_v17 = vld [vmem:[#allocation53_spill] sm:$0xff] }
 0x900   :  { %2782 = vmatprep.subr.mxu0 %v7904_v18  ;;  %2851 = vmatprep.subr.mxu1 %v7907_v54  ;;  %v10796_v18 = vld [vmem:[#allocation56_spill] sm:$0xff]  ;;  %v10797_v54 = vld [vmem:[#allocation55_spill] sm:$0xff] }
 0x901   :  { %2783 = vmatpush2.msra.mxu0 %v10759_v45  ;;  %2852 = vmatpush2.msra.mxu1 %v10760_v35  ;;  %v10814_v45 = vld [vmem:[#allocation74_spill] sm:$0xff]  ;;  %v10815_v35 = vld [vmem:[#allocation73_spill] sm:$0xff] }
 0x902   :  { %2784 = vmatprep.subr.mxu0 %v10761_v59  ;;  %2853 = vmatprep.subr.mxu1 %v10762_v47  ;;  %v10816_v59 = vld [vmem:[#allocation76_spill] sm:$0xff]  ;;  %v10817_v47 = vld [vmem:[#allocation75_spill] sm:$0xff] }
 0x903   :  { %2785 = vmatpush2.msra.mxu0 %v10763_v30  ;;  %2854 = vmatpush2.msra.mxu1 %v10764_v63  ;;  %v10818_v30 = vld [vmem:[#allocation78_spill] sm:$0xff]  ;;  %v10819_v63 = vld [vmem:[#allocation77_spill] sm:$0xff] }
 0x904   :  { %2786 = vmatprep.subr.mxu0 %v10765_v52  ;;  %2855 = vmatprep.subr.mxu1 %v10766_v7  ;;  %v10820_v52 = vld [vmem:[#allocation80_spill] sm:$0xff]  ;;  %v10821_v7 = vld [vmem:[#allocation79_spill] sm:$0xff] }
 0x905   :  { %2787 = vmatpush2.msra.mxu0 %v10767_v28  ;;  %2856 = vmatpush2.msra.mxu1 %v10768_v9  ;;  %v10822_v28 = vld [vmem:[#allocation82_spill] sm:$0xff]  ;;  %v10823_v9 = vld [vmem:[#allocation81_spill] sm:$0xff] }
 0x906   :  { %2788 = vmatprep.subr.mxu0 %v10769_v42  ;;  %2857 = vmatprep.subr.mxu1 %v10770_v24  ;;  %v10824_v42 = vld [vmem:[#allocation84_spill] sm:$0xff]  ;;  %v10825_v24 = vld [vmem:[#allocation83_spill] sm:$0xff] }
 0x907   :  { %2789 = vmatpush2.msra.mxu0 %v10771_v55  ;;  %2858 = vmatpush2.msra.mxu1 %v10772_v46  ;;  %v10826_v55 = vld [vmem:[#allocation86_spill] sm:$0xff]  ;;  %v10827_v46 = vld [vmem:[#allocation85_spill] sm:$0xff] }
 0x908   :  { %2790 = vmatprep.subr.mxu0 %v10773_v60  ;;  %2859 = vmatprep.subr.mxu1 %v10774_v49  ;;  %v10828_v60 = vld [vmem:[#allocation88_spill] sm:$0xff]  ;;  %v10829_v49 = vld [vmem:[#allocation87_spill] sm:$0xff] }
 0x909   :  { %2791 = vmatpush2.msra.mxu0 %v10775_v1  ;;  %2860 = vmatpush2.msra.mxu1 %v10776_v23  ;;  %v10830_v1 = vld [vmem:[#allocation90_spill] sm:$0xff]  ;;  %v10831_v23 = vld [vmem:[#allocation89_spill] sm:$0xff] }
 0x90a   :  { %2792 = vmatprep.subr.mxu0 %v10777_v61  ;;  %2861 = vmatprep.subr.mxu1 %v10778_v43  ;;  %v10832_v61 = vld [vmem:[#allocation92_spill] sm:$0xff]  ;;  %v10833_v43 = vld [vmem:[#allocation91_spill] sm:$0xff] }
 0x90b   :  { %2793 = vmatpush2.msra.mxu0 %v10779_v22  ;;  %2862 = vmatpush2.msra.mxu1 %v10780_v0  ;;  %v10834_v22 = vld [vmem:[#allocation94_spill] sm:$0xff]  ;;  %v10836_v0 = vld [vmem:[#allocation96_spill] sm:$0xff] }
 0x90c   :  { %2794 = vmatprep.subr.mxu0 %v10781_v38  ;;  %2863 = vmatprep.subr.mxu1 %v10782_v39  ;;  %v10837_v38 = vld [vmem:[#allocation95_spill] sm:$0xff]  ;;  %v10838_v39 = vld [vmem:[#allocation98_spill] sm:$0xff] }
 0x90d   :  { %2795 = vmatpush2.msra.mxu0 %v10783_v62  ;;  %2864 = vmatpush2.msra.mxu1 %v10784_v56  ;;  %v10839_v62 = vld [vmem:[#allocation97_spill] sm:$0xff]  ;;  %v10840_v56 = vld [vmem:[#allocation100_spill] sm:$0xff] }
 0x90e   :  { %2797 = vmatmul.mubr.f32.vlgmr.msra.gmra.mxu0 %v2731_v53  ;;  %2865 = vmatprep.subr.mxu1 %v10785_v2  ;;  %v10841_v2 = vld [vmem:[#allocation99_spill] sm:$0xff] }
 0x90f   :  { %2866 = vmatpush2.msra.mxu1 %v10786_v3  ;;  %2898 = vmatprep.subr.mxu0 %v10787_v4  ;;  %v10842_v3 = vld [vmem:[#allocation102_spill] sm:$0xff]  ;;  %v10843_v4 = vld [vmem:[#allocation101_spill] sm:$0xff] }
 0x910   :  { %2868 = vmatmul.mubr.f32.vlgmr.msra.gmra.mxu1 %v2731_v53  ;;  %2969 = vmatprep.subr.mxu1 %v10788_v6  ;;  %v10835_v53 = vld [vmem:[#allocation93_spill] sm:$0xff]  ;;  %v10844_v6 = vld [vmem:[#allocation104_spill] sm:$0xff] }
 0x911   :  { %2899 = vmatpush1.msra.mxu0 %v10789_v8  ;;  %2970 = vmatpush1.msra.mxu1 %v10790_v11  ;;  %v10845_v8 = vld [vmem:[#allocation103_spill] sm:$0xff]  ;;  %v10846_v11 = vld [vmem:[#allocation106_spill] sm:$0xff] }
 0x912   :  { %2900 = vmatprep.subr.mxu0 %v10791_v12  ;;  %2971 = vmatprep.subr.mxu1 %v10792_v13  ;;  %v10847_v12 = vld [vmem:[#allocation105_spill] sm:$0xff]  ;;  %v10848_v13 = vld [vmem:[#allocation108_spill] sm:$0xff] }
 0x913   :  { %2901 = vmatpush1.msra.mxu0 %v10793_v14  ;;  %2972 = vmatpush1.msra.mxu1 %v10794_v16  ;;  %v10849_v14 = vld [vmem:[#allocation107_spill] sm:$0xff]  ;;  %v10850_v16 = vld [vmem:[#allocation110_spill] sm:$0xff] }
 0x914   :  { %2902 = vmatprep.subr.mxu0 %v10795_v17  ;;  %2973 = vmatprep.subr.mxu1 %v10796_v18  ;;  %v10851_v17 = vld [vmem:[#allocation109_spill] sm:$0xff]  ;;  %v10852_v18 = vld [vmem:[#allocation112_spill] sm:$0xff] }
 0x915   :  { %2903 = vmatpush1.msra.mxu0 %v10797_v54  ;;  %2974 = vmatpush1.msra.mxu1 %v10798_v37  ;;  %v10853_v54 = vld [vmem:[#allocation111_spill] sm:$0xff]  ;;  %v10854_v37 = vld [vmem:[#allocation114_spill] sm:$0xff] }
 0x916   :  { %2904 = vmatprep.subr.mxu0 %v10799_v58  ;;  %2975 = vmatprep.subr.mxu1 %v10800_v32  ;;  %v10855_v58 = vld [vmem:[#allocation113_spill] sm:$0xff]  ;;  %v10856_v32 = vld [vmem:[#allocation116_spill] sm:$0xff] }
 0x917   :  { %2905 = vmatpush1.msra.mxu0 %v10801_v21  ;;  %2976 = vmatpush1.msra.mxu1 %v10802_v5  ;;  %v10857_v21 = vld [vmem:[#allocation115_spill] sm:$0xff]  ;;  %v10858_v5 = vld [vmem:[#allocation118_spill] sm:$0xff] }
 0x918   :  { %2906 = vmatprep.subr.mxu0 %v10803_v41  ;;  %2977 = vmatprep.subr.mxu1 %v10804_v27  ;;  %v10859_v41 = vld [vmem:[#allocation117_spill] sm:$0xff]  ;;  %v10860_v27 = vld [vmem:[#allocation120_spill] sm:$0xff] }
 0x919   :  { %2907 = vmatpush1.msra.mxu0 %v10805_v57  ;;  %2978 = vmatpush1.msra.mxu1 %v10806_v34  ;;  %v10861_v57 = vld [vmem:[#allocation119_spill] sm:$0xff]  ;;  %v10862_v34 = vld [vmem:[#allocation122_spill] sm:$0xff] }
 0x91a   :  { %2908 = vmatprep.subr.mxu0 %v10807_v26  ;;  %2979 = vmatprep.subr.mxu1 %v10808_v29  ;;  %v10863_v26 = vld [vmem:[#allocation121_spill] sm:$0xff]  ;;  %v10864_v29 = vld [vmem:[#allocation124_spill] sm:$0xff] }
 0x91b   :  { %2909 = vmatpush1.msra.mxu0 %v10809_v10  ;;  %2980 = vmatpush1.msra.mxu1 %v10810_v44  ;;  %v10865_v10 = vld [vmem:[#allocation123_spill] sm:$0xff]  ;;  %v10866_v44 = vld [vmem:[#allocation126_spill] sm:$0xff] }
 0x91c   :  { %2910 = vmatprep.subr.mxu0 %v10811_v20  ;;  %2981 = vmatprep.subr.mxu1 %v10812_v25  ;;  %v10867_v20 = vld [vmem:[#allocation125_spill] sm:$0xff]  ;;  %v10868_v25 = vld [vmem:[#allocation128_spill] sm:$0xff] }
 0x91d   :  { %2911 = vmatpush1.msra.mxu0 %v10813_v31  ;;  %2982 = vmatpush1.msra.mxu1 %v10814_v45  ;;  %v10869_v31 = vld [vmem:[#allocation127_spill] sm:$0xff]  ;;  %v10870_v45 = vld [vmem:[#allocation130_spill] sm:$0xff] }
 0x91e   :  { %2912 = vmatprep.subr.mxu0 %v10815_v35  ;;  %2983 = vmatprep.subr.mxu1 %v10816_v59  ;;  %v10871_v35 = vld [vmem:[#allocation129_spill] sm:$0xff]  ;;  %v10872_v59 = vld [vmem:[#allocation132_spill] sm:$0xff] }
 0x91f   :  { %2913 = vmatpush1.msra.mxu0 %v10817_v47  ;;  %2984 = vmatpush1.msra.mxu1 %v10818_v30  ;;  %v10873_v47 = vld [vmem:[#allocation131_spill] sm:$0xff]  ;;  %v10874_v30 = vld [vmem:[#allocation134_spill] sm:$0xff] }
 0x920   :  { %2914 = vmatprep.subr.mxu0 %v10819_v63  ;;  %2985 = vmatprep.subr.mxu1 %v10820_v52  ;;  %v10875_v63 = vld [vmem:[#allocation133_spill] sm:$0xff]  ;;  %v10876_v52 = vld [vmem:[#allocation136_spill] sm:$0xff] }
 0x921   :  { %2915 = vmatpush1.msra.mxu0 %v10821_v7  ;;  %2986 = vmatpush1.msra.mxu1 %v10822_v28  ;;  %v10877_v7 = vld [vmem:[#allocation135_spill] sm:$0xff]  ;;  %v10878_v28 = vld [vmem:[#allocation138_spill] sm:$0xff] }
 0x922   :  { %2916 = vmatprep.subr.mxu0 %v10823_v9  ;;  %2987 = vmatprep.subr.mxu1 %v10824_v42  ;;  %v10879_v9 = vld [vmem:[#allocation137_spill] sm:$0xff]  ;;  %v10880_v42 = vld [vmem:[#allocation140_spill] sm:$0xff] }
 0x923   :  { %2917 = vmatpush1.msra.mxu0 %v10825_v24  ;;  %2988 = vmatpush1.msra.mxu1 %v10826_v55  ;;  %v10881_v24 = vld [vmem:[#allocation139_spill] sm:$0xff]  ;;  %v10882_v55 = vld [vmem:[#allocation142_spill] sm:$0xff] }
 0x924   :  { %2918 = vmatprep.subr.mxu0 %v10827_v46  ;;  %2989 = vmatprep.subr.mxu1 %v10828_v60  ;;  %v10883_v46 = vld [vmem:[#allocation141_spill] sm:$0xff]  ;;  %v10884_v60 = vld [vmem:[#allocation144_spill] sm:$0xff] }
 0x925   :  { %2919 = vmatpush1.msra.mxu0 %v10829_v49  ;;  %2990 = vmatpush1.msra.mxu1 %v10830_v1  ;;  %v10885_v49 = vld [vmem:[#allocation143_spill] sm:$0xff]  ;;  %v10886_v1 = vld [vmem:[#allocation146_spill] sm:$0xff] }
 0x926   :  { %2920 = vmatprep.subr.mxu0 %v10831_v23  ;;  %2991 = vmatprep.subr.mxu1 %v10832_v61  ;;  %v10887_v23 = vld [vmem:[#allocation145_spill] sm:$0xff]  ;;  %v10888_v61 = vld [vmem:[#allocation148_spill] sm:$0xff] }
 0x927   :  { %2921 = vmatpush1.msra.mxu0 %v10833_v43  ;;  %2992 = vmatpush1.msra.mxu1 %v10834_v22  ;;  %v10889_v43 = vld [vmem:[#allocation147_spill] sm:$0xff]  ;;  %v10890_v22 = vld [vmem:[#allocation150_spill] sm:$0xff] }
 0x928   :  { %2922 = vmatprep.subr.mxu0 %v10835_v53  ;;  %2993 = vmatprep.subr.mxu1 %v10836_v0  ;;  %v10891_v53 = vld [vmem:[#allocation149_spill] sm:$0xff]  ;;  %v10892_v0 = vld [vmem:[#allocation152_spill] sm:$0xff] }
 0x929   :  { %2923 = vmatpush1.msra.mxu0 %v10837_v38  ;;  %2994 = vmatpush1.msra.mxu1 %v10838_v39  ;;  %v10893_v38 = vld [vmem:[#allocation151_spill] sm:$0xff]  ;;  %v10894_v39 = vld [vmem:[#allocation154_spill] sm:$0xff] }
 0x92a   :  { %2924 = vmatprep.subr.mxu0 %v10839_v62  ;;  %2995 = vmatprep.subr.mxu1 %v10840_v56  ;;  %v10895_v62 = vld [vmem:[#allocation153_spill] sm:$0xff]  ;;  %v10896_v56 = vld [vmem:[#allocation156_spill] sm:$0xff] }
 0x92b   :  { %2925 = vmatpush1.msra.mxu0 %v10841_v2  ;;  %2996 = vmatpush1.msra.mxu1 %v10842_v3  ;;  %v10897_v2 = vld [vmem:[#allocation155_spill] sm:$0xff]  ;;  %v10898_v3 = vld [vmem:[#allocation158_spill] sm:$0xff] }
 0x92c   :  { %2926 = vmatprep.subr.mxu0 %v10843_v4  ;;  %2997 = vmatprep.subr.mxu1 %v10844_v6  ;;  %v10899_v4 = vld [vmem:[#allocation157_spill] sm:$0xff]  ;;  %v10900_v6 = vld [vmem:[#allocation160_spill] sm:$0xff] }
 0x92d   :  { %2927 = vmatpush1.msra.mxu0 %v10845_v8  ;;  %2998 = vmatpush1.msra.mxu1 %v10846_v11  ;;  %v10901_v8 = vld [vmem:[#allocation159_spill] sm:$0xff]  ;;  %v10902_v11 = vld [vmem:[#allocation162_spill] sm:$0xff] }
 0x92e   :  { %2928 = vmatprep.subr.mxu0 %v10847_v12  ;;  %2999 = vmatprep.subr.mxu1 %v10848_v13  ;;  %v10903_v12 = vld [vmem:[#allocation161_spill] sm:$0xff]  ;;  %v10904_v13 = vld [vmem:[#allocation164_spill] sm:$0xff] }
 0x92f   :  { %2929 = vmatpush1.msra.mxu0 %v10849_v14  ;;  %3000 = vmatpush1.msra.mxu1 %v10850_v16  ;;  %v10905_v14 = vld [vmem:[#allocation163_spill] sm:$0xff] }
 0x930   :  { %2930 = vmatprep.subr.mxu0 %v10851_v17  ;;  %3001 = vmatprep.subr.mxu1 %v10852_v18  ;;  %v10906_v16 = vld [vmem:[#allocation167_spill] sm:$0xff]  ;;  %v10907_v17 = vld [vmem:[#allocation165_spill] sm:$0xff]  ;;  %v10908_v18 = vld [vmem:[#allocation168_spill] sm:$0xff] }
 0x931   :  { %2931 = vmatpush2.msra.mxu0 %v10853_v54  ;;  %3002 = vmatpush2.msra.mxu1 %v10854_v37  ;;  %v10909_v54 = vld [vmem:[#allocation166_spill] sm:$0xff] }
 0x932   :  { %2932 = vmatprep.subr.mxu0 %v10855_v58  ;;  %3003 = vmatprep.subr.mxu1 %v10856_v32  ;;  %v10910_v37 = vld [vmem:[#allocation170_spill] sm:$0xff]  ;;  %v10911_v58 = vld [vmem:[#allocation169_spill] sm:$0xff]  ;;  %v10912_v32 = vld [vmem:[#allocation172_spill] sm:$0xff] }
 0x933   :  { %2933 = vmatpush2.msra.mxu0 %v10857_v21  ;;  %3004 = vmatpush2.msra.mxu1 %v10858_v5  ;;  %v10913_v21 = vld [vmem:[#allocation171_spill] sm:$0xff]  ;;  %v10914_v5 = vld [vmem:[#allocation173_spill] sm:$0xff] }
 0x934   :  { %2934 = vmatprep.subr.mxu0 %v10859_v41  ;;  %3005 = vmatprep.subr.mxu1 %v10860_v27  ;;  %v10915_v41 = vmov 0.0  }
 0x935   :  { %2935 = vmatpush2.msra.mxu0 %v10861_v57  ;;  %3006 = vmatpush2.msra.mxu1 %v10862_v34  ;;  %v10916_v57 = vld [vmem:[#allocation19_spill] sm:$0xff] }
 0x936   :  { %2936 = vmatprep.subr.mxu0 %v10863_v26  ;;  %3007 = vmatprep.subr.mxu1 %v10864_v29 }
 0x937   :  { %2937 = vmatpush2.msra.mxu0 %v10865_v10  ;;  %3008 = vmatpush2.msra.mxu1 %v10866_v44  ;;  %v10917_v10 = vld [vmem:[#allocation16_spill] sm:$0xff] }
 0x938   :  { %2938 = vmatprep.subr.mxu0 %v10867_v20  ;;  %3009 = vmatprep.subr.mxu1 %v10868_v25 }
 0x939   :  { %2939 = vmatpush2.msra.mxu0 %v10869_v31  ;;  %3010 = vmatpush2.msra.mxu1 %v10870_v45 }
 0x93a   :  { %2940 = vmatprep.subr.mxu0 %v10871_v35  ;;  %3011 = vmatprep.subr.mxu1 %v10872_v59 }
 0x93b   :  { %2941 = vmatpush2.msra.mxu0 %v10873_v47  ;;  %3012 = vmatpush2.msra.mxu1 %v10874_v30 }
 0x93c   :  { %2942 = vmatprep.subr.mxu0 %v10875_v63  ;;  %3013 = vmatprep.subr.mxu1 %v10876_v52 }
 0x93d   :  { %2943 = vmatpush2.msra.mxu0 %v10877_v7  ;;  %3014 = vmatpush2.msra.mxu1 %v10878_v28 }
 0x93e   :  { %2944 = vmatprep.subr.mxu0 %v10879_v9  ;;  %3015 = vmatprep.subr.mxu1 %v10880_v42 }
 0x93f   :  { %2945 = vmatpush2.msra.mxu0 %v10881_v24  ;;  %3016 = vmatpush2.msra.mxu1 %v10882_v55 }
 0x940   :  { %2946 = vmatprep.subr.mxu0 %v10883_v46  ;;  %3017 = vmatprep.subr.mxu1 %v10884_v60 }
 0x941   :  { %2947 = vmatpush2.msra.mxu0 %v10885_v49  ;;  %3018 = vmatpush2.msra.mxu1 %v10886_v1 }
 0x942   :  { %2948 = vmatprep.subr.mxu0 %v10887_v23  ;;  %3019 = vmatprep.subr.mxu1 %v10888_v61 }
 0x943   :  { %2949 = vmatpush2.msra.mxu0 %v10889_v43  ;;  %3020 = vmatpush2.msra.mxu1 %v10890_v22 }
 0x944   :  { %2950 = vmatprep.subr.mxu0 %v10891_v53  ;;  %3021 = vmatprep.subr.mxu1 %v10892_v0 }
 0x945   :  { %2951 = vmatpush2.msra.mxu0 %v10893_v38  ;;  %3022 = vmatpush2.msra.mxu1 %v10894_v39 }
 0x946   :  { %2952 = vmatprep.subr.mxu0 %v10895_v62  ;;  %3023 = vmatprep.subr.mxu1 %v10896_v56 }
 0x947   :  { %2953 = vmatpush2.msra.mxu0 %v10897_v2  ;;  %3024 = vmatpush2.msra.mxu1 %v10898_v3 }
 0x948   :  { %2954 = vmatprep.subr.mxu0 %v10899_v4  ;;  %3025 = vmatprep.subr.mxu1 %v10900_v6 }
 0x949   :  { %2955 = vmatpush2.msra.mxu0 %v10901_v8  ;;  %3026 = vmatpush2.msra.mxu1 %v10902_v11 }
 0x94a   :  { %2956 = vmatprep.subr.mxu0 %v10903_v12  ;;  %3027 = vmatprep.subr.mxu1 %v10904_v13 }
 0x94b   :  { %2957 = vmatpush2.msra.mxu0 %v10905_v14  ;;  %3028 = vmatpush2.msra.mxu1 %v10906_v16 }
 0x94c   :  { %2958 = vmatprep.subr.mxu0 %v10907_v17  ;;  %3029 = vmatprep.subr.mxu1 %v10908_v18 }
 0x94d   :  { %2959 = vmatpush2.msra.mxu0 %v10909_v54  ;;  %3030 = vmatpush2.msra.mxu1 %v10910_v37  ;;  %v3079_v54 = vld [vmem:[#allocation10 + $0x78] sm:$0xff]  ;;  %v3078_v37 = vld [vmem:[#allocation10 + $0x70] sm:$0xff] }
 0x94e   :  { %2960 = vmatprep.subr.mxu0 %v10911_v58  ;;  %3031 = vmatprep.subr.mxu1 %v10912_v32  ;;  %v3077_v58 = vld [vmem:[#allocation10 + $0x68] sm:$0xff]  ;;  %v3075_v32 = vld [vmem:[#allocation10 + $0x58] sm:$0xff] }
 0x94f   :  { %2961 = vmatpush2.msra.mxu0 %v10913_v21  ;;  %3032 = vmatpush2.msra.mxu1 %v10914_v5  ;;  %v3074_v21 = vld [vmem:[#allocation10 + $0x50] sm:$0xff]  ;;  %v3073_v5 = vld [vmem:[#allocation10 + $0x48] sm:$0xff] }
 0x950   :  { %3254 = vmatprep.subr.mxu0 %v10915_v41 }
 0x98e   :  { %v2630_v27 = vpop.f32.mrf.mxu0  ;;  %v2701_v20 = vpop.f32.mrf.mxu1 }
 0x98f   :  { %v2631_v34 = vadd.f32 %v2630_v27, %v10916_v57  ;;  %v2702_v47 = vadd.f32 %v2701_v20, %v5606_v40  ;;  %v3072_v27 = vld [vmem:[#allocation10 + $0x40] sm:$0xff]  ;;  %v3067_v20 = vld [vmem:[#allocation10 + $0x18] sm:$0xff] }
 0x990   :  { %v2632_v26 = vpop.f32.mrf.mxu0  ;;  %v2703_v31 = vpop.f32.mrf.mxu1 }
 0x991   :  { %v3227_v29 = vmul.f32 -1.442695, %v2631_v34  ;;  %v2633_v44 = vadd.f32 %v2632_v26, %v10917_v10  ;;  %v2704_v45 = vadd.f32 %v2703_v31, %v5601_v36  ;;  %v3071_v34 = vld [vmem:[#allocation10 + $0x38] sm:$0xff]  ;;  %v3070_v26 = vld [vmem:[#allocation10 + $0x30] sm:$0xff]  ;;  %v3065_v31 = vld [vmem:[#allocation10 + $0x8] sm:$0xff] }
 0x993   :  { %3509 = vpow2.f32 %v3227_v29  ;;  %v3228_v25 = vmul.f32 -1.442695, %v2633_v44  ;;  %v3229_v35 = vmul.f32 -1.442695, %v2704_v45  ;;  %v3069_v29 = vld [vmem:[#allocation10 + $0x28] sm:$0xff]  ;;  %v3068_v44 = vld [vmem:[#allocation10 + $0x20] sm:$0xff] }
 0x994   :  { %v3064_v45 = vld [vmem:[#allocation10] sm:$0xff] }
 0x995   :  { %3511 = vpow2.f32 %v3228_v25  ;;  %v3066_v25 = vld [vmem:[#allocation10 + $0x10] sm:$0xff] }
 0x996   :  { %3513 = vpow2.f32 %v3229_v35 }
 0x9a0   :  { %v3510_v59 = vpop.eup %3509 }
 0x9a1   :  { %v2709_v30 = vadd.f32 1.0, %v3510_v59 }
 0x9a2   :  { %v3512_v63 = vpop.eup %3511 }
 0x9a3   :  { %3515 = vrcp.f32 %v2709_v30  ;;  %v2715_v52 = vadd.f32 1.0, %v3512_v63  ;;  %v3514_v7 = vpop.eup %3513 }
 0x9a4   :  { %3517 = vtanh.f32 %v2702_v47  ;;  %v2722_v24 = vadd.f32 1.0, %v3514_v7 }
 0x9a5   :  { %3519 = vrcp.f32 %v2715_v52 }
 0x9a6   :  { %3521 = vrcp.f32 %v2722_v24 }
 0x9b0   :  { %v3516_v28 = vpop.eup %3515 }
 0x9b1   :  { %v3518_v9 = vpop.eup %3517 }
 0x9b2   :  { %v3520_v42 = vpop.eup %3519  ;;  %v2726_v55 = vmul.f32 %v3518_v9, %v3516_v28 }
 0x9b3   :  { %v2725_v46 = vmul.f32 %v3520_v42, %v8384_v50  ;;  %v3522_v49 = vpop.eup %3521 }
 0x9b5   :  { %v8597_v60 = vadd.f32 %v2726_v55, %v2725_v46 }
 0x9b7   :  { %3523 = vtanh.f32 %v8597_v60 }
 0x9c4   :  { %v3524_v1 = vpop.eup %3523 }
 0x9c5   :  { %v2729_v23 = vmul.f32 %v3524_v1, %v3522_v49 }
 0x9c7   :  { %2962 = vmatprep.mubr.f32.mxu0 %v2729_v23  ;;  %3033 = vmatprep.mubr.f32.mxu1 %v2729_v23 }
 0x9ce   :  { %v2798_v61 = vpop.f32.mrf.mxu0 }
 0x9cf   :  { %v2799_v43 = vadd.f32 %v2798_v61, %v9764_v15 }
 0x9d0   :  { %v2800_v22 = vpop.f32.mrf.mxu0  ;;  %v2869_v50 = vpop.f32.mrf.mxu1 }
 0x9d1   :  { %v3230_v53 = vmul.f32 -1.442695, %v2799_v43  ;;  %v2801_v0 = vadd.f32 %v2800_v22, %v9765_v19  ;;  %v2870_v56 = vadd.f32 %v2869_v50, %v5205_v48 }
 0x9d2   :  { %v2871_v39 = vpop.f32.mrf.mxu1 }
 0x9d3   :  { %3525 = vpow2.f32 %v3230_v53  ;;  %v3231_v38 = vmul.f32 -1.442695, %v2801_v0  ;;  %v2872_v62 = vadd.f32 %v2871_v39, %v5201_v51  ;;  %v3236_v39 = vld [vmem:[%s8639_s6] ss:$0 sm:$0xff]  ;;  %s4488_s6 = scalar_lea.vmem %s3178_s29, 128 }
 0x9d4   :  { %p4489_p11 = scmp.ne.s32.totalorder %s3178_s29, %s4488_s6  ;;  %p4494_p13 = scmp.lt.s32.totalorder %s4488_s6, %s4488_s6 }
 0x9d5   :  { %3527 = vpow2.f32 %v3231_v38  ;;  %v3232_v2 = vmul.f32 -1.442695, %v2872_v62  ;;  %v10918_v38 = vlaneseq }
 0x9d6   :  { %3529 = vtanh.f32 %v2870_v56  ;;  %p4495_p0 = por %p4494_p13, %p4493_p12 }
 0x9d7   :  { %3531 = vpow2.f32 %v3232_v2  ;;  %v3158_v50 = vand.u32 127, %v10918_v38 }
 0x9d8   :  { %p4496_p1 = pnand %p4495_p0, %p4489_p11 }
 0x9d9   :  { %vm3159_vm1 = vcmp.lt.s32.totalorder %v3158_v50, 2 }
 0x9e0   :  { %v3526_v3 = vpop.eup %3525 }
 0x9e1   :  { %v2877_v4 = vadd.f32 1.0, %v3526_v3 }
 0x9e2   :  { %v3528_v6 = vpop.eup %3527 }
 0x9e3   :  { %3533 = vrcp.f32 %v2877_v4  ;;  %v2883_v15 = vadd.f32 1.0, %v3528_v6  ;;  %v3530_v8 = vpop.eup %3529 }
 0x9e4   :  { %v3532_v19 = vpop.eup %3531 }
 0x9e5   :  { %3535 = vrcp.f32 %v2883_v15  ;;  %v2890_v13 = vadd.f32 1.0, %v3532_v19 }
 0x9e7   :  { %3537 = vrcp.f32 %v2890_v13 }
 0x9f0   :  { %v3534_v11 = vpop.eup %3533 }
 0x9f1   :  { %v2894_v16 = vmul.f32 %v3534_v11, %v3530_v8 }
 0x9f2   :  { %v3536_v12 = vpop.eup %3535 }
 0x9f3   :  { %v2893_v14 = vmul.f32 %v3536_v12, %v8392_v33  ;;  %v3076_v33 = vld [vmem:[#allocation10 + $0x60] sm:$0xff] }
 0x9f4   :  { %v3538_v48 = vpop.eup %3537 }
 0x9f5   :  { %v2895_v51 = vadd.f32 %v2894_v16, %v2893_v14 }
 0x9f7   :  { %3539 = vtanh.f32 %v2895_v51 }
 0xa04   :  { %v3540_v17 = vpop.eup %3539 }
 0xa05   :  { %v2897_v18 = vmul.f32 %v3540_v17, %v3538_v48 }
 0xa07   :  { %2963 = vmatmul.mubr.f32.vlgmr.msra.gmra.mxu0 %v2897_v18  ;;  %3034 = vmatmul.mubr.f32.vlgmr.msra.gmra.mxu1 %v2897_v18 }
 0xa08   :  { %3255 = vmatpush3.msra.mxu0 %v3079_v54  ;;  %3286 = vmatprep.mubr.msk.f32.mxu0 %vm4526_vm0, %v10915_v41 }
 0xa09   :  { %3256 = vmatprep.subr.mxu0 %v10915_v41 }
 0xa0a   :  { %3257 = vmatpush3.msra.mxu0 %v3078_v37 }
 0xa0b   :  { %3258 = vmatprep.subr.mxu0 %v10915_v41 }
 0xa0c   :  { %3259 = vmatpush3.msra.mxu0 %v3077_v58 }
 0xa0d   :  { %3260 = vmatprep.subr.mxu0 %v10915_v41 }
 0xa0e   :  { %3261 = vmatpush3.msra.mxu0 %v3076_v33 }
 0xa0f   :  { %3262 = vmatprep.subr.mxu0 %v10915_v41 }
 0xa10   :  { %3263 = vmatpush3.msra.mxu0 %v3075_v32 }
 0xa11   :  { %3264 = vmatprep.subr.mxu0 %v10915_v41 }
 0xa12   :  { %3265 = vmatpush3.msra.mxu0 %v3074_v21 }
 0xa13   :  { %3266 = vmatprep.subr.mxu0 %v10915_v41 }
 0xa14   :  { %3267 = vmatpush3.msra.mxu0 %v3073_v5 }
 0xa15   :  { %3268 = vmatprep.subr.mxu0 %v10915_v41 }
 0xa16   :  { %3269 = vmatpush3.msra.mxu0 %v3072_v27 }
 0xa17   :  { %3270 = vmatprep.subr.mxu0 %v10915_v41 }
 0xa18   :  { %3271 = vmatpush3.msra.mxu0 %v3071_v34 }
 0xa19   :  { %3272 = vmatprep.subr.mxu0 %v10915_v41 }
 0xa1a   :  { %3273 = vmatpush3.msra.mxu0 %v3070_v26 }
 0xa1b   :  { %3274 = vmatprep.subr.mxu0 %v10915_v41 }
 0xa1c   :  { %3275 = vmatpush3.msra.mxu0 %v3069_v29 }
 0xa1d   :  { %3276 = vmatprep.subr.mxu0 %v10915_v41 }
 0xa1e   :  { %3277 = vmatpush3.msra.mxu0 %v3068_v44 }
 0xa1f   :  { %3278 = vmatprep.subr.mxu0 %v10915_v41 }
 0xa20   :  { %3279 = vmatpush3.msra.mxu0 %v3067_v20 }
 0xa21   :  { %3280 = vmatprep.subr.mxu0 %v10915_v41 }
 0xa22   :  { %3281 = vmatpush3.msra.mxu0 %v3066_v25 }
 0xa23   :  { %3282 = vmatprep.subr.mxu0 %v10915_v41 }
 0xa24   :  { %3283 = vmatpush3.msra.mxu0 %v3065_v31 }
 0xa25   :  { %3284 = vmatprep.subr.mxu0 %v10915_v41 }
 0xa26   :  { %3285 = vmatpush3.msra.mxu0 %v3064_v45 }
 0xac7   :  { %v2964_v35 = vpop.f32.mrf.mxu0  ;;  %v3035_v52 = vpop.f32.mrf.mxu1 }
 0xac8   :  { %v2965_v59 = vadd.f32 %v2964_v35, %v10916_v57  ;;  %v3036_v55 = vadd.f32 %v3035_v52, %v5606_v40 }
 0xac9   :  { %v2966_v47 = vpop.f32.mrf.mxu0  ;;  %v3037_v28 = vpop.f32.mrf.mxu1 }
 0xaca   :  { %v3233_v30 = vmul.f32 -1.442695, %v2965_v59  ;;  %v2967_v63 = vadd.f32 %v2966_v47, %v10917_v10  ;;  %v3038_v9 = vadd.f32 %v3037_v28, %v5601_v36 }
 0xacc   :  { %3541 = vpow2.f32 %v3233_v30  ;;  %v3234_v7 = vmul.f32 -1.442695, %v2967_v63  ;;  %v3235_v42 = vmul.f32 -1.442695, %v3038_v9 }
 0xace   :  { %3543 = vpow2.f32 %v3234_v7 }
 0xacf   :  { %3545 = vpow2.f32 %v3235_v42 }
 0xad9   :  { %v3542_v24 = vpop.eup %3541 }
 0xada   :  { %v3043_v41 = vadd.f32 1.0, %v3542_v24 }
 0xadb   :  { %v3544_v46 = vpop.eup %3543 }
 0xadc   :  { %3547 = vrcp.f32 %v3043_v41  ;;  %v3049_v57 = vadd.f32 1.0, %v3544_v46  ;;  %v3546_v49 = vpop.eup %3545 }
 0xadd   :  { %3549 = vtanh.f32 %v3036_v55  ;;  %v3056_v61 = vadd.f32 1.0, %v3546_v49 }
 0xade   :  { %3551 = vrcp.f32 %v3049_v57 }
 0xadf   :  { %3553 = vrcp.f32 %v3056_v61 }
 0xae9   :  { %v3548_v10 = vpop.eup %3547 }
 0xaea   :  { %v3550_v1 = vpop.eup %3549 }
 0xaeb   :  { %v3552_v23 = vpop.eup %3551  ;;  %v3060_v43 = vmul.f32 %v3550_v1, %v3548_v10 }
 0xaec   :  { %v3059_v22 = vmul.f32 %v3552_v23, %v8597_v60  ;;  %v3554_v53 = vpop.eup %3553 }
 0xaee   :  { %v3061_v36 = vadd.f32 %v3060_v43, %v3059_v22 }
 0xaf0   :  { %3555 = vtanh.f32 %v3061_v36 }
 0xafd   :  { %v3556_v40 = vpop.eup %3555 }
 0xafe   :  { %v3063_v0 = vmul.f32 %v3556_v40, %v3554_v53 }
 0xb00   :  { %3287 = vmatmul.mubr.f32.vlgmr.msra.gmra.mxu0 %v3063_v0 }
 0xbc0   :  { %v3153_v62 = vpop.f32.mrf.mxu0 }
 0xbc1   :  { %v3154_v56 = vadd.f32 %v3236_v39, %v3153_v62 }
 0xbc2   :  { %v3288_v2 = vpop.f32.mrf.mxu0 }
 0xbc3   :  { %v3160_v3 = vsel %vm3159_vm1, %v3154_v56, -1e+30 }
 0xbc4   :  { %3161 = vmax.xlane.f32.xlu0 %v3160_v3 }
 0xc4d   :  { %v3162_v60 = vpop.xlane.xlu0 %3161 }
 0xc4e   :  { %v3163_v4 = vsub.f32 %v3160_v3, %v3162_v60 }
 0xc50   :  { %v3164_v6 = vmul.f32 1.442695, %v3163_v4 }
 0xc52   :  { %3557 = vpow2.f32 %v3164_v6 }
 0xc5f   :  { %v3558_v15 = vpop.eup %3557 }
 0xc60   :  { %3166 = vadd.xlane.f32.xlu0 %v3558_v15 }
 0xce9   :  { %v3167_v8 = vpop.xlane.xlu0 %3166 }
 0xcea   :  { %3559 = vrcp.f32 %v3167_v8 }
 0xcf7   :  { %v3560_v19 = vpop.eup %3559 }
 0xcf8   :  { %v3169_v11 = vmul.f32 %v3560_v19, %v3558_v15 }
 0xcfa   :  { %3170 = vst [vmem:[#allocation11] sm:$0xff] %v3169_v11 }
 0xcfb   :  { %4499 = shalt.err (!%p4496_p1)
}
 0xcfc   :  { %3180 = dma.vmem_to_hbm [thread:$0]  %s3178_s29, 128, %s8640_s7, [#allocation4]  }
 0xcfd   :  { %4514 = dma.done.wait [#allocation4], 128  }
 0xcfe   :  { %4515 = vsyncadd [#allocation4], 4294967168 }
 0xcff   :  { %3184 = vsyncpa [#allocation3], 1 }
 0xd00   :  { %3185 = vsyncpa [#allocation6], 1 }
 0xd01   :  { %3186 = vsyncpa [#allocation9], 1 }
 0xd02   :  { %3187 = vsyncpa [#allocation4], 1 }

</bundles_post_ra>
